<compile_context>
chip_gen: v6e
topology: v6e:2x2x1
jax: 0.10.0
libtpu: 0.0.40
codegen_flags: <defaults>
</compile_context>

<pallas_src>
import jax
import jax.numpy as jnp
from jax.experimental import pallas as pl
from jax.experimental.pallas import tpu as pltpu

BN_EPS = 1e-5
NUM_PBLOCKS = 3


# ---------------------------------------------------------------------------
# In-kernel math helpers (operate on loaded arrays, not refs)
# ---------------------------------------------------------------------------
def _bn_relu(y, gamma, beta):
    # BatchNorm1d training-mode (biased) batch statistics over the batch axis.
    # The whole batch is resident in the kernel, so these are exact.
    mean = jnp.mean(y, axis=0, keepdims=True)
    var = jnp.mean((y - mean) ** 2, axis=0, keepdims=True)   # two-pass, stable
    # Fold the BN affine into a single scale/shift; rsqrt goes to the EUP slot.
    scale = gamma * jax.lax.rsqrt(var + BN_EPS)
    shift = beta - mean * scale
    return jnp.maximum(y * scale + shift, 0.0)


def _lin_bn_relu(x, w_bf16, gamma, beta):
    # Linear WITHOUT bias: the bias is cancelled by BN's mean subtraction.
    # bf16 weights are upcast on-chip; accumulation stays in f32.
    y = jnp.dot(x, w_bf16.astype(jnp.float32),
                preferred_element_type=jnp.float32)
    return _bn_relu(y, gamma, beta)


# ---------------------------------------------------------------------------
# Single fused kernel: entire NetA forward
# ---------------------------------------------------------------------------
def neta_kernel(*refs):
    idx = 0
    h = refs[idx][...]
    b = refs[idx + 1][...]
    idx += 2

    # --- 3x PairwiseBlock -------------------------------------------------
    for _ in range(NUM_PBLOCKS):
        w1, g1, be1, w2, g2, be2 = (refs[idx + k] for k in range(6))
        idx += 6
        # Residual is added AFTER the ReLU; both new values depend only on
        # the OLD h and b, so compute before swapping.
        h_new = _lin_bn_relu(h, w1[...], g1[...], be1[...]) + b
        b_new = _lin_bn_relu(b, w2[...], g2[...], be2[...]) + h
        h, b = h_new, b_new

    # --- BlockB b1 (768 -> 384) without materializing concat([h, b]) ------
    w_top, w_bot, g, be = (refs[idx + k] for k in range(4))
    idx += 4
    y = (jnp.dot(h, w_top[...].astype(jnp.float32),
                 preferred_element_type=jnp.float32)
         + jnp.dot(b, w_bot[...].astype(jnp.float32),
                   preferred_element_type=jnp.float32))
    x = _bn_relu(y, g[...], be[...])
    # TODO(synk): Dropout's random masking is applied as identity (inference
    # behaviour); training-mode mask-and-scale is not implemented.

    # --- BlockB b2 (384->192), b3 (192->96) --------------------------------
    for _ in range(2):
        w, g, be = (refs[idx + k] for k in range(3))
        idx += 3
        x = _lin_bn_relu(x, w[...], g[...], be[...])

    # --- Classifier head fused as epilogue: Linear(96->4, with bias)+softmax
    fc_w = refs[idx][...]
    fc_b = refs[idx + 1][...]
    out_ref = refs[idx + 2]
    logits = jnp.dot(x, fc_w.astype(jnp.float32),
                     preferred_element_type=jnp.float32) + fc_b
    m = jnp.max(logits, axis=1, keepdims=True)
    e = jnp.exp(logits - m)
    out_ref[...] = (e / jnp.sum(e, axis=1, keepdims=True)).astype(out_ref.dtype)


# ---------------------------------------------------------------------------
# Wrapper: one pallas_call, all arrays full-block in VMEM, no grid
# ---------------------------------------------------------------------------
def _full_spec(arr):
    ndim = arr.ndim

    def index_map():
        return (0,) * ndim

    return pl.BlockSpec(arr.shape, index_map)


def neta_forward(headline, body, params):
    args = [headline, body]
    for blk in params["pblocks"]:
        args += [blk["w1"], blk["g1"], blk["be1"],
                 blk["w2"], blk["g2"], blk["be2"]]
    w_top, w_bot, g1, be1 = params["b1"]
    args += [w_top, w_bot, g1, be1]
    for name in ("b2", "b3"):
        w, g, be = params[name]
        args += [w, g, be]
    args += [params["fc1_w"], params["fc1_b"]]

    n = headline.shape[0]
    return pl.pallas_call(
        neta_kernel,
        out_shape=jax.ShapeDtypeStruct((n, 4), jnp.float32),
        in_specs=[_full_spec(a) for a in args],
        out_specs=pl.BlockSpec((n, 4), lambda: (0, 0)),
        compiler_params=pltpu.CompilerParams(
            # Explicit budget (review, v7x): total resident footprint is
            # ~2.6 MB bf16 weights + small f32 BN params + (8, <=768)
            # activations -- far under 32 MiB scoped / 64 MiB physical.
            vmem_limit_bytes=32 * 1024 * 1024,
        ),
    )(*args)


# ---------------------------------------------------------------------------
# Pure-JAX reference (standard BN formulation, uses the concat) for checking
# ---------------------------------------------------------------------------
def _ref_block(x, w, gamma, beta):
    y = jnp.dot(x, w.astype(jnp.float32),
                precision=jax.lax.Precision.HIGHEST)
    mean = jnp.mean(y, axis=0, keepdims=True)
    var = jnp.mean((y - mean) ** 2, axis=0, keepdims=True)
    y_hat = (y - mean) / jnp.sqrt(var + BN_EPS)
    return jnp.maximum(gamma * y_hat + beta, 0.0)


def reference_forward(headline, body, params):
    h, b = headline, body
    for blk in params["pblocks"]:
        h_new = _ref_block(h, blk["w1"], blk["g1"], blk["be1"]) + b
        b_new = _ref_block(b, blk["w2"], blk["g2"], blk["be2"]) + h
        h, b = h_new, b_new
    x = jnp.concatenate([h, b], axis=1)
    w_top, w_bot, g, be = params["b1"]
    w_full = jnp.concatenate([w_top, w_bot], axis=0)
    x = _ref_block(x, w_full, g, be)
    for name in ("b2", "b3"):
        w, g, be = params[name]
        x = _ref_block(x, w, g, be)
    logits = jnp.dot(x, params["fc1_w"].astype(jnp.float32),
                     precision=jax.lax.Precision.HIGHEST) + params["fc1_b"]
    return jax.nn.softmax(logits, axis=1)


# ---------------------------------------------------------------------------
# Deterministic parameter construction (mimics nn.Linear fan-in init)
# ---------------------------------------------------------------------------
def _linear_weight(key, in_f, out_f):
    bound = 1.0 / jnp.sqrt(jnp.float32(in_f))
    w = jax.random.uniform(key, (out_f, in_f), minval=-bound, maxval=bound,
                           dtype=jnp.float32)
    # (in_f, out_f) for row-major x @ w, stored bf16 (halves the weight DMA).
    return w.T.astype(jnp.bfloat16)


def _bn_params(kg, kb, f):
    gamma = 1.0 + 0.1 * jax.random.normal(kg, (1, f), dtype=jnp.float32)
    beta = 0.1 * jax.random.normal(kb, (1, f), dtype=jnp.float32)
    return gamma, beta


if __name__ == "__main__":
    key = jax.random.PRNGKey(0)
    batch = 8
    # The residual adds and the cat->768 into BlockB(768,384) force
    # in_features == out_features == 384 for the pairwise blocks.
    feat = 384

    key_iter = iter(jax.random.split(key, 40))

    def nk():
        return next(key_iter)

    headline = jax.random.normal(nk(), (batch, feat), dtype=jnp.float32)
    body = jax.random.normal(nk(), (batch, feat), dtype=jnp.float32)

    params = {"pblocks": []}
    for _ in range(NUM_PBLOCKS):
        g1, be1 = _bn_params(nk(), nk(), feat)
        g2, be2 = _bn_params(nk(), nk(), feat)
        params["pblocks"].append({
            "w1": _linear_weight(nk(), feat, feat), "g1": g1, "be1": be1,
            "w2": _linear_weight(nk(), feat, feat), "g2": g2, "be2": be2,
        })

    # BlockB b1: store the (768, 384) weight split into its top/bottom 384
    # rows so the kernel can skip the concatenate([h, b]).
    w_b1 = _linear_weight(nk(), 768, 384)            # (768, 384) bf16
    g, be = _bn_params(nk(), nk(), 384)
    params["b1"] = (w_b1[:feat], w_b1[feat:], g, be)

    for name, (i_f, o_f) in (("b2", (384, 192)), ("b3", (192, 96))):
        g, be = _bn_params(nk(), nk(), o_f)
        params[name] = (_linear_weight(nk(), i_f, o_f), g, be)

    params["fc1_w"] = _linear_weight(nk(), 96, 4)
    fc1_bound = 1.0 / jnp.sqrt(jnp.float32(96))
    params["fc1_b"] = jax.random.uniform(nk(), (1, 4), minval=-fc1_bound,
                                         maxval=fc1_bound, dtype=jnp.float32)

    out = neta_forward(headline, body, params)
    out = jax.block_until_ready(out)

    ref = reference_forward(headline, body, params)
    assert out.shape == (batch, 4)
    assert jnp.allclose(jnp.sum(out, axis=1), 1.0, atol=1e-5)
    assert jnp.allclose(out, ref, atol=2e-4, rtol=2e-4), "mismatch vs reference"

    print("KERNEL_OK")
</pallas_src>

<mosaic_0001>
module attributes {stable_mosaic.version = 11 : i64} {
  func.func @neta_kernel(%arg0: memref<8x384xf32, #tpu.memory_space<vmem>>, %arg1: memref<8x384xf32, #tpu.memory_space<vmem>>, %arg2: memref<384x384xbf16, #tpu.memory_space<vmem>>, %arg3: memref<1x384xf32, #tpu.memory_space<vmem>>, %arg4: memref<1x384xf32, #tpu.memory_space<vmem>>, %arg5: memref<384x384xbf16, #tpu.memory_space<vmem>>, %arg6: memref<1x384xf32, #tpu.memory_space<vmem>>, %arg7: memref<1x384xf32, #tpu.memory_space<vmem>>, %arg8: memref<384x384xbf16, #tpu.memory_space<vmem>>, %arg9: memref<1x384xf32, #tpu.memory_space<vmem>>, %arg10: memref<1x384xf32, #tpu.memory_space<vmem>>, %arg11: memref<384x384xbf16, #tpu.memory_space<vmem>>, %arg12: memref<1x384xf32, #tpu.memory_space<vmem>>, %arg13: memref<1x384xf32, #tpu.memory_space<vmem>>, %arg14: memref<384x384xbf16, #tpu.memory_space<vmem>>, %arg15: memref<1x384xf32, #tpu.memory_space<vmem>>, %arg16: memref<1x384xf32, #tpu.memory_space<vmem>>, %arg17: memref<384x384xbf16, #tpu.memory_space<vmem>>, %arg18: memref<1x384xf32, #tpu.memory_space<vmem>>, %arg19: memref<1x384xf32, #tpu.memory_space<vmem>>, %arg20: memref<384x384xbf16, #tpu.memory_space<vmem>>, %arg21: memref<384x384xbf16, #tpu.memory_space<vmem>>, %arg22: memref<1x384xf32, #tpu.memory_space<vmem>>, %arg23: memref<1x384xf32, #tpu.memory_space<vmem>>, %arg24: memref<384x192xbf16, #tpu.memory_space<vmem>>, %arg25: memref<1x192xf32, #tpu.memory_space<vmem>>, %arg26: memref<1x192xf32, #tpu.memory_space<vmem>>, %arg27: memref<192x96xbf16, #tpu.memory_space<vmem>>, %arg28: memref<1x96xf32, #tpu.memory_space<vmem>>, %arg29: memref<1x96xf32, #tpu.memory_space<vmem>>, %arg30: memref<96x4xbf16, #tpu.memory_space<vmem>>, %arg31: memref<1x4xf32, #tpu.memory_space<vmem>>, %arg32: memref<8x4xf32, #tpu.memory_space<vmem>>) attributes {dimension_semantics = [], scalar_prefetch = 0 : i64, scratch_operands = 0 : i64, tpu.core_type = #tpu.core_type<tc>} {
    %c0 = arith.constant 0 : index
    %c0_0 = arith.constant 0 : index
    %0 = vector.load %arg0[%c0, %c0_0] : memref<8x384xf32, #tpu.memory_space<vmem>>, vector<8x384xf32>
    %c0_1 = arith.constant 0 : index
    %c0_2 = arith.constant 0 : index
    %1 = vector.load %arg1[%c0_1, %c0_2] : memref<8x384xf32, #tpu.memory_space<vmem>>, vector<8x384xf32>
    %c0_3 = arith.constant 0 : index
    %c0_4 = arith.constant 0 : index
    %2 = vector.load %arg2[%c0_3, %c0_4] : memref<384x384xbf16, #tpu.memory_space<vmem>>, vector<384x384xbf16>
    %c0_5 = arith.constant 0 : index
    %c0_6 = arith.constant 0 : index
    %3 = vector.load %arg3[%c0_5, %c0_6] : memref<1x384xf32, #tpu.memory_space<vmem>>, vector<1x384xf32>
    %c0_7 = arith.constant 0 : index
    %c0_8 = arith.constant 0 : index
    %4 = vector.load %arg4[%c0_7, %c0_8] : memref<1x384xf32, #tpu.memory_space<vmem>>, vector<1x384xf32>
    %5 = arith.extf %2 : vector<384x384xbf16> to vector<384x384xf32>
    %cst = arith.constant dense<0.000000e+00> : vector<8x384xf32>
    %6 = tpu.matmul %0, %5, %cst {dimension_numbers = #tpu.dot_dimension_numbers<[1], [0], [0], [1], [0, 0, 1, 1], [], []>} : vector<8x384xf32>, vector<384x384xf32>, vector<8x384xf32> -> vector<8x384xf32>
    %cst_9 = arith.constant dense<0.000000e+00> : vector<384xf32>
    %7 = vector.multi_reduction <add>, %6, %cst_9 [0] : vector<8x384xf32> to vector<384xf32>
    %8 = vector.shape_cast %7 : vector<384xf32> to vector<1x384xf32>
    %cst_10 = arith.constant 8.000000e+00 : f32
    %9 = vector.broadcast %cst_10 : f32 to vector<1x384xf32>
    %10 = arith.divf %8, %9 : vector<1x384xf32>
    %11 = vector.broadcast %10 : vector<1x384xf32> to vector<8x384xf32>
    %12 = arith.subf %6, %11 : vector<8x384xf32>
    %13 = arith.mulf %12, %12 : vector<8x384xf32>
    %cst_11 = arith.constant dense<0.000000e+00> : vector<384xf32>
    %14 = vector.multi_reduction <add>, %13, %cst_11 [0] : vector<8x384xf32> to vector<384xf32>
    %15 = vector.shape_cast %14 : vector<384xf32> to vector<1x384xf32>
    %cst_12 = arith.constant 8.000000e+00 : f32
    %16 = vector.broadcast %cst_12 : f32 to vector<1x384xf32>
    %17 = arith.divf %15, %16 : vector<1x384xf32>
    %cst_13 = arith.constant 9.99999974E-6 : f32
    %18 = vector.broadcast %cst_13 : f32 to vector<1x384xf32>
    %19 = arith.addf %17, %18 : vector<1x384xf32>
    %20 = math.rsqrt %19 : vector<1x384xf32>
    %21 = arith.mulf %3, %20 : vector<1x384xf32>
    %22 = arith.mulf %10, %21 : vector<1x384xf32>
    %23 = arith.subf %4, %22 : vector<1x384xf32>
    %24 = vector.broadcast %21 : vector<1x384xf32> to vector<8x384xf32>
    %25 = arith.mulf %6, %24 : vector<8x384xf32>
    %26 = vector.broadcast %23 : vector<1x384xf32> to vector<8x384xf32>
    %27 = arith.addf %25, %26 : vector<8x384xf32>
    %cst_14 = arith.constant 0.000000e+00 : f32
    %28 = vector.broadcast %cst_14 : f32 to vector<8x384xf32>
    %29 = arith.maximumf %27, %28 : vector<8x384xf32>
    %30 = arith.addf %29, %1 : vector<8x384xf32>
    %c0_15 = arith.constant 0 : index
    %c0_16 = arith.constant 0 : index
    %31 = vector.load %arg5[%c0_15, %c0_16] : memref<384x384xbf16, #tpu.memory_space<vmem>>, vector<384x384xbf16>
    %c0_17 = arith.constant 0 : index
    %c0_18 = arith.constant 0 : index
    %32 = vector.load %arg6[%c0_17, %c0_18] : memref<1x384xf32, #tpu.memory_space<vmem>>, vector<1x384xf32>
    %c0_19 = arith.constant 0 : index
    %c0_20 = arith.constant 0 : index
    %33 = vector.load %arg7[%c0_19, %c0_20] : memref<1x384xf32, #tpu.memory_space<vmem>>, vector<1x384xf32>
    %34 = arith.extf %31 : vector<384x384xbf16> to vector<384x384xf32>
    %cst_21 = arith.constant dense<0.000000e+00> : vector<8x384xf32>
    %35 = tpu.matmul %1, %34, %cst_21 {dimension_numbers = #tpu.dot_dimension_numbers<[1], [0], [0], [1], [0, 0, 1, 1], [], []>} : vector<8x384xf32>, vector<384x384xf32>, vector<8x384xf32> -> vector<8x384xf32>
    %cst_22 = arith.constant dense<0.000000e+00> : vector<384xf32>
    %36 = vector.multi_reduction <add>, %35, %cst_22 [0] : vector<8x384xf32> to vector<384xf32>
    %37 = vector.shape_cast %36 : vector<384xf32> to vector<1x384xf32>
    %cst_23 = arith.constant 8.000000e+00 : f32
    %38 = vector.broadcast %cst_23 : f32 to vector<1x384xf32>
    %39 = arith.divf %37, %38 : vector<1x384xf32>
    %40 = vector.broadcast %39 : vector<1x384xf32> to vector<8x384xf32>
    %41 = arith.subf %35, %40 : vector<8x384xf32>
    %42 = arith.mulf %41, %41 : vector<8x384xf32>
    %cst_24 = arith.constant dense<0.000000e+00> : vector<384xf32>
    %43 = vector.multi_reduction <add>, %42, %cst_24 [0] : vector<8x384xf32> to vector<384xf32>
    %44 = vector.shape_cast %43 : vector<384xf32> to vector<1x384xf32>
    %cst_25 = arith.constant 8.000000e+00 : f32
    %45 = vector.broadcast %cst_25 : f32 to vector<1x384xf32>
    %46 = arith.divf %44, %45 : vector<1x384xf32>
    %cst_26 = arith.constant 9.99999974E-6 : f32
    %47 = vector.broadcast %cst_26 : f32 to vector<1x384xf32>
    %48 = arith.addf %46, %47 : vector<1x384xf32>
    %49 = math.rsqrt %48 : vector<1x384xf32>
    %50 = arith.mulf %32, %49 : vector<1x384xf32>
    %51 = arith.mulf %39, %50 : vector<1x384xf32>
    %52 = arith.subf %33, %51 : vector<1x384xf32>
    %53 = vector.broadcast %50 : vector<1x384xf32> to vector<8x384xf32>
    %54 = arith.mulf %35, %53 : vector<8x384xf32>
    %55 = vector.broadcast %52 : vector<1x384xf32> to vector<8x384xf32>
    %56 = arith.addf %54, %55 : vector<8x384xf32>
    %cst_27 = arith.constant 0.000000e+00 : f32
    %57 = vector.broadcast %cst_27 : f32 to vector<8x384xf32>
    %58 = arith.maximumf %56, %57 : vector<8x384xf32>
    %59 = arith.addf %58, %0 : vector<8x384xf32>
    %c0_28 = arith.constant 0 : index
    %c0_29 = arith.constant 0 : index
    %60 = vector.load %arg8[%c0_28, %c0_29] : memref<384x384xbf16, #tpu.memory_space<vmem>>, vector<384x384xbf16>
    %c0_30 = arith.constant 0 : index
    %c0_31 = arith.constant 0 : index
    %61 = vector.load %arg9[%c0_30, %c0_31] : memref<1x384xf32, #tpu.memory_space<vmem>>, vector<1x384xf32>
    %c0_32 = arith.constant 0 : index
    %c0_33 = arith.constant 0 : index
    %62 = vector.load %arg10[%c0_32, %c0_33] : memref<1x384xf32, #tpu.memory_space<vmem>>, vector<1x384xf32>
    %63 = arith.extf %60 : vector<384x384xbf16> to vector<384x384xf32>
    %cst_34 = arith.constant dense<0.000000e+00> : vector<8x384xf32>
    %64 = tpu.matmul %30, %63, %cst_34 {dimension_numbers = #tpu.dot_dimension_numbers<[1], [0], [0], [1], [0, 0, 1, 1], [], []>} : vector<8x384xf32>, vector<384x384xf32>, vector<8x384xf32> -> vector<8x384xf32>
    %cst_35 = arith.constant dense<0.000000e+00> : vector<384xf32>
    %65 = vector.multi_reduction <add>, %64, %cst_35 [0] : vector<8x384xf32> to vector<384xf32>
    %66 = vector.shape_cast %65 : vector<384xf32> to vector<1x384xf32>
    %cst_36 = arith.constant 8.000000e+00 : f32
    %67 = vector.broadcast %cst_36 : f32 to vector<1x384xf32>
    %68 = arith.divf %66, %67 : vector<1x384xf32>
    %69 = vector.broadcast %68 : vector<1x384xf32> to vector<8x384xf32>
    %70 = arith.subf %64, %69 : vector<8x384xf32>
    %71 = arith.mulf %70, %70 : vector<8x384xf32>
    %cst_37 = arith.constant dense<0.000000e+00> : vector<384xf32>
    %72 = vector.multi_reduction <add>, %71, %cst_37 [0] : vector<8x384xf32> to vector<384xf32>
    %73 = vector.shape_cast %72 : vector<384xf32> to vector<1x384xf32>
    %cst_38 = arith.constant 8.000000e+00 : f32
    %74 = vector.broadcast %cst_38 : f32 to vector<1x384xf32>
    %75 = arith.divf %73, %74 : vector<1x384xf32>
    %cst_39 = arith.constant 9.99999974E-6 : f32
    %76 = vector.broadcast %cst_39 : f32 to vector<1x384xf32>
    %77 = arith.addf %75, %76 : vector<1x384xf32>
    %78 = math.rsqrt %77 : vector<1x384xf32>
    %79 = arith.mulf %61, %78 : vector<1x384xf32>
    %80 = arith.mulf %68, %79 : vector<1x384xf32>
    %81 = arith.subf %62, %80 : vector<1x384xf32>
    %82 = vector.broadcast %79 : vector<1x384xf32> to vector<8x384xf32>
    %83 = arith.mulf %64, %82 : vector<8x384xf32>
    %84 = vector.broadcast %81 : vector<1x384xf32> to vector<8x384xf32>
    %85 = arith.addf %83, %84 : vector<8x384xf32>
    %cst_40 = arith.constant 0.000000e+00 : f32
    %86 = vector.broadcast %cst_40 : f32 to vector<8x384xf32>
    %87 = arith.maximumf %85, %86 : vector<8x384xf32>
    %88 = arith.addf %87, %59 : vector<8x384xf32>
    %c0_41 = arith.constant 0 : index
    %c0_42 = arith.constant 0 : index
    %89 = vector.load %arg11[%c0_41, %c0_42] : memref<384x384xbf16, #tpu.memory_space<vmem>>, vector<384x384xbf16>
    %c0_43 = arith.constant 0 : index
    %c0_44 = arith.constant 0 : index
    %90 = vector.load %arg12[%c0_43, %c0_44] : memref<1x384xf32, #tpu.memory_space<vmem>>, vector<1x384xf32>
    %c0_45 = arith.constant 0 : index
    %c0_46 = arith.constant 0 : index
    %91 = vector.load %arg13[%c0_45, %c0_46] : memref<1x384xf32, #tpu.memory_space<vmem>>, vector<1x384xf32>
    %92 = arith.extf %89 : vector<384x384xbf16> to vector<384x384xf32>
    %cst_47 = arith.constant dense<0.000000e+00> : vector<8x384xf32>
    %93 = tpu.matmul %59, %92, %cst_47 {dimension_numbers = #tpu.dot_dimension_numbers<[1], [0], [0], [1], [0, 0, 1, 1], [], []>} : vector<8x384xf32>, vector<384x384xf32>, vector<8x384xf32> -> vector<8x384xf32>
    %cst_48 = arith.constant dense<0.000000e+00> : vector<384xf32>
    %94 = vector.multi_reduction <add>, %93, %cst_48 [0] : vector<8x384xf32> to vector<384xf32>
    %95 = vector.shape_cast %94 : vector<384xf32> to vector<1x384xf32>
    %cst_49 = arith.constant 8.000000e+00 : f32
    %96 = vector.broadcast %cst_49 : f32 to vector<1x384xf32>
    %97 = arith.divf %95, %96 : vector<1x384xf32>
    %98 = vector.broadcast %97 : vector<1x384xf32> to vector<8x384xf32>
    %99 = arith.subf %93, %98 : vector<8x384xf32>
    %100 = arith.mulf %99, %99 : vector<8x384xf32>
    %cst_50 = arith.constant dense<0.000000e+00> : vector<384xf32>
    %101 = vector.multi_reduction <add>, %100, %cst_50 [0] : vector<8x384xf32> to vector<384xf32>
    %102 = vector.shape_cast %101 : vector<384xf32> to vector<1x384xf32>
    %cst_51 = arith.constant 8.000000e+00 : f32
    %103 = vector.broadcast %cst_51 : f32 to vector<1x384xf32>
    %104 = arith.divf %102, %103 : vector<1x384xf32>
    %cst_52 = arith.constant 9.99999974E-6 : f32
    %105 = vector.broadcast %cst_52 : f32 to vector<1x384xf32>
    %106 = arith.addf %104, %105 : vector<1x384xf32>
    %107 = math.rsqrt %106 : vector<1x384xf32>
    %108 = arith.mulf %90, %107 : vector<1x384xf32>
    %109 = arith.mulf %97, %108 : vector<1x384xf32>
    %110 = arith.subf %91, %109 : vector<1x384xf32>
    %111 = vector.broadcast %108 : vector<1x384xf32> to vector<8x384xf32>
    %112 = arith.mulf %93, %111 : vector<8x384xf32>
    %113 = vector.broadcast %110 : vector<1x384xf32> to vector<8x384xf32>
    %114 = arith.addf %112, %113 : vector<8x384xf32>
    %cst_53 = arith.constant 0.000000e+00 : f32
    %115 = vector.broadcast %cst_53 : f32 to vector<8x384xf32>
    %116 = arith.maximumf %114, %115 : vector<8x384xf32>
    %117 = arith.addf %116, %30 : vector<8x384xf32>
    %c0_54 = arith.constant 0 : index
    %c0_55 = arith.constant 0 : index
    %118 = vector.load %arg14[%c0_54, %c0_55] : memref<384x384xbf16, #tpu.memory_space<vmem>>, vector<384x384xbf16>
    %c0_56 = arith.constant 0 : index
    %c0_57 = arith.constant 0 : index
    %119 = vector.load %arg15[%c0_56, %c0_57] : memref<1x384xf32, #tpu.memory_space<vmem>>, vector<1x384xf32>
    %c0_58 = arith.constant 0 : index
    %c0_59 = arith.constant 0 : index
    %120 = vector.load %arg16[%c0_58, %c0_59] : memref<1x384xf32, #tpu.memory_space<vmem>>, vector<1x384xf32>
    %121 = arith.extf %118 : vector<384x384xbf16> to vector<384x384xf32>
    %cst_60 = arith.constant dense<0.000000e+00> : vector<8x384xf32>
    %122 = tpu.matmul %88, %121, %cst_60 {dimension_numbers = #tpu.dot_dimension_numbers<[1], [0], [0], [1], [0, 0, 1, 1], [], []>} : vector<8x384xf32>, vector<384x384xf32>, vector<8x384xf32> -> vector<8x384xf32>
    %cst_61 = arith.constant dense<0.000000e+00> : vector<384xf32>
    %123 = vector.multi_reduction <add>, %122, %cst_61 [0] : vector<8x384xf32> to vector<384xf32>
    %124 = vector.shape_cast %123 : vector<384xf32> to vector<1x384xf32>
    %cst_62 = arith.constant 8.000000e+00 : f32
    %125 = vector.broadcast %cst_62 : f32 to vector<1x384xf32>
    %126 = arith.divf %124, %125 : vector<1x384xf32>
    %127 = vector.broadcast %126 : vector<1x384xf32> to vector<8x384xf32>
    %128 = arith.subf %122, %127 : vector<8x384xf32>
    %129 = arith.mulf %128, %128 : vector<8x384xf32>
    %cst_63 = arith.constant dense<0.000000e+00> : vector<384xf32>
    %130 = vector.multi_reduction <add>, %129, %cst_63 [0] : vector<8x384xf32> to vector<384xf32>
    %131 = vector.shape_cast %130 : vector<384xf32> to vector<1x384xf32>
    %cst_64 = arith.constant 8.000000e+00 : f32
    %132 = vector.broadcast %cst_64 : f32 to vector<1x384xf32>
    %133 = arith.divf %131, %132 : vector<1x384xf32>
    %cst_65 = arith.constant 9.99999974E-6 : f32
    %134 = vector.broadcast %cst_65 : f32 to vector<1x384xf32>
    %135 = arith.addf %133, %134 : vector<1x384xf32>
    %136 = math.rsqrt %135 : vector<1x384xf32>
    %137 = arith.mulf %119, %136 : vector<1x384xf32>
    %138 = arith.mulf %126, %137 : vector<1x384xf32>
    %139 = arith.subf %120, %138 : vector<1x384xf32>
    %140 = vector.broadcast %137 : vector<1x384xf32> to vector<8x384xf32>
    %141 = arith.mulf %122, %140 : vector<8x384xf32>
    %142 = vector.broadcast %139 : vector<1x384xf32> to vector<8x384xf32>
    %143 = arith.addf %141, %142 : vector<8x384xf32>
    %cst_66 = arith.constant 0.000000e+00 : f32
    %144 = vector.broadcast %cst_66 : f32 to vector<8x384xf32>
    %145 = arith.maximumf %143, %144 : vector<8x384xf32>
    %146 = arith.addf %145, %117 : vector<8x384xf32>
    %c0_67 = arith.constant 0 : index
    %c0_68 = arith.constant 0 : index
    %147 = vector.load %arg17[%c0_67, %c0_68] : memref<384x384xbf16, #tpu.memory_space<vmem>>, vector<384x384xbf16>
    %c0_69 = arith.constant 0 : index
    %c0_70 = arith.constant 0 : index
    %148 = vector.load %arg18[%c0_69, %c0_70] : memref<1x384xf32, #tpu.memory_space<vmem>>, vector<1x384xf32>
    %c0_71 = arith.constant 0 : index
    %c0_72 = arith.constant 0 : index
    %149 = vector.load %arg19[%c0_71, %c0_72] : memref<1x384xf32, #tpu.memory_space<vmem>>, vector<1x384xf32>
    %150 = arith.extf %147 : vector<384x384xbf16> to vector<384x384xf32>
    %cst_73 = arith.constant dense<0.000000e+00> : vector<8x384xf32>
    %151 = tpu.matmul %117, %150, %cst_73 {dimension_numbers = #tpu.dot_dimension_numbers<[1], [0], [0], [1], [0, 0, 1, 1], [], []>} : vector<8x384xf32>, vector<384x384xf32>, vector<8x384xf32> -> vector<8x384xf32>
    %cst_74 = arith.constant dense<0.000000e+00> : vector<384xf32>
    %152 = vector.multi_reduction <add>, %151, %cst_74 [0] : vector<8x384xf32> to vector<384xf32>
    %153 = vector.shape_cast %152 : vector<384xf32> to vector<1x384xf32>
    %cst_75 = arith.constant 8.000000e+00 : f32
    %154 = vector.broadcast %cst_75 : f32 to vector<1x384xf32>
    %155 = arith.divf %153, %154 : vector<1x384xf32>
    %156 = vector.broadcast %155 : vector<1x384xf32> to vector<8x384xf32>
    %157 = arith.subf %151, %156 : vector<8x384xf32>
    %158 = arith.mulf %157, %157 : vector<8x384xf32>
    %cst_76 = arith.constant dense<0.000000e+00> : vector<384xf32>
    %159 = vector.multi_reduction <add>, %158, %cst_76 [0] : vector<8x384xf32> to vector<384xf32>
    %160 = vector.shape_cast %159 : vector<384xf32> to vector<1x384xf32>
    %cst_77 = arith.constant 8.000000e+00 : f32
    %161 = vector.broadcast %cst_77 : f32 to vector<1x384xf32>
    %162 = arith.divf %160, %161 : vector<1x384xf32>
    %cst_78 = arith.constant 9.99999974E-6 : f32
    %163 = vector.broadcast %cst_78 : f32 to vector<1x384xf32>
    %164 = arith.addf %162, %163 : vector<1x384xf32>
    %165 = math.rsqrt %164 : vector<1x384xf32>
    %166 = arith.mulf %148, %165 : vector<1x384xf32>
    %167 = arith.mulf %155, %166 : vector<1x384xf32>
    %168 = arith.subf %149, %167 : vector<1x384xf32>
    %169 = vector.broadcast %166 : vector<1x384xf32> to vector<8x384xf32>
    %170 = arith.mulf %151, %169 : vector<8x384xf32>
    %171 = vector.broadcast %168 : vector<1x384xf32> to vector<8x384xf32>
    %172 = arith.addf %170, %171 : vector<8x384xf32>
    %cst_79 = arith.constant 0.000000e+00 : f32
    %173 = vector.broadcast %cst_79 : f32 to vector<8x384xf32>
    %174 = arith.maximumf %172, %173 : vector<8x384xf32>
    %175 = arith.addf %174, %88 : vector<8x384xf32>
    %c0_80 = arith.constant 0 : index
    %c0_81 = arith.constant 0 : index
    %176 = vector.load %arg20[%c0_80, %c0_81] : memref<384x384xbf16, #tpu.memory_space<vmem>>, vector<384x384xbf16>
    %177 = arith.extf %176 : vector<384x384xbf16> to vector<384x384xf32>
    %cst_82 = arith.constant dense<0.000000e+00> : vector<8x384xf32>
    %178 = tpu.matmul %146, %177, %cst_82 {dimension_numbers = #tpu.dot_dimension_numbers<[1], [0], [0], [1], [0, 0, 1, 1], [], []>} : vector<8x384xf32>, vector<384x384xf32>, vector<8x384xf32> -> vector<8x384xf32>
    %c0_83 = arith.constant 0 : index
    %c0_84 = arith.constant 0 : index
    %179 = vector.load %arg21[%c0_83, %c0_84] : memref<384x384xbf16, #tpu.memory_space<vmem>>, vector<384x384xbf16>
    %180 = arith.extf %179 : vector<384x384xbf16> to vector<384x384xf32>
    %cst_85 = arith.constant dense<0.000000e+00> : vector<8x384xf32>
    %181 = tpu.matmul %175, %180, %cst_85 {dimension_numbers = #tpu.dot_dimension_numbers<[1], [0], [0], [1], [0, 0, 1, 1], [], []>} : vector<8x384xf32>, vector<384x384xf32>, vector<8x384xf32> -> vector<8x384xf32>
    %182 = arith.addf %178, %181 : vector<8x384xf32>
    %c0_86 = arith.constant 0 : index
    %c0_87 = arith.constant 0 : index
    %183 = vector.load %arg22[%c0_86, %c0_87] : memref<1x384xf32, #tpu.memory_space<vmem>>, vector<1x384xf32>
    %c0_88 = arith.constant 0 : index
    %c0_89 = arith.constant 0 : index
    %184 = vector.load %arg23[%c0_88, %c0_89] : memref<1x384xf32, #tpu.memory_space<vmem>>, vector<1x384xf32>
    %cst_90 = arith.constant dense<0.000000e+00> : vector<384xf32>
    %185 = vector.multi_reduction <add>, %182, %cst_90 [0] : vector<8x384xf32> to vector<384xf32>
    %186 = vector.shape_cast %185 : vector<384xf32> to vector<1x384xf32>
    %cst_91 = arith.constant 8.000000e+00 : f32
    %187 = vector.broadcast %cst_91 : f32 to vector<1x384xf32>
    %188 = arith.divf %186, %187 : vector<1x384xf32>
    %189 = vector.broadcast %188 : vector<1x384xf32> to vector<8x384xf32>
    %190 = arith.subf %182, %189 : vector<8x384xf32>
    %191 = arith.mulf %190, %190 : vector<8x384xf32>
    %cst_92 = arith.constant dense<0.000000e+00> : vector<384xf32>
    %192 = vector.multi_reduction <add>, %191, %cst_92 [0] : vector<8x384xf32> to vector<384xf32>
    %193 = vector.shape_cast %192 : vector<384xf32> to vector<1x384xf32>
    %cst_93 = arith.constant 8.000000e+00 : f32
    %194 = vector.broadcast %cst_93 : f32 to vector<1x384xf32>
    %195 = arith.divf %193, %194 : vector<1x384xf32>
    %cst_94 = arith.constant 9.99999974E-6 : f32
    %196 = vector.broadcast %cst_94 : f32 to vector<1x384xf32>
    %197 = arith.addf %195, %196 : vector<1x384xf32>
    %198 = math.rsqrt %197 : vector<1x384xf32>
    %199 = arith.mulf %183, %198 : vector<1x384xf32>
    %200 = arith.mulf %188, %199 : vector<1x384xf32>
    %201 = arith.subf %184, %200 : vector<1x384xf32>
    %202 = vector.broadcast %199 : vector<1x384xf32> to vector<8x384xf32>
    %203 = arith.mulf %182, %202 : vector<8x384xf32>
    %204 = vector.broadcast %201 : vector<1x384xf32> to vector<8x384xf32>
    %205 = arith.addf %203, %204 : vector<8x384xf32>
    %cst_95 = arith.constant 0.000000e+00 : f32
    %206 = vector.broadcast %cst_95 : f32 to vector<8x384xf32>
    %207 = arith.maximumf %205, %206 : vector<8x384xf32>
    %c0_96 = arith.constant 0 : index
    %c0_97 = arith.constant 0 : index
    %208 = vector.load %arg24[%c0_96, %c0_97] : memref<384x192xbf16, #tpu.memory_space<vmem>>, vector<384x192xbf16>
    %c0_98 = arith.constant 0 : index
    %c0_99 = arith.constant 0 : index
    %209 = vector.load %arg25[%c0_98, %c0_99] : memref<1x192xf32, #tpu.memory_space<vmem>>, vector<1x192xf32>
    %c0_100 = arith.constant 0 : index
    %c0_101 = arith.constant 0 : index
    %210 = vector.load %arg26[%c0_100, %c0_101] : memref<1x192xf32, #tpu.memory_space<vmem>>, vector<1x192xf32>
    %211 = arith.extf %208 : vector<384x192xbf16> to vector<384x192xf32>
    %cst_102 = arith.constant dense<0.000000e+00> : vector<8x192xf32>
    %212 = tpu.matmul %207, %211, %cst_102 {dimension_numbers = #tpu.dot_dimension_numbers<[1], [0], [0], [1], [0, 0, 1, 1], [], []>} : vector<8x384xf32>, vector<384x192xf32>, vector<8x192xf32> -> vector<8x192xf32>
    %cst_103 = arith.constant dense<0.000000e+00> : vector<192xf32>
    %213 = vector.multi_reduction <add>, %212, %cst_103 [0] : vector<8x192xf32> to vector<192xf32>
    %214 = vector.shape_cast %213 : vector<192xf32> to vector<1x192xf32>
    %cst_104 = arith.constant 8.000000e+00 : f32
    %215 = vector.broadcast %cst_104 : f32 to vector<1x192xf32>
    %216 = arith.divf %214, %215 : vector<1x192xf32>
    %217 = vector.broadcast %216 : vector<1x192xf32> to vector<8x192xf32>
    %218 = arith.subf %212, %217 : vector<8x192xf32>
    %219 = arith.mulf %218, %218 : vector<8x192xf32>
    %cst_105 = arith.constant dense<0.000000e+00> : vector<192xf32>
    %220 = vector.multi_reduction <add>, %219, %cst_105 [0] : vector<8x192xf32> to vector<192xf32>
    %221 = vector.shape_cast %220 : vector<192xf32> to vector<1x192xf32>
    %cst_106 = arith.constant 8.000000e+00 : f32
    %222 = vector.broadcast %cst_106 : f32 to vector<1x192xf32>
    %223 = arith.divf %221, %222 : vector<1x192xf32>
    %cst_107 = arith.constant 9.99999974E-6 : f32
    %224 = vector.broadcast %cst_107 : f32 to vector<1x192xf32>
    %225 = arith.addf %223, %224 : vector<1x192xf32>
    %226 = math.rsqrt %225 : vector<1x192xf32>
    %227 = arith.mulf %209, %226 : vector<1x192xf32>
    %228 = arith.mulf %216, %227 : vector<1x192xf32>
    %229 = arith.subf %210, %228 : vector<1x192xf32>
    %230 = vector.broadcast %227 : vector<1x192xf32> to vector<8x192xf32>
    %231 = arith.mulf %212, %230 : vector<8x192xf32>
    %232 = vector.broadcast %229 : vector<1x192xf32> to vector<8x192xf32>
    %233 = arith.addf %231, %232 : vector<8x192xf32>
    %cst_108 = arith.constant 0.000000e+00 : f32
    %234 = vector.broadcast %cst_108 : f32 to vector<8x192xf32>
    %235 = arith.maximumf %233, %234 : vector<8x192xf32>
    %c0_109 = arith.constant 0 : index
    %c0_110 = arith.constant 0 : index
    %236 = vector.load %arg27[%c0_109, %c0_110] : memref<192x96xbf16, #tpu.memory_space<vmem>>, vector<192x96xbf16>
    %c0_111 = arith.constant 0 : index
    %c0_112 = arith.constant 0 : index
    %237 = vector.load %arg28[%c0_111, %c0_112] : memref<1x96xf32, #tpu.memory_space<vmem>>, vector<1x96xf32>
    %c0_113 = arith.constant 0 : index
    %c0_114 = arith.constant 0 : index
    %238 = vector.load %arg29[%c0_113, %c0_114] : memref<1x96xf32, #tpu.memory_space<vmem>>, vector<1x96xf32>
    %239 = arith.extf %236 : vector<192x96xbf16> to vector<192x96xf32>
    %cst_115 = arith.constant dense<0.000000e+00> : vector<8x96xf32>
    %240 = tpu.matmul %235, %239, %cst_115 {dimension_numbers = #tpu.dot_dimension_numbers<[1], [0], [0], [1], [0, 0, 1, 1], [], []>} : vector<8x192xf32>, vector<192x96xf32>, vector<8x96xf32> -> vector<8x96xf32>
    %cst_116 = arith.constant dense<0.000000e+00> : vector<96xf32>
    %241 = vector.multi_reduction <add>, %240, %cst_116 [0] : vector<8x96xf32> to vector<96xf32>
    %242 = vector.shape_cast %241 : vector<96xf32> to vector<1x96xf32>
    %cst_117 = arith.constant 8.000000e+00 : f32
    %243 = vector.broadcast %cst_117 : f32 to vector<1x96xf32>
    %244 = arith.divf %242, %243 : vector<1x96xf32>
    %245 = vector.broadcast %244 : vector<1x96xf32> to vector<8x96xf32>
    %246 = arith.subf %240, %245 : vector<8x96xf32>
    %247 = arith.mulf %246, %246 : vector<8x96xf32>
    %cst_118 = arith.constant dense<0.000000e+00> : vector<96xf32>
    %248 = vector.multi_reduction <add>, %247, %cst_118 [0] : vector<8x96xf32> to vector<96xf32>
    %249 = vector.shape_cast %248 : vector<96xf32> to vector<1x96xf32>
    %cst_119 = arith.constant 8.000000e+00 : f32
    %250 = vector.broadcast %cst_119 : f32 to vector<1x96xf32>
    %251 = arith.divf %249, %250 : vector<1x96xf32>
    %cst_120 = arith.constant 9.99999974E-6 : f32
    %252 = vector.broadcast %cst_120 : f32 to vector<1x96xf32>
    %253 = arith.addf %251, %252 : vector<1x96xf32>
    %254 = math.rsqrt %253 : vector<1x96xf32>
    %255 = arith.mulf %237, %254 : vector<1x96xf32>
    %256 = arith.mulf %244, %255 : vector<1x96xf32>
    %257 = arith.subf %238, %256 : vector<1x96xf32>
    %258 = vector.broadcast %255 : vector<1x96xf32> to vector<8x96xf32>
    %259 = arith.mulf %240, %258 : vector<8x96xf32>
    %260 = vector.broadcast %257 : vector<1x96xf32> to vector<8x96xf32>
    %261 = arith.addf %259, %260 : vector<8x96xf32>
    %cst_121 = arith.constant 0.000000e+00 : f32
    %262 = vector.broadcast %cst_121 : f32 to vector<8x96xf32>
    %263 = arith.maximumf %261, %262 : vector<8x96xf32>
    %c0_122 = arith.constant 0 : index
    %c0_123 = arith.constant 0 : index
    %264 = vector.load %arg30[%c0_122, %c0_123] : memref<96x4xbf16, #tpu.memory_space<vmem>>, vector<96x4xbf16>
    %c0_124 = arith.constant 0 : index
    %c0_125 = arith.constant 0 : index
    %265 = vector.load %arg31[%c0_124, %c0_125] : memref<1x4xf32, #tpu.memory_space<vmem>>, vector<1x4xf32>
    %266 = arith.extf %264 : vector<96x4xbf16> to vector<96x4xf32>
    %cst_126 = arith.constant dense<0.000000e+00> : vector<8x4xf32>
    %267 = tpu.matmul %263, %266, %cst_126 {dimension_numbers = #tpu.dot_dimension_numbers<[1], [0], [0], [1], [0, 0, 1, 1], [], []>} : vector<8x96xf32>, vector<96x4xf32>, vector<8x4xf32> -> vector<8x4xf32>
    %268 = vector.broadcast %265 : vector<1x4xf32> to vector<8x4xf32>
    %269 = arith.addf %267, %268 : vector<8x4xf32>
    %cst_127 = arith.constant dense<0xFF800000> : vector<8xf32>
    %270 = vector.multi_reduction <maximumf>, %269, %cst_127 [1] : vector<8x4xf32> to vector<8xf32>
    %271 = vector.shape_cast %270 : vector<8xf32> to vector<8x1xf32>
    %272 = vector.broadcast %271 : vector<8x1xf32> to vector<8x4xf32>
    %273 = arith.subf %269, %272 : vector<8x4xf32>
    %274 = math.exp %273 : vector<8x4xf32>
    %cst_128 = arith.constant dense<0.000000e+00> : vector<8xf32>
    %275 = vector.multi_reduction <add>, %274, %cst_128 [1] : vector<8x4xf32> to vector<8xf32>
    %276 = vector.shape_cast %275 : vector<8xf32> to vector<8x1xf32>
    %277 = vector.broadcast %276 : vector<8x1xf32> to vector<8x4xf32>
    %278 = arith.divf %274, %277 : vector<8x4xf32>
    %c0_129 = arith.constant 0 : index
    %c0_130 = arith.constant 0 : index
    %279 = vector.load %arg32[%c0_129, %c0_130] : memref<8x4xf32, #tpu.memory_space<vmem>>, vector<8x4xf32>
    tpu.vector_store %arg32[%c0_129, %c0_130], %278 {strides = array<i32>} : memref<8x4xf32, #tpu.memory_space<vmem>>, vector<8x4xf32>,
    return
  }
}

</mosaic_0001>

<bundles_post_ra>
// kernel: tpu_custom_call.1
= control target key start
LH: loop header
LB: loop body
LE: loop exit
PB: predicated region body
PF: predicated region fallthrough
CT: control target
= control target key end

     0   :  { %s7417_s6 = smov 1   ;;  %s7418_s10 = smov 2   ;;  %s8461_s0 = inlined_call_operand.smem [shape: u32[33], index: -1, kind: input, shape index: {}] }
   0x1   :  { %s7472_s5 = sld [smem:[%s8461_s0]]   ;;  %s7419_s14 = smov 3  }
   0x2   :  { %s7477_s9 = sld [smem:[%s8461_s0 + %s7417_s6]]   ;;  %s7420_s18 = smov 4  }
   0x3   :  { %s7482_s13 = sld [smem:[%s8461_s0 + %s7418_s10]]   ;;  %s7421_s22 = smov 5  }
   0x4   :  { %s7487_s17 = sld [smem:[%s8461_s0 + %s7419_s14]]   ;;  %s7422_s26 = smov 6  }
   0x5   :  { %s7492_s21 = sld [smem:[%s8461_s0 + %s7420_s18]]   ;;  %s7423_s30 = smov 7  }
   0x6   :  { %s7497_s25 = sld [smem:[%s8461_s0 + %s7421_s22]]   ;;  %s7424_s4 = smov 8  }
   0x7   :  { %s7502_s29 = sld [smem:[%s8461_s0 + %s7422_s26]]   ;;  %s7425_s10 = smov 9  }
   0x8   :  { %s7507_s3 = sld [smem:[%s8461_s0 + %s7423_s30]]   ;;  %s7426_s15 = smov 10  }
   0x9   :  { %s7512_s8 = sld [smem:[%s8461_s0 + %s7424_s4]]   ;;  %s7427_s20 = smov 11  }
   0xa   :  { %s7517_s14 = sld [smem:[%s8461_s0 + %s7425_s10]]   ;;  %s7428_s26 = smov 12  }
   0xb   :  { %8464 = sst [smem:[#allocation24_spill]] %s7492_s21  ;;  %s7429_s1 = smov 13  }
   0xc   :  { %s7522_s19 = sld [smem:[%s8461_s0 + %s7426_s15]]   ;;  %s7430_s7 = smov 14  }
   0xd   :  { %8465 = sst [smem:[#allocation25_spill]] %s7502_s29  ;;  %s7431_s15 = smov 15  }
   0xe   :  { %s7527_s24 = sld [smem:[%s8461_s0 + %s7427_s20]]   ;;  %s7432_s22 = smov 16  }
   0xf   :  { %s7532_s30 = sld [smem:[%s8461_s0 + %s7428_s26]]   ;;  %s7433_s28 = smov 17  }
  0x10   :  { %s7537_s6 = sld [smem:[%s8461_s0 + %s7429_s1]]  }
  0x11   :  { %s7542_s12 = sld [smem:[%s8461_s0 + %s7430_s7]]   ;;  %s7434_s7 = smov 18  }
  0x12   :  { %8466 = sst [smem:[#allocation26_spill]] %s7522_s19 }
  0x13   :  { %s7547_s20 = sld [smem:[%s8461_s0 + %s7431_s15]]   ;;  %s7435_s15 = smov 19  }
  0x14   :  { %s7552_s27 = sld [smem:[%s8461_s0 + %s7432_s22]]   ;;  %s7436_s22 = smov 20  }
  0x15   :  { %8467 = sst [smem:[#allocation27_spill]] %s7532_s30 }
  0x16   :  { %8468 = sst [smem:[#allocation28_spill]] %s7537_s6 }
  0x17   :  { %s7557_s4 = sld [smem:[%s8461_s0 + %s7433_s28]]   ;;  %s7437_s28 = smov 21  }
  0x18   :  { %s7562_s6 = sld [smem:[%s8461_s0 + %s7434_s7]]   ;;  %s7438_s7 = smov 22  }
  0x19   :  { %8469 = sst [smem:[#allocation29_spill]] %s7547_s20 }
  0x1a   :  { %8470 = sst [smem:[#allocation30_spill]] %s7552_s27 }
  0x1b   :  { %s7567_s20 = sld [smem:[%s8461_s0 + %s7435_s15]]   ;;  %s7439_s15 = smov 23  }
  0x1c   :  { %s7572_s27 = sld [smem:[%s8461_s0 + %s7436_s22]]   ;;  %s7440_s22 = smov 24  }
  0x1d   :  { %s7577_s30 = sld [smem:[%s8461_s0 + %s7437_s28]]   ;;  %s7441_s28 = smov 25  }
  0x1e   :  { %8471 = sst [smem:[#allocation31_spill]] %s7562_s6 }
  0x1f   :  { %s7582_s6 = sld [smem:[%s8461_s0 + %s7438_s7]]   ;;  %s7442_s7 = smov 26  }
  0x20   :  { %s7587_s19 = sld [smem:[%s8461_s0 + %s7439_s15]]   ;;  %s7443_s15 = smov 27  }
  0x21   :  { %s7592_s29 = sld [smem:[%s8461_s0 + %s7440_s22]]   ;;  %s7444_s22 = smov 28  }
  0x22   :  { %s7597_s21 = sld [smem:[%s8461_s0 + %s7441_s28]]   ;;  %s7445_s28 = smov 29  }
  0x25   :  { %8472 = sst [smem:[#allocation32_spill]] %s7582_s6 }
  0x26   :  { %8473 = sst [smem:[#allocation33_spill]] %s7587_s19 }
  0x27   :  { %8474 = sst [smem:[#allocation34_spill]] %s7592_s29 }
  0x28   :  { %8475 = sst [smem:[#allocation35_spill]] %s7597_s21 }
  0x29   :  { %s7602_s6 = sld [smem:[%s8461_s0 + %s7442_s7]]   ;;  %s7446_s7 = smov 30  }
  0x2a   :  { %s7607_s19 = sld [smem:[%s8461_s0 + %s7443_s15]]   ;;  %s7447_s15 = smov 31  }
  0x2b   :  { %s7612_s29 = sld [smem:[%s8461_s0 + %s7444_s22]]   ;;  %s7448_s22 = smov 32  }
  0x2c   :  { %s7617_s21 = sld [smem:[%s8461_s0 + %s7445_s28]]  }
  0x2f   :  { %8476 = sst [smem:[#allocation36_spill]] %s7602_s6 }
  0x30   :  { %8477 = sst [smem:[#allocation37_spill]] %s7607_s19 }
  0x31   :  { %8478 = sst [smem:[#allocation38_spill]] %s7612_s29 }
  0x32   :  { %s7622_s6 = sld [smem:[%s8461_s0 + %s7446_s7]]  }
  0x33   :  { %s7627_s19 = sld [smem:[%s8461_s0 + %s7447_s15]]  }
  0x34   :  { %s7632_s29 = sld [smem:[%s8461_s0 + %s7448_s22]]  }
  0x35   :  { %70 = vsyncpa [#allocation3], 0 }
  0x36   :  { %71 = vsyncpa [#allocation5], 0 }
  0x37   :  { %72 = vsyncpa [#allocation8], 0 }
  0x38   :  { %73 = vsyncpa [#allocation11], 0 }
  0x39   :  { %74 = vsyncpa [#allocation14], 0 }
  0x3a   :  { %75 = vsyncpa [#allocation17], 0  ;;  %s7449_s28 = smov [#allocation4]   ;;  %s7450_s2 = smov [#allocation7]  }
  0x3b   :  { %s106_s1 = sshll.u32 %s7449_s28, 4  ;;  %s128_s7 = sshll.u32 %s7450_s2, 4  ;;  %s107_s1 = int_to_ptr.vmem [resolvable:$true] %s106_s1  ;;  %s129_s7 = int_to_ptr.vmem [resolvable:$true] %s128_s7 }
  0x3c   :  { %s7213_s10 = scalar_lea.vmem %s107_s1, 48  ;;  %s7217_s11 = scalar_lea.vmem %s107_s1, 64 }
  0x3d   :  { %p7214_p0 = scmp.ne.s32.totalorder %s107_s1, %s7213_s10  ;;  %p7218_p1 = scmp.lt.s32.totalorder %s107_s1, %s107_s1 }
  0x3e   :  { %p7219_p2 = scmp.lt.s32.totalorder %s7217_s11, %s7213_s10 }
  0x40   :  { %p7220_p3 = por %p7219_p2, %p7218_p1 }
  0x42   :  { %p7221_p4 = pnand %p7220_p3, %p7214_p0 }
  0x44   :  { %7224 = shalt.err (!%p7221_p4)
}
  0x45   :  { %109 = dma.hbm_to_vmem [thread:$0]  %s7507_s3, 48, %s107_s1, [#allocation5]  }
  0x46   :  { %s7233_s0 = scalar_lea.vmem %s129_s7, 48  ;;  %s7237_s15 = scalar_lea.vmem %s129_s7, 64 }
  0x47   :  { %p7234_p5 = scmp.ne.s32.totalorder %s129_s7, %s7233_s0  ;;  %p7238_p6 = scmp.lt.s32.totalorder %s129_s7, %s129_s7 }
  0x48   :  { %p7239_p7 = scmp.lt.s32.totalorder %s7237_s15, %s7233_s0 }
  0x4a   :  { %p7240_p8 = por %p7239_p7, %p7238_p6 }
  0x4c   :  { %p7241_p9 = pnand %p7240_p8, %p7234_p5 }
  0x4e   :  { %7244 = shalt.err (!%p7241_p9)
}
  0x4f   :  { %131 = dma.hbm_to_vmem [thread:$0]  %s7517_s14, 48, %s129_s7, [#allocation8]  }
  0x50   :  { %s7451_s16 = smov [#allocation10]   ;;  %s7452_s22 = smov [#allocation13]  }
  0x51   :  { %s155_s18 = sshll.u32 %s7451_s16, 4  ;;  %s186_s23 = sshll.u32 %s7452_s22, 4  ;;  %s156_s18 = int_to_ptr.vmem [resolvable:$true] %s155_s18  ;;  %s187_s23 = int_to_ptr.vmem [resolvable:$true] %s186_s23 }
  0x52   :  { %s7253_s26 = scalar_lea.vmem %s156_s18, 9216  ;;  %p7258_p11 = scmp.lt.s32.totalorder %s156_s18, %s156_s18 }
  0x53   :  { %p7254_p10 = scmp.ne.s32.totalorder %s156_s18, %s7253_s26  ;;  %p7259_p12 = scmp.lt.s32.totalorder %s7253_s26, %s7253_s26 }
  0x55   :  { %p7260_p13 = por %p7259_p12, %p7258_p11 }
  0x57   :  { %p7261_p0 = pnand %p7260_p13, %p7254_p10 }
  0x59   :  { %7264 = shalt.err (!%p7261_p0)
}
  0x5a   :  { %s7453_s3 = smov 192   ;;  %s7454_s28 = smov 12  }
  0x5b   :  { %161 = dma.hbm_to_vmem [thread:$0]  %s7542_s12, 9216, %s156_s18, [#allocation11], %s7453_s3, %s7453_s3, %s7454_s28  }
  0x5c   :  { %s7273_s14 = scalar_lea.vmem %s187_s23, 48  ;;  %s7277_s1 = scalar_lea.vmem %s187_s23, 64 }
  0x5d   :  { %p7274_p1 = scmp.ne.s32.totalorder %s187_s23, %s7273_s14  ;;  %p7278_p2 = scmp.lt.s32.totalorder %s187_s23, %s187_s23 }
  0x5e   :  { %p7279_p3 = scmp.lt.s32.totalorder %s7277_s1, %s7273_s14 }
  0x60   :  { %p7280_p4 = por %p7279_p3, %p7278_p2 }
  0x62   :  { %p7281_p5 = pnand %p7280_p4, %p7274_p1 }
  0x64   :  { %7284 = shalt.err (!%p7281_p5)
}
  0x65   :  { %189 = dma.hbm_to_vmem [thread:$0]  %s7567_s20, 48, %s187_s23, [#allocation14]  }
  0x66   :  { %s7455_s2 = smov [#allocation2]   ;;  %s7456_s10 = smov [#allocation6]  }
  0x67   :  { %s91_s7 = sshll.u32 %s7455_s2, 4  ;;  %s115_s11 = sshll.u32 %s7456_s10, 4  ;;  %s92_s7 = int_to_ptr.vmem [resolvable:$true] %s91_s7  ;;  %s116_s11 = int_to_ptr.vmem [resolvable:$true] %s115_s11 }
  0x68   :  { %s7293_s0 = scalar_lea.vmem %s92_s7, 9216  ;;  %p7298_p7 = scmp.lt.s32.totalorder %s92_s7, %s92_s7 }
  0x69   :  { %p7294_p6 = scmp.ne.s32.totalorder %s92_s7, %s7293_s0  ;;  %p7299_p8 = scmp.lt.s32.totalorder %s7293_s0, %s7293_s0 }
  0x6b   :  { %p7300_p9 = por %p7299_p8, %p7298_p7 }
  0x6d   :  { %p7301_p10 = pnand %p7300_p9, %p7294_p6 }
  0x6f   :  { %7304 = shalt.err (!%p7301_p10)
}
  0x70   :  { %97 = dma.hbm_to_vmem [thread:$0]  %s7497_s25, 9216, %s92_s7, [#allocation3], %s7453_s3, %s7453_s3, %s7454_s28  }
  0x71   :  { %s7313_s12 = scalar_lea.vmem %s116_s11, 9216  ;;  %p7318_p12 = scmp.lt.s32.totalorder %s116_s11, %s116_s11 }
  0x72   :  { %p7314_p11 = scmp.ne.s32.totalorder %s116_s11, %s7313_s12  ;;  %p7319_p13 = scmp.lt.s32.totalorder %s7313_s12, %s7313_s12 }
  0x74   :  { %p7320_p0 = por %p7319_p13, %p7318_p12 }
  0x76   :  { %p7321_p1 = pnand %p7320_p0, %p7314_p11 }
  0x78   :  { %7324 = shalt.err (!%p7321_p1)
}
  0x79   :  { %121 = dma.hbm_to_vmem [thread:$0]  %s7512_s8, 9216, %s116_s11, [#allocation5], %s7453_s3, %s7453_s3, %s7454_s28  }
  0x7a   :  { %s7457_s20 = smov [#allocation9]   ;;  %s7458_s16 = smov [#allocation12]  }
  0x7b   :  { %s139_s15 = sshll.u32 %s7457_s20, 4  ;;  %s171_s18 = sshll.u32 %s7458_s16, 4  ;;  %s140_s15 = int_to_ptr.vmem [resolvable:$true] %s139_s15  ;;  %s172_s18 = int_to_ptr.vmem [resolvable:$true] %s171_s18 }
  0x7c   :  { %s7333_s22 = scalar_lea.vmem %s140_s15, 9216  ;;  %p7338_p3 = scmp.lt.s32.totalorder %s140_s15, %s140_s15 }
  0x7d   :  { %p7334_p2 = scmp.ne.s32.totalorder %s140_s15, %s7333_s22  ;;  %p7339_p4 = scmp.lt.s32.totalorder %s7333_s22, %s7333_s22 }
  0x7f   :  { %p7340_p5 = por %p7339_p4, %p7338_p3 }
  0x81   :  { %p7341_p6 = pnand %p7340_p5, %p7334_p2 }
  0x83   :  { %7344 = shalt.err (!%p7341_p6)
}
  0x84   :  { %145 = dma.hbm_to_vmem [thread:$0]  %s7527_s24, 9216, %s140_s15, [#allocation8], %s7453_s3, %s7453_s3, %s7454_s28  }
  0x85   :  { %s7353_s25 = scalar_lea.vmem %s172_s18, 9216  ;;  %p7358_p8 = scmp.lt.s32.totalorder %s172_s18, %s172_s18 }
  0x86   :  { %p7354_p7 = scmp.ne.s32.totalorder %s172_s18, %s7353_s25  ;;  %p7359_p9 = scmp.lt.s32.totalorder %s7353_s25, %s7353_s25 }
  0x88   :  { %p7360_p10 = por %p7359_p9, %p7358_p8 }
  0x8a   :  { %p7361_p11 = pnand %p7360_p10, %p7354_p7 }
  0x8c   :  { %7364 = shalt.err (!%p7361_p11)
}
  0x8d   :  { %177 = dma.hbm_to_vmem [thread:$0]  %s7557_s4, 9216, %s172_s18, [#allocation11], %s7453_s3, %s7453_s3, %s7454_s28  }
  0x8e   :  { %s7459_s8 = smov [#allocation15]   ;;  %s7460_s26 = smov [#allocation16]  }
  0x8f   :  { %s195_s23 = sshll.u32 %s7459_s8, 4  ;;  %s207_s14 = sshll.u32 %s7460_s26, 4  ;;  %s196_s23 = int_to_ptr.vmem [resolvable:$true] %s195_s23  ;;  %s208_s14 = int_to_ptr.vmem [resolvable:$true] %s207_s14 }
  0x90   :  { %s7373_s1 = scalar_lea.vmem %s196_s23, 9216  ;;  %p7378_p13 = scmp.lt.s32.totalorder %s196_s23, %s196_s23 }
  0x91   :  { %p7374_p12 = scmp.ne.s32.totalorder %s196_s23, %s7373_s1  ;;  %p7379_p0 = scmp.lt.s32.totalorder %s7373_s1, %s7373_s1 }
  0x93   :  { %p7380_p1 = por %p7379_p0, %p7378_p13 }
  0x95   :  { %p7381_p2 = pnand %p7380_p1, %p7374_p12 }
  0x97   :  { %7384 = shalt.err (!%p7381_p2)
}
  0x98   :  { %201 = dma.hbm_to_vmem [thread:$0]  %s7572_s27, 9216, %s196_s23, [#allocation14], %s7453_s3, %s7453_s3, %s7454_s28  }
  0x99   :  { %s7393_s24 = scalar_lea.vmem %s208_s14, 9216  ;;  %p7398_p4 = scmp.lt.s32.totalorder %s208_s14, %s208_s14 }
  0x9a   :  { %p7394_p3 = scmp.ne.s32.totalorder %s208_s14, %s7393_s24  ;;  %p7399_p5 = scmp.lt.s32.totalorder %s7393_s24, %s7393_s24 }
  0x9c   :  { %p7400_p6 = por %p7399_p5, %p7398_p4 }
  0x9e   :  { %p7401_p7 = pnand %p7400_p6, %p7394_p3 }
  0xa0   :  { %7404 = shalt.err (!%p7401_p7)
}
  0xa1   :  { %213 = dma.hbm_to_vmem [thread:$0]  %s7577_s30, 9216, %s208_s14, [#allocation17], %s7453_s3, %s7453_s3, %s7454_s28  }
  0xa2   :  { %7405 = dma.done.wait [#allocation3], 9216  }
  0xa3   :  { %7406 = vsyncadd [#allocation3], 4294958080 }
  0xa4   :  { %7407 = dma.done.wait [#allocation5], 9264  }
  0xa5   :  { %7408 = vsyncadd [#allocation5], 4294958032 }
  0xa6   :  { %7409 = dma.done.wait [#allocation8], 9264  }
  0xa7   :  { %7410 = vsyncadd [#allocation8], 4294958032 }
  0xa8   :  { %7411 = dma.done.wait [#allocation11], 18432  }
  0xa9   :  { %7412 = vsyncadd [#allocation11], 4294948864 }
  0xaa   :  { %7413 = dma.done.wait [#allocation14], 9264  }
  0xab   :  { %7414 = vsyncadd [#allocation14], 4294958032 }
  0xac   :  { %7415 = dma.done.wait [#allocation17], 9216  }
  0xad   :  { %7416 = vsyncadd [#allocation17], 4294958080  ;;  %v7461_v0 = vmov 0.0   ;;  %v300_v1 = vld [vmem:[%s7482_s13 + $0xb4] sm:$0xff]  ;;  %v298_v2 = vld [vmem:[%s7482_s13 + $0xa8] sm:$0xff]  ;;  %vm7462_vm0 = vmmov 0  }
  0xae   :  { %647 = vmatprep.mubr.f32.mxu1 %v7461_v0  ;;  %v364_v3 = vld [vmem:[%s7482_s13 + $0x234] sm:$0xff]  ;;  %v414_v4 = vunpack.c.h.bf16 %v300_v1  ;;  %v413_v5 = vunpack.c.l.bf16 %v300_v1  ;;  %v411_v6 = vunpack.c.h.bf16 %v298_v2  ;;  %v296_v7 = vld [vmem:[%s7482_s13 + $0x9c] sm:$0xff]  ;;  %v362_v8 = vld [vmem:[%s7482_s13 + $0x228] sm:$0xff]  ;;  %v410_v9 = vunpack.c.l.bf16 %v298_v2  ;;  %s8483_s30 = sld [smem:[#allocation28_spill]] }
  0xaf   :  { %v510_v10 = vunpack.c.h.bf16 %v364_v3  ;;  %v509_v11 = vunpack.c.l.bf16 %v364_v3  ;;  %v294_v12 = vld [vmem:[%s7482_s13 + $0x90] sm:$0xff]  ;;  %v360_v13 = vld [vmem:[%s7482_s13 + $0x21c] sm:$0xff]  ;;  %v408_v14 = vunpack.c.h.bf16 %v296_v7  ;;  %v507_v15 = vunpack.c.h.bf16 %v362_v8  ;;  %v292_v20 = vld [vmem:[%s7482_s13 + $0x84] sm:$0xff]  ;;  %s8484_s27 = sld [smem:[#allocation29_spill]] }
  0xb0   :  { %512 = vmatprep.subr.mxu0 %v414_v4  ;;  %v506_v16 = vunpack.c.l.bf16 %v362_v8  ;;  %v358_v17 = vld [vmem:[%s7482_s13 + $0x210] sm:$0xff]  ;;  %v407_v18 = vunpack.c.l.bf16 %v296_v7  ;;  %v504_v19 = vunpack.c.h.bf16 %v360_v13  ;;  %v405_v21 = vunpack.c.h.bf16 %v294_v12  ;;  %v356_v23 = vld [vmem:[%s7482_s13 + $0x204] sm:$0xff]  ;;  %v290_v26 = vld [vmem:[%s7482_s13 + $0x78] sm:$0xff]  ;;  %s8485_s4 = sld [smem:[#allocation30_spill]] }
  0xb1   :  { %513 = vmatpush1.msra.mxu0 %v413_v5  ;;  %583 = vmatprep.subr.mxu1 %v510_v10  ;;  %v503_v22 = vunpack.c.l.bf16 %v360_v13  ;;  %v404_v24 = vunpack.c.l.bf16 %v294_v12  ;;  %v501_v25 = vunpack.c.h.bf16 %v358_v17  ;;  %v402_v27 = vunpack.c.h.bf16 %v292_v20  ;;  %v354_v29 = vld [vmem:[%s7482_s13 + $0x1f8] sm:$0xff]  ;;  %v288_v32 = vld [vmem:[%s7482_s13 + $0x6c] sm:$0xff]  ;;  %v286_v38 = vld [vmem:[%s7482_s13 + $0x60] sm:$0xff]  ;;  %s8486_s3 = sld [smem:[#allocation31_spill]] }
  0xb2   :  { %514 = vmatprep.subr.mxu0 %v411_v6  ;;  %584 = vmatpush1.msra.mxu1 %v509_v11  ;;  %v500_v28 = vunpack.c.l.bf16 %v358_v17  ;;  %v401_v30 = vunpack.c.l.bf16 %v292_v20  ;;  %v498_v31 = vunpack.c.h.bf16 %v356_v23  ;;  %v399_v33 = vunpack.c.h.bf16 %v290_v26  ;;  %v352_v35 = vld [vmem:[%s7482_s13 + $0x1ec] sm:$0xff]  ;;  %v350_v41 = vld [vmem:[%s7482_s13 + $0x1e0] sm:$0xff]  ;;  %v284_v44 = vld [vmem:[%s7482_s13 + $0x54] sm:$0xff]  ;;  %s8487_s28 = sld [smem:[#allocation34_spill]] }
  0xb3   :  { %515 = vmatpush1.msra.mxu0 %v410_v9  ;;  %585 = vmatprep.subr.mxu1 %v507_v15  ;;  %v497_v34 = vunpack.c.l.bf16 %v356_v23  ;;  %v398_v36 = vunpack.c.l.bf16 %v290_v26  ;;  %v495_v37 = vunpack.c.h.bf16 %v354_v29  ;;  %v396_v39 = vunpack.c.h.bf16 %v288_v32  ;;  %v348_v47 = vld [vmem:[%s7482_s13 + $0x1d4] sm:$0xff]  ;;  %v282_v50 = vld [vmem:[%s7482_s13 + $0x48] sm:$0xff]  ;;  %v280_v56 = vld [vmem:[%s7482_s13 + $0x3c] sm:$0xff]  ;;  %s8488_s2 = sld [smem:[#allocation32_spill]] }
  0xb4   :  { %516 = vmatprep.subr.mxu0 %v408_v14  ;;  %586 = vmatpush1.msra.mxu1 %v506_v16  ;;  %v494_v40 = vunpack.c.l.bf16 %v354_v29  ;;  %v395_v42 = vunpack.c.l.bf16 %v288_v32  ;;  %v492_v43 = vunpack.c.h.bf16 %v352_v35  ;;  %v393_v45 = vunpack.c.h.bf16 %v286_v38  ;;  %v346_v53 = vld [vmem:[%s7482_s13 + $0x1c8] sm:$0xff]  ;;  %v344_v59 = vld [vmem:[%s7482_s13 + $0x1bc] sm:$0xff]  ;;  %v278_v62 = vld [vmem:[%s7482_s13 + $0x30] sm:$0xff]  ;;  %s8489_s7 = sld [smem:[#allocation33_spill]] }
  0xb5   :  { %517 = vmatpush1.msra.mxu0 %v407_v18  ;;  %587 = vmatprep.subr.mxu1 %v504_v19  ;;  %v491_v46 = vunpack.c.l.bf16 %v352_v35  ;;  %v392_v48 = vunpack.c.l.bf16 %v286_v38  ;;  %v489_v49 = vunpack.c.h.bf16 %v350_v41  ;;  %v390_v51 = vunpack.c.h.bf16 %v284_v44  ;;  %v342_v2 = vld [vmem:[%s7482_s13 + $0x1b0] sm:$0xff]  ;;  %v276_v5 = vld [vmem:[%s7482_s13 + $0x24] sm:$0xff]  ;;  %v274_v11 = vld [vmem:[%s7482_s13 + $0x18] sm:$0xff]  ;;  %s8490_s10 = sld [smem:[#allocation37_spill]] }
  0xb6   :  { %518 = vmatprep.subr.mxu0 %v405_v21  ;;  %588 = vmatpush1.msra.mxu1 %v503_v22  ;;  %v488_v52 = vunpack.c.l.bf16 %v350_v41  ;;  %v389_v54 = vunpack.c.l.bf16 %v284_v44  ;;  %v486_v55 = vunpack.c.h.bf16 %v348_v47  ;;  %v387_v57 = vunpack.c.h.bf16 %v282_v50  ;;  %v340_v8 = vld [vmem:[%s7482_s13 + $0x1a4] sm:$0xff]  ;;  %v338_v14 = vld [vmem:[%s7482_s13 + $0x198] sm:$0xff]  ;;  %v272_v17 = vld [vmem:[%s7482_s13 + $0xc] sm:$0xff]  ;;  %s8491_s11 = sld [smem:[#allocation35_spill]] }
  0xb7   :  { %519 = vmatpush1.msra.mxu0 %v404_v24  ;;  %589 = vmatprep.subr.mxu1 %v501_v25  ;;  %v485_v58 = vunpack.c.l.bf16 %v348_v47  ;;  %v386_v60 = vunpack.c.l.bf16 %v282_v50  ;;  %v483_v61 = vunpack.c.h.bf16 %v346_v53  ;;  %v384_v63 = vunpack.c.h.bf16 %v280_v56  ;;  %v336_v20 = vld [vmem:[%s7482_s13 + $0x18c] sm:$0xff]  ;;  %v270_v23 = vld [vmem:[%s7482_s13] sm:$0xff]  ;;  %v332_v29 = vld [vmem:[%s7482_s13 + $0x174] sm:$0xff]  ;;  %s8492_s0 = sld [smem:[#allocation36_spill]] }
  0xb8   :  { %520 = vmatprep.subr.mxu0 %v402_v27  ;;  %590 = vmatpush1.msra.mxu1 %v500_v28  ;;  %v482_v1 = vunpack.c.l.bf16 %v346_v53  ;;  %v383_v3 = vunpack.c.l.bf16 %v280_v56  ;;  %v480_v4 = vunpack.c.h.bf16 %v344_v59  ;;  %v381_v6 = vunpack.c.h.bf16 %v278_v62  ;;  %v334_v26 = vld [vmem:[%s7482_s13 + $0x180] sm:$0xff]  ;;  %v333_v32 = vld [vmem:[%s7482_s13 + $0x170] ss:$12 sps:$4 sm:$0xff]   ;;  %v330_v35 = vld [vmem:[%s7482_s13 + $0x168] sm:$0xff]  ;;  %s8493_s12 = sld [smem:[#allocation38_spill]] }
  0xb9   :  { %521 = vmatpush1.msra.mxu0 %v401_v30  ;;  %591 = vmatprep.subr.mxu1 %v498_v31  ;;  %v479_v7 = vunpack.c.l.bf16 %v344_v59  ;;  %v380_v9 = vunpack.c.l.bf16 %v278_v62  ;;  %v477_v10 = vunpack.c.h.bf16 %v342_v2  ;;  %v378_v12 = vunpack.c.h.bf16 %v276_v5  ;;  %v301_v38 = vld [vmem:[%s7482_s13 + $0xb0] ss:$12 sps:$4 sm:$0xff]   ;;  %v329_v47 = vld [vmem:[%s7482_s13 + $0x158] ss:$12 sps:$4 sm:$0xff]   ;;  %v325_v59 = vld [vmem:[%s7482_s13 + $0x140] ss:$12 sps:$4 sm:$0xff]  }
  0xba   :  { %522 = vmatprep.subr.mxu0 %v399_v33  ;;  %592 = vmatpush1.msra.mxu1 %v497_v34  ;;  %v476_v13 = vunpack.c.l.bf16 %v342_v2  ;;  %v377_v15 = vunpack.c.l.bf16 %v276_v5  ;;  %v474_v16 = vunpack.c.h.bf16 %v340_v8  ;;  %v375_v18 = vunpack.c.h.bf16 %v274_v11  ;;  %v328_v41 = vld [vmem:[%s7482_s13 + $0x15c] sm:$0xff]  ;;  %v7704_v44 = vld [vmem:[%s7472_s5 + $0x10] sm:$0xff]  ;;  %v297_v50 = vld [vmem:[%s7482_s13 + $0x98] ss:$12 sps:$4 sm:$0xff]  }
  0xbb   :  { %523 = vmatpush1.msra.mxu0 %v398_v36  ;;  %593 = vmatprep.subr.mxu1 %v495_v37  ;;  %v473_v19 = vunpack.c.l.bf16 %v340_v8  ;;  %v374_v21 = vunpack.c.l.bf16 %v274_v11  ;;  %v471_v22 = vunpack.c.h.bf16 %v338_v14  ;;  %v372_v24 = vunpack.c.h.bf16 %v272_v17  ;;  %v324_v53 = vld [vmem:[%s7482_s13 + $0x144] sm:$0xff]  ;;  %v293_v62 = vld [vmem:[%s7482_s13 + $0x80] ss:$12 sps:$4 sm:$0xff]  }
  0xbc   :  { %524 = vmatprep.subr.mxu0 %v396_v39  ;;  %594 = vmatpush1.msra.mxu1 %v494_v40  ;;  %v470_v25 = vunpack.c.l.bf16 %v338_v14  ;;  %v371_v27 = vunpack.c.l.bf16 %v272_v17  ;;  %v468_v28 = vunpack.c.h.bf16 %v336_v20  ;;  %v369_v30 = vunpack.c.h.bf16 %v270_v23  ;;  %v320_v2 = vld [vmem:[%s7482_s13 + $0x12c] sm:$0xff]  ;;  %v321_v8 = vld [vmem:[%s7482_s13 + $0x128] ss:$12 sps:$4 sm:$0xff]  }
  0xbd   :  { %525 = vmatpush1.msra.mxu0 %v395_v42  ;;  %595 = vmatprep.subr.mxu1 %v492_v43  ;;  %v467_v31 = vunpack.c.l.bf16 %v336_v20  ;;  %v368_v33 = vunpack.c.l.bf16 %v270_v23  ;;  %v465_v34 = vunpack.c.h.bf16 %v334_v26  ;;  %v462_v36 = vunpack.c.h.bf16 %v332_v29  ;;  %v289_v11 = vld [vmem:[%s7482_s13 + $0x68] ss:$12 sps:$4 sm:$0xff]   ;;  %v317_v20 = vld [vmem:[%s7482_s13 + $0x110] ss:$12 sps:$4 sm:$0xff]  }
  0xbe   :  { %526 = vmatprep.subr.mxu0 %v393_v45  ;;  %596 = vmatpush1.msra.mxu1 %v491_v46  ;;  %v464_v37 = vunpack.c.l.bf16 %v334_v26  ;;  %v461_v39 = vunpack.c.l.bf16 %v332_v29  ;;  %v463_v40 = vunpack.c.h.bf16 %v333_v32  ;;  %v459_v42 = vunpack.c.h.bf16 %v330_v35  ;;  %v326_v46 = vld [vmem:[%s7482_s13 + $0x150] sm:$0xff]  ;;  %v312_v26 = vld [vmem:[%s7482_s13 + $0xfc] sm:$0xff] }
  0xbf   :  { %527 = vmatpush1.msra.mxu0 %v392_v48  ;;  %597 = vmatprep.subr.mxu1 %v489_v49  ;;  %v458_v43 = vunpack.c.l.bf16 %v330_v35  ;;  %v415_v45 = vunpack.c.h.bf16 %v301_v38  ;;  %v456_v48 = vunpack.c.h.bf16 %v328_v41  ;;  %v460_v49 = vunpack.c.l.bf16 %v333_v32  ;;  %v316_v14 = vld [vmem:[%s7482_s13 + $0x114] sm:$0xff]  ;;  %v285_v23 = vld [vmem:[%s7482_s13 + $0x50] ss:$12 sps:$4 sm:$0xff]  }
  0xc0   :  { %528 = vmatprep.subr.mxu0 %v390_v51  ;;  %598 = vmatpush1.msra.mxu1 %v488_v52  ;;  %v455_v51 = vunpack.c.l.bf16 %v328_v41  ;;  %v412_v52 = vunpack.c.l.bf16 %v301_v38  ;;  %v452_v56 = vunpack.c.l.bf16 %v326_v46  ;;  %v313_v32 = vld [vmem:[%s7482_s13 + $0xf8] ss:$12 sps:$4 sm:$0xff]   ;;  %vm5851_vm1 = vcmask 523264  }
  0xc1   :  { %529 = vmatpush1.msra.mxu0 %v389_v54  ;;  %599 = vmatprep.subr.mxu1 %v486_v55  ;;  %v453_v54 = vunpack.c.h.bf16 %v326_v46  ;;  %v457_v55 = vunpack.c.h.bf16 %v329_v47  ;;  %v281_v35 = vld [vmem:[%s7482_s13 + $0x38] ss:$12 sps:$4 sm:$0xff]   ;;  %vm6075_vm2 = vcmask 785408   ;;  %vm6218_vm3 = vcmask 31744  }
  0xc2   :  { %530 = vmatprep.subr.mxu0 %v387_v57  ;;  %600 = vmatpush1.msra.mxu1 %v485_v58  ;;  %v409_v57 = vunpack.c.h.bf16 %v297_v50  ;;  %v322_v58 = vld [vmem:[%s7482_s13 + $0x138] sm:$0xff]  ;;  %v308_v38 = vld [vmem:[%s7482_s13 + $0xe4] sm:$0xff] }
  0xc3   :  { %531 = vmatpush1.msra.mxu0 %v386_v60  ;;  %601 = vmatprep.subr.mxu1 %v483_v61  ;;  %v450_v60 = vunpack.c.h.bf16 %v324_v53  ;;  %v454_v61 = vunpack.c.l.bf16 %v329_v47  ;;  %v446_v5 = vunpack.c.l.bf16 %v322_v58  ;;  %v426_v46 = vunpack.c.h.bf16 %v308_v38 }
  0xc4   :  { %532 = vmatprep.subr.mxu0 %v384_v63  ;;  %602 = vmatpush1.msra.mxu1 %v482_v1  ;;  %v449_v63 = vunpack.c.l.bf16 %v324_v53  ;;  %v406_v1 = vunpack.c.l.bf16 %v297_v50  ;;  %v430_v47 = vunpack.c.l.bf16 %v313_v32  ;;  %v382_v50 = vunpack.c.l.bf16 %v281_v35 }
  0xc5   :  { %533 = vmatpush1.msra.mxu0 %v383_v3  ;;  %603 = vmatprep.subr.mxu1 %v480_v4  ;;  %v447_v3 = vunpack.c.h.bf16 %v322_v58  ;;  %v451_v4 = vunpack.c.h.bf16 %v325_v59 }
  0xc6   :  { %534 = vmatprep.subr.mxu0 %v381_v6  ;;  %604 = vmatpush1.msra.mxu1 %v479_v7  ;;  %v403_v6 = vunpack.c.h.bf16 %v293_v62  ;;  %v318_v7 = vld [vmem:[%s7482_s13 + $0x120] sm:$0xff] }
  0xc7   :  { %535 = vmatpush1.msra.mxu0 %v380_v9  ;;  %605 = vmatprep.subr.mxu1 %v477_v10  ;;  %v444_v9 = vunpack.c.h.bf16 %v320_v2  ;;  %v448_v10 = vunpack.c.l.bf16 %v325_v59  ;;  %v440_v17 = vunpack.c.l.bf16 %v318_v7  ;;  %v305_v59 = vld [vmem:[%s7482_s13 + $0xc8] ss:$12 sps:$4 sm:$0xff]  }
  0xc8   :  { %536 = vmatprep.subr.mxu0 %v378_v12  ;;  %606 = vmatpush1.msra.mxu1 %v476_v13  ;;  %v443_v12 = vunpack.c.l.bf16 %v320_v2  ;;  %v400_v13 = vunpack.c.l.bf16 %v293_v62  ;;  %v273_v62 = vld [vmem:[%s7482_s13 + $0x14] ss:$552 sps:$4 sm:$0xff]   ;;  %v265_v2 = vld [vmem:[%s7472_s5 + $0x8] sm:$0xff] }
  0xc9   :  { %537 = vmatpush1.msra.mxu0 %v377_v15  ;;  %607 = vmatprep.subr.mxu1 %v474_v16  ;;  %v441_v15 = vunpack.c.h.bf16 %v318_v7  ;;  %v445_v16 = vunpack.c.h.bf16 %v321_v8  ;;  %v418_v7 = vunpack.c.l.bf16 %v305_v59 }
  0xca   :  { %538 = vmatprep.subr.mxu0 %v375_v18  ;;  %608 = vmatpush1.msra.mxu1 %v473_v19  ;;  %v397_v18 = vunpack.c.h.bf16 %v289_v11  ;;  %v314_v19 = vld [vmem:[%s7482_s13 + $0x108] sm:$0xff] }
  0xcb   :  { %539 = vmatpush1.msra.mxu0 %v374_v21  ;;  %609 = vmatprep.subr.mxu1 %v471_v22  ;;  %v438_v21 = vunpack.c.h.bf16 %v316_v14  ;;  %v442_v22 = vunpack.c.l.bf16 %v321_v8  ;;  %v434_v29 = vunpack.c.l.bf16 %v314_v19  ;;  %v982_v8 = vld [vmem:[#allocation2 + $0xb4] sm:$0xff] }
  0xcc   :  { %540 = vmatprep.subr.mxu0 %v372_v24  ;;  %610 = vmatpush1.msra.mxu1 %v470_v25  ;;  %v437_v24 = vunpack.c.l.bf16 %v316_v14  ;;  %v394_v25 = vunpack.c.l.bf16 %v289_v11  ;;  %v361_v11 = vld [vmem:[%s7482_s13 + $0x218] ss:$12 sps:$4 sm:$0xff]   ;;  %v980_v14 = vld [vmem:[#allocation2 + $0xa8] sm:$0xff] }
  0xcd   :  { %541 = vmatpush1.msra.mxu0 %v371_v27  ;;  %611 = vmatprep.subr.mxu1 %v468_v28  ;;  %v435_v27 = vunpack.c.h.bf16 %v314_v19  ;;  %v439_v28 = vunpack.c.h.bf16 %v317_v20  ;;  %v357_v19 = vld [vmem:[%s7482_s13 + $0x200] ss:$12 sps:$4 sm:$0xff]  }
  0xce   :  { %542 = vmatprep.subr.mxu0 %v369_v30  ;;  %612 = vmatpush1.msra.mxu1 %v467_v31  ;;  %v391_v30 = vunpack.c.h.bf16 %v285_v23  ;;  %v310_v31 = vld [vmem:[%s7482_s13 + $0xf0] sm:$0xff] }
  0xcf   :  { %543 = vmatpush1.msra.mxu0 %v368_v33  ;;  %613 = vmatprep.subr.mxu1 %v465_v34  ;;  %v432_v33 = vunpack.c.h.bf16 %v312_v26  ;;  %v436_v34 = vunpack.c.l.bf16 %v317_v20  ;;  %v428_v41 = vunpack.c.l.bf16 %v310_v31  ;;  %v1092_v20 = vunpack.c.l.bf16 %v980_v14 }
  0xd0   :  { %544 = vmatprep.subr.mxu0 %v462_v36  ;;  %614 = vmatpush1.msra.mxu1 %v464_v37  ;;  %v431_v36 = vunpack.c.l.bf16 %v312_v26  ;;  %v388_v37 = vunpack.c.l.bf16 %v285_v23  ;;  %v974_v26 = vld [vmem:[#allocation2 + $0x84] sm:$0xff] }
  0xd1   :  { %545 = vmatpush2.msra.mxu0 %v461_v39  ;;  %6364 = vmatprep.subr.mxu1 %v463_v40  ;;  %v429_v39 = vunpack.c.h.bf16 %v310_v31  ;;  %v433_v40 = vunpack.c.h.bf16 %v313_v32  ;;  %v972_v31 = vld [vmem:[#allocation2 + $0x78] sm:$0xff]  ;;  %v1084_v32 = vunpack.c.h.bf16 %v974_v26 }
  0xd2   :  { %546 = vmatprep.subr.mxu0 %v459_v42  ;;  %648 = vmatmul.mubr.f32.vlgmr.msra.gmra.mxu1 %v7704_v44  ;;  %v385_v42 = vunpack.c.h.bf16 %v281_v35  ;;  %v970_v35 = vld [vmem:[#allocation2 + $0x6c] sm:$0xff] }
  0xd3   :  { %547 = vmatpush2.msra.mxu0 %v458_v43  ;;  %6365 = vmatpush3.msra.mxu1 %v415_v45  ;;  %v306_v43 = vld [vmem:[%s7482_s13 + $0xd8] sm:$0xff]  ;;  %v309_v45 = vld [vmem:[%s7482_s13 + $0xe0] ss:$12 sps:$4 sm:$0xff]  }
  0xd4   :  { %548 = vmatprep.subr.mxu0 %v456_v48  ;;  %6366 = vmatprep.subr.mxu1 %v460_v49  ;;  %v277_v48 = vld [vmem:[%s7482_s13 + $0x20] ss:$12 sps:$4 sm:$0xff]   ;;  %v425_v49 = vunpack.c.l.bf16 %v308_v38  ;;  %v427_v53 = vunpack.c.h.bf16 %v309_v45  ;;  %v424_v58 = vunpack.c.l.bf16 %v309_v45  ;;  %v1080_v38 = vunpack.c.l.bf16 %v972_v31  ;;  %v966_v45 = vld [vmem:[#allocation2 + $0x54] sm:$0xff] }
  0xd5   :  { %549 = vmatpush2.msra.mxu0 %v455_v51  ;;  %6367 = vmatpush3.msra.mxu1 %v412_v52  ;;  %v304_v51 = vld [vmem:[%s7482_s13 + $0xcc] sm:$0xff]  ;;  %v423_v52 = vunpack.c.h.bf16 %v306_v43 }
  0xd6   :  { %550 = vmatprep.subr.mxu0 %v453_v54  ;;  %6368 = vmatprep.subr.mxu1 %v457_v55  ;;  %v422_v54 = vunpack.c.l.bf16 %v306_v43  ;;  %v379_v55 = vunpack.c.h.bf16 %v277_v48 }
  0xd7   :  { %551 = vmatpush2.msra.mxu0 %v452_v56  ;;  %6369 = vmatpush3.msra.mxu1 %v409_v57  ;;  %v302_v56 = vld [vmem:[%s7482_s13 + $0xc0] sm:$0xff]  ;;  %v420_v57 = vunpack.c.h.bf16 %v304_v51 }
  0xd8   :  { %552 = vmatprep.subr.mxu0 %v450_v60  ;;  %6370 = vmatprep.subr.mxu1 %v454_v61  ;;  %v419_v60 = vunpack.c.l.bf16 %v304_v51  ;;  %v376_v61 = vunpack.c.l.bf16 %v277_v48  ;;  %v1072_v51 = vunpack.c.h.bf16 %v966_v45 }
  0xd9   :  { %553 = vmatpush2.msra.mxu0 %v449_v63  ;;  %6371 = vmatpush3.msra.mxu1 %v406_v1  ;;  %v417_v63 = vunpack.c.h.bf16 %v302_v56  ;;  %v416_v1 = vunpack.c.l.bf16 %v302_v56  ;;  %v341_v56 = vld [vmem:[%s7482_s13 + $0x1a0] ss:$12 sps:$4 sm:$0xff]  }
  0xda   :  { %554 = vmatprep.subr.mxu0 %v447_v3  ;;  %6372 = vmatprep.subr.mxu1 %v451_v4  ;;  %v421_v3 = vunpack.c.h.bf16 %v305_v59  ;;  %v271_v4 = vld [vmem:[%s7482_s13 + $0x8] ss:$552 sps:$4 sm:$0xff]  }
  0xdb   :  { %555 = vmatpush2.msra.mxu0 %v446_v5  ;;  %6373 = vmatpush3.msra.mxu1 %v403_v6  ;;  %v373_v5 = vunpack.c.l.bf16 %v273_v62  ;;  %v264_v6 = vld [vmem:[%s7472_s5] sm:$0xff]  ;;  %v960_v59 = vld [vmem:[#allocation2 + $0x30] sm:$0xff] }
  0xdc   :  { %556 = vmatprep.subr.mxu0 %v444_v9  ;;  %6374 = vmatprep.subr.mxu1 %v448_v10  ;;  %v511_v9 = vunpack.c.h.bf16 %v273_v62  ;;  %v370_v10 = vunpack.c.l.bf16 %v271_v4  ;;  %v475_v62 = vunpack.c.h.bf16 %v341_v56 }
  0xdd   :  { %557 = vmatpush2.msra.mxu0 %v443_v12  ;;  %6375 = vmatpush3.msra.mxu1 %v400_v13  ;;  %v508_v12 = vunpack.c.h.bf16 %v271_v4  ;;  %v1096_v13 = vunpack.c.h.bf16 %v982_v8  ;;  %v472_v4 = vunpack.c.l.bf16 %v341_v56 }
  0xde   :  { %558 = vmatprep.subr.mxu0 %v441_v15  ;;  %6376 = vmatprep.subr.mxu1 %v445_v16  ;;  %v1095_v15 = vunpack.c.l.bf16 %v982_v8  ;;  %v505_v16 = vunpack.c.h.bf16 %v361_v11 }
  0xdf   :  { %559 = vmatpush2.msra.mxu0 %v440_v17  ;;  %6377 = vmatpush3.msra.mxu1 %v397_v18  ;;  %v978_v17 = vld [vmem:[#allocation2 + $0x9c] sm:$0xff]  ;;  %v1093_v18 = vunpack.c.h.bf16 %v980_v14 }
  0xe0   :  { %560 = vmatprep.subr.mxu0 %v438_v21  ;;  %6378 = vmatprep.subr.mxu1 %v442_v22  ;;  %v502_v21 = vunpack.c.l.bf16 %v361_v11  ;;  %v976_v22 = vld [vmem:[#allocation2 + $0x90] sm:$0xff]  ;;  %v1090_v23 = vunpack.c.h.bf16 %v978_v17  ;;  %v952_v14 = vld [vmem:[#allocation2] sm:$0xff] }
  0xe1   :  { %561 = vmatpush2.msra.mxu0 %v437_v24  ;;  %6379 = vmatpush3.msra.mxu1 %v394_v25  ;;  %v1089_v24 = vunpack.c.l.bf16 %v978_v17  ;;  %v499_v25 = vunpack.c.h.bf16 %v357_v19  ;;  %v1044_v17 = vld [vmem:[#allocation2 + $0x228] sm:$0xff] }
  0xe2   :  { %562 = vmatprep.subr.mxu0 %v435_v27  ;;  %6380 = vmatprep.subr.mxu1 %v439_v28  ;;  %v1087_v27 = vunpack.c.h.bf16 %v976_v22  ;;  %v353_v28 = vld [vmem:[%s7482_s13 + $0x1e8] ss:$12 sps:$4 sm:$0xff]  }
  0xe3   :  { %563 = vmatpush2.msra.mxu0 %v434_v29  ;;  %6381 = vmatpush3.msra.mxu1 %v391_v30  ;;  %v1086_v29 = vunpack.c.l.bf16 %v976_v22  ;;  %v496_v30 = vunpack.c.l.bf16 %v357_v19  ;;  %v1050_v22 = vunpack.c.l.bf16 %v952_v14 }
  0xe4   :  { %564 = vmatprep.subr.mxu0 %v432_v33  ;;  %6382 = vmatprep.subr.mxu1 %v436_v34  ;;  %v1083_v33 = vunpack.c.l.bf16 %v974_v26  ;;  %v493_v34 = vunpack.c.h.bf16 %v353_v28 }
  0xe5   :  { %565 = vmatpush2.msra.mxu0 %v431_v36  ;;  %6383 = vmatpush3.msra.mxu1 %v388_v37  ;;  %v1081_v36 = vunpack.c.h.bf16 %v972_v31  ;;  %v349_v37 = vld [vmem:[%s7482_s13 + $0x1d0] ss:$12 sps:$4 sm:$0xff]  }
  0xe6   :  { %566 = vmatprep.subr.mxu0 %v429_v39  ;;  %6384 = vmatprep.subr.mxu1 %v433_v40  ;;  %v490_v39 = vunpack.c.l.bf16 %v353_v28  ;;  %v968_v40 = vld [vmem:[#allocation2 + $0x60] sm:$0xff]  ;;  %v487_v43 = vunpack.c.h.bf16 %v349_v37 }
  0xe7   :  { %567 = vmatpush2.msra.mxu0 %v428_v41  ;;  %6385 = vmatpush3.msra.mxu1 %v385_v42  ;;  %v1078_v41 = vunpack.c.h.bf16 %v970_v35  ;;  %v1077_v42 = vunpack.c.l.bf16 %v970_v35  ;;  %v1074_v48 = vunpack.c.l.bf16 %v968_v40  ;;  %v1038_v35 = vld [vmem:[#allocation2 + $0x204] sm:$0xff] }
  0xe8   :  { %568 = vmatprep.subr.mxu0 %v426_v46  ;;  %6386 = vmatprep.subr.mxu1 %v430_v47  ;;  %v1075_v46 = vunpack.c.h.bf16 %v968_v40  ;;  %v345_v47 = vld [vmem:[%s7482_s13 + $0x1b8] ss:$12 sps:$4 sm:$0xff]  }
  0xe9   :  { %569 = vmatpush2.msra.mxu0 %v425_v49  ;;  %6387 = vmatpush3.msra.mxu1 %v382_v50  ;;  %v484_v49 = vunpack.c.l.bf16 %v349_v37  ;;  %v964_v50 = vld [vmem:[#allocation2 + $0x48] sm:$0xff]  ;;  %v1036_v40 = vld [vmem:[#allocation2 + $0x1f8] sm:$0xff] }
  0xea   :  { %570 = vmatprep.subr.mxu0 %v423_v52  ;;  %6388 = vmatprep.subr.mxu1 %v427_v53  ;;  %v1071_v52 = vunpack.c.l.bf16 %v966_v45  ;;  %v481_v53 = vunpack.c.h.bf16 %v345_v47  ;;  %v1179_v45 = vunpack.c.l.bf16 %v1038_v35 }
  0xeb   :  { %571 = vmatpush2.msra.mxu0 %v422_v54  ;;  %6389 = vmatpush3.msra.mxu1 %v379_v55  ;;  %v962_v54 = vld [vmem:[#allocation2 + $0x3c] sm:$0xff]  ;;  %v1069_v55 = vunpack.c.h.bf16 %v964_v50 }
  0xec   :  { %572 = vmatprep.subr.mxu0 %v420_v57  ;;  %6390 = vmatprep.subr.mxu1 %v424_v58  ;;  %v1068_v57 = vunpack.c.l.bf16 %v964_v50  ;;  %v478_v58 = vunpack.c.l.bf16 %v345_v47  ;;  %v1034_v47 = vld [vmem:[#allocation2 + $0x1ec] sm:$0xff] }
  0xed   :  { %573 = vmatpush2.msra.mxu0 %v419_v60  ;;  %6391 = vmatpush3.msra.mxu1 %v376_v61  ;;  %v1066_v60 = vunpack.c.h.bf16 %v962_v54  ;;  %v1065_v61 = vunpack.c.l.bf16 %v962_v54  ;;  %v1002_v54 = vld [vmem:[#allocation2 + $0x12c] sm:$0xff] }
  0xee   :  { %574 = vmatprep.subr.mxu0 %v417_v63  ;;  %576 = vmatprep.mubr.f32.mxu0 %v265_v2  ;;  %v958_v63 = vld [vmem:[#allocation2 + $0x24] sm:$0xff] }
  0xef   :  { %575 = vmatpush2.msra.mxu0 %v416_v1  ;;  %6392 = vmatprep.subr.mxu1 %v421_v3  ;;  %v1063_v1 = vunpack.c.h.bf16 %v960_v59  ;;  %v1062_v3 = vunpack.c.l.bf16 %v960_v59  ;;  %v1030_v59 = vld [vmem:[#allocation2 + $0x1d4] sm:$0xff] }
  0xf0   :  { %577 = vmatmul.mubr.f32.vlgmr.msra.gmra.mxu0 %v264_v6  ;;  %6393 = vmatpush3.msra.mxu1 %v373_v5  ;;  %v956_v5 = vld [vmem:[#allocation2 + $0x18] sm:$0xff] }
  0xf1   :  { %6793 = vmatprep.subr.mxu0 %v7461_v0  ;;  %6394 = vmatprep.subr.mxu1 %v418_v7  ;;  %v1059_v7 = vunpack.c.l.bf16 %v958_v63  ;;  %v1056_v11 = vunpack.c.l.bf16 %v956_v5 }
  0xf2   :  { %6794 = vmatpush3.msra.mxu0 %v511_v9  ;;  %6395 = vmatpush3.msra.mxu1 %v370_v10  ;;  %v954_v9 = vld [vmem:[#allocation2 + $0xc] sm:$0xff]  ;;  %v1057_v10 = vunpack.c.h.bf16 %v956_v5 }
  0xf3   :  { %6795 = vmatprep.subr.mxu0 %v7461_v0  ;;  %718 = vmatprep.mubr.f32.mxu1 %v265_v2  ;;  %v337_v2 = vld [vmem:[%s7482_s13 + $0x188] ss:$12 sps:$4 sm:$0xff]   ;;  %s8479_s13 = sld [smem:[#allocation24_spill]] }
  0xf4   :  { %6796 = vmatpush3.msra.mxu0 %v508_v12  ;;  %1194 = vmatprep.subr.mxu1 %v1096_v13  ;;  %v469_v8 = vunpack.c.h.bf16 %v337_v2  ;;  %v466_v12 = vunpack.c.l.bf16 %v337_v2  ;;  %v1046_v13 = vld [vmem:[#allocation2 + $0x234] sm:$0xff]  ;;  %v1028_v2 = vld [vmem:[#allocation2 + $0x1c8] sm:$0xff] }
  0xf5   :  { %719 = vmatmul.mubr.f32.vlgmr.msra.gmra.mxu1 %v264_v6  ;;  %6797 = vmatprep.subr.mxu0 %v7461_v0  ;;  %v1060_v6 = vunpack.c.h.bf16 %v958_v63  ;;  %v1192_v19 = vunpack.c.h.bf16 %v1046_v13 }
  0xf6   :  { %1195 = vmatpush1.msra.mxu1 %v1095_v15  ;;  %6798 = vmatpush3.msra.mxu0 %v505_v16  ;;  %v1054_v15 = vunpack.c.h.bf16 %v954_v9  ;;  %v1053_v16 = vunpack.c.l.bf16 %v954_v9  ;;  %v996_v9 = vld [vmem:[#allocation2 + $0x108] sm:$0xff] }
  0xf7   :  { %1196 = vmatprep.subr.mxu1 %v1093_v18  ;;  %6799 = vmatprep.subr.mxu0 %v7461_v0  ;;  %v1014_v18 = vld [vmem:[#allocation2 + $0x174] sm:$0xff] }
  0xf8   :  { %1197 = vmatpush1.msra.mxu1 %v1092_v20  ;;  %6800 = vmatpush3.msra.mxu0 %v502_v21  ;;  %v1051_v20 = vunpack.c.h.bf16 %v952_v14  ;;  %v1191_v21 = vunpack.c.l.bf16 %v1046_v13  ;;  %v1144_v26 = vunpack.c.h.bf16 %v1014_v18  ;;  %v1143_v28 = vunpack.c.l.bf16 %v1014_v18  ;;  %v1024_v14 = vld [vmem:[#allocation2 + $0x1b0] sm:$0xff] }
  0xf9   :  { %1198 = vmatprep.subr.mxu1 %v1090_v23  ;;  %6801 = vmatprep.subr.mxu0 %v7461_v0  ;;  %v1042_v23 = vld [vmem:[#allocation2 + $0x21c] sm:$0xff] }
  0xfa   :  { %1199 = vmatpush1.msra.mxu1 %v1089_v24  ;;  %6802 = vmatpush3.msra.mxu0 %v499_v25  ;;  %v1012_v24 = vld [vmem:[#allocation2 + $0x168] sm:$0xff]  ;;  %v1189_v25 = vunpack.c.h.bf16 %v1044_v17  ;;  %v1186_v31 = vunpack.c.h.bf16 %v1042_v23 }
  0xfb   :  { %1200 = vmatprep.subr.mxu1 %v1087_v27  ;;  %6803 = vmatprep.subr.mxu0 %v7461_v0  ;;  %v1188_v27 = vunpack.c.l.bf16 %v1044_v17  ;;  %v1117_v17 = vunpack.c.h.bf16 %v996_v9 }
  0xfc   :  { %1201 = vmatpush1.msra.mxu1 %v1086_v29  ;;  %6804 = vmatpush3.msra.mxu0 %v496_v30  ;;  %v1040_v29 = vld [vmem:[#allocation2 + $0x210] sm:$0xff]  ;;  %v1010_v30 = vld [vmem:[#allocation2 + $0x15c] sm:$0xff] }
  0xfd   :  { %1202 = vmatprep.subr.mxu1 %v1084_v32  ;;  %6805 = vmatprep.subr.mxu0 %v7461_v0  ;;  %v1141_v32 = vunpack.c.h.bf16 %v1012_v24  ;;  %v1183_v37 = vunpack.c.h.bf16 %v1040_v29 }
  0xfe   :  { %1203 = vmatpush1.msra.mxu1 %v1083_v33  ;;  %6806 = vmatpush3.msra.mxu0 %v493_v34  ;;  %v1185_v33 = vunpack.c.l.bf16 %v1042_v23  ;;  %v1140_v34 = vunpack.c.l.bf16 %v1012_v24  ;;  %v1158_v24 = vunpack.c.l.bf16 %v1024_v14 }
  0xff   :  { %1204 = vmatprep.subr.mxu1 %v1081_v36  ;;  %6807 = vmatprep.subr.mxu0 %v7461_v0  ;;  %v1008_v36 = vld [vmem:[#allocation2 + $0x150] sm:$0xff] }
 0x100   :  { %1205 = vmatpush1.msra.mxu1 %v1080_v38  ;;  %6808 = vmatpush3.msra.mxu0 %v490_v39  ;;  %v1138_v38 = vunpack.c.h.bf16 %v1010_v30  ;;  %v1137_v39 = vunpack.c.l.bf16 %v1010_v30 }
 0x101   :  { %1206 = vmatprep.subr.mxu1 %v1078_v41  ;;  %6809 = vmatprep.subr.mxu0 %v7461_v0  ;;  %v1006_v41 = vld [vmem:[#allocation2 + $0x144] sm:$0xff] }
 0x102   :  { %1207 = vmatpush1.msra.mxu1 %v1077_v42  ;;  %6810 = vmatpush3.msra.mxu0 %v487_v43  ;;  %v1180_v42 = vunpack.c.h.bf16 %v1038_v35  ;;  %v1135_v43 = vunpack.c.h.bf16 %v1008_v36  ;;  %v1132_v50 = vunpack.c.h.bf16 %v1006_v41 }
 0x103   :  { %1208 = vmatprep.subr.mxu1 %v1075_v46  ;;  %6811 = vmatprep.subr.mxu0 %v7461_v0  ;;  %v1134_v46 = vunpack.c.l.bf16 %v1008_v36 }
 0x104   :  { %1209 = vmatpush1.msra.mxu1 %v1074_v48  ;;  %6812 = vmatpush3.msra.mxu0 %v484_v49  ;;  %v1004_v48 = vld [vmem:[#allocation2 + $0x138] sm:$0xff]  ;;  %v1177_v49 = vunpack.c.h.bf16 %v1036_v40 }
 0x105   :  { %1210 = vmatprep.subr.mxu1 %v1072_v51  ;;  %6813 = vmatprep.subr.mxu0 %v7461_v0  ;;  %v1176_v51 = vunpack.c.l.bf16 %v1036_v40  ;;  %v1129_v56 = vunpack.c.h.bf16 %v1004_v48 }
 0x106   :  { %1211 = vmatpush1.msra.mxu1 %v1071_v52  ;;  %6814 = vmatpush3.msra.mxu0 %v481_v53  ;;  %v1131_v52 = vunpack.c.l.bf16 %v1006_v41  ;;  %v1032_v53 = vld [vmem:[#allocation2 + $0x1e0] sm:$0xff] }
 0x107   :  { %1212 = vmatprep.subr.mxu1 %v1069_v55  ;;  %6815 = vmatprep.subr.mxu0 %v7461_v0  ;;  %v1174_v55 = vunpack.c.h.bf16 %v1034_v47  ;;  %v1170_v63 = vunpack.c.l.bf16 %v1032_v53 }
 0x108   :  { %1213 = vmatpush1.msra.mxu1 %v1068_v57  ;;  %6816 = vmatpush3.msra.mxu0 %v478_v58  ;;  %v1173_v57 = vunpack.c.l.bf16 %v1034_v47  ;;  %v1128_v58 = vunpack.c.l.bf16 %v1004_v48  ;;  %v984_v47 = vld [vmem:[#allocation2 + $0xc0] sm:$0xff] }
 0x109   :  { %1214 = vmatprep.subr.mxu1 %v1066_v60  ;;  %6817 = vmatprep.subr.mxu0 %v7461_v0  ;;  %v1000_v60 = vld [vmem:[#allocation2 + $0x120] sm:$0xff] }
 0x10a   :  { %1215 = vmatpush1.msra.mxu1 %v1065_v61  ;;  %6818 = vmatpush3.msra.mxu0 %v475_v62  ;;  %v1171_v61 = vunpack.c.h.bf16 %v1032_v53  ;;  %v1126_v62 = vunpack.c.h.bf16 %v1002_v54  ;;  %v1123_v5 = vunpack.c.h.bf16 %v1000_v60  ;;  %v1098_v53 = vunpack.c.l.bf16 %v984_v47 }
 0x10b   :  { %1216 = vmatprep.subr.mxu1 %v1063_v1  ;;  %6819 = vmatprep.subr.mxu0 %v7461_v0  ;;  %v1125_v1 = vunpack.c.l.bf16 %v1002_v54  ;;  %v7764_v54 = vld [vmem:[%s7477_s9 + $0x10] sm:$0xff] }
 0x10c   :  { %1217 = vmatpush1.msra.mxu1 %v1062_v3  ;;  %6820 = vmatpush3.msra.mxu0 %v472_v4  ;;  %v998_v3 = vld [vmem:[#allocation2 + $0x114] sm:$0xff]  ;;  %v1168_v4 = vunpack.c.h.bf16 %v1030_v59 }
 0x10d   :  { %1218 = vmatprep.subr.mxu1 %v1060_v6  ;;  %6821 = vmatprep.subr.mxu0 %v7461_v0  ;;  %v1167_v6 = vunpack.c.l.bf16 %v1030_v59  ;;  %v1119_v13 = vunpack.c.l.bf16 %v998_v3  ;;  %v7768_v59 = vld [vmem:[%s7477_s9 + $0x8] sm:$0xff] }
 0x10e   :  { %1219 = vmatpush1.msra.mxu1 %v1059_v7  ;;  %6822 = vmatpush3.msra.mxu0 %v469_v8  ;;  %v1122_v7 = vunpack.c.l.bf16 %v1000_v60  ;;  %v1026_v8 = vld [vmem:[#allocation2 + $0x1bc] sm:$0xff] }
 0x10f   :  { %1220 = vmatprep.subr.mxu1 %v1057_v10  ;;  %6823 = vmatprep.subr.mxu0 %v7461_v0  ;;  %v1165_v10 = vunpack.c.h.bf16 %v1028_v2  ;;  %v1161_v18 = vunpack.c.l.bf16 %v1026_v8 }
 0x110   :  { %1221 = vmatpush1.msra.mxu1 %v1056_v11  ;;  %6824 = vmatpush3.msra.mxu0 %v466_v12  ;;  %v1120_v11 = vunpack.c.h.bf16 %v998_v3  ;;  %v1164_v12 = vunpack.c.l.bf16 %v1028_v2  ;;  %v1007_v3 = vld [vmem:[#allocation2 + $0x14c] ss:$216 sps:$4 sm:$0xff]  }
 0x111   :  { %6825 = vmatprep.mubr.msk.f32.mxu0 %vm7462_vm0, %v7461_v0  ;;  %1222 = vmatprep.subr.mxu1 %v1054_v15  ;;  %v994_v15 = vld [vmem:[#allocation2 + $0xfc] sm:$0xff] }
 0x112   :  { %6826 = vmatmul.mubr.f32.vlgmr.msra.gmra.mxu0 %v7704_v44  ;;  %1223 = vmatpush1.msra.mxu1 %v1053_v16  ;;  %v1182_v44 = vunpack.c.l.bf16 %v1040_v29  ;;  %v1162_v16 = vunpack.c.h.bf16 %v1026_v8  ;;  %v1114_v23 = vunpack.c.h.bf16 %v994_v15  ;;  %v1133_v8 = vunpack.c.l.bf16 %v1007_v3 }
 0x113   :  { %1265 = vmatprep.subr.mxu0 %v1192_v19  ;;  %1224 = vmatprep.subr.mxu1 %v1051_v20  ;;  %v1116_v19 = vunpack.c.l.bf16 %v996_v9  ;;  %v1022_v20 = vld [vmem:[#allocation2 + $0x1a4] sm:$0xff]  ;;  %v973_v9 = vld [vmem:[#allocation2 + $0x80] ss:$408 sps:$4 sm:$0xff]  }
 0x114   :  { %1266 = vmatpush1.msra.mxu0 %v1191_v21  ;;  %1225 = vmatpush1.msra.mxu1 %v1050_v22  ;;  %v992_v21 = vld [vmem:[#allocation2 + $0xf0] sm:$0xff]  ;;  %v1159_v22 = vunpack.c.h.bf16 %v1024_v14  ;;  %v1155_v30 = vunpack.c.l.bf16 %v1022_v20 }
 0x115   :  { %1267 = vmatprep.subr.mxu0 %v1189_v25  ;;  %1226 = vmatprep.subr.mxu1 %v1144_v26  ;;  %v1113_v25 = vunpack.c.l.bf16 %v994_v15  ;;  %v1020_v26 = vld [vmem:[#allocation2 + $0x198] sm:$0xff]  ;;  %v1111_v29 = vunpack.c.h.bf16 %v992_v21  ;;  %v971_v14 = vld [vmem:[#allocation2 + $0x74] ss:$180 sps:$4 sm:$0xff]   ;;  %v1082_v15 = vunpack.c.l.bf16 %v973_v9 }
 0x116   :  { %1268 = vmatpush1.msra.mxu0 %v1188_v27  ;;  %1227 = vmatpush2.msra.mxu1 %v1143_v28  ;;  %v990_v27 = vld [vmem:[#allocation2 + $0xe4] sm:$0xff]  ;;  %v1156_v28 = vunpack.c.h.bf16 %v1022_v20  ;;  %v1152_v36 = vunpack.c.l.bf16 %v1020_v26 }
 0x117   :  { %1269 = vmatprep.subr.mxu0 %v1186_v31  ;;  %1228 = vmatprep.subr.mxu1 %v1141_v32  ;;  %v1110_v31 = vunpack.c.l.bf16 %v992_v21  ;;  %v1018_v32 = vld [vmem:[#allocation2 + $0x18c] sm:$0xff]  ;;  %v1108_v35 = vunpack.c.h.bf16 %v990_v27  ;;  %v999_v21 = vld [vmem:[#allocation2 + $0x11c] ss:$216 sps:$4 sm:$0xff]  }
 0x118   :  { %1270 = vmatpush1.msra.mxu0 %v1185_v33  ;;  %1229 = vmatpush2.msra.mxu1 %v1140_v34  ;;  %v988_v33 = vld [vmem:[#allocation2 + $0xd8] sm:$0xff]  ;;  %v1153_v34 = vunpack.c.h.bf16 %v1020_v26  ;;  %v1149_v41 = vunpack.c.l.bf16 %v1018_v32  ;;  %v1121_v26 = vunpack.c.l.bf16 %v999_v21 }
 0x119   :  { %1271 = vmatprep.subr.mxu0 %v1183_v37  ;;  %1230 = vmatprep.subr.mxu1 %v1138_v38  ;;  %v1107_v37 = vunpack.c.l.bf16 %v990_v27  ;;  %v1016_v38 = vld [vmem:[#allocation2 + $0x180] sm:$0xff]  ;;  %v1105_v40 = vunpack.c.h.bf16 %v988_v33  ;;  %v965_v27 = vld [vmem:[#allocation2 + $0x50] ss:$408 sps:$4 sm:$0xff]  }
 0x11a   :  { %1272 = vmatpush1.msra.mxu0 %v1182_v44  ;;  %1231 = vmatpush2.msra.mxu1 %v1137_v39  ;;  %v986_v44 = vld [vmem:[#allocation2 + $0xcc] sm:$0xff]  ;;  %v1150_v39 = vunpack.c.h.bf16 %v1018_v32  ;;  %v1146_v48 = vunpack.c.l.bf16 %v1016_v38  ;;  %v963_v32 = vld [vmem:[#allocation2 + $0x44] ss:$180 sps:$4 sm:$0xff]  }
 0x11b   :  { %1273 = vmatprep.subr.mxu0 %v1180_v42  ;;  %1232 = vmatprep.subr.mxu1 %v1135_v43  ;;  %v1104_v42 = vunpack.c.l.bf16 %v988_v33  ;;  %v1015_v43 = vld [vmem:[#allocation2 + $0x170] ss:$12 sps:$4 sm:$0xff]   ;;  %v1070_v33 = vunpack.c.l.bf16 %v965_v27 }
 0x11c   :  { %1274 = vmatpush1.msra.mxu0 %v1179_v45  ;;  %1233 = vmatpush2.msra.mxu1 %v1134_v46  ;;  %v1147_v45 = vunpack.c.h.bf16 %v1016_v38  ;;  %v1102_v46 = vunpack.c.h.bf16 %v986_v44 }
 0x11d   :  { %1275 = vmatprep.subr.mxu0 %v1177_v49  ;;  %1234 = vmatprep.subr.mxu1 %v1132_v50  ;;  %v1101_v49 = vunpack.c.l.bf16 %v986_v44  ;;  %v983_v50 = vld [vmem:[#allocation2 + $0xb0] ss:$12 sps:$4 sm:$0xff]   ;;  %v991_v44 = vld [vmem:[#allocation2 + $0xec] ss:$216 sps:$4 sm:$0xff]  }
 0x11e   :  { %1276 = vmatpush1.msra.mxu0 %v1176_v51  ;;  %1235 = vmatpush2.msra.mxu1 %v1131_v52  ;;  %v1145_v51 = vunpack.c.h.bf16 %v1015_v43  ;;  %v1099_v52 = vunpack.c.h.bf16 %v984_v47  ;;  %v1094_v60 = vunpack.c.l.bf16 %v983_v50  ;;  %v1163_v47 = vunpack.c.h.bf16 %v991_v44 }
 0x11f   :  { %1277 = vmatprep.subr.mxu0 %v1174_v55  ;;  %1236 = vmatprep.subr.mxu1 %v1129_v56  ;;  %v1097_v55 = vunpack.c.h.bf16 %v983_v50  ;;  %v1011_v56 = vld [vmem:[#allocation2 + $0x164] ss:$216 sps:$4 sm:$0xff]   ;;  %v955_v50 = vld [vmem:[#allocation2 + $0x14] ss:$180 sps:$4 sm:$0xff]  }
 0x120   :  { %1278 = vmatpush1.msra.mxu0 %v1173_v57  ;;  %1237 = vmatpush2.msra.mxu1 %v1128_v58  ;;  %v1142_v57 = vunpack.c.l.bf16 %v1015_v43  ;;  %v979_v58 = vld [vmem:[#allocation2 + $0xa4] ss:$180 sps:$4 sm:$0xff]   ;;  %v1193_v2 = vunpack.c.h.bf16 %v1011_v56  ;;  %v1109_v43 = vunpack.c.l.bf16 %v991_v44  ;;  %v1637_v44 = vld [vmem:[#allocation6 + $0x18] sm:$0xff] }
 0x121   :  { %1279 = vmatprep.subr.mxu0 %v1171_v61  ;;  %1238 = vmatprep.subr.mxu1 %v1126_v62  ;;  %v7772_v61 = vld [vmem:[%s7477_s9] sm:$0xff]  ;;  %v1139_v62 = vunpack.c.l.bf16 %v1011_v56  ;;  %v1055_v56 = vunpack.c.l.bf16 %v955_v50 }
 0x122   :  { %1280 = vmatpush1.msra.mxu0 %v1170_v63  ;;  %1239 = vmatpush2.msra.mxu1 %v1125_v1  ;;  %v977_v63 = vld [vmem:[#allocation2 + $0x98] ss:$408 sps:$4 sm:$0xff]   ;;  %v1091_v1 = vunpack.c.l.bf16 %v979_v58 }
 0x123   :  { %1281 = vmatprep.subr.mxu0 %v1168_v4  ;;  %1240 = vmatprep.subr.mxu1 %v1123_v5  ;;  %v1136_v4 = vunpack.c.h.bf16 %v979_v58  ;;  %v975_v5 = vld [vmem:[#allocation2 + $0x8c] ss:$180 sps:$4 sm:$0xff]   ;;  %v1100_v58 = vunpack.c.h.bf16 %v955_v50  ;;  %v1695_v50 = vld [vmem:[#allocation6 + $0x174] sm:$0xff] }
 0x124   :  { %1282 = vmatpush1.msra.mxu0 %v1167_v6  ;;  %1241 = vmatpush2.msra.mxu1 %v1122_v7  ;;  %v1088_v6 = vunpack.c.l.bf16 %v977_v63  ;;  %v1190_v7 = vunpack.c.h.bf16 %v977_v63 }
 0x125   :  { %1283 = vmatprep.subr.mxu0 %v1165_v10  ;;  %1242 = vmatprep.subr.mxu1 %v1120_v11  ;;  %v1085_v10 = vunpack.c.l.bf16 %v975_v5  ;;  %v1187_v11 = vunpack.c.h.bf16 %v1007_v3  ;;  %v1663_v3 = vld [vmem:[#allocation6 + $0xb4] sm:$0xff] }
 0x126   :  { %1284 = vmatpush1.msra.mxu0 %v1164_v12  ;;  %1243 = vmatpush2.msra.mxu1 %v1119_v13  ;;  %v1003_v12 = vld [vmem:[#allocation2 + $0x134] ss:$216 sps:$4 sm:$0xff]   ;;  %v1130_v13 = vunpack.c.h.bf16 %v975_v5 }
 0x127   :  { %1285 = vmatprep.subr.mxu0 %v1162_v16  ;;  %1244 = vmatprep.subr.mxu1 %v1117_v17  ;;  %v1184_v16 = vunpack.c.h.bf16 %v973_v9  ;;  %v1127_v17 = vunpack.c.l.bf16 %v1003_v12  ;;  %v1181_v20 = vunpack.c.h.bf16 %v1003_v12  ;;  %v1661_v5 = vld [vmem:[#allocation6 + $0xa8] sm:$0xff] }
 0x128   :  { %1286 = vmatpush1.msra.mxu0 %v1161_v18  ;;  %1245 = vmatpush2.msra.mxu1 %v1116_v19  ;;  %v969_v18 = vld [vmem:[#allocation2 + $0x68] ss:$408 sps:$4 sm:$0xff]   ;;  %v1079_v19 = vunpack.c.l.bf16 %v971_v14 }
 0x129   :  { %1287 = vmatprep.subr.mxu0 %v1159_v22  ;;  %1246 = vmatprep.subr.mxu1 %v1114_v23  ;;  %v1124_v22 = vunpack.c.h.bf16 %v971_v14  ;;  %v967_v23 = vld [vmem:[#allocation2 + $0x5c] ss:$180 sps:$4 sm:$0xff]   ;;  %v1655_v12 = vld [vmem:[#allocation6 + $0x84] sm:$0xff] }
 0x12a   :  { %1288 = vmatpush1.msra.mxu0 %v1158_v24  ;;  %1247 = vmatpush2.msra.mxu1 %v1113_v25  ;;  %v1076_v24 = vunpack.c.l.bf16 %v969_v18  ;;  %v1178_v25 = vunpack.c.h.bf16 %v969_v18  ;;  %v1764_v14 = vunpack.c.l.bf16 %v1655_v12  ;;  %v1651_v18 = vld [vmem:[#allocation6 + $0x6c] sm:$0xff] }
 0x12b   :  { %1289 = vmatprep.subr.mxu0 %v1156_v28  ;;  %1248 = vmatprep.subr.mxu1 %v1111_v29  ;;  %v1073_v28 = vunpack.c.l.bf16 %v967_v23  ;;  %v1175_v29 = vunpack.c.h.bf16 %v999_v21  ;;  %v1649_v21 = vld [vmem:[#allocation6 + $0x60] sm:$0xff] }
 0x12c   :  { %1290 = vmatpush1.msra.mxu0 %v1155_v30  ;;  %1249 = vmatpush2.msra.mxu1 %v1110_v31  ;;  %v995_v30 = vld [vmem:[#allocation2 + $0x104] ss:$216 sps:$4 sm:$0xff]   ;;  %v1118_v31 = vunpack.c.h.bf16 %v967_v23  ;;  %v1755_v23 = vunpack.c.l.bf16 %v1649_v21 }
 0x12d   :  { %1291 = vmatprep.subr.mxu0 %v1153_v34  ;;  %1250 = vmatprep.subr.mxu1 %v1108_v35  ;;  %v1172_v34 = vunpack.c.h.bf16 %v965_v27  ;;  %v1115_v35 = vunpack.c.l.bf16 %v995_v30  ;;  %v1169_v38 = vunpack.c.h.bf16 %v995_v30  ;;  %v1645_v27 = vld [vmem:[#allocation6 + $0x48] sm:$0xff]  ;;  %v1643_v30 = vld [vmem:[#allocation6 + $0x3c] sm:$0xff] }
 0x12e   :  { %1292 = vmatpush1.msra.mxu0 %v1152_v36  ;;  %1251 = vmatpush2.msra.mxu1 %v1107_v37  ;;  %v961_v36 = vld [vmem:[#allocation2 + $0x38] ss:$408 sps:$4 sm:$0xff]   ;;  %v1067_v37 = vunpack.c.l.bf16 %v963_v32 }
 0x12f   :  { %1293 = vmatprep.subr.mxu0 %v1150_v39  ;;  %1252 = vmatprep.subr.mxu1 %v1105_v40  ;;  %v1112_v39 = vunpack.c.h.bf16 %v963_v32  ;;  %v959_v40 = vld [vmem:[#allocation2 + $0x2c] ss:$180 sps:$4 sm:$0xff]   ;;  %v1746_v32 = vunpack.c.l.bf16 %v1643_v30 }
 0x130   :  { %1294 = vmatpush1.msra.mxu0 %v1149_v41  ;;  %1253 = vmatpush2.msra.mxu1 %v1104_v42  ;;  %v1064_v41 = vunpack.c.l.bf16 %v961_v36  ;;  %v1166_v42 = vunpack.c.h.bf16 %v961_v36  ;;  %v1639_v36 = vld [vmem:[#allocation6 + $0x24] sm:$0xff] }
 0x131   :  { %1295 = vmatprep.subr.mxu0 %v1147_v45  ;;  %1254 = vmatprep.subr.mxu1 %v1102_v46  ;;  %v957_v45 = vld [vmem:[#allocation2 + $0x20] ss:$408 sps:$4 sm:$0xff]   ;;  %v1061_v46 = vunpack.c.l.bf16 %v959_v40 }
 0x132   :  { %1296 = vmatpush1.msra.mxu0 %v1146_v48  ;;  %1255 = vmatpush2.msra.mxu1 %v1101_v49  ;;  %v987_v48 = vld [vmem:[#allocation2 + $0xd4] ss:$216 sps:$4 sm:$0xff]   ;;  %v1106_v49 = vunpack.c.h.bf16 %v959_v40  ;;  %v1737_v40 = vunpack.c.l.bf16 %v1637_v44 }
 0x133   :  { %1329 = vmatprep.mubr.f32.mxu0 %v7461_v0  ;;  %6416 = vmatprep.subr.mxu0 %v1145_v51  ;;  %v1058_v51 = vunpack.c.l.bf16 %v957_v45 }
 0x134   :  { %1256 = vmatprep.subr.mxu1 %v1099_v52  ;;  %1330 = vmatmul.mubr.f32.vlgmr.msra.gmra.mxu0 %v7764_v54  ;;  %v1160_v52 = vunpack.c.h.bf16 %v957_v45  ;;  %v1633_v45 = vld [vmem:[#allocation6] sm:$0xff] }
 0x135   :  { %6417 = vmatpush3.msra.mxu0 %v1097_v55  ;;  %1257 = vmatpush2.msra.mxu1 %v1098_v53  ;;  %v1103_v53 = vunpack.c.l.bf16 %v987_v48  ;;  %v953_v55 = vld [vmem:[#allocation2 + $0x8] ss:$408 sps:$4 sm:$0xff]  }
 0x136   :  { %1258 = vmatprep.mubr.f32.mxu1 %v7768_v59  ;;  %6418 = vmatprep.subr.mxu0 %v1142_v57  ;;  %v1157_v57 = vunpack.c.h.bf16 %v987_v48  ;;  %v1154_v63 = vunpack.c.h.bf16 %v953_v55  ;;  %v1731_v48 = vunpack.c.l.bf16 %v1633_v45 }
 0x137   :  { %1259 = vmatmul.mubr.f32.vlgmr.msra.gmra.mxu1 %v7772_v61  ;;  %6419 = vmatpush3.msra.mxu0 %v1094_v60  ;;  %v1052_v60 = vunpack.c.l.bf16 %v953_v55  ;;  %v1824_v55 = vunpack.c.l.bf16 %v1695_v50 }
 0x138   :  { %6420 = vmatprep.subr.mxu0 %v1139_v62  ;;  %6828 = vmatprep.subr.mxu1 %v7461_v0  ;;  %v1019_v62 = vld [vmem:[#allocation2 + $0x188] ss:$12 sps:$4 sm:$0xff]  }
 0x139   :  { %6421 = vmatpush3.msra.mxu0 %v1091_v1  ;;  %6829 = vmatpush3.msra.mxu1 %v1193_v2  ;;  %v1151_v1 = vunpack.c.h.bf16 %v1019_v62  ;;  %v1148_v2 = vunpack.c.l.bf16 %v1019_v62  ;;  %v1723_v62 = vld [vmem:[#allocation6 + $0x21c] sm:$0xff] }
 0x13a   :  { %6422 = vmatprep.subr.mxu0 %v1136_v4  ;;  %6830 = vmatprep.subr.mxu1 %v7461_v0  ;;  %v1777_v4 = vunpack.c.h.bf16 %v1663_v3 }
 0x13b   :  { %6423 = vmatpush3.msra.mxu0 %v1088_v6  ;;  %6831 = vmatpush3.msra.mxu1 %v1190_v7  ;;  %v1773_v6 = vunpack.c.l.bf16 %v1661_v5  ;;  %v1659_v7 = vld [vmem:[#allocation6 + $0x9c] sm:$0xff] }
 0x13c   :  { %6424 = vmatprep.subr.mxu0 %v1133_v8  ;;  %6832 = vmatprep.subr.mxu1 %v7461_v0  ;;  %v1771_v8 = vunpack.c.h.bf16 %v1659_v7  ;;  %v1770_v9 = vunpack.c.l.bf16 %v1659_v7 }
 0x13d   :  { %6425 = vmatpush3.msra.mxu0 %v1085_v10  ;;  %6833 = vmatpush3.msra.mxu1 %v1187_v11  ;;  %v1657_v10 = vld [vmem:[#allocation6 + $0x90] sm:$0xff] }
 0x13e   :  { %6426 = vmatprep.subr.mxu0 %v1130_v13  ;;  %6834 = vmatprep.subr.mxu1 %v7461_v0  ;;  %v1768_v11 = vunpack.c.h.bf16 %v1657_v10  ;;  %v1765_v13 = vunpack.c.h.bf16 %v1655_v12 }
 0x13f   :  { %6427 = vmatpush3.msra.mxu0 %v1082_v15  ;;  %6835 = vmatpush3.msra.mxu1 %v1184_v16  ;;  %v1653_v15 = vld [vmem:[#allocation6 + $0x78] sm:$0xff] }
 0x140   :  { %6428 = vmatprep.subr.mxu0 %v1127_v17  ;;  %6836 = vmatprep.subr.mxu1 %v7461_v0  ;;  %v1762_v16 = vunpack.c.h.bf16 %v1653_v15  ;;  %v1761_v17 = vunpack.c.l.bf16 %v1653_v15 }
 0x141   :  { %6429 = vmatpush3.msra.mxu0 %v1079_v19  ;;  %6837 = vmatpush3.msra.mxu1 %v1181_v20  ;;  %v1759_v19 = vunpack.c.h.bf16 %v1651_v18  ;;  %v1758_v20 = vunpack.c.l.bf16 %v1651_v18 }
 0x142   :  { %6430 = vmatprep.subr.mxu0 %v1124_v22  ;;  %6838 = vmatprep.subr.mxu1 %v7461_v0  ;;  %v1756_v22 = vunpack.c.h.bf16 %v1649_v21 }
 0x143   :  { %6431 = vmatpush3.msra.mxu0 %v1076_v24  ;;  %6839 = vmatpush3.msra.mxu1 %v1178_v25  ;;  %v1647_v24 = vld [vmem:[#allocation6 + $0x54] sm:$0xff] }
 0x144   :  { %6432 = vmatprep.subr.mxu0 %v1121_v26  ;;  %6840 = vmatprep.subr.mxu1 %v7461_v0  ;;  %v1753_v25 = vunpack.c.h.bf16 %v1647_v24  ;;  %v1752_v26 = vunpack.c.l.bf16 %v1647_v24 }
 0x145   :  { %6433 = vmatpush3.msra.mxu0 %v1073_v28  ;;  %6841 = vmatpush3.msra.mxu1 %v1175_v29  ;;  %v1750_v28 = vunpack.c.h.bf16 %v1645_v27  ;;  %v1749_v29 = vunpack.c.l.bf16 %v1645_v27 }
 0x146   :  { %6434 = vmatprep.subr.mxu0 %v1118_v31  ;;  %6842 = vmatprep.subr.mxu1 %v7461_v0  ;;  %v1747_v31 = vunpack.c.h.bf16 %v1643_v30 }
 0x147   :  { %6435 = vmatpush3.msra.mxu0 %v1070_v33  ;;  %6843 = vmatpush3.msra.mxu1 %v1172_v34  ;;  %v1641_v33 = vld [vmem:[#allocation6 + $0x30] sm:$0xff] }
 0x148   :  { %6436 = vmatprep.subr.mxu0 %v1115_v35  ;;  %6844 = vmatprep.subr.mxu1 %v7461_v0  ;;  %v1744_v34 = vunpack.c.h.bf16 %v1641_v33  ;;  %v1743_v35 = vunpack.c.l.bf16 %v1641_v33 }
 0x149   :  { %6437 = vmatpush3.msra.mxu0 %v1067_v37  ;;  %6845 = vmatpush3.msra.mxu1 %v1169_v38  ;;  %v1741_v37 = vunpack.c.h.bf16 %v1639_v36  ;;  %v1740_v38 = vunpack.c.l.bf16 %v1639_v36 }
 0x14a   :  { %6438 = vmatprep.subr.mxu0 %v1112_v39  ;;  %6846 = vmatprep.subr.mxu1 %v7461_v0  ;;  %v1738_v39 = vunpack.c.h.bf16 %v1637_v44 }
 0x14b   :  { %6439 = vmatpush3.msra.mxu0 %v1064_v41  ;;  %6847 = vmatpush3.msra.mxu1 %v1166_v42  ;;  %v1635_v41 = vld [vmem:[#allocation6 + $0xc] sm:$0xff] }
 0x14c   :  { %6440 = vmatprep.subr.mxu0 %v1109_v43  ;;  %6848 = vmatprep.subr.mxu1 %v7461_v0  ;;  %v1735_v42 = vunpack.c.h.bf16 %v1635_v41  ;;  %v1734_v43 = vunpack.c.l.bf16 %v1635_v41 }
 0x14d   :  { %6441 = vmatpush3.msra.mxu0 %v1061_v46  ;;  %6849 = vmatpush3.msra.mxu1 %v1163_v47  ;;  %v1732_v46 = vunpack.c.h.bf16 %v1633_v45  ;;  %v1727_v47 = vld [vmem:[#allocation6 + $0x234] sm:$0xff] }
 0x14e   :  { %6442 = vmatprep.subr.mxu0 %v1106_v49  ;;  %6850 = vmatprep.subr.mxu1 %v7461_v0  ;;  %v1873_v49 = vunpack.c.h.bf16 %v1727_v47 }
 0x14f   :  { %6443 = vmatpush3.msra.mxu0 %v1058_v51  ;;  %6851 = vmatpush3.msra.mxu1 %v1160_v52  ;;  %v1872_v51 = vunpack.c.l.bf16 %v1727_v47  ;;  %v1825_v52 = vunpack.c.h.bf16 %v1695_v50  ;;  %v1675_v47 = vld [vmem:[#allocation6 + $0xfc] sm:$0xff]  ;;  %v1705_v50 = vld [vmem:[#allocation6 + $0x1b0] sm:$0xff] }
 0x150   :  { %6444 = vmatprep.subr.mxu0 %v1103_v53  ;;  %6852 = vmatprep.subr.mxu1 %v7461_v0  ;;  %v1725_v53 = vld [vmem:[#allocation6 + $0x228] sm:$0xff] }
 0x151   :  { %6445 = vmatpush3.msra.mxu0 %v1055_v56  ;;  %6853 = vmatpush3.msra.mxu1 %v1157_v57  ;;  %v1870_v56 = vunpack.c.h.bf16 %v1725_v53  ;;  %v1693_v57 = vld [vmem:[#allocation6 + $0x168] sm:$0xff] }
 0x152   :  { %6446 = vmatprep.subr.mxu0 %v1100_v58  ;;  %6854 = vmatprep.subr.mxu1 %v7461_v0  ;;  %v1869_v58 = vunpack.c.l.bf16 %v1725_v53  ;;  %v1673_v53 = vld [vmem:[#allocation6 + $0xf0] sm:$0xff] }
 0x153   :  { %6447 = vmatpush3.msra.mxu0 %v1052_v60  ;;  %1400 = vmatprep.mubr.f32.mxu0 %v7768_v59  ;;  %v1776_v59 = vunpack.c.l.bf16 %v1663_v3  ;;  %v1822_v60 = vunpack.c.h.bf16 %v1693_v57  ;;  %v1866_v3 = vunpack.c.l.bf16 %v1723_v62 }
 0x154   :  { %6855 = vmatpush3.msra.mxu1 %v1154_v63  ;;  %1401 = vmatmul.mubr.f32.vlgmr.msra.gmra.mxu0 %v7772_v61  ;;  %v1774_v61 = vunpack.c.h.bf16 %v1661_v5  ;;  %v1821_v63 = vunpack.c.l.bf16 %v1693_v57  ;;  %v1703_v57 = vld [vmem:[#allocation6 + $0x1a4] sm:$0xff] }
 0x155   :  { %6856 = vmatprep.subr.mxu1 %v7461_v0  ;;  %6860 = vmatprep.mubr.msk.f32.mxu1 %vm7462_vm0, %v7461_v0 }
 0x156   :  { %6857 = vmatpush3.msra.mxu1 %v1151_v1  ;;  %1875 = vmatprep.subr.mxu0 %v1777_v4  ;;  %v1867_v1 = vunpack.c.h.bf16 %v1723_v62  ;;  %v1671_v62 = vld [vmem:[#allocation6 + $0xe4] sm:$0xff] }
 0x157   :  { %6858 = vmatprep.subr.mxu1 %v7461_v0  ;;  %1876 = vmatpush1.msra.mxu0 %v1776_v59  ;;  %v1721_v59 = vld [vmem:[#allocation6 + $0x210] sm:$0xff] }
 0x158   :  { %6859 = vmatpush3.msra.mxu1 %v1148_v2  ;;  %1877 = vmatprep.subr.mxu0 %v1774_v61  ;;  %v1691_v2 = vld [vmem:[#allocation6 + $0x15c] sm:$0xff]  ;;  %v1864_v61 = vunpack.c.h.bf16 %v1721_v59  ;;  %v1863_v7 = vunpack.c.l.bf16 %v1721_v59 }
 0x159   :  { %6861 = vmatmul.mubr.f32.vlgmr.msra.gmra.mxu1 %v7764_v54  ;;  %1878 = vmatpush1.msra.mxu0 %v1773_v6  ;;  %v1767_v54 = vunpack.c.l.bf16 %v1657_v10  ;;  %v1819_v4 = vunpack.c.h.bf16 %v1691_v2  ;;  %v1818_v5 = vunpack.c.l.bf16 %v1691_v2  ;;  %v1689_v6 = vld [vmem:[#allocation6 + $0x150] sm:$0xff]  ;;  %v1701_v2 = vld [vmem:[#allocation6 + $0x198] sm:$0xff] }
 0x15a   :  { %2010 = vmatprep.mubr.f32.mxu1 %v7461_v0  ;;  %1879 = vmatprep.subr.mxu0 %v1771_v8  ;;  %v1816_v8 = vunpack.c.h.bf16 %v1689_v6  ;;  %v1815_v10 = vunpack.c.l.bf16 %v1689_v6  ;;  %v1669_v59 = vld [vmem:[#allocation6 + $0xd8] sm:$0xff]  ;;  %v1699_v6 = vld [vmem:[#allocation6 + $0x18c] sm:$0xff] }
 0x15b   :  { %1880 = vmatpush1.msra.mxu0 %v1770_v9  ;;  %1946 = vmatprep.subr.mxu1 %v1873_v49  ;;  %v1719_v9 = vld [vmem:[#allocation6 + $0x204] sm:$0xff]  ;;  %v1795_v49 = vunpack.c.h.bf16 %v1675_v47 }
 0x15c   :  { %1881 = vmatprep.subr.mxu0 %v1768_v11  ;;  %1947 = vmatpush1.msra.mxu1 %v1872_v51  ;;  %v1687_v11 = vld [vmem:[#allocation6 + $0x144] sm:$0xff]  ;;  %v1861_v12 = vunpack.c.h.bf16 %v1719_v9  ;;  %v1794_v51 = vunpack.c.l.bf16 %v1675_v47 }
 0x15d   :  { %1882 = vmatpush1.msra.mxu0 %v1767_v54  ;;  %1948 = vmatprep.subr.mxu1 %v1870_v56  ;;  %v1860_v54 = vunpack.c.l.bf16 %v1719_v9  ;;  %v1812_v15 = vunpack.c.l.bf16 %v1687_v11  ;;  %v1792_v56 = vunpack.c.h.bf16 %v1673_v53  ;;  %v1667_v9 = vld [vmem:[#allocation6 + $0xcc] sm:$0xff] }
 0x15e   :  { %1883 = vmatprep.subr.mxu0 %v1765_v13  ;;  %1949 = vmatpush1.msra.mxu1 %v1869_v58  ;;  %v1813_v13 = vunpack.c.h.bf16 %v1687_v11  ;;  %v1791_v58 = vunpack.c.l.bf16 %v1673_v53  ;;  %v1783_v11 = vunpack.c.h.bf16 %v1667_v9 }
 0x15f   :  { %1884 = vmatpush1.msra.mxu0 %v1764_v14  ;;  %1950 = vmatprep.subr.mxu1 %v1867_v1  ;;  %v1717_v14 = vld [vmem:[#allocation6 + $0x1f8] sm:$0xff]  ;;  %v1789_v1 = vunpack.c.h.bf16 %v1671_v62 }
 0x160   :  { %1885 = vmatprep.subr.mxu0 %v1762_v16  ;;  %1951 = vmatpush1.msra.mxu1 %v1866_v3  ;;  %v1858_v16 = vunpack.c.h.bf16 %v1717_v14  ;;  %v1857_v18 = vunpack.c.l.bf16 %v1717_v14  ;;  %v1788_v3 = vunpack.c.l.bf16 %v1671_v62  ;;  %v1665_v14 = vld [vmem:[#allocation6 + $0xc0] sm:$0xff] }
 0x161   :  { %1886 = vmatpush1.msra.mxu0 %v1761_v17  ;;  %1952 = vmatprep.subr.mxu1 %v1864_v61  ;;  %v1685_v17 = vld [vmem:[#allocation6 + $0x138] sm:$0xff]  ;;  %v1786_v61 = vunpack.c.h.bf16 %v1669_v59 }
 0x162   :  { %1887 = vmatprep.subr.mxu0 %v1759_v19  ;;  %1953 = vmatpush1.msra.mxu1 %v1863_v7  ;;  %v1810_v19 = vunpack.c.h.bf16 %v1685_v17  ;;  %v1809_v21 = vunpack.c.l.bf16 %v1685_v17  ;;  %v1785_v7 = vunpack.c.l.bf16 %v1669_v59  ;;  %v7798_v17 = vld [vmem:[#allocation6 + $0x170] ss:$12 sps:$4 sm:$0xff]  }
 0x163   :  { %1888 = vmatpush1.msra.mxu0 %v1758_v20  ;;  %1954 = vmatprep.subr.mxu1 %v1861_v12  ;;  %v1715_v20 = vld [vmem:[#allocation6 + $0x1ec] sm:$0xff]  ;;  %v1782_v12 = vunpack.c.l.bf16 %v1667_v9 }
 0x164   :  { %1889 = vmatprep.subr.mxu0 %v1756_v22  ;;  %1955 = vmatpush1.msra.mxu1 %v1860_v54  ;;  %v1855_v22 = vunpack.c.h.bf16 %v1715_v20  ;;  %v1854_v24 = vunpack.c.l.bf16 %v1715_v20  ;;  %v1697_v54 = vld [vmem:[#allocation6 + $0x180] sm:$0xff] }
 0x165   :  { %1890 = vmatpush1.msra.mxu0 %v1755_v23  ;;  %v1683_v23 = vld [vmem:[#allocation6 + $0x12c] sm:$0xff]  ;;  %1956 = vmatprep.subr.mxu1 %v1858_v16  ;;  %v1780_v16 = vunpack.c.h.bf16 %v1665_v14 }
 0x166   :  { %1891 = vmatprep.subr.mxu0 %v1753_v25  ;;  %v1807_v25 = vunpack.c.h.bf16 %v1683_v23  ;;  %1957 = vmatpush1.msra.mxu1 %v1857_v18  ;;  %v1806_v27 = vunpack.c.l.bf16 %v1683_v23  ;;  %v1779_v18 = vunpack.c.l.bf16 %v1665_v14 }
 0x167   :  { %1892 = vmatpush1.msra.mxu0 %v1752_v26  ;;  %v1713_v26 = vld [vmem:[#allocation6 + $0x1e0] sm:$0xff]  ;;  %1958 = vmatprep.subr.mxu1 %v1855_v22 }
 0x168   :  { %1893 = vmatprep.subr.mxu0 %v1750_v28  ;;  %v1852_v28 = vunpack.c.h.bf16 %v1713_v26  ;;  %v1851_v30 = vunpack.c.l.bf16 %v1713_v26  ;;  %1959 = vmatpush1.msra.mxu1 %v1854_v24 }
 0x169   :  { %1894 = vmatpush1.msra.mxu0 %v1749_v29  ;;  %v1681_v29 = vld [vmem:[#allocation6 + $0x120] sm:$0xff] }
 0x16a   :  { %1895 = vmatprep.subr.mxu0 %v1747_v31  ;;  %v1804_v31 = vunpack.c.h.bf16 %v1681_v29  ;;  %v1803_v33 = vunpack.c.l.bf16 %v1681_v29  ;;  %1960 = vmatprep.subr.mxu1 %v1852_v28 }
 0x16b   :  { %1896 = vmatpush1.msra.mxu0 %v1746_v32  ;;  %v1711_v32 = vld [vmem:[#allocation6 + $0x1d4] sm:$0xff]  ;;  %1961 = vmatpush1.msra.mxu1 %v1851_v30 }
 0x16c   :  { %1897 = vmatprep.subr.mxu0 %v1744_v34  ;;  %v1849_v34 = vunpack.c.h.bf16 %v1711_v32  ;;  %v1848_v36 = vunpack.c.l.bf16 %v1711_v32 }
 0x16d   :  { %1898 = vmatpush1.msra.mxu0 %v1743_v35  ;;  %v1679_v35 = vld [vmem:[#allocation6 + $0x114] sm:$0xff] }
 0x16e   :  { %1899 = vmatprep.subr.mxu0 %v1741_v37  ;;  %v1801_v37 = vunpack.c.h.bf16 %v1679_v35  ;;  %v1800_v44 = vunpack.c.l.bf16 %v1679_v35  ;;  %1962 = vmatprep.subr.mxu1 %v1849_v34 }
 0x16f   :  { %1900 = vmatpush1.msra.mxu0 %v1740_v38  ;;  %v1709_v38 = vld [vmem:[#allocation6 + $0x1c8] sm:$0xff]  ;;  %1963 = vmatpush1.msra.mxu1 %v1848_v36 }
 0x170   :  { %1901 = vmatprep.subr.mxu0 %v1738_v39  ;;  %v1846_v39 = vunpack.c.h.bf16 %v1709_v38  ;;  %v1845_v41 = vunpack.c.l.bf16 %v1709_v38 }
 0x171   :  { %1902 = vmatpush1.msra.mxu0 %v1737_v40  ;;  %v1677_v40 = vld [vmem:[#allocation6 + $0x108] sm:$0xff] }
 0x172   :  { %1903 = vmatprep.subr.mxu0 %v1735_v42  ;;  %v1798_v42 = vunpack.c.h.bf16 %v1677_v40  ;;  %v1797_v45 = vunpack.c.l.bf16 %v1677_v40  ;;  %1964 = vmatprep.subr.mxu1 %v1846_v39 }
 0x173   :  { %1904 = vmatpush1.msra.mxu0 %v1734_v43  ;;  %v1707_v43 = vld [vmem:[#allocation6 + $0x1bc] sm:$0xff]  ;;  %1965 = vmatpush1.msra.mxu1 %v1845_v41 }
 0x174   :  { %1905 = vmatprep.subr.mxu0 %v1732_v46  ;;  %v1843_v46 = vunpack.c.h.bf16 %v1707_v43 }
 0x175   :  { %1906 = vmatpush1.msra.mxu0 %v1731_v48  ;;  %v1842_v48 = vunpack.c.l.bf16 %v1707_v43 }
 0x176   :  { %1907 = vmatprep.subr.mxu0 %v1825_v52  ;;  %v1840_v52 = vunpack.c.h.bf16 %v1705_v50  ;;  %1966 = vmatprep.subr.mxu1 %v1843_v46 }
 0x177   :  { %1908 = vmatpush2.msra.mxu0 %v1824_v55  ;;  %v1839_v55 = vunpack.c.l.bf16 %v1705_v50  ;;  %1967 = vmatpush1.msra.mxu1 %v1842_v48 }
 0x178   :  { %1909 = vmatprep.subr.mxu0 %v1822_v60  ;;  %v1837_v60 = vunpack.c.h.bf16 %v1703_v57  ;;  %1968 = vmatprep.subr.mxu1 %v1840_v52 }
 0x179   :  { %1910 = vmatpush2.msra.mxu0 %v1821_v63  ;;  %v1836_v63 = vunpack.c.l.bf16 %v1703_v57  ;;  %1969 = vmatpush1.msra.mxu1 %v1839_v55 }
 0x17a   :  { %1911 = vmatprep.subr.mxu0 %v1819_v4  ;;  %v1834_v4 = vunpack.c.h.bf16 %v1701_v2  ;;  %1970 = vmatprep.subr.mxu1 %v1837_v60 }
 0x17b   :  { %1912 = vmatpush2.msra.mxu0 %v1818_v5  ;;  %v1833_v5 = vunpack.c.l.bf16 %v1701_v2  ;;  %1971 = vmatpush1.msra.mxu1 %v1836_v63 }
 0x17c   :  { %1913 = vmatprep.subr.mxu0 %v1816_v8  ;;  %v1831_v8 = vunpack.c.h.bf16 %v1699_v6  ;;  %1972 = vmatprep.subr.mxu1 %v1834_v4 }
 0x17d   :  { %1914 = vmatpush2.msra.mxu0 %v1815_v10  ;;  %v1830_v10 = vunpack.c.l.bf16 %v1699_v6  ;;  %1973 = vmatpush1.msra.mxu1 %v1833_v5 }
 0x17e   :  { %1915 = vmatprep.subr.mxu0 %v1813_v13  ;;  %v1828_v13 = vunpack.c.h.bf16 %v1697_v54  ;;  %1974 = vmatprep.subr.mxu1 %v1831_v8 }
 0x17f   :  { %1916 = vmatpush2.msra.mxu0 %v1812_v15  ;;  %v1827_v15 = vunpack.c.l.bf16 %v1697_v54  ;;  %1975 = vmatpush1.msra.mxu1 %v1830_v10 }
 0x180   :  { %1917 = vmatprep.subr.mxu0 %v1810_v19  ;;  %v1826_v19 = vunpack.c.h.bf16 %v7798_v17  ;;  %1976 = vmatprep.subr.mxu1 %v1828_v13 }
 0x181   :  { %1918 = vmatpush2.msra.mxu0 %v1809_v21  ;;  %1977 = vmatpush1.msra.mxu1 %v1827_v15 }
 0x182   :  { %1919 = vmatprep.subr.mxu0 %v1807_v25  ;;  %6468 = vmatprep.subr.mxu1 %v1826_v19 }
 0x183   :  { %1920 = vmatpush2.msra.mxu0 %v1806_v27 }
 0x184   :  { %1921 = vmatprep.subr.mxu0 %v1804_v31 }
 0x185   :  { %1922 = vmatpush2.msra.mxu0 %v1803_v33 }
 0x186   :  { %1923 = vmatprep.subr.mxu0 %v1801_v37 }
 0x187   :  { %1924 = vmatpush2.msra.mxu0 %v1800_v44 }
 0x188   :  { %1925 = vmatprep.subr.mxu0 %v1798_v42 }
 0x189   :  { %1926 = vmatpush2.msra.mxu0 %v1797_v45 }
 0x18a   :  { %1927 = vmatprep.subr.mxu0 %v1795_v49 }
 0x18b   :  { %1928 = vmatpush2.msra.mxu0 %v1794_v51 }
 0x18c   :  { %1929 = vmatprep.subr.mxu0 %v1792_v56 }
 0x18d   :  { %1930 = vmatpush2.msra.mxu0 %v1791_v58 }
 0x18e   :  { %1931 = vmatprep.subr.mxu0 %v1789_v1 }
 0x18f   :  { %1932 = vmatpush2.msra.mxu0 %v1788_v3 }
 0x190   :  { %1933 = vmatprep.subr.mxu0 %v1786_v61 }
 0x191   :  { %1934 = vmatpush2.msra.mxu0 %v1785_v7 }
 0x192   :  { %1935 = vmatprep.subr.mxu0 %v1783_v11  ;;  %v649_v20 = vpop.f32.mrf.mxu1 }
 0x193   :  { %1936 = vmatpush2.msra.mxu0 %v1782_v12 }
 0x194   :  { %1937 = vmatprep.subr.mxu0 %v1780_v16  ;;  %v651_v23 = vpop.f32.mrf.mxu1 }
 0x195   :  { %1938 = vmatpush2.msra.mxu0 %v1779_v18 }
 0x196   :  { %6863 = vmatprep.subr.mxu0 %v7461_v0 }
 0x1b0   :  { %v578_v21 = vpop.f32.mrf.mxu0 }
 0x1b1   :  { %v7802_v22 = vadd.f32 %v649_v20, %v578_v21 }
 0x1b2   :  { %v580_v24 = vpop.f32.mrf.mxu0 }
 0x1b3   :  { %v794_v25 = vrot.slane %v7802_v22, 4  ;;  %v7805_v26 = vadd.f32 %v651_v23, %v580_v24 }
 0x1b5   :  { %v795_v27 = vadd.f32 %v794_v25, %v7802_v22  ;;  %v800_v28 = vrot.slane %v7805_v26, 4  ;;  %v6396_v40 = vpop.f32.mrf.mxu1 }
 0x1b7   :  { %v796_v29 = vrot.slane %v795_v27, 2  ;;  %v801_v30 = vadd.f32 %v800_v28, %v7805_v26  ;;  %v6397_v43 = vpop.f32.mrf.mxu1 }
 0x1b8   :  { %v6398_v47 = vadd.f32 %v6397_v43, %v6396_v40 }
 0x1b9   :  { %v802_v31 = vrot.slane %v801_v30, 2  ;;  %v797_v32 = vadd.f32 %v796_v29, %v795_v27  ;;  %v7463_v27 = vmov 1966171168   ;;  %v856_v29 = vlaneseq }
 0x1ba   :  { %v854_v28 = vunpack.c.l.s4 %v7463_v27 }
 0x1bb   :  { %v803_v33 = vadd.f32 %v802_v31, %v801_v30  ;;  %v798_v35 = vrot.slane %v797_v32, 1 }
 0x1bd   :  { %v804_v34 = vrot.slane %v803_v33, 1  ;;  %v799_v37 = vadd.f32 %v798_v35, %v797_v32  ;;  %v855_v35 = vunpack.c.0.s8 %v854_v28 }
 0x1bf   :  { %v805_v36 = vadd.f32 %v804_v34, %v803_v33  ;;  %v7812_v44 = vmul.f32 0.125, %v799_v37 }
 0x1c1   :  { %v7810_v38 = vmul.f32 0.125, %v805_v36  ;;  %v816_v41 = vsub.f32 %v7802_v22, %v7812_v44  ;;  %v857_v36 = vshrl.u32 %v856_v29, 7 }
 0x1c3   :  { %v817_v39 = vsub.f32 %v7805_v26, %v7810_v38  ;;  %v819_v45 = vmul.f32 %v816_v41, %v816_v41 }
 0x1c5   :  { %v820_v42 = vmul.f32 %v817_v39, %v817_v39  ;;  %v822_v49 = vrot.slane %v819_v45, 4 }
 0x1c7   :  { %v828_v46 = vrot.slane %v820_v42, 4  ;;  %v823_v55 = vadd.f32 %v822_v49, %v819_v45 }
 0x1c9   :  { %v829_v52 = vadd.f32 %v828_v46, %v820_v42  ;;  %v824_v60 = vrot.slane %v823_v55, 2  ;;  %v7834_v46 = vsub.s32 %v855_v35, %v857_v36 }
 0x1cb   :  { %v830_v57 = vrot.slane %v829_v52, 2  ;;  %v825_v2 = vadd.f32 %v824_v60, %v823_v55 }
 0x1cd   :  { %v831_v63 = vadd.f32 %v830_v57, %v829_v52  ;;  %v826_v5 = vrot.slane %v825_v2, 1  ;;  %v366_v57 = vld [vmem:[%s7487_s17] sm:$0x7]  ;;  %s8482_s17 = sld [smem:[#allocation27_spill]] }
 0x1cf   :  { %v832_v4 = vrot.slane %v831_v63, 1  ;;  %v827_v8 = vadd.f32 %v826_v5, %v825_v2 }
 0x1d1   :  { %v833_v6 = vadd.f32 %v832_v4, %v831_v63  ;;  %v840_v54 = vmul.f32 0.125, %v827_v8  ;;  %v7842_v63 = vsub.s32 1, %v857_v36 }
 0x1d2   :  { %v790_v48 = vpop.f32.mrf.mxu0 }
 0x1d3   :  { %v7818_v50 = vadd.f32 %v6398_v47, %v790_v48  ;;  %v841_v10 = vmul.f32 0.125, %v833_v6  ;;  %v843_v15 = vadd.f32 1e-05, %v840_v54 }
 0x1d4   :  { %v6827_v51 = vpop.f32.mrf.mxu0 }
 0x1d5   :  { %v806_v53 = vrot.slane %v7818_v50, 4  ;;  %v844_v13 = vadd.f32 1e-05, %v841_v10 }
 0x1d7   :  { %v807_v56 = vadd.f32 %v806_v53, %v7818_v50  ;;  %7147 = vrsqrt.f32 %v844_v13 }
 0x1d8   :  { %7149 = vrsqrt.f32 %v843_v15 }
 0x1d9   :  { %v808_v58 = vrot.slane %v807_v56, 2 }
 0x1db   :  { %v809_v62 = vadd.f32 %v808_v58, %v807_v56 }
 0x1dd   :  { %v810_v1 = vrot.slane %v809_v62, 1 }
 0x1df   :  { %v811_v3 = vadd.f32 %v810_v1, %v809_v62  ;;  %v7840_v62 = vsub.s32 0, %v857_v36  ;;  %v7844_v1 = vsub.s32 2, %v857_v36 }
 0x1e1   :  { %v7822_v59 = vmul.f32 0.125, %v811_v3 }
 0x1e3   :  { %v818_v61 = vsub.f32 %v7818_v50, %v7822_v59 }
 0x1e4   :  { %v7148_v37 = vpop.eup %7147 }
 0x1e5   :  { %v821_v7 = vmul.f32 %v818_v61, %v818_v61  ;;  %v7150_v41 = vpop.eup %7149 }
 0x1e6   :  { %v852_v45 = vcombine.low %v7150_v41, %v7148_v37  ;;  %v1664_v41 = vld [vmem:[#allocation6 + $0xb0] ss:$12 sps:$4 sm:$0xff]  }
 0x1e7   :  { %v834_v9 = vrot.slane %v821_v7, 4 }
 0x1e8   :  { %v859_v52 = vrot.slane %v852_v45, %v7834_v46 }
 0x1e9   :  { %v835_v11 = vadd.f32 %v834_v9, %v821_v7 }
 0x1eb   :  { %v836_v12 = vrot.slane %v835_v11, 2 }
 0x1ed   :  { %v837_v14 = vadd.f32 %v836_v12, %v835_v11 }
 0x1ef   :  { %v838_v16 = vrot.slane %v837_v14, 1 }
 0x1f1   :  { %v839_v18 = vadd.f32 %v838_v16, %v837_v14 }
 0x1f3   :  { %v842_v19 = vmul.f32 0.125, %v839_v18 }
 0x1f4   :  { %v1331_v20 = vpop.f32.mrf.mxu0 }
 0x1f5   :  { %v845_v21 = vadd.f32 1e-05, %v842_v19 }
 0x1f6   :  { %v1333_v24 = vpop.f32.mrf.mxu0 }
 0x1f7   :  { %7151 = vrsqrt.f32 %v845_v21  ;;  %v1260_v23 = vpop.f32.mrf.mxu1  ;;  %v367_v21 = vld [vmem:[%s8479_s13] sm:$0x7] }
 0x1f8   :  { %v7826_v25 = vadd.f32 %v1331_v20, %v1260_v23 }
 0x1f9   :  { %v1262_v30 = vpop.f32.mrf.mxu1 }
 0x1fa   :  { %v1476_v31 = vrot.slane %v7826_v25, 4  ;;  %v7829_v32 = vadd.f32 %v1333_v24, %v1262_v30 }
 0x1fc   :  { %v1477_v33 = vadd.f32 %v1476_v31, %v7826_v25  ;;  %v1482_v34 = vrot.slane %v7829_v32, 4 }
 0x1fe   :  { %v1478_v39 = vrot.slane %v1477_v33, 2  ;;  %v1483_v40 = vadd.f32 %v1482_v34, %v7829_v32 }
 0x200   :  { %v1479_v42 = vadd.f32 %v1478_v39, %v1477_v33  ;;  %v1484_v43 = vrot.slane %v1483_v40, 2 }
 0x202   :  { %v1480_v47 = vrot.slane %v1479_v42, 1  ;;  %v1485_v48 = vadd.f32 %v1484_v43, %v1483_v40 }
 0x204   :  { %v7152_v49 = vpop.eup %7151  ;;  %v1486_v51 = vrot.slane %v1485_v48, 1  ;;  %v1481_v55 = vadd.f32 %v1480_v47, %v1479_v42 }
 0x205   :  { %v866_v53 = vrot.slane %v7152_v49, %v7834_v46 }
 0x206   :  { %v1487_v58 = vadd.f32 %v1486_v51, %v1485_v48  ;;  %v7846_v2 = vmul.f32 0.125, %v1481_v55 }
 0x207   :  { %v867_v56 = vcombine.low %v859_v52, %v866_v53  ;;  %v1778_v52 = vunpack.c.h.bf16 %v1664_v41  ;;  %v7199_v53 = vld [vmem:[%s7477_s9 + $0x8] sm:$0xff] }
 0x208   :  { %v7848_v4 = vmul.f32 0.125, %v1487_v58  ;;  %v1497_v7 = vsub.f32 %v7826_v25, %v7846_v2  ;;  %v7201_v58 = vld [vmem:[%s7477_s9] sm:$0xff] }
 0x209   :  { %v874_v60 = vrot.slane %v867_v56, %v7834_v46  ;;  %v7200_v56 = vld [vmem:[%s7477_s9 + $0x10] sm:$0xff]  ;;  %s8480_s9 = sld [smem:[#allocation25_spill]] }
 0x20a   :  { %v1498_v11 = vsub.f32 %v7829_v32, %v7848_v4  ;;  %v1500_v12 = vmul.f32 %v1497_v7, %v1497_v7  ;;  %v1775_v7 = vunpack.c.l.bf16 %v1664_v41 }
 0x20b   :  { %v876_v3 = vmul.f32 %v874_v60, %v366_v57 }
 0x20c   :  { %v1501_v15 = vmul.f32 %v1498_v11, %v1498_v11  ;;  %v1503_v19 = vrot.slane %v1500_v12, 4  ;;  %v1658_v11 = vld [vmem:[#allocation6 + $0x98] ss:$180 sps:$4 sm:$0xff]  }
 0x20d   :  { %v889_v5 = vrot.slane %v876_v3, %v7844_v1  ;;  %v881_v61 = vrot.slane %v876_v3, %v7840_v62  ;;  %v885_v6 = vrot.slane %v876_v3, %v7842_v63  ;;  %v1823_v3 = vunpack.c.l.bf16 %v7798_v17 }
 0x20e   :  { %v1509_v23 = vrot.slane %v1501_v15, 4  ;;  %v1504_v28 = vadd.f32 %v1503_v19, %v1500_v12  ;;  %v1769_v19 = vunpack.c.l.bf16 %v1658_v11 }
 0x20f   :  { %v895_v8 = vmul.f32 %v889_v5, %v7822_v59  ;;  %v893_v9 = vmul.f32 %v881_v61, %v7812_v44  ;;  %v894_v10 = vmul.f32 %v885_v6, %v7810_v38  ;;  %v926_v27 = vmul.f32 %v889_v5, %v7818_v50  ;;  %v1726_v5 = vld [vmem:[#allocation6 + $0xa4] ss:$396 sps:$4 sm:$0xff]  }
 0x210   :  { %v925_v30 = vmul.f32 %v885_v6, %v7805_v26  ;;  %v924_v34 = vmul.f32 %v881_v61, %v7802_v22  ;;  %v1510_v37 = vadd.f32 %v1509_v23, %v1501_v15  ;;  %v1505_v43 = vrot.slane %v1504_v28, 2  ;;  %v1728_v22 = vld [vmem:[#allocation6 + $0x164] ss:$216 sps:$4 sm:$0xff]   ;;  %v1722_v15 = vld [vmem:[#allocation6 + $0x8c] ss:$396 sps:$4 sm:$0xff]  }
 0x211   :  { %v899_v54 = vcombine.low %v893_v9, %v894_v10  ;;  %v913_v13 = vrot.slane %v895_v8, %v7834_v46  ;;  %v1874_v6 = vunpack.c.h.bf16 %v1728_v22  ;;  %v1690_v8 = vld [vmem:[#allocation6 + $0x158] ss:$204 sps:$4 sm:$0xff]   ;;  %v1820_v10 = vunpack.c.l.bf16 %v1728_v22  ;;  %v1678_v22 = vld [vmem:[#allocation6 + $0x110] ss:$204 sps:$4 sm:$0xff]  }
 0x212   :  { %v1511_v49 = vrot.slane %v1510_v37, 2  ;;  %v1506_v9 = vadd.f32 %v1505_v43, %v1504_v28  ;;  %v1817_v17 = vunpack.c.l.bf16 %v1690_v8  ;;  %v1714_v43 = vld [vmem:[#allocation6 + $0x5c] ss:$396 sps:$4 sm:$0xff]  }
 0x213   :  { %v906_v14 = vrot.slane %v899_v54, %v7834_v46 }
 0x214   :  { %v6448_v16 = vpop.f32.mrf.mxu0  ;;  %v1512_v54 = vadd.f32 %v1511_v49, %v1510_v37 }
 0x215   :  { %v914_v18 = vcombine.low %v906_v14, %v913_v13  ;;  %v1871_v13 = vunpack.c.h.bf16 %v1726_v5  ;;  %v1772_v14 = vunpack.c.l.bf16 %v1726_v5  ;;  %v1799_v5 = vunpack.c.l.bf16 %v1678_v22 }
 0x216   :  { %v6449_v20 = vpop.f32.mrf.mxu0  ;;  %v1513_v23 = vrot.slane %v1512_v54, 1 }
 0x217   :  { %v6450_v59 = vadd.f32 %v6449_v20, %v6448_v16  ;;  %v921_v44 = vrot.slane %v914_v18, %v7834_v46  ;;  %v1868_v18 = vunpack.c.h.bf16 %v1690_v8  ;;  %v1686_v20 = vld [vmem:[#allocation6 + $0x140] ss:$204 sps:$4 sm:$0xff]  }
 0x218   :  { %v1811_v28 = vunpack.c.l.bf16 %v1686_v20 }
 0x219   :  { %v1472_v38 = vpop.f32.mrf.mxu1  ;;  %v923_v24 = vsub.f32 %v367_v21, %v921_v44  ;;  %v1507_v21 = vrot.slane %v1506_v9, 1  ;;  %v1654_v44 = vld [vmem:[#allocation6 + $0x80] ss:$180 sps:$4 sm:$0xff]  }
 0x21a   :  { %v7865_v29 = vadd.f32 %v6450_v59, %v1472_v38  ;;  %v1814_v59 = vunpack.c.h.bf16 %v1658_v11  ;;  %v1808_v37 = vunpack.c.h.bf16 %v1654_v44 }
 0x21b   :  { %v935_v31 = vrot.slane %v923_v24, %v7842_v63  ;;  %v939_v33 = vrot.slane %v923_v24, %v7844_v1  ;;  %v931_v35 = vrot.slane %v923_v24, %v7840_v62  ;;  %v6862_v36 = vpop.f32.mrf.mxu1  ;;  %v1865_v24 = vunpack.c.h.bf16 %v1722_v15 }
 0x21c   :  { %v1488_v39 = vrot.slane %v7865_v29, 4  ;;  %v1508_v36 = vadd.f32 %v1507_v21, %v1506_v9  ;;  %v1674_v9 = vld [vmem:[#allocation6 + $0xf8] ss:$204 sps:$4 sm:$0xff]   ;;  %v1670_v21 = vld [vmem:[#allocation6 + $0xe0] ss:$204 sps:$4 sm:$0xff]  }
 0x21d   :  { %v944_v50 = vadd.f32 %v935_v31, %v925_v30  ;;  %v945_v40 = vadd.f32 %v939_v33, %v926_v27  ;;  %v943_v42 = vadd.f32 %v931_v35, %v924_v34  ;;  %v1766_v27 = vunpack.c.l.bf16 %v1722_v15  ;;  %v1718_v30 = vld [vmem:[#allocation6 + $0x74] ss:$396 sps:$4 sm:$0xff]  }
 0x21e   :  { %v1489_v26 = vadd.f32 %v1488_v39, %v7865_v29  ;;  %v1862_v33 = vunpack.c.h.bf16 %v1686_v20  ;;  %v1763_v34 = vunpack.c.l.bf16 %v1654_v44  ;;  %v1682_v35 = vld [vmem:[#allocation6 + $0x128] ss:$204 sps:$4 sm:$0xff]   ;;  %v1859_v41 = vunpack.c.h.bf16 %v1718_v30 }
 0x21f   :  { %v947_v45 = vmax.f32 %v944_v50, 0.0  ;;  %v948_v47 = vmax.f32 %v945_v40, 0.0  ;;  %v946_v48 = vmax.f32 %v943_v42, 0.0  ;;  %v1650_v39 = vld [vmem:[#allocation6 + $0x68] ss:$180 sps:$4 sm:$0xff]   ;;  %v1514_v50 = vadd.f32 %v1513_v23, %v1512_v54 }
 0x220   :  { %v1490_v51 = vrot.slane %v1489_v26, 2  ;;  %v1760_v42 = vunpack.c.l.bf16 %v1718_v30  ;;  %v1521_v49 = vmul.f32 0.125, %v1508_v36  ;;  %v1642_v54 = vld [vmem:[#allocation6 + $0x38] ss:$180 sps:$4 sm:$0xff]   ;;  %v1793_v15 = vunpack.c.l.bf16 %v1674_v9  ;;  %v1638_v44 = vld [vmem:[#allocation6 + $0x20] ss:$180 sps:$4 sm:$0xff]  }
 0x221   :  { %v7875_v55 = vadd.f32 %v7199_v53, %v947_v45  ;;  %v7878_v57 = vadd.f32 %v7200_v56, %v948_v47  ;;  %v7881_v60 = vadd.f32 %v7201_v58, %v946_v48  ;;  %v1856_v47 = vunpack.c.h.bf16 %v1682_v35  ;;  %v1702_v30 = vld [vmem:[#allocation6 + $0x14] ss:$396 sps:$4 sm:$0xff]  }
 0x222   :  { %v1491_v61 = vadd.f32 %v1490_v51, %v1489_v26  ;;  %v1805_v26 = vunpack.c.l.bf16 %v1682_v35  ;;  %v1757_v48 = vunpack.c.l.bf16 %v1650_v39  ;;  %v1802_v51 = vunpack.c.h.bf16 %v1650_v39  ;;  %v1666_v35 = vld [vmem:[#allocation6 + $0xc8] ss:$204 sps:$4 sm:$0xff]  }
 0x223   :  { %1939 = vmatprep.mubr.f32.mxu0 %v7875_v55  ;;  %2011 = vmatmul.mubr.f32.vlgmr.msra.gmra.mxu1 %v7878_v57  ;;  %v1522_v53 = vmul.f32 0.125, %v1514_v50  ;;  %v1853_v58 = vunpack.c.h.bf16 %v1714_v43  ;;  %v1745_v20 = vunpack.c.l.bf16 %v1642_v54  ;;  %v1784_v36 = vunpack.c.h.bf16 %v1638_v44 }
 0x224   :  { %v1492_v12 = vrot.slane %v1491_v61, 1  ;;  %6469 = vmatpush3.msra.mxu1 %v1778_v52  ;;  %1940 = vmatmul.mubr.f32.vlgmr.msra.gmra.mxu0 %v7881_v60  ;;  %v1646_v52 = vld [vmem:[#allocation6 + $0x50] ss:$180 sps:$4 sm:$0xff]   ;;  %v1835_v50 = vunpack.c.h.bf16 %v1702_v30 }
 0x225   :  { %6470 = vmatprep.subr.mxu1 %v1823_v3  ;;  %2081 = vmatprep.mubr.f32.mxu1 %v7875_v55  ;;  %v1754_v3 = vunpack.c.l.bf16 %v1714_v43  ;;  %v1751_v8 = vunpack.c.l.bf16 %v1646_v52  ;;  %v1796_v11 = vunpack.c.h.bf16 %v1646_v52 }
 0x226   :  { %v1493_v16 = vadd.f32 %v1492_v12, %v1491_v61  ;;  %6864 = vmatpush3.msra.mxu0 %v1874_v6  ;;  %6471 = vmatpush3.msra.mxu1 %v1775_v7  ;;  %v1710_v61 = vld [vmem:[#allocation6 + $0x44] ss:$396 sps:$4 sm:$0xff]   ;;  %v1850_v7 = vunpack.c.h.bf16 %v1678_v22  ;;  %v1525_v12 = vadd.f32 1e-05, %v1522_v53 }
 0x227   :  { %6865 = vmatprep.subr.mxu0 %v7461_v0  ;;  %6472 = vmatprep.subr.mxu1 %v1820_v10  ;;  %v1524_v10 = vadd.f32 1e-05, %v1521_v49  ;;  %v2342_v22 = vld [vmem:[#allocation9 + $0xa8] sm:$0xff]  ;;  %v2340_v53 = vld [vmem:[#allocation9 + $0x9c] sm:$0xff] }
 0x228   :  { %v7889_v38 = vmul.f32 0.125, %v1493_v16  ;;  %6866 = vmatpush3.msra.mxu0 %v1871_v13  ;;  %6473 = vmatpush3.msra.mxu1 %v1772_v14  ;;  %v1847_v14 = vunpack.c.h.bf16 %v1710_v61  ;;  %v1706_v16 = vld [vmem:[#allocation6 + $0x2c] ss:$396 sps:$4 sm:$0xff]  }
 0x229   :  { %6867 = vmatprep.subr.mxu0 %v7461_v0  ;;  %6474 = vmatprep.subr.mxu1 %v1817_v17  ;;  %v1748_v17 = vunpack.c.l.bf16 %v1710_v61  ;;  %7153 = vrsqrt.f32 %v1524_v10  ;;  %v2452_v10 = vunpack.c.h.bf16 %v2340_v53 }
 0x22a   :  { %v1499_v31 = vsub.f32 %v7865_v29, %v7889_v38  ;;  %6868 = vmatpush3.msra.mxu0 %v1868_v18  ;;  %6475 = vmatpush3.msra.mxu1 %v1769_v19  ;;  %v1844_v19 = vunpack.c.h.bf16 %v1674_v9  ;;  %7155 = vrsqrt.f32 %v1525_v12  ;;  %v2451_v12 = vunpack.c.l.bf16 %v2340_v53 }
 0x22b   :  { %6869 = vmatprep.subr.mxu0 %v7461_v0  ;;  %6476 = vmatprep.subr.mxu1 %v1814_v59  ;;  %v1790_v59 = vunpack.c.h.bf16 %v1642_v54  ;;  %v2402_v54 = vld [vmem:[#allocation9 + $0x210] sm:$0xff] }
 0x22c   :  { %v1502_v40 = vmul.f32 %v1499_v31, %v1499_v31  ;;  %6870 = vmatpush3.msra.mxu0 %v1865_v24  ;;  %6477 = vmatpush3.msra.mxu1 %v1766_v27  ;;  %v1841_v24 = vunpack.c.h.bf16 %v1706_v16  ;;  %v1742_v27 = vunpack.c.l.bf16 %v1706_v16  ;;  %v2400_v16 = vld [vmem:[#allocation9 + $0x204] sm:$0xff] }
 0x22d   :  { %6871 = vmatprep.subr.mxu0 %v7461_v0  ;;  %6478 = vmatprep.subr.mxu1 %v1811_v28  ;;  %v1787_v28 = vunpack.c.l.bf16 %v1670_v21 }
 0x22e   :  { %v1515_v45 = vrot.slane %v1502_v40, 4  ;;  %6872 = vmatpush3.msra.mxu0 %v1862_v33  ;;  %6479 = vmatpush3.msra.mxu1 %v1763_v34  ;;  %v1838_v33 = vunpack.c.h.bf16 %v1670_v21  ;;  %v1739_v34 = vunpack.c.l.bf16 %v1638_v44  ;;  %v2545_v21 = vunpack.c.h.bf16 %v2402_v54 }
 0x22f   :  { %6873 = vmatprep.subr.mxu0 %v7461_v0  ;;  %6480 = vmatprep.subr.mxu1 %v1808_v37  ;;  %v1634_v37 = vld [vmem:[#allocation6 + $0x8] sm:$0xf]  ;;  %v2544_v44 = vunpack.c.l.bf16 %v2402_v54 }
 0x230   :  { %v1516_v56 = vadd.f32 %v1515_v45, %v1502_v40  ;;  %6874 = vmatpush3.msra.mxu0 %v1859_v41  ;;  %6481 = vmatpush3.msra.mxu1 %v1760_v42  ;;  %v1736_v40 = vunpack.c.l.bf16 %v1702_v30  ;;  %v1781_v41 = vunpack.c.l.bf16 %v1666_v35  ;;  %v1698_v42 = vld [vmem:[#allocation6 + $0x188] sm:$0xf]  ;;  %v1733_v43 = vunpack.c.l.bf16 %v1634_v37  ;;  %v2344_v45 = vld [vmem:[#allocation9 + $0xb4] sm:$0xff] }
 0x231   :  { %6875 = vmatprep.subr.mxu0 %v7461_v0  ;;  %6482 = vmatprep.subr.mxu1 %v1805_v26  ;;  %v1832_v26 = vunpack.c.h.bf16 %v1666_v35  ;;  %v2458_v49 = vunpack.c.h.bf16 %v2344_v45  ;;  %v2457_v52 = vunpack.c.l.bf16 %v2344_v45  ;;  %v2328_v45 = vld [vmem:[#allocation9 + $0x54] sm:$0xff] }
 0x232   :  { %v1517_v6 = vrot.slane %v1516_v56, 2  ;;  %6876 = vmatpush3.msra.mxu0 %v1856_v47  ;;  %6483 = vmatpush3.msra.mxu1 %v1757_v48  ;;  %v2408_v47 = vld [vmem:[#allocation9 + $0x234] sm:$0xff]  ;;  %v1829_v48 = vunpack.c.l.bf16 %v1698_v42  ;;  %v2394_v42 = vld [vmem:[#allocation9 + $0x1e0] sm:$0xff] }
 0x233   :  { %6877 = vmatprep.subr.mxu0 %v7461_v0  ;;  %6484 = vmatprep.subr.mxu1 %v1802_v51  ;;  %v2406_v51 = vld [vmem:[#allocation9 + $0x228] sm:$0xff] }
 0x234   :  { %v1518_v13 = vadd.f32 %v1517_v6, %v1516_v56  ;;  %6878 = vmatpush3.msra.mxu0 %v1853_v58  ;;  %6485 = vmatpush3.msra.mxu1 %v1754_v3  ;;  %v2554_v56 = vunpack.c.h.bf16 %v2408_v47  ;;  %v2455_v58 = vunpack.c.h.bf16 %v2342_v22  ;;  %v2553_v3 = vunpack.c.l.bf16 %v2408_v47 }
 0x235   :  { %6879 = vmatprep.subr.mxu0 %v7461_v0  ;;  %6486 = vmatprep.subr.mxu1 %v1799_v5  ;;  %v2404_v5 = vld [vmem:[#allocation9 + $0x21c] sm:$0xff]  ;;  %v2454_v6 = vunpack.c.l.bf16 %v2342_v22 }
 0x236   :  { %v1519_v18 = vrot.slane %v1518_v13, 1  ;;  %6880 = vmatpush3.msra.mxu0 %v1850_v7  ;;  %6487 = vmatpush3.msra.mxu1 %v1751_v8  ;;  %v7154_v61 = vpop.eup %7153  ;;  %v2338_v7 = vld [vmem:[#allocation9 + $0x90] sm:$0xff]  ;;  %v2551_v8 = vunpack.c.h.bf16 %v2406_v51 }
 0x237   :  { %6881 = vmatprep.subr.mxu0 %v7461_v0  ;;  %6488 = vmatprep.subr.mxu1 %v1796_v11  ;;  %v7156_v9 = vpop.eup %7155  ;;  %v2550_v11 = vunpack.c.l.bf16 %v2406_v51  ;;  %v2392_v51 = vld [vmem:[#allocation9 + $0x1d4] sm:$0xff] }
 0x238   :  { %v1520_v23 = vadd.f32 %v1519_v18, %v1518_v13  ;;  %6882 = vmatpush3.msra.mxu0 %v1847_v14  ;;  %6489 = vmatpush3.msra.mxu1 %v1748_v17  ;;  %v2336_v13 = vld [vmem:[#allocation9 + $0x84] sm:$0xff]  ;;  %v2548_v14 = vunpack.c.h.bf16 %v2404_v5  ;;  %v2449_v17 = vunpack.c.h.bf16 %v2338_v7  ;;  %v1533_v18 = vcombine.low %v7154_v61, %v7156_v9 }
 0x239   :  { %6883 = vmatprep.subr.mxu0 %v7461_v0  ;;  %6490 = vmatprep.subr.mxu1 %v1793_v15  ;;  %v2547_v15 = vunpack.c.l.bf16 %v2404_v5  ;;  %v2532_v5 = vunpack.c.l.bf16 %v2394_v42  ;;  %v2390_v61 = vld [vmem:[#allocation9 + $0x1c8] sm:$0xff]  ;;  %v2530_v9 = vunpack.c.h.bf16 %v2392_v51  ;;  %v2529_v54 = vunpack.c.l.bf16 %v2392_v51  ;;  %v2378_v51 = vld [vmem:[#allocation9 + $0x180] sm:$0xff] }
 0x23a   :  { %v1523_v31 = vmul.f32 0.125, %v1520_v23  ;;  %6884 = vmatpush3.msra.mxu0 %v1844_v19  ;;  %6491 = vmatpush3.msra.mxu1 %v1745_v20  ;;  %v2448_v19 = vunpack.c.l.bf16 %v2338_v7  ;;  %v2334_v20 = vld [vmem:[#allocation9 + $0x78] sm:$0xff]  ;;  %v1540_v35 = vrot.slane %v1533_v18, %v7834_v46  ;;  %v2433_v7 = vunpack.c.l.bf16 %v2328_v45 }
 0x23b   :  { %6885 = vmatprep.subr.mxu0 %v7461_v0  ;;  %6492 = vmatprep.subr.mxu1 %v1790_v59  ;;  %v2446_v59 = vunpack.c.h.bf16 %v2336_v13  ;;  %v2398_v23 = vld [vmem:[#allocation9 + $0x1f8] sm:$0xff]  ;;  %v2442_v37 = vunpack.c.l.bf16 %v2334_v20 }
 0x23c   :  { %v1526_v39 = vadd.f32 1e-05, %v1523_v31  ;;  %6886 = vmatpush3.msra.mxu0 %v1841_v24  ;;  %6493 = vmatpush3.msra.mxu1 %v1742_v27  ;;  %v2445_v24 = vunpack.c.l.bf16 %v2336_v13  ;;  %v2332_v27 = vld [vmem:[#allocation9 + $0x6c] sm:$0xff]  ;;  %v2443_v31 = vunpack.c.h.bf16 %v2334_v20 }
 0x23d   :  { %6887 = vmatprep.subr.mxu0 %v7461_v0  ;;  %6494 = vmatprep.subr.mxu1 %v1787_v28  ;;  %v2542_v28 = vunpack.c.h.bf16 %v2400_v16  ;;  %v2386_v20 = vld [vmem:[#allocation9 + $0x1b0] sm:$0xff] }
 0x23e   :  { %7157 = vrsqrt.f32 %v1526_v39  ;;  %6888 = vmatpush3.msra.mxu0 %v1838_v33  ;;  %6495 = vmatpush3.msra.mxu1 %v1739_v34  ;;  %v2541_v33 = vunpack.c.l.bf16 %v2400_v16  ;;  %v2396_v34 = vld [vmem:[#allocation9 + $0x1ec] sm:$0xff]  ;;  %v2330_v39 = vld [vmem:[#allocation9 + $0x60] sm:$0xff] }
 0x23f   :  { %6889 = vmatprep.subr.mxu0 %v7461_v0  ;;  %6496 = vmatprep.subr.mxu1 %v1784_v36  ;;  %v2536_v47 = vunpack.c.h.bf16 %v2396_v34  ;;  %v2437_v22 = vunpack.c.h.bf16 %v2330_v39  ;;  %v2436_v53 = vunpack.c.l.bf16 %v2330_v39 }
 0x240   :  { %6890 = vmatpush3.msra.mxu0 %v1835_v50  ;;  %6497 = vmatpush3.msra.mxu1 %v1736_v40  ;;  %v2539_v50 = vunpack.c.h.bf16 %v2398_v23  ;;  %v2440_v40 = vunpack.c.h.bf16 %v2332_v27 }
 0x241   :  { %6891 = vmatprep.subr.mxu0 %v7461_v0  ;;  %6498 = vmatprep.subr.mxu1 %v1781_v41  ;;  %v2538_v41 = vunpack.c.l.bf16 %v2398_v23 }
 0x242   :  { %6892 = vmatpush3.msra.mxu0 %v1832_v26  ;;  %6499 = vmatpush3.msra.mxu1 %v1733_v43  ;;  %v2439_v43 = vunpack.c.l.bf16 %v2332_v27 }
 0x243   :  { %6893 = vmatprep.subr.mxu0 %v7461_v0  ;;  %2082 = vmatmul.mubr.f32.vlgmr.msra.gmra.mxu1 %v7881_v60 }
 0x244   :  { %6894 = vmatpush3.msra.mxu0 %v1829_v48  ;;  %6895 = vmatprep.mubr.msk.f32.mxu0 %vm7462_vm0, %v7461_v0  ;;  %v1048_v48 = vld [vmem:[%s8480_s9] sm:$0x7] }
 0x245   :  { %2556 = vmatprep.subr.mxu1 %v2458_v49  ;;  %6896 = vmatmul.mubr.f32.vlgmr.msra.gmra.mxu0 %v7878_v57  ;;  %v2535_v49 = vunpack.c.l.bf16 %v2396_v34  ;;  %v2318_v34 = vld [vmem:[#allocation9 + $0x18] sm:$0xff] }
 0x246   :  { %2557 = vmatpush1.msra.mxu1 %v2457_v52  ;;  %2627 = vmatprep.subr.mxu0 %v2554_v56  ;;  %v2326_v56 = vld [vmem:[#allocation9 + $0x48] sm:$0xff] }
 0x247   :  { %2558 = vmatprep.subr.mxu1 %v2455_v58  ;;  %2628 = vmatpush1.msra.mxu0 %v2553_v3  ;;  %v2533_v58 = vunpack.c.h.bf16 %v2394_v42  ;;  %v2434_v3 = vunpack.c.h.bf16 %v2328_v45  ;;  %v2418_v45 = vunpack.c.l.bf16 %v2318_v34 }
 0x248   :  { %2559 = vmatpush1.msra.mxu1 %v2454_v6  ;;  %2629 = vmatprep.subr.mxu0 %v2551_v8  ;;  %v2324_v8 = vld [vmem:[#allocation9 + $0x3c] sm:$0xff] }
 0x249   :  { %2560 = vmatprep.subr.mxu1 %v2452_v10  ;;  %2630 = vmatpush1.msra.mxu0 %v2550_v11  ;;  %v2430_v10 = vunpack.c.l.bf16 %v2326_v56  ;;  %v2431_v11 = vunpack.c.h.bf16 %v2326_v56  ;;  %v2428_v18 = vunpack.c.h.bf16 %v2324_v8  ;;  %v2376_v56 = vld [vmem:[#allocation9 + $0x174] sm:$0xff] }
 0x24a   :  { %2561 = vmatpush1.msra.mxu1 %v2451_v12  ;;  %2631 = vmatprep.subr.mxu0 %v2548_v14  ;;  %v2388_v12 = vld [vmem:[#allocation9 + $0x1bc] sm:$0xff]  ;;  %v2322_v14 = vld [vmem:[#allocation9 + $0x30] sm:$0xff] }
 0x24b   :  { %v7158_v30 = vpop.eup %7157  ;;  %2562 = vmatprep.subr.mxu1 %v2449_v17  ;;  %2632 = vmatpush1.msra.mxu0 %v2547_v15  ;;  %v2527_v17 = vunpack.c.h.bf16 %v2390_v61  ;;  %v2425_v27 = vunpack.c.h.bf16 %v2322_v14 }
 0x24c   :  { %v1547_v36 = vrot.slane %v7158_v30, %v7834_v46  ;;  %2563 = vmatpush1.msra.mxu1 %v2448_v19  ;;  %2633 = vmatprep.subr.mxu0 %v2545_v21  ;;  %v2526_v19 = vunpack.c.l.bf16 %v2390_v61  ;;  %v2427_v21 = vunpack.c.l.bf16 %v2324_v8  ;;  %v2384_v30 = vld [vmem:[#allocation9 + $0x1a4] sm:$0xff] }
 0x24d   :  { %2564 = vmatprep.subr.mxu1 %v2446_v59  ;;  %2634 = vmatpush1.msra.mxu0 %v2544_v44  ;;  %v2320_v59 = vld [vmem:[#allocation9 + $0x24] sm:$0xff]  ;;  %v2524_v44 = vunpack.c.h.bf16 %v2388_v12  ;;  %v2517_v42 = vunpack.c.l.bf16 %v2384_v30 }
 0x24e   :  { %v1548_v26 = vcombine.low %v1540_v35, %v1547_v36  ;;  %2565 = vmatpush1.msra.mxu1 %v2445_v24  ;;  %2635 = vmatprep.subr.mxu0 %v2542_v28  ;;  %v2523_v28 = vunpack.c.l.bf16 %v2388_v12  ;;  %v2521_v35 = vunpack.c.h.bf16 %v2386_v20  ;;  %v2422_v36 = vunpack.c.h.bf16 %v2320_v59 }
 0x24f   :  { %2566 = vmatprep.subr.mxu1 %v2443_v31  ;;  %2636 = vmatpush1.msra.mxu0 %v2541_v33  ;;  %v2424_v33 = vunpack.c.l.bf16 %v2322_v14 }
 0x250   :  { %v1555_v52 = vrot.slane %v1548_v26, %v7834_v46  ;;  %2567 = vmatpush1.msra.mxu1 %v2442_v37  ;;  %2637 = vmatprep.subr.mxu0 %v2539_v50  ;;  %v2382_v37 = vld [vmem:[#allocation9 + $0x198] sm:$0xff]  ;;  %v2316_v50 = vld [vmem:[#allocation9 + $0xc] sm:$0xff] }
 0x251   :  { %2568 = vmatprep.subr.mxu1 %v2440_v40  ;;  %2638 = vmatpush1.msra.mxu0 %v2538_v41  ;;  %v2518_v40 = vunpack.c.h.bf16 %v2384_v30  ;;  %v2380_v26 = vld [vmem:[#allocation9 + $0x18c] sm:$0xff] }
 0x252   :  { %v1557_v6 = vmul.f32 %v1555_v52, %v1048_v48  ;;  %2569 = vmatpush1.msra.mxu1 %v2439_v43  ;;  %2639 = vmatprep.subr.mxu0 %v2536_v47  ;;  %v2314_v47 = vld [vmem:[#allocation9] sm:$0xff]  ;;  %v2515_v48 = vunpack.c.h.bf16 %v2382_v37  ;;  %v2511_v61 = vunpack.c.l.bf16 %v2380_v26 }
 0x253   :  { %2570 = vmatprep.subr.mxu1 %v2437_v22  ;;  %2640 = vmatpush1.msra.mxu0 %v2535_v49  ;;  %v2416_v22 = vunpack.c.h.bf16 %v2316_v50  ;;  %v2514_v49 = vunpack.c.l.bf16 %v2382_v37  ;;  %v2412_v8 = vunpack.c.l.bf16 %v2314_v47  ;;  %v7203_v37 = vld [vmem:[%s7472_s5 + $0x10] sm:$0xff] }
 0x254   :  { %v7916_v13 = vrot.slane %v1557_v6, %v7844_v1  ;;  %2571 = vmatpush1.msra.mxu1 %v2436_v53  ;;  %2641 = vmatprep.subr.mxu0 %v2533_v58  ;;  %v7919_v15 = vrot.slane %v1557_v6, %v7840_v62  ;;  %v7922_v16 = vrot.slane %v1557_v6, %v7842_v63  ;;  %v2415_v53 = vunpack.c.l.bf16 %v2316_v50  ;;  %v2374_v6 = vld [vmem:[#allocation9 + $0x168] sm:$0xff]  ;;  %v2341_v50 = vld [vmem:[#allocation9 + $0x98] ss:$12 sps:$4 sm:$0xff]  }
 0x255   :  { %2572 = vmatprep.subr.mxu1 %v2434_v3  ;;  %2642 = vmatpush1.msra.mxu0 %v2532_v5  ;;  %v2512_v58 = vunpack.c.h.bf16 %v2380_v26  ;;  %v1049_v3 = vld [vmem:[#allocation4] sm:$0x7]  ;;  %v2413_v5 = vunpack.c.h.bf16 %v2314_v47  ;;  %v2364_v47 = vld [vmem:[#allocation9 + $0x12c] sm:$0xff] }
 0x256   :  { %2573 = vmatpush1.msra.mxu1 %v2433_v7  ;;  %2643 = vmatprep.subr.mxu0 %v2530_v9  ;;  %v1574_v23 = vmul.f32 %v7919_v15, %v7846_v2  ;;  %v1576_v24 = vmul.f32 %v7916_v13, %v7889_v38  ;;  %v1575_v31 = vmul.f32 %v7922_v16, %v7848_v4  ;;  %v2520_v2 = vunpack.c.l.bf16 %v2386_v20 }
 0x257   :  { %2574 = vmatprep.subr.mxu1 %v2431_v11  ;;  %2644 = vmatpush1.msra.mxu0 %v2529_v54  ;;  %v2421_v38 = vunpack.c.l.bf16 %v2320_v59  ;;  %v2419_v4 = vunpack.c.h.bf16 %v2318_v34  ;;  %v2509_v9 = vunpack.c.h.bf16 %v2378_v51  ;;  %v2506_v11 = vunpack.c.h.bf16 %v2376_v56  ;;  %v2368_v34 = vld [vmem:[#allocation9 + $0x144] sm:$0xff] }
 0x258   :  { %2575 = vmatpush1.msra.mxu1 %v2430_v10  ;;  %2645 = vmatprep.subr.mxu0 %v2527_v17  ;;  %v1580_v39 = vcombine.low %v1574_v23, %v1575_v31  ;;  %v1594_v41 = vrot.slane %v1576_v24, %v7834_v46  ;;  %v2377_v10 = vld [vmem:[#allocation9 + $0x170] ss:$12 sps:$4 sm:$0xff]   ;;  %v2508_v54 = vunpack.c.l.bf16 %v2378_v51  ;;  %v1607_v14 = vmul.f32 %v7916_v13, %v7865_v29  ;;  %v2337_v51 = vld [vmem:[#allocation9 + $0x80] ss:$12 sps:$4 sm:$0xff]  }
 0x259   :  { %2576 = vmatprep.subr.mxu1 %v2428_v18  ;;  %2646 = vmatpush1.msra.mxu0 %v2526_v19  ;;  %v2505_v17 = vunpack.c.l.bf16 %v2376_v56  ;;  %v2503_v18 = vunpack.c.h.bf16 %v2374_v6  ;;  %v2372_v19 = vld [vmem:[#allocation9 + $0x15c] sm:$0xff]  ;;  %v2507_v20 = vunpack.c.h.bf16 %v2377_v10  ;;  %v2502_v23 = vunpack.c.l.bf16 %v2374_v6  ;;  %v2360_v6 = vld [vmem:[#allocation9 + $0x114] sm:$0xff] }
 0x25a   :  { %2577 = vmatpush1.msra.mxu1 %v2427_v21  ;;  %2647 = vmatprep.subr.mxu0 %v2524_v44  ;;  %v1587_v43 = vrot.slane %v1580_v39, %v7834_v46  ;;  %v1606_v21 = vmul.f32 %v7922_v16, %v7829_v32  ;;  %v2500_v29 = vunpack.c.h.bf16 %v2372_v19  ;;  %v2499_v32 = vunpack.c.l.bf16 %v2372_v19  ;;  %v2362_v56 = vld [vmem:[#allocation9 + $0x120] sm:$0xff] }
 0x25b   :  { %2578 = vmatprep.subr.mxu1 %v2425_v27  ;;  %2648 = vmatpush1.msra.mxu0 %v2523_v28  ;;  %v2345_v27 = vld [vmem:[#allocation9 + $0xb0] ss:$12 sps:$4 sm:$0xff]   ;;  %v2481_v19 = vunpack.c.l.bf16 %v2360_v6 }
 0x25c   :  { %2579 = vmatpush1.msra.mxu1 %v2424_v33  ;;  %2649 = vmatprep.subr.mxu0 %v2521_v35  ;;  %v1595_v52 = vcombine.low %v1587_v43, %v1594_v41  ;;  %v2370_v28 = vld [vmem:[#allocation9 + $0x150] sm:$0xff]  ;;  %v2459_v31 = vunpack.c.h.bf16 %v2345_v27  ;;  %v2373_v35 = vld [vmem:[#allocation9 + $0x158] ss:$12 sps:$4 sm:$0xff]   ;;  %v2456_v41 = vunpack.c.l.bf16 %v2345_v27  ;;  %v2493_v43 = vunpack.c.l.bf16 %v2368_v34 }
 0x25d   :  { %2580 = vmatprep.subr.mxu1 %v2422_v36  ;;  %2650 = vmatpush1.msra.mxu0 %v2520_v2  ;;  %v2497_v33 = vunpack.c.h.bf16 %v2370_v28  ;;  %v7202_v36 = vld [vmem:[%s7472_s5 + $0x8] sm:$0xff]  ;;  %v2501_v26 = vunpack.c.h.bf16 %v2373_v35  ;;  %v2354_v27 = vld [vmem:[#allocation9 + $0xf0] sm:$0xff] }
 0x25e   :  { %2581 = vmatpush1.msra.mxu1 %v2421_v38  ;;  %2651 = vmatprep.subr.mxu0 %v2518_v40  ;;  %v1602_v7 = vrot.slane %v1595_v52, %v7834_v46  ;;  %v2504_v38 = vunpack.c.l.bf16 %v2377_v10  ;;  %v2496_v40 = vunpack.c.l.bf16 %v2370_v28  ;;  %v2333_v10 = vld [vmem:[#allocation9 + $0x68] ss:$12 sps:$4 sm:$0xff]  }
 0x25f   :  { %2582 = vmatprep.subr.mxu1 %v2419_v4  ;;  %2652 = vmatpush1.msra.mxu0 %v2517_v42  ;;  %v2366_v4 = vld [vmem:[#allocation9 + $0x138] sm:$0xff]  ;;  %v2494_v42 = vunpack.c.h.bf16 %v2368_v34  ;;  %v2473_v34 = vunpack.c.h.bf16 %v2354_v27 }
 0x260   :  { %2583 = vmatpush1.msra.mxu1 %v2418_v45  ;;  %2653 = vmatprep.subr.mxu0 %v2515_v48  ;;  %v7933_v12 = vsub.f32 %v1049_v3, %v1602_v7  ;;  %v2453_v45 = vunpack.c.h.bf16 %v2341_v50  ;;  %v2369_v48 = vld [vmem:[#allocation9 + $0x140] ss:$12 sps:$4 sm:$0xff]   ;;  %v2490_v52 = vunpack.c.l.bf16 %v2366_v4  ;;  %v2365_v7 = vld [vmem:[#allocation9 + $0x128] ss:$12 sps:$4 sm:$0xff]  }
 0x261   :  { %2584 = vmatprep.subr.mxu1 %v2416_v22  ;;  %2654 = vmatpush1.msra.mxu0 %v2514_v49  ;;  %v2491_v22 = vunpack.c.h.bf16 %v2366_v4  ;;  %v2498_v49 = vunpack.c.l.bf16 %v2373_v35  ;;  %v2495_v3 = vunpack.c.h.bf16 %v2369_v48 }
 0x262   :  { %2585 = vmatpush1.msra.mxu1 %v2415_v53  ;;  %2655 = vmatprep.subr.mxu0 %v2512_v58  ;;  %v1616_v59 = vrot.slane %v7933_v12, %v7842_v63  ;;  %v1620_v44 = vrot.slane %v7933_v12, %v7844_v1  ;;  %v2450_v53 = vunpack.c.l.bf16 %v2341_v50  ;;  %v2488_v58 = vunpack.c.h.bf16 %v2364_v47 }
 0x263   :  { %2586 = vmatprep.subr.mxu1 %v2413_v5  ;;  %2656 = vmatpush1.msra.mxu0 %v2511_v61  ;;  %v2487_v5 = vunpack.c.l.bf16 %v2364_v47  ;;  %v2447_v61 = vunpack.c.h.bf16 %v2337_v51  ;;  %v2353_v47 = vld [vmem:[#allocation9 + $0xe0] ss:$12 sps:$4 sm:$0xff]  }
 0x264   :  { %2587 = vmatpush1.msra.mxu1 %v2412_v8  ;;  %2657 = vmatprep.subr.mxu0 %v2509_v9  ;;  %v1625_v13 = vadd.f32 %v1616_v59, %v1606_v21  ;;  %v1626_v24 = vadd.f32 %v1620_v44, %v1607_v14  ;;  %v2485_v8 = vunpack.c.h.bf16 %v2362_v56  ;;  %v2492_v9 = vunpack.c.l.bf16 %v2369_v48  ;;  %v2358_v14 = vld [vmem:[#allocation9 + $0x108] sm:$0xff]  ;;  %v2356_v21 = vld [vmem:[#allocation9 + $0xfc] sm:$0xff] }
 0x265   :  { %2588 = vmatprep.subr.mxu1 %v2506_v11  ;;  %2658 = vmatpush1.msra.mxu0 %v2508_v54  ;;  %v2484_v11 = vunpack.c.l.bf16 %v2362_v56  ;;  %v2444_v54 = vunpack.c.l.bf16 %v2337_v51  ;;  %v2361_v59 = vld [vmem:[#allocation9 + $0x110] ss:$12 sps:$4 sm:$0xff]   ;;  %v2479_v44 = vunpack.c.h.bf16 %v2358_v14  ;;  %v2476_v28 = vunpack.c.h.bf16 %v2356_v21 }
 0x266   :  { %2589 = vmatpush2.msra.mxu1 %v2505_v17  ;;  %2691 = vmatprep.mubr.f32.mxu0 %v7461_v0  ;;  %v1628_v16 = vmax.f32 %v1625_v13, 0.0  ;;  %v1629_v30 = vmax.f32 %v1626_v24, 0.0  ;;  %v2482_v17 = vunpack.c.h.bf16 %v2360_v6  ;;  %v2478_v13 = vunpack.c.l.bf16 %v2358_v14  ;;  %v7204_v14 = vld [vmem:[%s7472_s5] sm:$0xff]  ;;  %s8481_s5 = sld [smem:[#allocation26_spill]] }
 0x267   :  { %2590 = vmatprep.subr.mxu1 %v2503_v18  ;;  %6520 = vmatprep.subr.mxu0 %v2507_v20  ;;  %v2489_v18 = vunpack.c.h.bf16 %v2365_v7  ;;  %v2441_v20 = vunpack.c.h.bf16 %v2333_v10  ;;  %v2438_v24 = vunpack.c.l.bf16 %v2333_v10  ;;  %v2480_v35 = vunpack.c.l.bf16 %v2361_v59 }
 0x268   :  { %2591 = vmatpush2.msra.mxu1 %v2502_v23  ;;  %v7945_v2 = vadd.f32 %v7202_v36, %v1628_v16  ;;  %v7948_v39 = vadd.f32 %v7203_v37, %v1629_v30  ;;  %v2486_v23 = vunpack.c.l.bf16 %v2365_v7  ;;  %v2475_v16 = vunpack.c.l.bf16 %v2356_v21  ;;  %v2325_v36 = vld [vmem:[#allocation9 + $0x38] ss:$12 sps:$4 sm:$0xff]   ;;  %v2317_v7 = vld [vmem:[#allocation9 + $0x14] ss:$180 sps:$4 sm:$0xff]  }
 0x269   :  { %2592 = vmatprep.subr.mxu1 %v2500_v29  ;;  %v2329_v29 = vld [vmem:[#allocation9 + $0x50] ss:$12 sps:$4 sm:$0xff]   ;;  %v1612_v37 = vrot.slane %v7933_v12, %v7840_v62  ;;  %v2405_v21 = vld [vmem:[#allocation9 + $0x218] ss:$12 sps:$4 sm:$0xff]  }
 0x26a   :  { %2593 = vmatpush2.msra.mxu1 %v2499_v32  ;;  %2620 = vmatprep.mubr.f32.mxu1 %v7945_v2  ;;  %v2483_v32 = vunpack.c.h.bf16 %v2361_v59  ;;  %v2435_v30 = vunpack.c.h.bf16 %v2329_v29  ;;  %v2432_v50 = vunpack.c.l.bf16 %v2329_v29  ;;  %v2546_v29 = vunpack.c.l.bf16 %v2405_v21 }
 0x26b   :  { %2692 = vmatmul.mubr.f32.vlgmr.msra.gmra.mxu0 %v7948_v39  ;;  %2594 = vmatprep.subr.mxu1 %v2497_v33  ;;  %v2357_v33 = vld [vmem:[#allocation9 + $0xf8] ss:$12 sps:$4 sm:$0xff]  }
 0x26c   :  { %6521 = vmatpush3.msra.mxu0 %v2459_v31  ;;  %2762 = vmatprep.mubr.f32.mxu0 %v7945_v2  ;;  %v2352_v31 = vld [vmem:[#allocation9 + $0xe4] sm:$0xff]  ;;  %v2477_v4 = vunpack.c.h.bf16 %v2357_v33  ;;  %v2474_v48 = vunpack.c.l.bf16 %v2357_v33 }
 0x26d   :  { %6522 = vmatprep.subr.mxu0 %v2504_v38  ;;  %2595 = vmatpush2.msra.mxu1 %v2496_v40  ;;  %v2472_v38 = vunpack.c.l.bf16 %v2354_v27  ;;  %v2350_v40 = vld [vmem:[#allocation9 + $0xd8] sm:$0xff] }
 0x26e   :  { %6523 = vmatpush3.msra.mxu0 %v2456_v41  ;;  %2596 = vmatprep.subr.mxu1 %v2494_v42  ;;  %v2470_v41 = vunpack.c.h.bf16 %v2352_v31  ;;  %v1605_v42 = vmul.f32 %v7919_v15, %v7826_v25  ;;  %v2467_v12 = vunpack.c.h.bf16 %v2350_v40  ;;  %v2466_v51 = vunpack.c.l.bf16 %v2350_v40  ;;  %v3023_v40 = vld [vmem:[#allocation10 + $0xa8] sm:$0xff] }
 0x26f   :  { %6524 = vmatprep.subr.mxu0 %v2501_v26  ;;  %2597 = vmatpush2.msra.mxu1 %v2493_v43  ;;  %v2469_v26 = vunpack.c.l.bf16 %v2352_v31  ;;  %v2429_v43 = vunpack.c.h.bf16 %v2325_v36  ;;  %v2471_v15 = vunpack.c.h.bf16 %v2353_v47  ;;  %v2389_v31 = vld [vmem:[#allocation9 + $0x1b8] ss:$12 sps:$4 sm:$0xff]  }
 0x270   :  { %6525 = vmatpush3.msra.mxu0 %v2453_v45  ;;  %2598 = vmatprep.subr.mxu1 %v2491_v22  ;;  %v2348_v45 = vld [vmem:[#allocation9 + $0xcc] sm:$0xff] }
 0x271   :  { %6526 = vmatprep.subr.mxu0 %v2498_v49  ;;  %2599 = vmatpush2.msra.mxu1 %v2490_v52  ;;  %v2321_v22 = vld [vmem:[#allocation9 + $0x20] ss:$12 sps:$4 sm:$0xff]   ;;  %v1624_v49 = vadd.f32 %v1612_v37, %v1605_v42  ;;  %v2426_v52 = vunpack.c.l.bf16 %v2325_v36  ;;  %v2464_v25 = vunpack.c.h.bf16 %v2348_v45  ;;  %v2463_v56 = vunpack.c.l.bf16 %v2348_v45  ;;  %v3025_v36 = vld [vmem:[#allocation10 + $0xb4] sm:$0xff] }
 0x272   :  { %6527 = vmatpush3.msra.mxu0 %v2450_v53  ;;  %2600 = vmatprep.subr.mxu1 %v2488_v58  ;;  %v2346_v53 = vld [vmem:[#allocation9 + $0xc0] sm:$0xff]  ;;  %v2423_v58 = vunpack.c.h.bf16 %v2321_v22  ;;  %v2522_v37 = vunpack.c.l.bf16 %v2389_v31  ;;  %v2381_v42 = vld [vmem:[#allocation9 + $0x188] ss:$12 sps:$4 sm:$0xff]  }
 0x273   :  { %6528 = vmatprep.subr.mxu0 %v2495_v3  ;;  %2601 = vmatpush2.msra.mxu1 %v2487_v5  ;;  %v2349_v3 = vld [vmem:[#allocation9 + $0xd4] ss:$360 sps:$4 sm:$0xff]   ;;  %v2461_v5 = vunpack.c.h.bf16 %v2346_v53  ;;  %v1627_v6 = vmax.f32 %v1624_v49, 0.0 }
 0x274   :  { %6529 = vmatpush3.msra.mxu0 %v2447_v61  ;;  %2602 = vmatprep.subr.mxu1 %v2485_v8  ;;  %v2468_v61 = vunpack.c.l.bf16 %v2353_v47  ;;  %v2460_v8 = vunpack.c.l.bf16 %v2346_v53  ;;  %v2465_v10 = vunpack.c.l.bf16 %v2349_v3  ;;  %v2510_v53 = vunpack.c.l.bf16 %v2381_v42 }
 0x275   :  { %6530 = vmatprep.subr.mxu0 %v2492_v9  ;;  %2603 = vmatpush2.msra.mxu1 %v2484_v11  ;;  %v2420_v9 = vunpack.c.l.bf16 %v2321_v22  ;;  %v2315_v11 = vld [vmem:[#allocation9 + $0x8] ss:$552 sps:$4 sm:$0xff]   ;;  %v2513_v22 = vunpack.c.h.bf16 %v2381_v42 }
 0x276   :  { %6531 = vmatpush3.msra.mxu0 %v2444_v54  ;;  %2604 = vmatprep.subr.mxu1 %v2482_v17  ;;  %v2417_v54 = vunpack.c.l.bf16 %v2317_v7  ;;  %v7958_v17 = vadd.f32 %v7204_v14, %v1627_v6  ;;  %v2552_v59 = vunpack.c.h.bf16 %v2315_v11  ;;  %v3007_v14 = vld [vmem:[#allocation10 + $0x48] sm:$0xff] }
 0x277   :  { %6532 = vmatprep.subr.mxu0 %v2489_v18  ;;  %2605 = vmatpush2.msra.mxu1 %v2481_v19  ;;  %v2555_v18 = vunpack.c.h.bf16 %v2349_v3  ;;  %v2462_v19 = vunpack.c.h.bf16 %v2317_v7  ;;  %v3011_v7 = vld [vmem:[#allocation10 + $0x60] sm:$0xff] }
 0x278   :  { %6533 = vmatpush3.msra.mxu0 %v2441_v20  ;;  %2606 = vmatprep.subr.mxu1 %v2479_v44  ;;  %v2414_v20 = vunpack.c.l.bf16 %v2315_v11  ;;  %v2549_v44 = vunpack.c.h.bf16 %v2405_v21 }
 0x279   :  { %6534 = vmatprep.subr.mxu0 %v2486_v23  ;;  %2607 = vmatpush2.msra.mxu1 %v2478_v13  ;;  %v2401_v23 = vld [vmem:[#allocation9 + $0x200] ss:$12 sps:$4 sm:$0xff]  }
 0x27a   :  { %6535 = vmatpush3.msra.mxu0 %v2438_v24  ;;  %2608 = vmatprep.subr.mxu1 %v2476_v28  ;;  %v2543_v13 = vunpack.c.h.bf16 %v2401_v23  ;;  %v2397_v24 = vld [vmem:[#allocation9 + $0x1e8] ss:$12 sps:$4 sm:$0xff]   ;;  %v2540_v27 = vunpack.c.l.bf16 %v2401_v23 }
 0x27b   :  { %6536 = vmatprep.subr.mxu0 %v2483_v32  ;;  %2609 = vmatpush2.msra.mxu1 %v2475_v16  ;;  %v2537_v28 = vunpack.c.h.bf16 %v2397_v24  ;;  %v2393_v32 = vld [vmem:[#allocation9 + $0x1d0] ss:$12 sps:$4 sm:$0xff]   ;;  %v2534_v16 = vunpack.c.l.bf16 %v2397_v24 }
 0x27c   :  { %6537 = vmatpush3.msra.mxu0 %v2435_v30  ;;  %2610 = vmatprep.subr.mxu1 %v2473_v34  ;;  %v2531_v30 = vunpack.c.h.bf16 %v2393_v32  ;;  %v2528_v33 = vunpack.c.l.bf16 %v2393_v32  ;;  %v2525_v34 = vunpack.c.h.bf16 %v2389_v31 }
 0x27d   :  { %6538 = vmatprep.subr.mxu0 %v2480_v35  ;;  %2611 = vmatpush2.msra.mxu1 %v2472_v38  ;;  %v2385_v35 = vld [vmem:[#allocation9 + $0x1a0] ss:$12 sps:$4 sm:$0xff]   ;;  %v3139_v38 = vunpack.c.h.bf16 %v3025_v36 }
 0x27e   :  { %6539 = vmatpush3.msra.mxu0 %v2432_v50  ;;  %2612 = vmatprep.subr.mxu1 %v2470_v41  ;;  %v3138_v50 = vunpack.c.l.bf16 %v3025_v36  ;;  %v2519_v41 = vunpack.c.h.bf16 %v2385_v35  ;;  %v2516_v45 = vunpack.c.l.bf16 %v2385_v35  ;;  %v3089_v36 = vld [vmem:[#allocation10 + $0x234] sm:$0xff] }
 0x27f   :  { %6540 = vmatprep.subr.mxu0 %v2477_v4  ;;  %2613 = vmatpush2.msra.mxu1 %v2469_v26  ;;  %v3136_v4 = vunpack.c.h.bf16 %v3023_v40  ;;  %v3135_v26 = vunpack.c.l.bf16 %v3023_v40  ;;  %v3234_v40 = vunpack.c.l.bf16 %v3089_v36 }
 0x280   :  { %6541 = vmatpush3.msra.mxu0 %v2429_v43  ;;  %2614 = vmatprep.subr.mxu1 %v2467_v12  ;;  %v3021_v43 = vld [vmem:[#allocation10 + $0x9c] sm:$0xff] }
 0x281   :  { %6542 = vmatprep.subr.mxu0 %v2474_v48  ;;  %2615 = vmatpush2.msra.mxu1 %v2466_v51  ;;  %v3133_v47 = vunpack.c.h.bf16 %v3021_v43  ;;  %v3132_v12 = vunpack.c.l.bf16 %v3021_v43  ;;  %v3019_v48 = vld [vmem:[#allocation10 + $0x90] sm:$0xff]  ;;  %v3055_v43 = vld [vmem:[#allocation10 + $0x168] sm:$0xff] }
 0x282   :  { %6543 = vmatpush3.msra.mxu0 %v2426_v52  ;;  %2616 = vmatprep.subr.mxu1 %v2464_v25  ;;  %v3130_v49 = vunpack.c.h.bf16 %v3019_v48  ;;  %v3129_v51 = vunpack.c.l.bf16 %v3019_v48  ;;  %v3017_v52 = vld [vmem:[#allocation10 + $0x84] sm:$0xff]  ;;  %v3183_v48 = vunpack.c.l.bf16 %v3055_v43 }
 0x283   :  { %6544 = vmatprep.subr.mxu0 %v2471_v15  ;;  %2617 = vmatpush2.msra.mxu1 %v2463_v56  ;;  %v3127_v25 = vunpack.c.h.bf16 %v3017_v52  ;;  %v3126_v15 = vunpack.c.l.bf16 %v3017_v52  ;;  %v3015_v56 = vld [vmem:[#allocation10 + $0x78] sm:$0xff] }
 0x284   :  { %6545 = vmatpush3.msra.mxu0 %v2423_v58  ;;  %2618 = vmatprep.subr.mxu1 %v2461_v5  ;;  %v3124_v58 = vunpack.c.h.bf16 %v3015_v56  ;;  %v3123_v3 = vunpack.c.l.bf16 %v3015_v56  ;;  %v3013_v5 = vld [vmem:[#allocation10 + $0x6c] sm:$0xff] }
 0x285   :  { %6546 = vmatprep.subr.mxu0 %v2468_v61  ;;  %2619 = vmatpush2.msra.mxu1 %v2460_v8  ;;  %v3121_v61 = vunpack.c.h.bf16 %v3013_v5  ;;  %v3120_v6 = vunpack.c.l.bf16 %v3013_v5  ;;  %v3118_v8 = vunpack.c.h.bf16 %v3011_v7  ;;  %v3051_v56 = vld [vmem:[#allocation10 + $0x150] sm:$0xff]  ;;  %v3081_v5 = vld [vmem:[#allocation10 + $0x204] sm:$0xff] }
 0x286   :  { %6547 = vmatpush3.msra.mxu0 %v2420_v9  ;;  %2621 = vmatmul.mubr.f32.vlgmr.msra.gmra.mxu1 %v7958_v17  ;;  %v3117_v9 = vunpack.c.l.bf16 %v3011_v7  ;;  %v3049_v7 = vld [vmem:[#allocation10 + $0x144] sm:$0xff] }
 0x287   :  { %6548 = vmatprep.subr.mxu0 %v2465_v10  ;;  %6898 = vmatprep.subr.mxu1 %v7461_v0  ;;  %v3009_v10 = vld [vmem:[#allocation10 + $0x54] sm:$0xff] }
 0x288   :  { %6549 = vmatpush3.msra.mxu0 %v2417_v54  ;;  %6899 = vmatpush3.msra.mxu1 %v2555_v18  ;;  %v3115_v11 = vunpack.c.h.bf16 %v3009_v10  ;;  %v3114_v54 = vunpack.c.l.bf16 %v3009_v10  ;;  %v3112_v18 = vunpack.c.h.bf16 %v3007_v14  ;;  %v3079_v10 = vld [vmem:[#allocation10 + $0x1f8] sm:$0xff] }
 0x289   :  { %6550 = vmatprep.subr.mxu0 %v2462_v19  ;;  %6900 = vmatprep.subr.mxu1 %v7461_v0  ;;  %v3111_v19 = vunpack.c.l.bf16 %v3007_v14  ;;  %v3047_v14 = vld [vmem:[#allocation10 + $0x138] sm:$0xff] }
 0x28a   :  { %6551 = vmatpush3.msra.mxu0 %v2414_v20  ;;  %6901 = vmatpush3.msra.mxu1 %v2552_v59  ;;  %v3005_v20 = vld [vmem:[#allocation10 + $0x3c] sm:$0xff] }
 0x28b   :  { %2763 = vmatmul.mubr.f32.vlgmr.msra.gmra.mxu0 %v7958_v17  ;;  %6902 = vmatprep.subr.mxu1 %v7461_v0  ;;  %v3109_v21 = vunpack.c.h.bf16 %v3005_v20  ;;  %v3108_v59 = vunpack.c.l.bf16 %v3005_v20  ;;  %v3077_v20 = vld [vmem:[#allocation10 + $0x1ec] sm:$0xff] }
 0x28c   :  { %6930 = vmatprep.mubr.msk.f32.mxu1 %vm7462_vm0, %v7461_v0  ;;  %6903 = vmatpush3.msra.mxu1 %v2549_v44  ;;  %v3003_v44 = vld [vmem:[#allocation10 + $0x30] sm:$0xff] }
 0x28d   :  { %6904 = vmatprep.subr.mxu1 %v7461_v0  ;;  %3237 = vmatprep.subr.mxu0 %v3139_v38  ;;  %v3106_v23 = vunpack.c.h.bf16 %v3003_v44  ;;  %v3235_v38 = vunpack.c.h.bf16 %v3089_v36 }
 0x28e   :  { %6905 = vmatpush3.msra.mxu1 %v2546_v29  ;;  %3238 = vmatpush1.msra.mxu0 %v3138_v50  ;;  %v3105_v29 = vunpack.c.l.bf16 %v3003_v44  ;;  %v3057_v50 = vld [vmem:[#allocation10 + $0x174] sm:$0xff]  ;;  %v3045_v44 = vld [vmem:[#allocation10 + $0x12c] sm:$0xff] }
 0x28f   :  { %6906 = vmatprep.subr.mxu1 %v7461_v0  ;;  %3239 = vmatprep.subr.mxu0 %v3136_v4  ;;  %v3087_v4 = vld [vmem:[#allocation10 + $0x228] sm:$0xff]  ;;  %v3186_v42 = vunpack.c.l.bf16 %v3057_v50 }
 0x290   :  { %6907 = vmatpush3.msra.mxu1 %v2543_v13  ;;  %3240 = vmatpush1.msra.mxu0 %v3135_v26  ;;  %v3001_v13 = vld [vmem:[#allocation10 + $0x24] sm:$0xff]  ;;  %v3232_v26 = vunpack.c.h.bf16 %v3087_v4 }
 0x291   :  { %6908 = vmatprep.subr.mxu1 %v7461_v0  ;;  %3241 = vmatprep.subr.mxu0 %v3133_v47  ;;  %v3103_v24 = vunpack.c.h.bf16 %v3001_v13  ;;  %v3184_v47 = vunpack.c.h.bf16 %v3055_v43 }
 0x292   :  { %6909 = vmatpush3.msra.mxu1 %v2540_v27  ;;  %3242 = vmatpush1.msra.mxu0 %v3132_v12  ;;  %v3102_v27 = vunpack.c.l.bf16 %v3001_v13  ;;  %v3085_v12 = vld [vmem:[#allocation10 + $0x21c] sm:$0xff] }
 0x293   :  { %6910 = vmatprep.subr.mxu1 %v7461_v0  ;;  %3243 = vmatprep.subr.mxu0 %v3130_v49  ;;  %v3053_v49 = vld [vmem:[#allocation10 + $0x15c] sm:$0xff] }
 0x294   :  { %6911 = vmatpush3.msra.mxu1 %v2537_v28  ;;  %3244 = vmatpush1.msra.mxu0 %v3129_v51  ;;  %v2999_v28 = vld [vmem:[#allocation10 + $0x18] sm:$0xff]  ;;  %v3228_v51 = vunpack.c.l.bf16 %v3085_v12  ;;  %v3181_v52 = vunpack.c.h.bf16 %v3053_v49  ;;  %v3075_v13 = vld [vmem:[#allocation10 + $0x1e0] sm:$0xff] }
 0x295   :  { %6912 = vmatprep.subr.mxu1 %v7461_v0  ;;  %3245 = vmatprep.subr.mxu0 %v3127_v25  ;;  %v3100_v32 = vunpack.c.h.bf16 %v2999_v28  ;;  %v3180_v25 = vunpack.c.l.bf16 %v3053_v49 }
 0x296   :  { %6913 = vmatpush3.msra.mxu1 %v2534_v16  ;;  %3246 = vmatpush1.msra.mxu0 %v3126_v15  ;;  %v3099_v16 = vunpack.c.l.bf16 %v2999_v28  ;;  %v3043_v28 = vld [vmem:[#allocation10 + $0x120] sm:$0xff] }
 0x297   :  { %6914 = vmatprep.subr.mxu1 %v7461_v0  ;;  %3247 = vmatprep.subr.mxu0 %v3124_v58 }
 0x298   :  { %6915 = vmatpush3.msra.mxu1 %v2531_v30  ;;  %3248 = vmatpush1.msra.mxu0 %v3123_v3  ;;  %v2997_v30 = vld [vmem:[#allocation10 + $0xc] sm:$0xff]  ;;  %v3178_v3 = vunpack.c.h.bf16 %v3051_v56 }
 0x299   :  { %6916 = vmatprep.subr.mxu1 %v7461_v0  ;;  %3249 = vmatprep.subr.mxu0 %v3121_v61  ;;  %v3097_v31 = vunpack.c.h.bf16 %v2997_v30  ;;  %v3177_v61 = vunpack.c.l.bf16 %v3051_v56 }
 0x29a   :  { %6917 = vmatpush3.msra.mxu1 %v2528_v33  ;;  %3250 = vmatpush1.msra.mxu0 %v3120_v6  ;;  %v3096_v33 = vunpack.c.l.bf16 %v2997_v30  ;;  %v3223_v6 = vunpack.c.h.bf16 %v3081_v5  ;;  %v3073_v30 = vld [vmem:[#allocation10 + $0x1d4] sm:$0xff] }
 0x29b   :  { %6918 = vmatprep.subr.mxu1 %v7461_v0  ;;  %3251 = vmatprep.subr.mxu0 %v3118_v8  ;;  %v3222_v8 = vunpack.c.l.bf16 %v3081_v5 }
 0x29c   :  { %6919 = vmatpush3.msra.mxu1 %v2525_v34  ;;  %3252 = vmatpush1.msra.mxu0 %v3117_v9  ;;  %v2995_v34 = vld [vmem:[#allocation10] sm:$0xff]  ;;  %v3175_v9 = vunpack.c.h.bf16 %v3049_v7 }
 0x29d   :  { %6920 = vmatprep.subr.mxu1 %v7461_v0  ;;  %3253 = vmatprep.subr.mxu0 %v3115_v11  ;;  %v3094_v35 = vunpack.c.h.bf16 %v2995_v34  ;;  %v3174_v11 = vunpack.c.l.bf16 %v3049_v7 }
 0x29e   :  { %6921 = vmatpush3.msra.mxu1 %v2522_v37  ;;  %3254 = vmatpush1.msra.mxu0 %v3114_v54  ;;  %v3093_v37 = vunpack.c.l.bf16 %v2995_v34  ;;  %v3220_v54 = vunpack.c.h.bf16 %v3079_v10  ;;  %v3041_v34 = vld [vmem:[#allocation10 + $0x114] sm:$0xff] }
 0x29f   :  { %6922 = vmatprep.subr.mxu1 %v7461_v0  ;;  %3255 = vmatprep.subr.mxu0 %v3112_v18  ;;  %v3219_v18 = vunpack.c.l.bf16 %v3079_v10  ;;  %v3163_v36 = vunpack.c.h.bf16 %v3041_v34 }
 0x2a0   :  { %6923 = vmatpush3.msra.mxu1 %v2519_v41  ;;  %3256 = vmatpush1.msra.mxu0 %v3111_v19  ;;  %v3187_v41 = vunpack.c.h.bf16 %v3057_v50  ;;  %v3172_v19 = vunpack.c.h.bf16 %v3047_v14 }
 0x2a1   :  { %6924 = vmatprep.subr.mxu1 %v7461_v0  ;;  %3257 = vmatprep.subr.mxu0 %v3109_v21  ;;  %v3171_v21 = vunpack.c.l.bf16 %v3047_v14 }
 0x2a2   :  { %6925 = vmatpush3.msra.mxu1 %v2516_v45  ;;  %3258 = vmatpush1.msra.mxu0 %v3108_v59  ;;  %v3231_v45 = vunpack.c.l.bf16 %v3087_v4  ;;  %v3217_v59 = vunpack.c.h.bf16 %v3077_v20 }
 0x2a3   :  { %6926 = vmatprep.subr.mxu1 %v7461_v0  ;;  %3259 = vmatprep.subr.mxu0 %v3106_v23  ;;  %v3216_v23 = vunpack.c.l.bf16 %v3077_v20 }
 0x2a4   :  { %6927 = vmatpush3.msra.mxu1 %v2513_v22  ;;  %3260 = vmatpush1.msra.mxu0 %v3105_v29  ;;  %v3229_v22 = vunpack.c.h.bf16 %v3085_v12  ;;  %v3169_v29 = vunpack.c.h.bf16 %v3045_v44 }
 0x2a5   :  { %6928 = vmatprep.subr.mxu1 %v7461_v0  ;;  %3261 = vmatprep.subr.mxu0 %v3103_v24  ;;  %v3168_v24 = vunpack.c.l.bf16 %v3045_v44 }
 0x2a6   :  { %6929 = vmatpush3.msra.mxu1 %v2510_v53  ;;  %3262 = vmatpush1.msra.mxu0 %v3102_v27  ;;  %v3083_v53 = vld [vmem:[#allocation10 + $0x210] sm:$0xff]  ;;  %v3214_v27 = vunpack.c.h.bf16 %v3075_v13 }
 0x2a7   :  { %6931 = vmatmul.mubr.f32.vlgmr.msra.gmra.mxu1 %v7948_v39  ;;  %3263 = vmatprep.subr.mxu0 %v3100_v32  ;;  %v3226_v15 = vunpack.c.h.bf16 %v3083_v53  ;;  %v3225_v58 = vunpack.c.l.bf16 %v3083_v53  ;;  %v3213_v32 = vunpack.c.l.bf16 %v3075_v13 }
 0x2a8   :  { %3372 = vmatprep.mubr.f32.mxu1 %v7461_v0  ;;  %3264 = vmatpush1.msra.mxu0 %v3099_v16  ;;  %v3166_v16 = vunpack.c.h.bf16 %v3043_v28 }
 0x2a9   :  { %3265 = vmatprep.subr.mxu0 %v3097_v31  ;;  %3308 = vmatprep.subr.mxu1 %v3235_v38  ;;  %v3165_v31 = vunpack.c.l.bf16 %v3043_v28  ;;  %v3162_v38 = vunpack.c.l.bf16 %v3041_v34 }
 0x2aa   :  { %3266 = vmatpush1.msra.mxu0 %v3096_v33  ;;  %3309 = vmatpush1.msra.mxu1 %v3234_v40  ;;  %v3211_v33 = vunpack.c.h.bf16 %v3073_v30  ;;  %v3039_v40 = vld [vmem:[#allocation10 + $0x108] sm:$0xff] }
 0x2ab   :  { %3267 = vmatprep.subr.mxu0 %v3094_v35  ;;  %3310 = vmatprep.subr.mxu1 %v3232_v26  ;;  %v3210_v35 = vunpack.c.l.bf16 %v3073_v30  ;;  %v3160_v4 = vunpack.c.h.bf16 %v3039_v40  ;;  %v3159_v26 = vunpack.c.l.bf16 %v3039_v40 }
 0x2ac   :  { %3268 = vmatpush1.msra.mxu0 %v3093_v37  ;;  %3311 = vmatpush1.msra.mxu1 %v3231_v45  ;;  %v3071_v37 = vld [vmem:[#allocation10 + $0x1c8] sm:$0xff]  ;;  %v3037_v45 = vld [vmem:[#allocation10 + $0xfc] sm:$0xff] }
 0x2ad   :  { %3269 = vmatprep.subr.mxu0 %v3187_v41  ;;  %3312 = vmatprep.subr.mxu1 %v3229_v22  ;;  %v3208_v50 = vunpack.c.h.bf16 %v3071_v37  ;;  %v3207_v41 = vunpack.c.l.bf16 %v3071_v37  ;;  %v3157_v12 = vunpack.c.h.bf16 %v3037_v45  ;;  %v3156_v22 = vunpack.c.l.bf16 %v3037_v45 }
 0x2ae   :  { %3270 = vmatpush2.msra.mxu0 %v3186_v42  ;;  %3313 = vmatpush1.msra.mxu1 %v3228_v51  ;;  %v3069_v42 = vld [vmem:[#allocation10 + $0x1bc] sm:$0xff]  ;;  %v3035_v51 = vld [vmem:[#allocation10 + $0xf0] sm:$0xff] }
 0x2af   :  { %3271 = vmatprep.subr.mxu0 %v3184_v47  ;;  %3314 = vmatprep.subr.mxu1 %v3226_v15  ;;  %v3205_v43 = vunpack.c.h.bf16 %v3069_v42  ;;  %v3204_v47 = vunpack.c.l.bf16 %v3069_v42  ;;  %v3154_v53 = vunpack.c.h.bf16 %v3035_v51  ;;  %v3153_v15 = vunpack.c.l.bf16 %v3035_v51 }
 0x2b0   :  { %3272 = vmatpush2.msra.mxu0 %v3183_v48  ;;  %3315 = vmatpush1.msra.mxu1 %v3225_v58  ;;  %v3067_v48 = vld [vmem:[#allocation10 + $0x1b0] sm:$0xff]  ;;  %v3033_v58 = vld [vmem:[#allocation10 + $0xe4] sm:$0xff] }
 0x2b1   :  { %3273 = vmatprep.subr.mxu0 %v3181_v52  ;;  %3316 = vmatprep.subr.mxu1 %v3223_v6  ;;  %v3202_v49 = vunpack.c.h.bf16 %v3067_v48  ;;  %v3201_v52 = vunpack.c.l.bf16 %v3067_v48  ;;  %v3151_v5 = vunpack.c.h.bf16 %v3033_v58  ;;  %v3150_v6 = vunpack.c.l.bf16 %v3033_v58 }
 0x2b2   :  { %3274 = vmatpush2.msra.mxu0 %v3180_v25  ;;  %3317 = vmatpush1.msra.mxu1 %v3222_v8  ;;  %v3065_v25 = vld [vmem:[#allocation10 + $0x1a4] sm:$0xff]  ;;  %v3031_v8 = vld [vmem:[#allocation10 + $0xd8] sm:$0xff] }
 0x2b3   :  { %3275 = vmatprep.subr.mxu0 %v3178_v3  ;;  %3318 = vmatprep.subr.mxu1 %v3220_v54  ;;  %v3199_v56 = vunpack.c.h.bf16 %v3065_v25  ;;  %v3198_v3 = vunpack.c.l.bf16 %v3065_v25  ;;  %v3148_v10 = vunpack.c.h.bf16 %v3031_v8  ;;  %v3147_v54 = vunpack.c.l.bf16 %v3031_v8 }
 0x2b4   :  { %3276 = vmatpush2.msra.mxu0 %v3177_v61  ;;  %3319 = vmatpush1.msra.mxu1 %v3219_v18  ;;  %v3063_v61 = vld [vmem:[#allocation10 + $0x198] sm:$0xff]  ;;  %v3029_v18 = vld [vmem:[#allocation10 + $0xcc] sm:$0xff] }
 0x2b5   :  { %3277 = vmatprep.subr.mxu0 %v3175_v9  ;;  %3320 = vmatprep.subr.mxu1 %v3217_v59  ;;  %v3196_v7 = vunpack.c.h.bf16 %v3063_v61  ;;  %v3195_v9 = vunpack.c.l.bf16 %v3063_v61  ;;  %v3145_v20 = vunpack.c.h.bf16 %v3029_v18  ;;  %v3144_v59 = vunpack.c.l.bf16 %v3029_v18 }
 0x2b6   :  { %3278 = vmatpush2.msra.mxu0 %v3174_v11  ;;  %3321 = vmatpush1.msra.mxu1 %v3216_v23  ;;  %v3061_v11 = vld [vmem:[#allocation10 + $0x18c] sm:$0xff]  ;;  %v3027_v23 = vld [vmem:[#allocation10 + $0xc0] sm:$0xff] }
 0x2b7   :  { %3279 = vmatprep.subr.mxu0 %v3172_v19  ;;  %3322 = vmatprep.subr.mxu1 %v3214_v27  ;;  %v3193_v14 = vunpack.c.h.bf16 %v3061_v11  ;;  %v3192_v19 = vunpack.c.l.bf16 %v3061_v11  ;;  %v3142_v13 = vunpack.c.h.bf16 %v3027_v23  ;;  %v3141_v27 = vunpack.c.l.bf16 %v3027_v23 }
 0x2b8   :  { %3280 = vmatpush2.msra.mxu0 %v3171_v21  ;;  %3323 = vmatpush1.msra.mxu1 %v3213_v32  ;;  %v3059_v21 = vld [vmem:[#allocation10 + $0x180] sm:$0xff] }
 0x2b9   :  { %3281 = vmatprep.subr.mxu0 %v3169_v29  ;;  %3324 = vmatprep.subr.mxu1 %v3211_v33  ;;  %v3190_v44 = vunpack.c.h.bf16 %v3059_v21  ;;  %v3189_v29 = vunpack.c.l.bf16 %v3059_v21 }
 0x2ba   :  { %3282 = vmatpush2.msra.mxu0 %v3168_v24  ;;  %3325 = vmatpush1.msra.mxu1 %v3210_v35  ;;  %v7982_v24 = vld [vmem:[#allocation10 + $0x170] ss:$12 sps:$4 sm:$0xff]  }
 0x2bb   :  { %3283 = vmatprep.subr.mxu0 %v3166_v16  ;;  %3326 = vmatprep.subr.mxu1 %v3208_v50  ;;  %v3188_v28 = vunpack.c.h.bf16 %v7982_v24 }
 0x2bc   :  { %3284 = vmatpush2.msra.mxu0 %v3165_v31  ;;  %3327 = vmatpush1.msra.mxu1 %v3207_v41 }
 0x2bd   :  { %3285 = vmatprep.subr.mxu0 %v3163_v36  ;;  %3328 = vmatprep.subr.mxu1 %v3205_v43 }
 0x2be   :  { %3286 = vmatpush2.msra.mxu0 %v3162_v38  ;;  %3329 = vmatpush1.msra.mxu1 %v3204_v47 }
 0x2bf   :  { %3287 = vmatprep.subr.mxu0 %v3160_v4  ;;  %3330 = vmatprep.subr.mxu1 %v3202_v49 }
 0x2c0   :  { %3288 = vmatpush2.msra.mxu0 %v3159_v26  ;;  %3331 = vmatpush1.msra.mxu1 %v3201_v52 }
 0x2c1   :  { %3289 = vmatprep.subr.mxu0 %v3157_v12  ;;  %3332 = vmatprep.subr.mxu1 %v3199_v56 }
 0x2c2   :  { %3290 = vmatpush2.msra.mxu0 %v3156_v22  ;;  %3333 = vmatpush1.msra.mxu1 %v3198_v3 }
 0x2c3   :  { %3291 = vmatprep.subr.mxu0 %v3154_v53  ;;  %3334 = vmatprep.subr.mxu1 %v3196_v7 }
 0x2c4   :  { %3292 = vmatpush2.msra.mxu0 %v3153_v15  ;;  %3335 = vmatpush1.msra.mxu1 %v3195_v9 }
 0x2c5   :  { %3293 = vmatprep.subr.mxu0 %v3151_v5  ;;  %3336 = vmatprep.subr.mxu1 %v3193_v14 }
 0x2c6   :  { %3294 = vmatpush2.msra.mxu0 %v3150_v6  ;;  %3337 = vmatpush1.msra.mxu1 %v3192_v19 }
 0x2c7   :  { %3295 = vmatprep.subr.mxu0 %v3148_v10  ;;  %3338 = vmatprep.subr.mxu1 %v3190_v44 }
 0x2c8   :  { %3296 = vmatpush2.msra.mxu0 %v3147_v54  ;;  %3339 = vmatpush1.msra.mxu1 %v3189_v29 }
 0x2c9   :  { %3297 = vmatprep.subr.mxu0 %v3145_v20  ;;  %6572 = vmatprep.subr.mxu1 %v3188_v28 }
 0x2ca   :  { %3298 = vmatpush2.msra.mxu0 %v3144_v59 }
 0x2cb   :  { %3299 = vmatprep.subr.mxu0 %v3142_v13 }
 0x2cc   :  { %3300 = vmatpush2.msra.mxu0 %v3141_v27 }
 0x2cd   :  { %6933 = vmatprep.subr.mxu0 %v7461_v0 }
 0x2e3   :  { %v2012_v32 = vpop.f32.mrf.mxu1 }
 0x2e4   :  { %v1941_v16 = vpop.f32.mrf.mxu0 }
 0x2e5   :  { %v7986_v30 = vadd.f32 %v2012_v32, %v1941_v16  ;;  %v2014_v31 = vpop.f32.mrf.mxu1 }
 0x2e6   :  { %v1943_v33 = vpop.f32.mrf.mxu0 }
 0x2e7   :  { %v2157_v34 = vrot.slane %v7986_v30, 4  ;;  %v7989_v35 = vadd.f32 %v2014_v31, %v1943_v33 }
 0x2e9   :  { %v2158_v36 = vadd.f32 %v2157_v34, %v7986_v30  ;;  %v2163_v37 = vrot.slane %v7989_v35, 4 }
 0x2eb   :  { %v2164_v38 = vadd.f32 %v2163_v37, %v7989_v35  ;;  %v2159_v50 = vrot.slane %v2158_v36, 2 }
 0x2ed   :  { %v2165_v40 = vrot.slane %v2164_v38, 2  ;;  %v2160_v4 = vadd.f32 %v2159_v50, %v2158_v36 }
 0x2ef   :  { %v2166_v41 = vadd.f32 %v2165_v40, %v2164_v38  ;;  %v2161_v26 = vrot.slane %v2160_v4, 1 }
 0x2f1   :  { %v2167_v42 = vrot.slane %v2166_v41, 1  ;;  %v2162_v45 = vadd.f32 %v2161_v26, %v2160_v4 }
 0x2f3   :  { %v2168_v43 = vadd.f32 %v2167_v42, %v2166_v41  ;;  %v2175_v12 = vmul.f32 0.125, %v2162_v45 }
 0x2f5   :  { %v7994_v47 = vmul.f32 0.125, %v2168_v43  ;;  %v2178_v22 = vsub.f32 %v7986_v30, %v2175_v12 }
 0x2f7   :  { %v2179_v48 = vsub.f32 %v7989_v35, %v7994_v47  ;;  %v2181_v52 = vmul.f32 %v2178_v22, %v2178_v22 }
 0x2f9   :  { %v2182_v49 = vmul.f32 %v2179_v48, %v2179_v48  ;;  %v2184_v3 = vrot.slane %v2181_v52, 4 }
 0x2fb   :  { %v2190_v15 = vrot.slane %v2182_v49, 4  ;;  %v2185_v7 = vadd.f32 %v2184_v3, %v2181_v52 }
 0x2fd   :  { %v2191_v61 = vadd.f32 %v2190_v15, %v2182_v49  ;;  %v2186_v11 = vrot.slane %v2185_v7, 2  ;;  %v1729_v49 = vld [vmem:[#allocation7] sm:$0x7] }
 0x2ff   :  { %v2192_v9 = vrot.slane %v2191_v61, 2  ;;  %v2187_v19 = vadd.f32 %v2186_v11, %v2185_v7 }
 0x301   :  { %v2193_v14 = vadd.f32 %v2192_v9, %v2191_v61  ;;  %v2188_v44 = vrot.slane %v2187_v19, 1 }
 0x303   :  { %v6500_v51 = vpop.f32.mrf.mxu1  ;;  %v2194_v21 = vrot.slane %v2193_v14, 1  ;;  %v2189_v27 = vadd.f32 %v2188_v44, %v2187_v19 }
 0x305   :  { %v2153_v53 = vpop.f32.mrf.mxu0  ;;  %v6501_v25 = vpop.f32.mrf.mxu1  ;;  %v2195_v29 = vadd.f32 %v2194_v21, %v2193_v14  ;;  %v2202_v31 = vmul.f32 0.125, %v2189_v27 }
 0x306   :  { %v6502_v56 = vadd.f32 %v6501_v25, %v6500_v51 }
 0x307   :  { %v6897_v58 = vpop.f32.mrf.mxu0  ;;  %v2203_v32 = vmul.f32 0.125, %v2195_v29  ;;  %v2205_v37 = vadd.f32 1e-05, %v2202_v31 }
 0x308   :  { %v7999_v5 = vadd.f32 %v6502_v56, %v2153_v53 }
 0x309   :  { %v2206_v34 = vadd.f32 1e-05, %v2203_v32 }
 0x30a   :  { %v2169_v6 = vrot.slane %v7999_v5, 4 }
 0x30b   :  { %7159 = vrsqrt.f32 %v2206_v34 }
 0x30c   :  { %v2170_v8 = vadd.f32 %v2169_v6, %v7999_v5  ;;  %7161 = vrsqrt.f32 %v2205_v37 }
 0x30e   :  { %v2171_v10 = vrot.slane %v2170_v8, 2 }
 0x310   :  { %v2172_v54 = vadd.f32 %v2171_v10, %v2170_v8 }
 0x312   :  { %v2173_v18 = vrot.slane %v2172_v54, 1 }
 0x314   :  { %v2174_v20 = vadd.f32 %v2173_v18, %v2172_v54 }
 0x316   :  { %v2177_v59 = vmul.f32 0.125, %v2174_v20  ;;  %v1730_v20 = vld [vmem:[%s8481_s5] sm:$0x7] }
 0x318   :  { %v2180_v23 = vsub.f32 %v7999_v5, %v2177_v59  ;;  %v7160_v4 = vpop.eup %7159 }
 0x319   :  { %v7162_v42 = vpop.eup %7161 }
 0x31a   :  { %v2183_v13 = vmul.f32 %v2180_v23, %v2180_v23  ;;  %v2214_v26 = vcombine.low %v7162_v42, %v7160_v4  ;;  %v3090_v4 = vld [vmem:[#allocation10 + $0x164] ss:$216 sps:$4 sm:$0xff]  }
 0x31c   :  { %v2196_v28 = vrot.slane %v2183_v13, 4  ;;  %v2221_v45 = vrot.slane %v2214_v26, %v7834_v46 }
 0x31e   :  { %v2197_v16 = vadd.f32 %v2196_v28, %v2183_v13 }
 0x320   :  { %v2198_v33 = vrot.slane %v2197_v16, 2 }
 0x322   :  { %v2199_v36 = vadd.f32 %v2198_v33, %v2197_v16 }
 0x324   :  { %v2200_v38 = vrot.slane %v2199_v36, 1 }
 0x326   :  { %v2201_v50 = vadd.f32 %v2200_v38, %v2199_v36  ;;  %v3026_v38 = vld [vmem:[#allocation10 + $0xb0] ss:$12 sps:$4 sm:$0xff]  }
 0x328   :  { %v2204_v40 = vmul.f32 0.125, %v2201_v50 }
 0x32a   :  { %v2207_v41 = vadd.f32 1e-05, %v2204_v40 }
 0x32b   :  { %v2693_v61 = vpop.f32.mrf.mxu0 }
 0x32c   :  { %7163 = vrsqrt.f32 %v2207_v41 }
 0x32d   :  { %v2695_v11 = vpop.f32.mrf.mxu0 }
 0x339   :  { %v7164_v43 = vpop.eup %7163 }
 0x33a   :  { %v2228_v48 = vrot.slane %v7164_v43, %v7834_v46 }
 0x33c   :  { %v2229_v22 = vcombine.low %v2221_v45, %v2228_v48  ;;  %v3088_v48 = vld [vmem:[#allocation10 + $0xa4] ss:$396 sps:$4 sm:$0xff]  }
 0x33e   :  { %v2236_v51 = vrot.slane %v2229_v22, %v7834_v46 }
 0x340   :  { %v2238_v52 = vmul.f32 %v2236_v51, %v1729_v49  ;;  %v3236_v51 = vunpack.c.h.bf16 %v3090_v4 }
 0x342   :  { %v2251_v53 = vrot.slane %v2238_v52, %v7844_v1  ;;  %v2243_v25 = vrot.slane %v2238_v52, %v7840_v62  ;;  %v2247_v15 = vrot.slane %v2238_v52, %v7842_v63  ;;  %v3137_v52 = vunpack.c.l.bf16 %v3026_v38 }
 0x344   :  { %v2257_v56 = vmul.f32 %v2251_v53, %v2177_v59  ;;  %v2255_v58 = vmul.f32 %v2243_v25, %v2175_v12  ;;  %v2256_v3 = vmul.f32 %v2247_v15, %v7994_v47  ;;  %v2288_v29 = vmul.f32 %v2251_v53, %v7999_v5  ;;  %v3052_v53 = vld [vmem:[#allocation10 + $0x158] ss:$204 sps:$4 sm:$0xff]  }
 0x345   :  { %v2287_v27 = vmul.f32 %v2247_v15, %v7989_v35  ;;  %v2286_v31 = vmul.f32 %v2243_v25, %v7986_v30  ;;  %v3140_v35 = vunpack.c.h.bf16 %v3026_v38  ;;  %v3185_v30 = vunpack.c.l.bf16 %v7982_v24  ;;  %v3008_v38 = vld [vmem:[#allocation10 + $0x50] ss:$180 sps:$4 sm:$0xff]  }
 0x346   :  { %v2261_v6 = vcombine.low %v2255_v58, %v2256_v3  ;;  %v2622_v7 = vpop.f32.mrf.mxu1  ;;  %v2275_v8 = vrot.slane %v2257_v56, %v7834_v46  ;;  %v3182_v25 = vunpack.c.l.bf16 %v3090_v4  ;;  %v3134_v24 = vunpack.c.l.bf16 %v3088_v48  ;;  %v3084_v56 = vld [vmem:[#allocation10 + $0x8c] ss:$396 sps:$4 sm:$0xff]   ;;  %v3072_v4 = vld [vmem:[#allocation10 + $0x44] ss:$396 sps:$4 sm:$0xff]  }
 0x347   :  { %v8012_v9 = vadd.f32 %v2693_v61, %v2622_v7  ;;  %v3230_v3 = vunpack.c.h.bf16 %v3052_v53 }
 0x348   :  { %v2268_v10 = vrot.slane %v2261_v6, %v7834_v46  ;;  %v2624_v54 = vpop.f32.mrf.mxu1  ;;  %v3048_v6 = vld [vmem:[#allocation10 + $0x140] ss:$204 sps:$4 sm:$0xff]  }
 0x349   :  { %v2838_v14 = vrot.slane %v8012_v9, 4  ;;  %v8016_v18 = vadd.f32 %v2695_v11, %v2624_v54  ;;  %v3227_v11 = vunpack.c.h.bf16 %v3084_v56  ;;  %v3128_v54 = vunpack.c.l.bf16 %v3084_v56 }
 0x34a   :  { %v2276_v19 = vcombine.low %v2268_v10, %v2275_v8  ;;  %v3016_v8 = vld [vmem:[#allocation10 + $0x80] ss:$180 sps:$4 sm:$0xff]  }
 0x34b   :  { %v2839_v12 = vadd.f32 %v2838_v14, %v8012_v9  ;;  %v2844_v47 = vrot.slane %v8016_v18, 4  ;;  %v3173_v14 = vunpack.c.l.bf16 %v3048_v6 }
 0x34c   :  { %v2283_v21 = vrot.slane %v2276_v19, %v7834_v46  ;;  %v3080_v19 = vld [vmem:[#allocation10 + $0x74] ss:$396 sps:$4 sm:$0xff]  }
 0x34d   :  { %v2840_v59 = vrot.slane %v2839_v12, 2  ;;  %v2845_v44 = vadd.f32 %v2844_v47, %v8016_v18  ;;  %v3125_v47 = vunpack.c.l.bf16 %v3016_v8 }
 0x34e   :  { %v2285_v23 = vsub.f32 %v1730_v20, %v2283_v21  ;;  %v3044_v21 = vld [vmem:[#allocation10 + $0x128] ss:$204 sps:$4 sm:$0xff]  }
 0x34f   :  { %v2846_v13 = vrot.slane %v2845_v44, 2  ;;  %v2841_v16 = vadd.f32 %v2840_v59, %v2839_v12  ;;  %v3224_v12 = vunpack.c.h.bf16 %v3048_v6  ;;  %v6552_v59 = vpop.f32.mrf.mxu0 }
 0x350   :  { %v2297_v28 = vrot.slane %v2285_v23, %v7842_v63  ;;  %v2301_v32 = vrot.slane %v2285_v23, %v7844_v1  ;;  %v2293_v33 = vrot.slane %v2285_v23, %v7840_v62  ;;  %v3012_v23 = vld [vmem:[#allocation10 + $0x68] ss:$180 sps:$4 sm:$0xff]  }
 0x351   :  { %v2847_v34 = vadd.f32 %v2846_v13, %v2845_v44  ;;  %v2842_v42 = vrot.slane %v2841_v16, 1  ;;  %v3170_v44 = vunpack.c.h.bf16 %v3016_v8  ;;  %v3221_v13 = vunpack.c.h.bf16 %v3080_v19 }
 0x352   :  { %v2306_v36 = vadd.f32 %v2297_v28, %v2287_v27  ;;  %v2307_v37 = vadd.f32 %v2301_v32, %v2288_v29  ;;  %v2305_v50 = vadd.f32 %v2293_v33, %v2286_v31  ;;  %v3122_v27 = vunpack.c.l.bf16 %v3080_v19  ;;  %v3076_v32 = vld [vmem:[#allocation10 + $0x5c] ss:$396 sps:$4 sm:$0xff]  }
 0x353   :  { %v2848_v40 = vrot.slane %v2847_v34, 1  ;;  %v2843_v15 = vadd.f32 %v2842_v42, %v2841_v16  ;;  %v3167_v28 = vunpack.c.l.bf16 %v3044_v21  ;;  %v3218_v31 = vunpack.c.h.bf16 %v3044_v21 }
 0x354   :  { %v2309_v41 = vmax.f32 %v2306_v36, 0.0  ;;  %v2310_v5 = vmax.f32 %v2307_v37, 0.0  ;;  %v2308_v26 = vmax.f32 %v2305_v50, 0.0  ;;  %v3119_v33 = vunpack.c.l.bf16 %v3012_v23  ;;  %v6553_v36 = vpop.f32.mrf.mxu0 }
 0x355   :  { %v2849_v22 = vadd.f32 %v2848_v40, %v2847_v34  ;;  %v8046_v10 = vmul.f32 0.125, %v2843_v15  ;;  %v3040_v34 = vld [vmem:[#allocation10 + $0x110] ss:$204 sps:$4 sm:$0xff]   ;;  %v3164_v37 = vunpack.c.h.bf16 %v3012_v23  ;;  %v3215_v40 = vunpack.c.h.bf16 %v3076_v32 }
 0x356   :  { %v8030_v43 = vadd.f32 %v2309_v41, %v7945_v2  ;;  %v8033_v45 = vadd.f32 %v2310_v5, %v7948_v39  ;;  %v8037_v49 = vadd.f32 %v2308_v26, %v7958_v17  ;;  %v3020_v2 = vld [vmem:[#allocation10 + $0x98] ss:$180 sps:$4 sm:$0xff]   ;;  %v3233_v39 = vunpack.c.h.bf16 %v3088_v48 }
 0x357   :  { %v3179_v17 = vunpack.c.l.bf16 %v3052_v53  ;;  %v8043_v58 = vmul.f32 0.125, %v2849_v22  ;;  %v3131_v61 = vunpack.c.l.bf16 %v3020_v2  ;;  %v3176_v7 = vunpack.c.h.bf16 %v3020_v2  ;;  %v3036_v48 = vld [vmem:[#allocation10 + $0xf8] ss:$204 sps:$4 sm:$0xff]  }
 0x358   :  { %3301 = vmatprep.mubr.f32.mxu0 %v8030_v43  ;;  %3373 = vmatmul.mubr.f32.vlgmr.msra.gmra.mxu1 %v8033_v45  ;;  %v2859_v29 = vsub.f32 %v8012_v9, %v8046_v10  ;;  %v3116_v41 = vunpack.c.l.bf16 %v3076_v32  ;;  %v3161_v5 = vunpack.c.l.bf16 %v3040_v34  ;;  %v3212_v26 = vunpack.c.h.bf16 %v3040_v34  ;;  %v3060_v34 = vld [vmem:[#allocation10 + $0x188] sm:$0xf] }
 0x359   :  { %6573 = vmatpush3.msra.mxu1 %v3140_v35  ;;  %3302 = vmatmul.mubr.f32.vlgmr.msra.gmra.mxu0 %v8037_v49  ;;  %v2860_v20 = vsub.f32 %v8016_v18, %v8043_v58  ;;  %v6554_v35 = vadd.f32 %v6553_v36, %v6552_v59  ;;  %v3209_v2 = vunpack.c.h.bf16 %v3072_v4  ;;  %v3110_v15 = vunpack.c.l.bf16 %v3072_v4 }
 0x35a   :  { %6574 = vmatprep.subr.mxu1 %v3185_v30  ;;  %3443 = vmatprep.mubr.f32.mxu1 %v8030_v43  ;;  %v2862_v50 = vmul.f32 %v2859_v29, %v2859_v29  ;;  %v3113_v30 = vunpack.c.l.bf16 %v3008_v38  ;;  %v3028_v29 = vld [vmem:[#allocation10 + $0xc8] ss:$204 sps:$4 sm:$0xff]  }
 0x35b   :  { %6934 = vmatpush3.msra.mxu0 %v3236_v51  ;;  %6575 = vmatpush3.msra.mxu1 %v3137_v52  ;;  %v2863_v16 = vmul.f32 %v2860_v20, %v2860_v20  ;;  %v3158_v51 = vunpack.c.h.bf16 %v3008_v38  ;;  %v3004_v52 = vld [vmem:[#allocation10 + $0x38] ss:$180 sps:$4 sm:$0xff]   ;;  %v3194_v38 = vunpack.c.h.bf16 %v3028_v29 }
 0x35c   :  { %6935 = vmatprep.subr.mxu0 %v7461_v0  ;;  %6576 = vmatprep.subr.mxu1 %v3182_v25  ;;  %v2865_v53 = vrot.slane %v2862_v50, 4  ;;  %v3107_v6 = vunpack.c.l.bf16 %v3004_v52  ;;  %v3152_v8 = vunpack.c.h.bf16 %v3004_v52  ;;  %v3702_v52 = vld [vmem:[#allocation12 + $0x9c] sm:$0xff] }
 0x35d   :  { %6936 = vmatpush3.msra.mxu0 %v3233_v39  ;;  %6577 = vmatpush3.msra.mxu1 %v3134_v24  ;;  %v2871_v42 = vrot.slane %v2863_v16, 4  ;;  %v3155_v24 = vunpack.c.l.bf16 %v3036_v48 }
 0x35e   :  { %6937 = vmatprep.subr.mxu0 %v7461_v0  ;;  %6578 = vmatprep.subr.mxu1 %v3179_v17  ;;  %v3068_v17 = vld [vmem:[#allocation10 + $0x2c] ss:$396 sps:$4 sm:$0xff]  }
 0x35f   :  { %6938 = vmatpush3.msra.mxu0 %v3230_v3  ;;  %6579 = vmatpush3.msra.mxu1 %v3131_v61  ;;  %v2872_v56 = vadd.f32 %v2871_v42, %v2863_v16  ;;  %v3206_v61 = vunpack.c.h.bf16 %v3036_v48  ;;  %v3203_v19 = vunpack.c.h.bf16 %v3068_v17  ;;  %v3104_v20 = vunpack.c.l.bf16 %v3068_v17 }
 0x360   :  { %6939 = vmatprep.subr.mxu0 %v7461_v0  ;;  %6580 = vmatprep.subr.mxu1 %v3176_v7  ;;  %v3032_v7 = vld [vmem:[#allocation10 + $0xe0] ss:$204 sps:$4 sm:$0xff]   ;;  %v3191_v42 = vunpack.c.l.bf16 %v3060_v34 }
 0x361   :  { %6940 = vmatpush3.msra.mxu0 %v3227_v11  ;;  %6581 = vmatpush3.msra.mxu1 %v3128_v54  ;;  %v3000_v11 = vld [vmem:[#allocation10 + $0x20] ss:$180 sps:$4 sm:$0xff]   ;;  %v2866_v54 = vadd.f32 %v2865_v53, %v2862_v50  ;;  %v2873_v21 = vrot.slane %v2872_v56, 2  ;;  %v3694_v34 = vld [vmem:[#allocation12 + $0x6c] sm:$0xff] }
 0x362   :  { %6941 = vmatprep.subr.mxu0 %v7461_v0  ;;  %6582 = vmatprep.subr.mxu1 %v3173_v14  ;;  %v3101_v23 = vunpack.c.l.bf16 %v3000_v11 }
 0x363   :  { %6942 = vmatpush3.msra.mxu0 %v3224_v12  ;;  %6583 = vmatpush3.msra.mxu1 %v3125_v47  ;;  %v3149_v12 = vunpack.c.l.bf16 %v3032_v7  ;;  %v3064_v47 = vld [vmem:[#allocation10 + $0x14] ss:$396 sps:$4 sm:$0xff]   ;;  %v2874_v36 = vadd.f32 %v2873_v21, %v2872_v56  ;;  %v3762_v21 = vld [vmem:[#allocation12 + $0x204] sm:$0xff] }
 0x364   :  { %6943 = vmatprep.subr.mxu0 %v7461_v0  ;;  %6584 = vmatprep.subr.mxu1 %v3170_v44  ;;  %v3200_v44 = vunpack.c.h.bf16 %v3032_v7  ;;  %v3197_v16 = vunpack.c.h.bf16 %v3064_v47 }
 0x365   :  { %6944 = vmatpush3.msra.mxu0 %v3221_v13  ;;  %6585 = vmatpush3.msra.mxu1 %v3122_v27  ;;  %v3146_v13 = vunpack.c.h.bf16 %v3000_v11  ;;  %v2996_v27 = vld [vmem:[#allocation10 + $0x8] sm:$0xf]  ;;  %v2875_v48 = vrot.slane %v2874_v36, 1 }
 0x366   :  { %6945 = vmatprep.subr.mxu0 %v7461_v0  ;;  %6586 = vmatprep.subr.mxu1 %v3167_v28  ;;  %v2867_v28 = vrot.slane %v2866_v54, 2  ;;  %v3095_v50 = vunpack.c.l.bf16 %v2996_v27 }
 0x367   :  { %6946 = vmatpush3.msra.mxu0 %v3218_v31  ;;  %6587 = vmatpush3.msra.mxu1 %v3119_v33  ;;  %v2834_v22 = vpop.f32.mrf.mxu1  ;;  %v3098_v31 = vunpack.c.l.bf16 %v3064_v47  ;;  %v3143_v33 = vunpack.c.l.bf16 %v3028_v29  ;;  %v2876_v11 = vadd.f32 %v2875_v48, %v2874_v36  ;;  %v3696_v29 = vld [vmem:[#allocation12 + $0x78] sm:$0xff]  ;;  %v3904_v36 = vunpack.c.h.bf16 %v3762_v21 }
 0x368   :  { %6947 = vmatprep.subr.mxu0 %v7461_v0  ;;  %6588 = vmatprep.subr.mxu1 %v3164_v37  ;;  %v8058_v25 = vadd.f32 %v6554_v35, %v2834_v22  ;;  %v3704_v35 = vld [vmem:[#allocation12 + $0xa8] sm:$0xff] }
 0x369   :  { %6948 = vmatpush3.msra.mxu0 %v3215_v40  ;;  %6589 = vmatpush3.msra.mxu1 %v3116_v41  ;;  %v6932_v39 = vpop.f32.mrf.mxu1  ;;  %v3706_v40 = vld [vmem:[#allocation12 + $0xb4] sm:$0xff]  ;;  %v3816_v56 = vunpack.c.l.bf16 %v3704_v35 }
 0x36a   :  { %6949 = vmatprep.subr.mxu0 %v7461_v0  ;;  %6590 = vmatprep.subr.mxu1 %v3161_v5  ;;  %v2850_v3 = vrot.slane %v8058_v25, 4  ;;  %v3770_v41 = vld [vmem:[#allocation12 + $0x234] sm:$0xff]  ;;  %v2868_v5 = vadd.f32 %v2867_v28, %v2866_v54  ;;  %v3766_v39 = vld [vmem:[#allocation12 + $0x21c] sm:$0xff] }
 0x36b   :  { %6950 = vmatpush3.msra.mxu0 %v3212_v26  ;;  %6591 = vmatpush3.msra.mxu1 %v3113_v30  ;;  %v3820_v26 = vunpack.c.h.bf16 %v3706_v40  ;;  %v3768_v30 = vld [vmem:[#allocation12 + $0x228] sm:$0xff]  ;;  %v3916_v53 = vunpack.c.h.bf16 %v3770_v41  ;;  %v3909_v47 = vunpack.c.l.bf16 %v3766_v39 }
 0x36c   :  { %6951 = vmatprep.subr.mxu0 %v7461_v0  ;;  %6592 = vmatprep.subr.mxu1 %v3158_v51  ;;  %v2851_v14 = vadd.f32 %v2850_v3, %v8058_v25  ;;  %v3819_v51 = vunpack.c.l.bf16 %v3706_v40  ;;  %v3700_v3 = vld [vmem:[#allocation12 + $0x90] sm:$0xff]  ;;  %v3912_v7 = vunpack.c.l.bf16 %v3768_v30 }
 0x36d   :  { %6952 = vmatpush3.msra.mxu0 %v3209_v2  ;;  %6593 = vmatpush3.msra.mxu1 %v3110_v15  ;;  %v3817_v2 = vunpack.c.h.bf16 %v3704_v35  ;;  %v3915_v15 = vunpack.c.l.bf16 %v3770_v41  ;;  %v3802_v35 = vunpack.c.h.bf16 %v3694_v34 }
 0x36e   :  { %6953 = vmatprep.subr.mxu0 %v7461_v0  ;;  %6594 = vmatprep.subr.mxu1 %v3155_v24  ;;  %v2852_v59 = vrot.slane %v2851_v14, 2  ;;  %v2869_v24 = vrot.slane %v2868_v5, 1 }
 0x36f   :  { %6954 = vmatpush3.msra.mxu0 %v3206_v61  ;;  %6595 = vmatpush3.msra.mxu1 %v3107_v6  ;;  %v3913_v61 = vunpack.c.h.bf16 %v3768_v30  ;;  %v3814_v6 = vunpack.c.h.bf16 %v3702_v52  ;;  %v3756_v30 = vld [vmem:[#allocation12 + $0x1e0] sm:$0xff] }
 0x370   :  { %6955 = vmatprep.subr.mxu0 %v7461_v0  ;;  %6596 = vmatprep.subr.mxu1 %v3152_v8  ;;  %v2853_v32 = vadd.f32 %v2852_v59, %v2851_v14  ;;  %v3764_v8 = vld [vmem:[#allocation12 + $0x210] sm:$0xff]  ;;  %v3813_v14 = vunpack.c.l.bf16 %v3702_v52  ;;  %v2870_v59 = vadd.f32 %v2869_v24, %v2868_v5  ;;  %v3804_v5 = vunpack.c.l.bf16 %v3696_v29 }
 0x371   :  { %6956 = vmatpush3.msra.mxu0 %v3203_v19  ;;  %6597 = vmatpush3.msra.mxu1 %v3104_v20  ;;  %v3698_v19 = vld [vmem:[#allocation12 + $0x84] sm:$0xff]  ;;  %v3910_v20 = vunpack.c.h.bf16 %v3766_v39  ;;  %v3906_v28 = vunpack.c.l.bf16 %v3764_v8  ;;  %v3801_v52 = vunpack.c.l.bf16 %v3694_v34  ;;  %v3754_v24 = vld [vmem:[#allocation12 + $0x1d4] sm:$0xff] }
 0x372   :  { %6957 = vmatprep.subr.mxu0 %v7461_v0  ;;  %6598 = vmatprep.subr.mxu1 %v3149_v12  ;;  %v2854_v37 = vrot.slane %v2853_v32, 1  ;;  %v3811_v12 = vunpack.c.h.bf16 %v3700_v3  ;;  %v3808_v27 = vunpack.c.h.bf16 %v3698_v19  ;;  %v2883_v40 = vmul.f32 0.125, %v2870_v59 }
 0x373   :  { %6958 = vmatpush3.msra.mxu0 %v3200_v44  ;;  %6599 = vmatpush3.msra.mxu1 %v3101_v23  ;;  %v3810_v23 = vunpack.c.l.bf16 %v3700_v3 }
 0x374   :  { %6959 = vmatprep.subr.mxu0 %v7461_v0  ;;  %6600 = vmatprep.subr.mxu1 %v3146_v13  ;;  %v2855_v4 = vadd.f32 %v2854_v37, %v2853_v32  ;;  %v3907_v13 = vunpack.c.h.bf16 %v3764_v8  ;;  %v3760_v32 = vld [vmem:[#allocation12 + $0x1f8] sm:$0xff]  ;;  %v3805_v37 = vunpack.c.h.bf16 %v3696_v29  ;;  %v3894_v8 = vunpack.c.l.bf16 %v3756_v30 }
 0x375   :  { %6960 = vmatpush3.msra.mxu0 %v3197_v16  ;;  %6601 = vmatpush3.msra.mxu1 %v3098_v31  ;;  %v2884_v16 = vmul.f32 0.125, %v2876_v11  ;;  %v3752_v11 = vld [vmem:[#allocation12 + $0x1c8] sm:$0xff] }
 0x376   :  { %6961 = vmatprep.subr.mxu0 %v7461_v0  ;;  %6602 = vmatprep.subr.mxu1 %v3143_v33  ;;  %v8069_v22 = vmul.f32 0.125, %v2855_v4  ;;  %v3807_v33 = vunpack.c.l.bf16 %v3698_v19  ;;  %v3692_v4 = vld [vmem:[#allocation12 + $0x60] sm:$0xff]  ;;  %v3889_v29 = vunpack.c.h.bf16 %v3752_v11 }
 0x377   :  { %6962 = vmatpush3.msra.mxu0 %v3194_v38  ;;  %6603 = vmatpush3.msra.mxu1 %v3095_v50  ;;  %v3903_v38 = vunpack.c.l.bf16 %v3762_v21  ;;  %v3758_v50 = vld [vmem:[#allocation12 + $0x1ec] sm:$0xff]  ;;  %v2887_v48 = vadd.f32 1e-05, %v2884_v16  ;;  %v3798_v3 = vunpack.c.l.bf16 %v3692_v4  ;;  %v3686_v19 = vld [vmem:[#allocation12 + $0x3c] sm:$0xff] }
 0x378   :  { %6963 = vmatprep.subr.mxu0 %v7461_v0  ;;  %3444 = vmatmul.mubr.f32.vlgmr.msra.gmra.mxu1 %v8037_v49  ;;  %v2861_v17 = vsub.f32 %v8058_v25, %v8069_v22  ;;  %v3897_v39 = vunpack.c.l.bf16 %v3758_v50  ;;  %v3750_v21 = vld [vmem:[#allocation12 + $0x1bc] sm:$0xff]  ;;  %v3789_v16 = vunpack.c.l.bf16 %v3686_v19 }
 0x379   :  { %6964 = vmatpush3.msra.mxu0 %v3191_v42  ;;  %6965 = vmatprep.mubr.msk.f32.mxu0 %vm7462_vm0, %v7461_v0  ;;  %v3901_v42 = vunpack.c.h.bf16 %v3760_v32  ;;  %7165 = vrsqrt.f32 %v2887_v48 }
 0x37a   :  { %3918 = vmatprep.subr.mxu1 %v3820_v26  ;;  %6966 = vmatmul.mubr.f32.vlgmr.msra.gmra.mxu0 %v8033_v45  ;;  %v2864_v54 = vmul.f32 %v2861_v17, %v2861_v17  ;;  %v3900_v26 = vunpack.c.l.bf16 %v3760_v32  ;;  %v2886_v17 = vadd.f32 1e-05, %v2883_v40 }
 0x37b   :  { %3919 = vmatpush1.msra.mxu1 %v3819_v51  ;;  %3989 = vmatprep.subr.mxu0 %v3916_v53  ;;  %v3690_v53 = vld [vmem:[#allocation12 + $0x54] sm:$0xff] }
 0x37c   :  { %3920 = vmatprep.subr.mxu1 %v3817_v2  ;;  %3990 = vmatpush1.msra.mxu0 %v3915_v15  ;;  %v2877_v44 = vrot.slane %v2864_v54, 4  ;;  %v3898_v2 = vunpack.c.h.bf16 %v3758_v50  ;;  %v3799_v15 = vunpack.c.h.bf16 %v3692_v4  ;;  %7167 = vrsqrt.f32 %v2886_v17  ;;  %v3680_v50 = vld [vmem:[#allocation12 + $0x18] sm:$0xff] }
 0x37d   :  { %3921 = vmatpush1.msra.mxu1 %v3816_v56  ;;  %3991 = vmatprep.subr.mxu0 %v3913_v61  ;;  %v3688_v61 = vld [vmem:[#allocation12 + $0x48] sm:$0xff]  ;;  %v3744_v4 = vld [vmem:[#allocation12 + $0x198] sm:$0xff] }
 0x37e   :  { %3922 = vmatprep.subr.mxu1 %v3814_v6  ;;  %3992 = vmatpush1.msra.mxu0 %v3912_v7  ;;  %v2878_v31 = vadd.f32 %v2877_v44, %v2864_v54  ;;  %v3895_v6 = vunpack.c.h.bf16 %v3756_v30  ;;  %v3796_v7 = vunpack.c.h.bf16 %v3690_v53  ;;  %v3792_v44 = vunpack.c.l.bf16 %v3688_v61 }
 0x37f   :  { %3923 = vmatpush1.msra.mxu1 %v3813_v14  ;;  %3993 = vmatprep.subr.mxu0 %v3910_v20  ;;  %v3795_v14 = vunpack.c.l.bf16 %v3690_v53  ;;  %v3892_v20 = vunpack.c.h.bf16 %v3754_v24  ;;  %v3781_v30 = vunpack.c.h.bf16 %v3680_v50  ;;  %v3676_v53 = vld [vmem:[#allocation12] sm:$0xff] }
 0x380   :  { %3924 = vmatprep.subr.mxu1 %v3811_v12  ;;  %3994 = vmatpush1.msra.mxu0 %v3909_v47  ;;  %v2879_v41 = vrot.slane %v2878_v31, 2  ;;  %v3793_v12 = vunpack.c.h.bf16 %v3688_v61  ;;  %v3891_v47 = vunpack.c.l.bf16 %v3754_v24  ;;  %v3740_v24 = vld [vmem:[#allocation12 + $0x180] sm:$0xff] }
 0x381   :  { %3925 = vmatpush1.msra.mxu1 %v3810_v23  ;;  %3995 = vmatprep.subr.mxu0 %v3907_v13  ;;  %v3684_v23 = vld [vmem:[#allocation12 + $0x30] sm:$0xff]  ;;  %v3790_v13 = vunpack.c.h.bf16 %v3686_v19 }
 0x382   :  { %3926 = vmatprep.subr.mxu1 %v3808_v27  ;;  %3996 = vmatpush1.msra.mxu0 %v3906_v28  ;;  %v2880_v51 = vadd.f32 %v2879_v41, %v2878_v31  ;;  %v3888_v27 = vunpack.c.l.bf16 %v3752_v11  ;;  %v3748_v28 = vld [vmem:[#allocation12 + $0x1b0] sm:$0xff]  ;;  %v3682_v31 = vld [vmem:[#allocation12 + $0x24] sm:$0xff]  ;;  %v3787_v34 = vunpack.c.h.bf16 %v3684_v23 }
 0x383   :  { %3927 = vmatpush1.msra.mxu1 %v3807_v33  ;;  %3997 = vmatprep.subr.mxu0 %v3904_v36  ;;  %v3886_v33 = vunpack.c.h.bf16 %v3750_v21  ;;  %v3885_v36 = vunpack.c.l.bf16 %v3750_v21  ;;  %v3883_v40 = vunpack.c.h.bf16 %v3748_v28  ;;  %v3784_v41 = vunpack.c.h.bf16 %v3682_v31  ;;  %v3736_v11 = vld [vmem:[#allocation12 + $0x168] sm:$0xff] }
 0x384   :  { %3928 = vmatprep.subr.mxu1 %v3805_v37  ;;  %3998 = vmatpush1.msra.mxu0 %v3903_v38  ;;  %v2881_v56 = vrot.slane %v2880_v51, 1  ;;  %v3746_v37 = vld [vmem:[#allocation12 + $0x1a4] sm:$0xff]  ;;  %v3786_v38 = vunpack.c.l.bf16 %v3684_v23 }
 0x385   :  { %3929 = vmatpush1.msra.mxu1 %v3804_v5  ;;  %3999 = vmatprep.subr.mxu0 %v3901_v42  ;;  %v3882_v5 = vunpack.c.l.bf16 %v3748_v28  ;;  %v3783_v42 = vunpack.c.l.bf16 %v3682_v31  ;;  %v3879_v48 = vunpack.c.l.bf16 %v3746_v37 }
 0x386   :  { %3930 = vmatprep.subr.mxu1 %v3802_v35  ;;  %4000 = vmatpush1.msra.mxu0 %v3900_v26  ;;  %v2882_v54 = vadd.f32 %v2881_v56, %v2880_v51  ;;  %v3678_v35 = vld [vmem:[#allocation12 + $0xc] sm:$0xff]  ;;  %v3880_v26 = vunpack.c.h.bf16 %v3746_v37  ;;  %v3738_v56 = vld [vmem:[#allocation12 + $0x174] sm:$0xff]  ;;  %v7166_v61 = vpop.eup %7165 }
 0x387   :  { %3931 = vmatpush1.msra.mxu1 %v3801_v52  ;;  %4001 = vmatprep.subr.mxu0 %v3898_v2  ;;  %v3742_v51 = vld [vmem:[#allocation12 + $0x18c] sm:$0xff]  ;;  %v3780_v52 = vunpack.c.l.bf16 %v3680_v50  ;;  %v3877_v2 = vunpack.c.h.bf16 %v3744_v4  ;;  %v3777_v17 = vunpack.c.l.bf16 %v3678_v35  ;;  %v3867_v21 = vunpack.c.l.bf16 %v3738_v56  ;;  %v2410_v50 = vld [vmem:[%s8482_s17] sm:$0x7] }
 0x388   :  { %3932 = vmatprep.subr.mxu1 %v3799_v15  ;;  %4002 = vmatpush1.msra.mxu0 %v3897_v39  ;;  %v2885_v59 = vmul.f32 0.125, %v2882_v54  ;;  %v3778_v15 = vunpack.c.h.bf16 %v3678_v35  ;;  %v3876_v39 = vunpack.c.l.bf16 %v3744_v4  ;;  %v3871_v54 = vunpack.c.h.bf16 %v3740_v24  ;;  %v3726_v4 = vld [vmem:[#allocation12 + $0x12c] sm:$0xff] }
 0x389   :  { %3933 = vmatpush1.msra.mxu1 %v3798_v3  ;;  %4003 = vmatprep.subr.mxu0 %v3895_v6  ;;  %v3874_v3 = vunpack.c.h.bf16 %v3742_v51  ;;  %v3775_v6 = vunpack.c.h.bf16 %v3676_v53  ;;  %v7168_v19 = vpop.eup %7167 }
 0x38a   :  { %3934 = vmatprep.subr.mxu1 %v3796_v7  ;;  %4004 = vmatpush1.msra.mxu0 %v3894_v8  ;;  %v2888_v32 = vadd.f32 1e-05, %v2885_v59  ;;  %v3873_v7 = vunpack.c.l.bf16 %v3742_v51  ;;  %v3774_v8 = vunpack.c.l.bf16 %v3676_v53  ;;  %v3734_v59 = vld [vmem:[#allocation12 + $0x15c] sm:$0xff]  ;;  %v3722_v53 = vld [vmem:[#allocation12 + $0x114] sm:$0xff] }
 0x38b   :  { %3935 = vmatpush1.msra.mxu1 %v3795_v14  ;;  %4005 = vmatprep.subr.mxu0 %v3892_v20  ;;  %v8078_v14 = vld [vmem:[#allocation12 + $0x170] ss:$12 sps:$4 sm:$0xff]   ;;  %v3868_v20 = vunpack.c.h.bf16 %v3738_v56  ;;  %v3862_v28 = vunpack.c.h.bf16 %v3734_v59  ;;  %v3861_v31 = vunpack.c.l.bf16 %v3734_v59  ;;  %v3720_v56 = vld [vmem:[#allocation12 + $0x108] sm:$0xff] }
 0x38c   :  { %3936 = vmatprep.subr.mxu1 %v3793_v12  ;;  %4006 = vmatpush1.msra.mxu0 %v3891_v47  ;;  %7169 = vrsqrt.f32 %v2888_v32  ;;  %v3870_v12 = vunpack.c.l.bf16 %v3740_v24  ;;  %v2895_v47 = vcombine.low %v7168_v19, %v7166_v61  ;;  %v3869_v23 = vunpack.c.h.bf16 %v8078_v14 }
 0x38d   :  { %3937 = vmatpush1.msra.mxu1 %v3792_v44  ;;  %4007 = vmatprep.subr.mxu0 %v3889_v29  ;;  %v3865_v44 = vunpack.c.h.bf16 %v3736_v11  ;;  %v3864_v29 = vunpack.c.l.bf16 %v3736_v11 }
 0x38e   :  { %3938 = vmatprep.subr.mxu1 %v3790_v13  ;;  %4008 = vmatpush1.msra.mxu0 %v3888_v27  ;;  %v3732_v13 = vld [vmem:[#allocation12 + $0x150] sm:$0xff]  ;;  %v2902_v32 = vrot.slane %v2895_v47, %v7834_v46  ;;  %v3714_v47 = vld [vmem:[#allocation12 + $0xe4] sm:$0xff] }
 0x38f   :  { %3939 = vmatpush1.msra.mxu1 %v3789_v16  ;;  %4009 = vmatprep.subr.mxu0 %v3886_v33  ;;  %v3730_v33 = vld [vmem:[#allocation12 + $0x144] sm:$0xff]  ;;  %v3858_v37 = vunpack.c.l.bf16 %v3732_v13 }
 0x390   :  { %3940 = vmatprep.subr.mxu1 %v3787_v34  ;;  %4010 = vmatpush1.msra.mxu0 %v3885_v36  ;;  %v3859_v34 = vunpack.c.h.bf16 %v3732_v13 }
 0x391   :  { %3941 = vmatpush1.msra.mxu1 %v3786_v38  ;;  %4011 = vmatprep.subr.mxu0 %v3883_v40  ;;  %v3728_v38 = vld [vmem:[#allocation12 + $0x138] sm:$0xff]  ;;  %v3856_v40 = vunpack.c.h.bf16 %v3730_v33 }
 0x392   :  { %3942 = vmatprep.subr.mxu1 %v3784_v41  ;;  %4012 = vmatpush1.msra.mxu0 %v3882_v5  ;;  %v3855_v5 = vunpack.c.l.bf16 %v3730_v33 }
 0x393   :  { %3943 = vmatpush1.msra.mxu1 %v3783_v42  ;;  %4013 = vmatprep.subr.mxu0 %v3880_v26  ;;  %v3853_v42 = vunpack.c.h.bf16 %v3728_v38  ;;  %v3852_v26 = vunpack.c.l.bf16 %v3728_v38 }
 0x394   :  { %3944 = vmatprep.subr.mxu1 %v3781_v30  ;;  %4014 = vmatpush1.msra.mxu0 %v3879_v48  ;;  %v3724_v30 = vld [vmem:[#allocation12 + $0x120] sm:$0xff]  ;;  %v3850_v48 = vunpack.c.h.bf16 %v3726_v4 }
 0x395   :  { %3945 = vmatpush1.msra.mxu1 %v3780_v52  ;;  %4015 = vmatprep.subr.mxu0 %v3877_v2  ;;  %v3849_v52 = vunpack.c.l.bf16 %v3726_v4 }
 0x396   :  { %3946 = vmatprep.subr.mxu1 %v3778_v15  ;;  %4016 = vmatpush1.msra.mxu0 %v3876_v39  ;;  %v3847_v39 = vunpack.c.h.bf16 %v3724_v30 }
 0x397   :  { %3947 = vmatpush1.msra.mxu1 %v3777_v17  ;;  %4017 = vmatprep.subr.mxu0 %v3874_v3  ;;  %v3846_v17 = vunpack.c.l.bf16 %v3724_v30 }
 0x398   :  { %3948 = vmatprep.subr.mxu1 %v3775_v6  ;;  %4018 = vmatpush1.msra.mxu0 %v3873_v7  ;;  %v3844_v6 = vunpack.c.h.bf16 %v3722_v53  ;;  %v3843_v7 = vunpack.c.l.bf16 %v3722_v53  ;;  %v3735_v53 = vld [vmem:[#allocation12 + $0x164] ss:$216 sps:$4 sm:$0xff]  }
 0x399   :  { %3949 = vmatpush1.msra.mxu1 %v3774_v8  ;;  %4019 = vmatprep.subr.mxu0 %v3871_v54  ;;  %v7170_v27 = vpop.eup %7169  ;;  %v3718_v8 = vld [vmem:[#allocation12 + $0xfc] sm:$0xff]  ;;  %v3841_v54 = vunpack.c.h.bf16 %v3720_v56 }
 0x39a   :  { %3950 = vmatprep.subr.mxu1 %v3868_v20  ;;  %4020 = vmatpush1.msra.mxu0 %v3870_v12  ;;  %v2909_v16 = vrot.slane %v7170_v27, %v7834_v46  ;;  %v3716_v20 = vld [vmem:[#allocation12 + $0xf0] sm:$0xff]  ;;  %v3832_v27 = vunpack.c.h.bf16 %v3714_v47 }
 0x39b   :  { %3951 = vmatpush2.msra.mxu1 %v3867_v21  ;;  %4053 = vmatprep.mubr.f32.mxu0 %v7461_v0  ;;  %v3835_v59 = vunpack.c.h.bf16 %v3716_v20 }
 0x39c   :  { %3952 = vmatprep.subr.mxu1 %v3865_v44  ;;  %6624 = vmatprep.subr.mxu0 %v3869_v23  ;;  %v2910_v36 = vcombine.low %v2902_v32, %v2909_v16  ;;  %v2411_v44 = vld [vmem:[%s8483_s30] sm:$0x7]  ;;  %v3834_v23 = vunpack.c.l.bf16 %v3716_v20  ;;  %v3710_v32 = vld [vmem:[#allocation12 + $0xcc] sm:$0xff] }
 0x39d   :  { %3953 = vmatpush2.msra.mxu1 %v3864_v29  ;;  %v3712_v29 = vld [vmem:[#allocation12 + $0xd8] sm:$0xff]  ;;  %v3825_v4 = vunpack.c.l.bf16 %v3710_v32  ;;  %v3727_v20 = vld [vmem:[#allocation12 + $0x134] ss:$216 sps:$4 sm:$0xff]  }
 0x39e   :  { %3954 = vmatprep.subr.mxu1 %v3862_v28  ;;  %v2917_v41 = vrot.slane %v2910_v36, %v7834_v46  ;;  %v3831_v28 = vunpack.c.l.bf16 %v3714_v47  ;;  %v3828_v33 = vunpack.c.l.bf16 %v3712_v29 }
 0x39f   :  { %3955 = vmatpush2.msra.mxu1 %v3861_v31 }
 0x3a0   :  { %3956 = vmatprep.subr.mxu1 %v3859_v34  ;;  %v2919_v35 = vmul.f32 %v2917_v41, %v2410_v50  ;;  %v3829_v34 = vunpack.c.h.bf16 %v3712_v29  ;;  %v3708_v50 = vld [vmem:[#allocation12 + $0xc0] sm:$0xff]  ;;  %v3723_v29 = vld [vmem:[#allocation12 + $0x11c] ss:$216 sps:$4 sm:$0xff]  }
 0x3a1   :  { %3957 = vmatpush2.msra.mxu1 %v3858_v37 }
 0x3a2   :  { %3958 = vmatprep.subr.mxu1 %v3856_v40  ;;  %v2932_v51 = vrot.slane %v2919_v35, %v7844_v1  ;;  %v2924_v2 = vrot.slane %v2919_v35, %v7840_v62  ;;  %v2928_v15 = vrot.slane %v2919_v35, %v7842_v63  ;;  %v3707_v35 = vld [vmem:[#allocation12 + $0xb0] ss:$12 sps:$4 sm:$0xff]  }
 0x3a3   :  { %3959 = vmatpush2.msra.mxu1 %v3855_v5  ;;  %v3826_v5 = vunpack.c.h.bf16 %v3710_v32 }
 0x3a4   :  { %3960 = vmatprep.subr.mxu1 %v3853_v42  ;;  %v2938_v24 = vmul.f32 %v2932_v51, %v8069_v22  ;;  %v2936_v3 = vmul.f32 %v2924_v2, %v8046_v10  ;;  %v2937_v61 = vmul.f32 %v2928_v15, %v8043_v58  ;;  %v3840_v22 = vunpack.c.l.bf16 %v3720_v56 }
 0x3a5   :  { %3961 = vmatpush2.msra.mxu1 %v3852_v26  ;;  %v3838_v10 = vunpack.c.h.bf16 %v3718_v8  ;;  %v3837_v58 = vunpack.c.l.bf16 %v3718_v8  ;;  %v2969_v31 = vmul.f32 %v2932_v51, %v8058_v25  ;;  %v2968_v36 = vmul.f32 %v2928_v15, %v8016_v18 }
 0x3a6   :  { %3962 = vmatprep.subr.mxu1 %v3850_v48  ;;  %v2942_v11 = vcombine.low %v2936_v3, %v2937_v61  ;;  %v2956_v19 = vrot.slane %v2938_v24, %v7834_v46  ;;  %v2967_v40 = vmul.f32 %v2924_v2, %v8012_v9  ;;  %v3823_v18 = vunpack.c.h.bf16 %v3708_v50  ;;  %v3703_v24 = vld [vmem:[#allocation12 + $0xa4] ss:$180 sps:$4 sm:$0xff]  }
 0x3a7   :  { %3963 = vmatpush2.msra.mxu1 %v3849_v52  ;;  %v3821_v51 = vunpack.c.h.bf16 %v3707_v35  ;;  %v3822_v15 = vunpack.c.l.bf16 %v3708_v50  ;;  %v3863_v56 = vunpack.c.l.bf16 %v3735_v53  ;;  %v3701_v3 = vld [vmem:[#allocation12 + $0x98] ss:$408 sps:$4 sm:$0xff]   ;;  %v3917_v61 = vunpack.c.h.bf16 %v3735_v53 }
 0x3a8   :  { %3964 = vmatprep.subr.mxu1 %v3847_v39  ;;  %v2949_v12 = vrot.slane %v2942_v11, %v7834_v46  ;;  %v3866_v39 = vunpack.c.l.bf16 %v8078_v14  ;;  %v3860_v14 = vunpack.c.h.bf16 %v3703_v24  ;;  %v3812_v8 = vunpack.c.l.bf16 %v3701_v3 }
 0x3a9   :  { %3965 = vmatpush2.msra.mxu1 %v3846_v17  ;;  %v3818_v17 = vunpack.c.l.bf16 %v3707_v35  ;;  %v3914_v11 = vunpack.c.h.bf16 %v3701_v3 }
 0x3aa   :  { %3966 = vmatprep.subr.mxu1 %v3844_v6  ;;  %v2957_v21 = vcombine.low %v2949_v12, %v2956_v19  ;;  %v3731_v6 = vld [vmem:[#allocation12 + $0x14c] ss:$216 sps:$4 sm:$0xff]   ;;  %v3697_v19 = vld [vmem:[#allocation12 + $0x80] ss:$408 sps:$4 sm:$0xff]  }
 0x3ab   :  { %3967 = vmatpush2.msra.mxu1 %v3843_v7  ;;  %v3699_v7 = vld [vmem:[#allocation12 + $0x8c] ss:$180 sps:$4 sm:$0xff]   ;;  %v3908_v47 = vunpack.c.h.bf16 %v3697_v19 }
 0x3ac   :  { %3968 = vmatprep.subr.mxu1 %v3841_v54  ;;  %v2964_v13 = vrot.slane %v2957_v21, %v7834_v46  ;;  %v3857_v54 = vunpack.c.l.bf16 %v3731_v6  ;;  %v3854_v12 = vunpack.c.h.bf16 %v3699_v7  ;;  %v3851_v21 = vunpack.c.l.bf16 %v3727_v20 }
 0x3ad   :  { %3969 = vmatpush2.msra.mxu1 %v3840_v22  ;;  %v3911_v22 = vunpack.c.h.bf16 %v3731_v6 }
 0x3ae   :  { %3970 = vmatprep.subr.mxu1 %v3838_v10  ;;  %v2966_v16 = vsub.f32 %v2411_v44, %v2964_v13  ;;  %v3695_v10 = vld [vmem:[#allocation12 + $0x74] ss:$180 sps:$4 sm:$0xff]  }
 0x3af   :  { %3971 = vmatpush2.msra.mxu1 %v3837_v58  ;;  %v3806_v58 = vunpack.c.l.bf16 %v3697_v19  ;;  %v3803_v44 = vunpack.c.l.bf16 %v3695_v10  ;;  %v3848_v13 = vunpack.c.h.bf16 %v3695_v10 }
 0x3b0   :  { %3972 = vmatprep.subr.mxu1 %v3835_v59  ;;  %v2978_v37 = vrot.slane %v2966_v16, %v7842_v63  ;;  %v2982_v38 = vrot.slane %v2966_v16, %v7844_v1  ;;  %v2974_v41 = vrot.slane %v2966_v16, %v7840_v62  ;;  %v3693_v59 = vld [vmem:[#allocation12 + $0x68] ss:$408 sps:$4 sm:$0xff]   ;;  %v3845_v16 = vunpack.c.l.bf16 %v3723_v29 }
 0x3b1   :  { %3973 = vmatpush2.msra.mxu1 %v3834_v23  ;;  %v3905_v23 = vunpack.c.h.bf16 %v3727_v20  ;;  %v3902_v32 = vunpack.c.h.bf16 %v3693_v59 }
 0x3b2   :  { %3974 = vmatprep.subr.mxu1 %v3832_v27  ;;  %v2987_v25 = vadd.f32 %v2978_v37, %v2968_v36  ;;  %v2988_v42 = vadd.f32 %v2982_v38, %v2969_v31  ;;  %v2986_v26 = vadd.f32 %v2974_v41, %v2967_v40  ;;  %v3691_v27 = vld [vmem:[#allocation12 + $0x5c] ss:$180 sps:$4 sm:$0xff]   ;;  %v3687_v38 = vld [vmem:[#allocation12 + $0x44] ss:$180 sps:$4 sm:$0xff]  }
 0x3b3   :  { %3975 = vmatpush2.msra.mxu1 %v3831_v28  ;;  %v3800_v28 = vunpack.c.l.bf16 %v3693_v59  ;;  %v3689_v31 = vld [vmem:[#allocation12 + $0x50] ss:$408 sps:$4 sm:$0xff]   ;;  %v3719_v36 = vld [vmem:[#allocation12 + $0x104] ss:$216 sps:$4 sm:$0xff]   ;;  %v3842_v37 = vunpack.c.h.bf16 %v3691_v27  ;;  %v3836_v35 = vunpack.c.h.bf16 %v3687_v38 }
 0x3b4   :  { %3976 = vmatprep.subr.mxu1 %v3829_v34  ;;  %v2990_v30 = vmax.f32 %v2987_v25, 0.0  ;;  %v2991_v48 = vmax.f32 %v2988_v42, 0.0  ;;  %v2989_v52 = vmax.f32 %v2986_v26, 0.0  ;;  %v3899_v34 = vunpack.c.h.bf16 %v3723_v29  ;;  %v3715_v42 = vld [vmem:[#allocation12 + $0xec] ss:$216 sps:$4 sm:$0xff]  }
 0x3b5   :  { %3977 = vmatpush2.msra.mxu1 %v3828_v33  ;;  %v3797_v33 = vunpack.c.l.bf16 %v3691_v27  ;;  %v3794_v50 = vunpack.c.l.bf16 %v3689_v31  ;;  %v3896_v40 = vunpack.c.h.bf16 %v3689_v31  ;;  %v3839_v41 = vunpack.c.l.bf16 %v3719_v36  ;;  %v3683_v26 = vld [vmem:[#allocation12 + $0x2c] ss:$180 sps:$4 sm:$0xff]   ;;  %v4627_v31 = vld [vmem:[#allocation16 + $0xb4] sm:$0xff] }
 0x3b6   :  { %3978 = vmatprep.subr.mxu1 %v3826_v5  ;;  %v8103_v9 = vadd.f32 %v2990_v30, %v7875_v55  ;;  %v8106_v2 = vadd.f32 %v2991_v48, %v7878_v57  ;;  %v8113_v55 = vadd.f32 %v2989_v52, %v7881_v60  ;;  %v3815_v57 = vunpack.c.l.bf16 %v3703_v24  ;;  %v3685_v5 = vld [vmem:[#allocation12 + $0x38] ss:$408 sps:$4 sm:$0xff]   ;;  %v3679_v24 = vld [vmem:[#allocation12 + $0x14] ss:$180 sps:$4 sm:$0xff]  }
 0x3b7   :  { %3979 = vmatpush2.msra.mxu1 %v3825_v4  ;;  %v3809_v60 = vunpack.c.l.bf16 %v3699_v7  ;;  %v3791_v4 = vunpack.c.l.bf16 %v3687_v38  ;;  %v3893_v25 = vunpack.c.h.bf16 %v3719_v36  ;;  %v3890_v30 = vunpack.c.h.bf16 %v3685_v5  ;;  %v3743_v7 = vld [vmem:[#allocation12 + $0x188] ss:$12 sps:$4 sm:$0xff]  }
 0x3b8   :  { %3980 = vmatprep.subr.mxu1 %v3823_v18  ;;  %3982 = vmatprep.mubr.f32.mxu1 %v8103_v9  ;;  %v3788_v18 = vunpack.c.l.bf16 %v3685_v5  ;;  %v3833_v48 = vunpack.c.l.bf16 %v3715_v42  ;;  %v3785_v52 = vunpack.c.l.bf16 %v3683_v26  ;;  %v3887_v53 = vunpack.c.h.bf16 %v3715_v42  ;;  %v4621_v42 = vld [vmem:[#allocation16 + $0x90] sm:$0xff] }
 0x3b9   :  { %4054 = vmatmul.mubr.f32.vlgmr.msra.gmra.mxu0 %v8106_v2  ;;  %3981 = vmatpush2.msra.mxu1 %v3822_v15  ;;  %v3711_v15 = vld [vmem:[#allocation12 + $0xd4] ss:$216 sps:$4 sm:$0xff]   ;;  %v3872_v19 = vunpack.c.l.bf16 %v3743_v7  ;;  %v4738_v36 = vunpack.c.l.bf16 %v4627_v31 }
 0x3ba   :  { %6625 = vmatpush3.msra.mxu0 %v3821_v51  ;;  %4124 = vmatprep.mubr.f32.mxu0 %v8103_v9  ;;  %v3681_v51 = vld [vmem:[#allocation12 + $0x20] ss:$408 sps:$4 sm:$0xff]   ;;  %v3827_v3 = vunpack.c.l.bf16 %v3711_v15  ;;  %v3881_v6 = vunpack.c.h.bf16 %v3711_v15 }
 0x3bb   :  { %6626 = vmatprep.subr.mxu0 %v3866_v39  ;;  %3983 = vmatmul.mubr.f32.vlgmr.msra.gmra.mxu1 %v8113_v55  ;;  %v3830_v39 = vunpack.c.h.bf16 %v3683_v26 }
 0x3bc   :  { %6627 = vmatpush3.msra.mxu0 %v3818_v17  ;;  %6968 = vmatprep.subr.mxu1 %v7461_v0  ;;  %v3782_v17 = vunpack.c.l.bf16 %v3681_v51 }
 0x3bd   :  { %6628 = vmatprep.subr.mxu0 %v3863_v56  ;;  %6969 = vmatpush3.msra.mxu1 %v3917_v61  ;;  %v3884_v56 = vunpack.c.h.bf16 %v3681_v51  ;;  %v3779_v61 = vunpack.c.l.bf16 %v3679_v24 }
 0x3be   :  { %6629 = vmatpush3.msra.mxu0 %v3815_v57  ;;  %6970 = vmatprep.subr.mxu1 %v7461_v0  ;;  %v3677_v57 = vld [vmem:[#allocation12 + $0x8] ss:$408 sps:$4 sm:$0xff]  }
 0x3bf   :  { %6630 = vmatprep.subr.mxu0 %v3860_v14  ;;  %6971 = vmatpush3.msra.mxu1 %v3914_v11  ;;  %v3824_v14 = vunpack.c.h.bf16 %v3679_v24  ;;  %v3878_v11 = vunpack.c.h.bf16 %v3677_v57 }
 0x3c0   :  { %6631 = vmatpush3.msra.mxu0 %v3812_v8  ;;  %6972 = vmatprep.subr.mxu1 %v7461_v0  ;;  %v3776_v8 = vunpack.c.l.bf16 %v3677_v57 }
 0x3c1   :  { %6632 = vmatprep.subr.mxu0 %v3857_v54  ;;  %6973 = vmatpush3.msra.mxu1 %v3911_v22  ;;  %v3875_v54 = vunpack.c.h.bf16 %v3743_v7 }
 0x3c2   :  { %6633 = vmatpush3.msra.mxu0 %v3809_v60  ;;  %6974 = vmatprep.subr.mxu1 %v7461_v0 }
 0x3c3   :  { %6634 = vmatprep.subr.mxu0 %v3854_v12  ;;  %6975 = vmatpush3.msra.mxu1 %v3908_v47 }
 0x3c4   :  { %6635 = vmatpush3.msra.mxu0 %v3806_v58  ;;  %6976 = vmatprep.subr.mxu1 %v7461_v0 }
 0x3c5   :  { %6636 = vmatprep.subr.mxu0 %v3851_v21  ;;  %6977 = vmatpush3.msra.mxu1 %v3905_v23 }
 0x3c6   :  { %6637 = vmatpush3.msra.mxu0 %v3803_v44  ;;  %6978 = vmatprep.subr.mxu1 %v7461_v0 }
 0x3c7   :  { %6638 = vmatprep.subr.mxu0 %v3848_v13  ;;  %6979 = vmatpush3.msra.mxu1 %v3902_v32 }
 0x3c8   :  { %6639 = vmatpush3.msra.mxu0 %v3800_v28  ;;  %6980 = vmatprep.subr.mxu1 %v7461_v0 }
 0x3c9   :  { %6640 = vmatprep.subr.mxu0 %v3845_v16  ;;  %6981 = vmatpush3.msra.mxu1 %v3899_v34  ;;  %v4739_v34 = vunpack.c.h.bf16 %v4627_v31 }
 0x3ca   :  { %6641 = vmatpush3.msra.mxu0 %v3797_v33  ;;  %6982 = vmatprep.subr.mxu1 %v7461_v0 }
 0x3cb   :  { %6642 = vmatprep.subr.mxu0 %v3842_v37  ;;  %6983 = vmatpush3.msra.mxu1 %v3896_v40  ;;  %v4625_v37 = vld [vmem:[#allocation16 + $0xa8] sm:$0xff] }
 0x3cc   :  { %6643 = vmatpush3.msra.mxu0 %v3794_v50  ;;  %6984 = vmatprep.subr.mxu1 %v7461_v0  ;;  %v4736_v38 = vunpack.c.h.bf16 %v4625_v37  ;;  %v4735_v40 = vunpack.c.l.bf16 %v4625_v37 }
 0x3cd   :  { %6644 = vmatprep.subr.mxu0 %v3839_v41  ;;  %6985 = vmatpush3.msra.mxu1 %v3893_v25  ;;  %v4623_v41 = vld [vmem:[#allocation16 + $0x9c] sm:$0xff] }
 0x3ce   :  { %6645 = vmatpush3.msra.mxu0 %v3791_v4  ;;  %6986 = vmatprep.subr.mxu1 %v7461_v0  ;;  %v4733_v4 = vunpack.c.h.bf16 %v4623_v41  ;;  %v4732_v25 = vunpack.c.l.bf16 %v4623_v41 }
 0x3cf   :  { %6646 = vmatprep.subr.mxu0 %v3836_v35  ;;  %6987 = vmatpush3.msra.mxu1 %v3890_v30  ;;  %v4730_v35 = vunpack.c.h.bf16 %v4621_v42  ;;  %v4619_v30 = vld [vmem:[#allocation16 + $0x84] sm:$0xff] }
 0x3d0   :  { %6647 = vmatpush3.msra.mxu0 %v3788_v18  ;;  %6988 = vmatprep.subr.mxu1 %v7461_v0  ;;  %v4729_v18 = vunpack.c.l.bf16 %v4621_v42  ;;  %v4727_v51 = vunpack.c.h.bf16 %v4619_v30 }
 0x3d1   :  { %6648 = vmatprep.subr.mxu0 %v3833_v48  ;;  %6989 = vmatpush3.msra.mxu1 %v3887_v53  ;;  %v4617_v53 = vld [vmem:[#allocation16 + $0x78] sm:$0xff] }
 0x3d2   :  { %6649 = vmatpush3.msra.mxu0 %v3785_v52  ;;  %6990 = vmatprep.subr.mxu1 %v7461_v0  ;;  %v4726_v52 = vunpack.c.l.bf16 %v4619_v30  ;;  %v4724_v15 = vunpack.c.h.bf16 %v4617_v53  ;;  %v4723_v24 = vunpack.c.l.bf16 %v4617_v53 }
 0x3d3   :  { %6650 = vmatprep.subr.mxu0 %v3830_v39  ;;  %6991 = vmatpush3.msra.mxu1 %v3884_v56 }
 0x3d4   :  { %6651 = vmatpush3.msra.mxu0 %v3782_v17  ;;  %6992 = vmatprep.subr.mxu1 %v7461_v0  ;;  %v4615_v17 = vld [vmem:[#allocation16 + $0x6c] sm:$0xff] }
 0x3d5   :  { %6652 = vmatprep.subr.mxu0 %v3827_v3  ;;  %6993 = vmatpush3.msra.mxu1 %v3881_v6  ;;  %v4721_v57 = vunpack.c.h.bf16 %v4615_v17  ;;  %v4613_v6 = vld [vmem:[#allocation16 + $0x60] sm:$0xff] }
 0x3d6   :  { %6653 = vmatpush3.msra.mxu0 %v3779_v61  ;;  %6994 = vmatprep.subr.mxu1 %v7461_v0  ;;  %v4720_v61 = vunpack.c.l.bf16 %v4615_v17 }
 0x3d7   :  { %6654 = vmatprep.subr.mxu0 %v3824_v14  ;;  %6995 = vmatpush3.msra.mxu1 %v3878_v11 }
 0x3d8   :  { %6655 = vmatpush3.msra.mxu0 %v3776_v8  ;;  %6996 = vmatprep.subr.mxu1 %v7461_v0  ;;  %v4718_v8 = vunpack.c.h.bf16 %v4613_v6 }
 0x3d9   :  { %4125 = vmatmul.mubr.f32.vlgmr.msra.gmra.mxu0 %v8113_v55  ;;  %6997 = vmatpush3.msra.mxu1 %v3875_v54 }
 0x3da   :  { %7000 = vmatprep.mubr.msk.f32.mxu1 %vm7462_vm0, %v7461_v0  ;;  %6998 = vmatprep.subr.mxu1 %v7461_v0 }
 0x3db   :  { %6999 = vmatpush3.msra.mxu1 %v3872_v19  ;;  %4837 = vmatprep.subr.mxu0 %v4739_v34  ;;  %v4717_v19 = vunpack.c.l.bf16 %v4613_v6 }
 0x3dc   :  { %7001 = vmatmul.mubr.f32.vlgmr.msra.gmra.mxu1 %v8106_v2  ;;  %4838 = vmatpush1.msra.mxu0 %v4738_v36 }
 0x3dd   :  { %4972 = vmatprep.mubr.f32.mxu1 %v7461_v0  ;;  %4839 = vmatprep.subr.mxu0 %v4736_v38 }
 0x3de   :  { %4840 = vmatpush1.msra.mxu0 %v4735_v40  ;;  %v4603_v40 = vld [vmem:[#allocation16 + $0x24] sm:$0xff] }
 0x3df   :  { %4841 = vmatprep.subr.mxu0 %v4733_v4  ;;  %v4703_v4 = vunpack.c.h.bf16 %v4603_v40  ;;  %v4702_v42 = vunpack.c.l.bf16 %v4603_v40 }
 0x3e0   :  { %4842 = vmatpush1.msra.mxu0 %v4732_v25 }
 0x3e1   :  { %4843 = vmatprep.subr.mxu0 %v4730_v35  ;;  %v4601_v35 = vld [vmem:[#allocation16 + $0x18] sm:$0xff] }
 0x3e2   :  { %4844 = vmatpush1.msra.mxu0 %v4729_v18 }
 0x3e3   :  { %4845 = vmatprep.subr.mxu0 %v4727_v51  ;;  %v4599_v51 = vld [vmem:[#allocation16 + $0xc] sm:$0xff] }
 0x3e4   :  { %4846 = vmatpush1.msra.mxu0 %v4726_v52  ;;  %v4697_v53 = vunpack.c.h.bf16 %v4599_v51 }
 0x3e5   :  { %4847 = vmatprep.subr.mxu0 %v4724_v15 }
 0x3e6   :  { %4848 = vmatpush1.msra.mxu0 %v4723_v24  ;;  %v4597_v24 = vld [vmem:[#allocation16] sm:$0xff] }
 0x3e7   :  { %4849 = vmatprep.subr.mxu0 %v4721_v57  ;;  %v4694_v17 = vunpack.c.h.bf16 %v4597_v24 }
 0x3e8   :  { %4850 = vmatpush1.msra.mxu0 %v4720_v61  ;;  %v4693_v61 = vunpack.c.l.bf16 %v4597_v24 }
 0x3e9   :  { %4851 = vmatprep.subr.mxu0 %v4718_v8 }
 0x3ea   :  { %4852 = vmatpush1.msra.mxu0 %v4717_v19 }
 0x418   :  { %v3374_v60 = vpop.f32.mrf.mxu1 }
 0x419   :  { %v3303_v22 = vpop.f32.mrf.mxu0 }
 0x41a   :  { %v8137_v20 = vadd.f32 %v3374_v60, %v3303_v22  ;;  %v3376_v12 = vpop.f32.mrf.mxu1  ;;  %v4611_v60 = vld [vmem:[#allocation16 + $0x54] sm:$0xff] }
 0x41b   :  { %v3305_v10 = vpop.f32.mrf.mxu0 }
 0x41c   :  { %v3519_v58 = vrot.slane %v8137_v20, 4  ;;  %v8140_v47 = vadd.f32 %v3376_v12, %v3305_v10  ;;  %v4715_v10 = vunpack.c.h.bf16 %v4611_v60 }
 0x41e   :  { %v3520_v21 = vadd.f32 %v3519_v58, %v8137_v20  ;;  %v3525_v59 = vrot.slane %v8140_v47, 4  ;;  %4853 = vmatprep.subr.mxu0 %v4715_v10 }
 0x420   :  { %v3521_v44 = vrot.slane %v3520_v21, 2  ;;  %v3526_v23 = vadd.f32 %v3525_v59, %v8140_v47  ;;  %v4609_v59 = vld [vmem:[#allocation16 + $0x48] sm:$0xff] }
 0x422   :  { %v3527_v29 = vrot.slane %v3526_v23, 2  ;;  %v3522_v13 = vadd.f32 %v3521_v44, %v3520_v21  ;;  %v4714_v21 = vunpack.c.l.bf16 %v4611_v60  ;;  %v4712_v44 = vunpack.c.h.bf16 %v4609_v59 }
 0x424   :  { %v3528_v27 = vadd.f32 %v3527_v29, %v3526_v23  ;;  %v3523_v32 = vrot.slane %v3522_v13, 1  ;;  %4854 = vmatpush1.msra.mxu0 %v4714_v21 }
 0x425   :  { %4855 = vmatprep.subr.mxu0 %v4712_v44 }
 0x426   :  { %v3529_v28 = vrot.slane %v3528_v27, 1  ;;  %v3524_v33 = vadd.f32 %v3523_v32, %v3522_v13  ;;  %v4711_v13 = vunpack.c.l.bf16 %v4609_v59  ;;  %v4687_v59 = vld [vmem:[#allocation16 + $0x21c] sm:$0xff] }
 0x428   :  { %v3530_v16 = vadd.f32 %v3529_v28, %v3528_v27  ;;  %v8147_v5 = vmul.f32 0.125, %v3524_v33  ;;  %v4607_v27 = vld [vmem:[#allocation16 + $0x3c] sm:$0xff]  ;;  %4856 = vmatpush1.msra.mxu0 %v4711_v13  ;;  %v4605_v33 = vld [vmem:[#allocation16 + $0x30] sm:$0xff]  ;;  %v4829_v13 = vunpack.c.h.bf16 %v4687_v59 }
 0x429   :  { %v4709_v32 = vunpack.c.h.bf16 %v4607_v27  ;;  %v4708_v31 = vunpack.c.l.bf16 %v4607_v27  ;;  %v4706_v34 = vunpack.c.h.bf16 %v4605_v33  ;;  %v4705_v38 = vunpack.c.l.bf16 %v4605_v33  ;;  %v4655_v27 = vld [vmem:[#allocation16 + $0x15c] sm:$0xff] }
 0x42a   :  { %v8145_v50 = vmul.f32 0.125, %v3530_v16  ;;  %v3540_v48 = vsub.f32 %v8137_v20, %v8147_v5 }
 0x42b   :  { %4857 = vmatprep.subr.mxu0 %v4709_v32  ;;  %v4828_v32 = vunpack.c.l.bf16 %v4687_v59 }
 0x42c   :  { %v3541_v26 = vsub.f32 %v8140_v47, %v8145_v50  ;;  %v3543_v56 = vmul.f32 %v3540_v48, %v3540_v48  ;;  %4858 = vmatpush1.msra.mxu0 %v4708_v31  ;;  %v4699_v48 = vunpack.c.l.bf16 %v4601_v35  ;;  %v4685_v31 = vld [vmem:[#allocation16 + $0x210] sm:$0xff] }
 0x42d   :  { %4859 = vmatprep.subr.mxu0 %v4706_v34  ;;  %v4780_v34 = vunpack.c.l.bf16 %v4655_v27 }
 0x42e   :  { %v3544_v39 = vmul.f32 %v3541_v26, %v3541_v26  ;;  %v3546_v22 = vrot.slane %v3543_v56, 4  ;;  %4860 = vmatpush1.msra.mxu0 %v4705_v38  ;;  %v4700_v26 = vunpack.c.h.bf16 %v4601_v35  ;;  %v4825_v38 = vunpack.c.l.bf16 %v4685_v31 }
 0x42f   :  { %4861 = vmatprep.subr.mxu0 %v4703_v4 }
 0x430   :  { %v3552_v11 = vrot.slane %v3544_v39, 4  ;;  %v3547_v28 = vadd.f32 %v3546_v22, %v3543_v56  ;;  %4862 = vmatpush1.msra.mxu0 %v4702_v42  ;;  %v4691_v56 = vld [vmem:[#allocation16 + $0x234] sm:$0xff] }
 0x431   :  { %4863 = vmatprep.subr.mxu0 %v4700_v26  ;;  %v4835_v6 = vunpack.c.h.bf16 %v4691_v56  ;;  %v4834_v8 = vunpack.c.l.bf16 %v4691_v56  ;;  %v4651_v26 = vld [vmem:[#allocation16 + $0x144] sm:$0xff]  ;;  %v4679_v56 = vld [vmem:[#allocation16 + $0x1ec] sm:$0xff] }
 0x432   :  { %v3553_v23 = vadd.f32 %v3552_v11, %v3544_v39  ;;  %v3548_v41 = vrot.slane %v3547_v28, 2  ;;  %4864 = vmatpush1.msra.mxu0 %v4699_v48  ;;  %v4696_v39 = vunpack.c.l.bf16 %v4599_v51  ;;  %v4775_v48 = vunpack.c.h.bf16 %v4651_v26  ;;  %v4681_v51 = vld [vmem:[#allocation16 + $0x1f8] sm:$0xff] }
 0x433   :  { %4865 = vmatprep.subr.mxu0 %v4697_v53  ;;  %4908 = vmatprep.subr.mxu1 %v4835_v6  ;;  %v4774_v53 = vunpack.c.l.bf16 %v4651_v26  ;;  %v4819_v24 = vunpack.c.l.bf16 %v4681_v51 }
 0x434   :  { %v3554_v36 = vrot.slane %v3553_v23, 2  ;;  %v3549_v52 = vadd.f32 %v3548_v41, %v3547_v28  ;;  %4866 = vmatpush1.msra.mxu0 %v4696_v39  ;;  %4909 = vmatpush1.msra.mxu1 %v4834_v8  ;;  %v4683_v41 = vld [vmem:[#allocation16 + $0x204] sm:$0xff]  ;;  %v4649_v39 = vld [vmem:[#allocation16 + $0x138] sm:$0xff] }
 0x435   :  { %4867 = vmatprep.subr.mxu0 %v4694_v17  ;;  %v4823_v35 = vunpack.c.h.bf16 %v4683_v41  ;;  %v4772_v17 = vunpack.c.h.bf16 %v4649_v39  ;;  %v4771_v6 = vunpack.c.l.bf16 %v4649_v39 }
 0x436   :  { %v3555_v18 = vadd.f32 %v3554_v36, %v3553_v23  ;;  %4868 = vmatpush1.msra.mxu0 %v4693_v61  ;;  %v4826_v36 = vunpack.c.h.bf16 %v4685_v31  ;;  %v4673_v31 = vld [vmem:[#allocation16 + $0x1c8] sm:$0xff] }
 0x438   :  { %v6604_v3 = vpop.f32.mrf.mxu1 }
 0x43a   :  { %v3515_v14 = vpop.f32.mrf.mxu0  ;;  %v6605_v7 = vpop.f32.mrf.mxu1 }
 0x43b   :  { %v6606_v54 = vadd.f32 %v6605_v7, %v6604_v3  ;;  %v3556_v3 = vrot.slane %v3555_v18, 1  ;;  %v3550_v7 = vrot.slane %v3549_v52, 1 }
 0x43c   :  { %v6967_v12 = vpop.f32.mrf.mxu0 }
 0x43d   :  { %v8153_v58 = vadd.f32 %v6606_v54, %v3515_v14  ;;  %v4659_v14 = vld [vmem:[#allocation16 + $0x174] sm:$0xff]  ;;  %v4689_v54 = vld [vmem:[#allocation16 + $0x228] sm:$0xff]  ;;  %v3557_v44 = vadd.f32 %v3556_v3, %v3555_v18  ;;  %v3551_v28 = vadd.f32 %v3550_v7, %v3549_v52 }
 0x43e   :  { %v4787_v11 = vunpack.c.h.bf16 %v4659_v14  ;;  %v4786_v60 = vunpack.c.l.bf16 %v4659_v14  ;;  %v4832_v22 = vunpack.c.h.bf16 %v4689_v54  ;;  %v4657_v12 = vld [vmem:[#allocation16 + $0x168] sm:$0xff]  ;;  %v4831_v10 = vunpack.c.l.bf16 %v4689_v54 }
 0x43f   :  { %v3531_v29 = vrot.slane %v8153_v58, 4  ;;  %v4784_v21 = vunpack.c.h.bf16 %v4657_v12  ;;  %v3565_v4 = vmul.f32 0.125, %v3557_v44  ;;  %v3564_v18 = vmul.f32 0.125, %v3551_v28  ;;  %v4647_v7 = vld [vmem:[#allocation16 + $0x12c] sm:$0xff]  ;;  %v4675_v44 = vld [vmem:[#allocation16 + $0x1d4] sm:$0xff] }
 0x440   :  { %4869 = vmatprep.subr.mxu0 %v4787_v11  ;;  %4910 = vmatprep.subr.mxu1 %v4832_v22  ;;  %v4817_v14 = vunpack.c.h.bf16 %v4679_v56  ;;  %v4816_v11 = vunpack.c.l.bf16 %v4679_v56  ;;  %v4769_v54 = vunpack.c.h.bf16 %v4647_v7  ;;  %v4768_v22 = vunpack.c.l.bf16 %v4647_v7 }
 0x441   :  { %v3532_v16 = vadd.f32 %v3531_v29, %v8153_v58  ;;  %4870 = vmatpush2.msra.mxu0 %v4786_v60  ;;  %v4783_v29 = vunpack.c.l.bf16 %v4657_v12  ;;  %4911 = vmatpush1.msra.mxu1 %v4831_v10  ;;  %v3568_v3 = vadd.f32 1e-05, %v3565_v4  ;;  %v3567_v8 = vadd.f32 1e-05, %v3564_v18  ;;  %v4645_v10 = vld [vmem:[#allocation16 + $0x120] sm:$0xff]  ;;  %v4669_v4 = vld [vmem:[#allocation16 + $0x1b0] sm:$0xff] }
 0x442   :  { %4871 = vmatprep.subr.mxu0 %v4784_v21  ;;  %4912 = vmatprep.subr.mxu1 %v4829_v13  ;;  %v4766_v59 = vunpack.c.h.bf16 %v4645_v10  ;;  %v4811_v13 = vunpack.c.h.bf16 %v4675_v44  ;;  %v4810_v28 = vunpack.c.l.bf16 %v4675_v44  ;;  %v4667_v18 = vld [vmem:[#allocation16 + $0x1a4] sm:$0xff]  ;;  %v8161_v44 = vld [vmem:[#allocation16 + $0x170] ss:$12 sps:$4 sm:$0xff]  }
 0x443   :  { %v3533_v37 = vrot.slane %v3532_v16, 2  ;;  %4872 = vmatpush2.msra.mxu0 %v4783_v29  ;;  %4913 = vmatpush1.msra.mxu1 %v4828_v32  ;;  %7171 = vrsqrt.f32 %v3568_v3  ;;  %v4765_v29 = vunpack.c.l.bf16 %v4645_v10  ;;  %v4799_v56 = vunpack.c.h.bf16 %v4667_v18  ;;  %v4633_v3 = vld [vmem:[#allocation16 + $0xd8] sm:$0xff]  ;;  %v4629_v10 = vld [vmem:[#allocation16 + $0xc0] sm:$0xff] }
 0x444   :  { %4914 = vmatprep.subr.mxu1 %v4826_v36  ;;  %7173 = vrsqrt.f32 %v3567_v8 }
 0x445   :  { %v3534_v25 = vadd.f32 %v3533_v37, %v3532_v16  ;;  %v4781_v16 = vunpack.c.h.bf16 %v4655_v27  ;;  %v4653_v37 = vld [vmem:[#allocation16 + $0x150] sm:$0xff]  ;;  %4915 = vmatpush1.msra.mxu1 %v4825_v38  ;;  %v4808_v38 = vunpack.c.h.bf16 %v4673_v31 }
 0x446   :  { %v4778_v40 = vunpack.c.h.bf16 %v4653_v37  ;;  %v4777_v42 = vunpack.c.l.bf16 %v4653_v37  ;;  %4916 = vmatprep.subr.mxu1 %v4823_v35  ;;  %v4643_v27 = vld [vmem:[#allocation16 + $0x114] sm:$0xff]  ;;  %v4807_v37 = vunpack.c.l.bf16 %v4673_v31  ;;  %v4788_v31 = vunpack.c.h.bf16 %v8161_v44 }
 0x447   :  { %v3535_v30 = vrot.slane %v3534_v25, 1  ;;  %4873 = vmatprep.subr.mxu0 %v4781_v16  ;;  %v4762_v32 = vunpack.c.l.bf16 %v4643_v27  ;;  %v4763_v16 = vunpack.c.h.bf16 %v4643_v27 }
 0x448   :  { %4874 = vmatpush2.msra.mxu0 %v4780_v34  ;;  %v4671_v34 = vld [vmem:[#allocation16 + $0x1bc] sm:$0xff] }
 0x449   :  { %v3536_v15 = vadd.f32 %v3535_v30, %v3534_v25  ;;  %4875 = vmatprep.subr.mxu0 %v4778_v40  ;;  %v4822_v30 = vunpack.c.l.bf16 %v4683_v41  ;;  %v4639_v41 = vld [vmem:[#allocation16 + $0xfc] sm:$0xff]  ;;  %v4804_v35 = vunpack.c.l.bf16 %v4671_v34  ;;  %v4805_v26 = vunpack.c.h.bf16 %v4671_v34 }
 0x44a   :  { %4876 = vmatpush2.msra.mxu0 %v4777_v42 }
 0x44b   :  { %v8157_v57 = vmul.f32 0.125, %v3536_v15  ;;  %v4820_v15 = vunpack.c.h.bf16 %v4681_v51  ;;  %4877 = vmatprep.subr.mxu0 %v4775_v48  ;;  %4917 = vmatpush1.msra.mxu1 %v4822_v30  ;;  %v4756_v48 = vunpack.c.l.bf16 %v4639_v41  ;;  %v4757_v51 = vunpack.c.h.bf16 %v4639_v41 }
 0x44c   :  { %4878 = vmatpush2.msra.mxu0 %v4774_v53  ;;  %v4635_v53 = vld [vmem:[#allocation16 + $0xe4] sm:$0xff] }
 0x44d   :  { %v3542_v19 = vsub.f32 %v8153_v58, %v8157_v57  ;;  %4918 = vmatprep.subr.mxu1 %v4820_v15  ;;  %4879 = vmatprep.subr.mxu0 %v4772_v17  ;;  %v4801_v15 = vunpack.c.l.bf16 %v4669_v4  ;;  %v4750_v7 = vunpack.c.l.bf16 %v4635_v53 }
 0x44e   :  { %4919 = vmatpush1.msra.mxu1 %v4819_v24  ;;  %4880 = vmatpush2.msra.mxu0 %v4771_v6  ;;  %v4665_v24 = vld [vmem:[#allocation16 + $0x198] sm:$0xff]  ;;  %v4751_v6 = vunpack.c.h.bf16 %v4635_v53 }
 0x44f   :  { %v3545_v23 = vmul.f32 %v3542_v19, %v3542_v19  ;;  %v4677_v19 = vld [vmem:[#allocation16 + $0x1e0] sm:$0xff]  ;;  %4920 = vmatprep.subr.mxu1 %v4817_v14  ;;  %4881 = vmatprep.subr.mxu0 %v4769_v54  ;;  %v4663_v14 = vld [vmem:[#allocation16 + $0x18c] sm:$0xff]  ;;  %v4796_v8 = vunpack.c.h.bf16 %v4665_v24  ;;  %v4795_v54 = vunpack.c.l.bf16 %v4665_v24 }
 0x450   :  { %v4814_v12 = vunpack.c.h.bf16 %v4677_v19  ;;  %4921 = vmatpush1.msra.mxu1 %v4816_v11  ;;  %v4813_v21 = vunpack.c.l.bf16 %v4677_v19  ;;  %4882 = vmatpush2.msra.mxu0 %v4768_v22  ;;  %v4631_v11 = vld [vmem:[#allocation16 + $0xcc] sm:$0xff]  ;;  %v4748_v19 = vunpack.c.h.bf16 %v4633_v3  ;;  %v4747_v22 = vunpack.c.l.bf16 %v4633_v3 }
 0x451   :  { %v3558_v33 = vrot.slane %v3545_v23, 4  ;;  %4883 = vmatprep.subr.mxu0 %v4766_v59  ;;  %v4745_v59 = vunpack.c.h.bf16 %v4631_v11 }
 0x452   :  { %4922 = vmatprep.subr.mxu1 %v4814_v12  ;;  %4884 = vmatpush2.msra.mxu0 %v4765_v29  ;;  %v4793_v12 = vunpack.c.h.bf16 %v4663_v14 }
 0x453   :  { %v3559_v25 = vadd.f32 %v3558_v33, %v3545_v23  ;;  %4923 = vmatpush1.msra.mxu1 %v4813_v21  ;;  %v4641_v33 = vld [vmem:[#allocation16 + $0x108] sm:$0xff]  ;;  %4885 = vmatprep.subr.mxu0 %v4763_v16  ;;  %v4792_v21 = vunpack.c.l.bf16 %v4663_v14  ;;  %v4741_v16 = vunpack.c.l.bf16 %v4629_v10 }
 0x454   :  { %4924 = vmatprep.subr.mxu1 %v4811_v13  ;;  %v4759_v40 = vunpack.c.l.bf16 %v4641_v33  ;;  %v4760_v42 = vunpack.c.h.bf16 %v4641_v33  ;;  %4886 = vmatpush2.msra.mxu0 %v4762_v32  ;;  %v7172_v13 = vpop.eup %7171 }
 0x455   :  { %v3560_v52 = vrot.slane %v3559_v25, 2  ;;  %4925 = vmatpush1.msra.mxu1 %v4810_v28  ;;  %v4742_v28 = vunpack.c.h.bf16 %v4629_v10  ;;  %v7174_v32 = vpop.eup %7173 }
 0x456   :  { %4926 = vmatprep.subr.mxu1 %v4808_v38  ;;  %4887 = vmatprep.subr.mxu0 %v4760_v42  ;;  %v3576_v33 = vcombine.low %v7174_v32, %v7172_v13 }
 0x457   :  { %v3561_v61 = vadd.f32 %v3560_v52, %v3559_v25  ;;  %v4637_v25 = vld [vmem:[#allocation16 + $0xf0] sm:$0xff]  ;;  %v4802_v52 = vunpack.c.h.bf16 %v4669_v4  ;;  %4927 = vmatpush1.msra.mxu1 %v4807_v37  ;;  %4888 = vmatpush2.msra.mxu0 %v4759_v40 }
 0x458   :  { %v4754_v39 = vunpack.c.h.bf16 %v4637_v25  ;;  %4928 = vmatprep.subr.mxu1 %v4805_v26  ;;  %v4753_v17 = vunpack.c.l.bf16 %v4637_v25  ;;  %4889 = vmatprep.subr.mxu0 %v4757_v51  ;;  %v3091_v40 = vld [vmem:[%s8484_s27] sm:$0x7] }
 0x459   :  { %v3562_v60 = vrot.slane %v3561_v61, 1  ;;  %4929 = vmatpush1.msra.mxu1 %v4804_v35  ;;  %4890 = vmatpush2.msra.mxu0 %v4756_v48 }
 0x45a   :  { %4930 = vmatprep.subr.mxu1 %v4802_v52  ;;  %4891 = vmatprep.subr.mxu0 %v4754_v39 }
 0x45b   :  { %v3563_v23 = vadd.f32 %v3562_v60, %v3561_v61  ;;  %v4798_v61 = vunpack.c.l.bf16 %v4667_v18  ;;  %4931 = vmatpush1.msra.mxu1 %v4801_v15  ;;  %v4661_v60 = vld [vmem:[#allocation16 + $0x180] sm:$0xff]  ;;  %4892 = vmatpush2.msra.mxu0 %v4753_v17 }
 0x45c   :  { %4932 = vmatprep.subr.mxu1 %v4799_v56  ;;  %4893 = vmatprep.subr.mxu0 %v4751_v6  ;;  %v4790_v29 = vunpack.c.h.bf16 %v4661_v60  ;;  %v4789_v27 = vunpack.c.l.bf16 %v4661_v60 }
 0x45d   :  { %v3566_v36 = vmul.f32 0.125, %v3563_v23  ;;  %4933 = vmatpush1.msra.mxu1 %v4798_v61  ;;  %4894 = vmatpush2.msra.mxu0 %v4750_v7  ;;  %v4744_v23 = vunpack.c.l.bf16 %v4631_v11 }
 0x45e   :  { %4934 = vmatprep.subr.mxu1 %v4796_v8  ;;  %4895 = vmatprep.subr.mxu0 %v4748_v19 }
 0x45f   :  { %v3569_v30 = vadd.f32 1e-05, %v3566_v36  ;;  %4935 = vmatpush1.msra.mxu1 %v4795_v54  ;;  %4896 = vmatpush2.msra.mxu0 %v4747_v22  ;;  %v3583_v36 = vrot.slane %v3576_v33, %v7834_v46 }
 0x460   :  { %4936 = vmatprep.subr.mxu1 %v4793_v12  ;;  %4897 = vmatprep.subr.mxu0 %v4745_v59 }
 0x461   :  { %7175 = vrsqrt.f32 %v3569_v30  ;;  %4937 = vmatpush1.msra.mxu1 %v4792_v21  ;;  %4898 = vmatpush2.msra.mxu0 %v4744_v23 }
 0x462   :  { %4938 = vmatprep.subr.mxu1 %v4790_v29  ;;  %4899 = vmatprep.subr.mxu0 %v4742_v28 }
 0x463   :  { %4939 = vmatpush1.msra.mxu1 %v4789_v27  ;;  %4900 = vmatpush2.msra.mxu0 %v4741_v16 }
 0x464   :  { %6676 = vmatprep.subr.mxu1 %v4788_v31  ;;  %7003 = vmatprep.subr.mxu0 %v7461_v0 }
 0x46e   :  { %v7176_v34 = vpop.eup %7175 }
 0x46f   :  { %v3590_v37 = vrot.slane %v7176_v34, %v7834_v46 }
 0x471   :  { %v3591_v38 = vcombine.low %v3583_v36, %v3590_v37 }
 0x473   :  { %v3598_v41 = vrot.slane %v3591_v38, %v7834_v46 }
 0x475   :  { %v3600_v4 = vmul.f32 %v3598_v41, %v3091_v40 }
 0x477   :  { %v3613_v25 = vrot.slane %v3600_v4, %v7844_v1  ;;  %v3605_v42 = vrot.slane %v3600_v4, %v7840_v62  ;;  %v8172_v35 = vrot.slane %v3600_v4, %v7842_v63 }
 0x479   :  { %v3650_v26 = vmul.f32 %v3613_v25, %v8153_v58  ;;  %v3619_v18 = vmul.f32 %v3613_v25, %v8157_v57  ;;  %v4055_v30 = vpop.f32.mrf.mxu0  ;;  %v3617_v48 = vmul.f32 %v3605_v42, %v8147_v5  ;;  %v3618_v51 = vmul.f32 %v8172_v35, %v8145_v50  ;;  %v3092_v50 = vld [vmem:[%s8485_s4] sm:$0x7] }
 0x47a   :  { %v3648_v60 = vmul.f32 %v3605_v42, %v8137_v20 }
 0x47b   :  { %v3984_v52 = vpop.f32.mrf.mxu1  ;;  %v3623_v53 = vcombine.low %v3617_v48, %v3618_v51  ;;  %v3637_v39 = vrot.slane %v3619_v18, %v7834_v46  ;;  %v4057_v24 = vpop.f32.mrf.mxu0 }
 0x47c   :  { %v8179_v15 = vadd.f32 %v4055_v30, %v3984_v52 }
 0x47d   :  { %v3986_v17 = vpop.f32.mrf.mxu1  ;;  %v3630_v56 = vrot.slane %v3623_v53, %v7834_v46 }
 0x47e   :  { %v4200_v58 = vrot.slane %v8179_v15, 4  ;;  %v8184_v57 = vadd.f32 %v4057_v24, %v3986_v17 }
 0x47f   :  { %v3638_v3 = vcombine.low %v3630_v56, %v3637_v39 }
 0x480   :  { %v4201_v5 = vadd.f32 %v4200_v58, %v8179_v15  ;;  %v4206_v61 = vrot.slane %v8184_v57, 4 }
 0x481   :  { %v3645_v6 = vrot.slane %v3638_v3, %v7834_v46 }
 0x482   :  { %v4202_v14 = vrot.slane %v4201_v5, 2  ;;  %v4207_v7 = vadd.f32 %v4206_v61, %v8184_v57 }
 0x483   :  { %v8191_v8 = vsub.f32 %v3092_v50, %v3645_v6 }
 0x484   :  { %v4208_v11 = vrot.slane %v4207_v7, 2  ;;  %v4203_v54 = vadd.f32 %v4202_v14, %v4201_v5 }
 0x485   :  { %v3663_v19 = vrot.slane %v8191_v8, %v7844_v1  ;;  %v3655_v22 = vrot.slane %v8191_v8, %v7840_v62 }
 0x486   :  { %v4209_v12 = vadd.f32 %v4208_v11, %v4207_v7  ;;  %v4204_v23 = vrot.slane %v4203_v54, 1 }
 0x487   :  { %v8198_v10 = vadd.f32 %v3663_v19, %v3650_v26  ;;  %v8200_v21 = vadd.f32 %v3655_v22, %v3648_v60 }
 0x488   :  { %v4210_v59 = vrot.slane %v4209_v12, 1  ;;  %v4205_v13 = vadd.f32 %v4204_v23, %v4203_v54 }
 0x48a   :  { %v4211_v29 = vadd.f32 %v4210_v59, %v4209_v12  ;;  %v4218_v28 = vmul.f32 0.125, %v4205_v13 }
 0x48c   :  { %v8202_v27 = vmul.f32 0.125, %v4211_v29  ;;  %v4221_v20 = vsub.f32 %v8179_v15, %v4218_v28 }
 0x48e   :  { %v4222_v32 = vsub.f32 %v8184_v57, %v8202_v27  ;;  %v4224_v33 = vmul.f32 %v4221_v20, %v4221_v20 }
 0x490   :  { %v4225_v16 = vmul.f32 %v4222_v32, %v4222_v32  ;;  %v4227_v40 = vrot.slane %v4224_v33, 4 }
 0x492   :  { %v4233_v36 = vrot.slane %v4225_v16, 4  ;;  %v4228_v26 = vadd.f32 %v4227_v40, %v4224_v33 }
 0x494   :  { %v4234_v25 = vadd.f32 %v4233_v36, %v4225_v16  ;;  %v4229_v51 = vrot.slane %v4228_v26, 2 }
 0x496   :  { %v4235_v30 = vrot.slane %v4234_v25, 2  ;;  %v4230_v24 = vadd.f32 %v4229_v51, %v4228_v26 }
 0x498   :  { %v4236_v53 = vadd.f32 %v4235_v30, %v4234_v25  ;;  %v4231_v3 = vrot.slane %v4230_v24, 1 }
 0x499   :  { %v6656_v31 = vpop.f32.mrf.mxu0 }
 0x49a   :  { %v4237_v56 = vrot.slane %v4236_v53, 1  ;;  %v4232_v6 = vadd.f32 %v4231_v3, %v4230_v24 }
 0x49b   :  { %v6657_v34 = vpop.f32.mrf.mxu0 }
 0x49c   :  { %v6658_v37 = vadd.f32 %v6657_v34, %v6656_v31  ;;  %v4196_v38 = vpop.f32.mrf.mxu1  ;;  %v4238_v61 = vadd.f32 %v4237_v56, %v4236_v53  ;;  %v4245_v54 = vmul.f32 0.125, %v4232_v6  ;;  %v4628_v6 = vld [vmem:[#allocation16 + $0xb0] ss:$12 sps:$4 sm:$0xff]  }
 0x49e   :  { %v4197_v41 = vadd.f32 %v6658_v37, %v4196_v38  ;;  %v7002_v4 = vpop.f32.mrf.mxu1  ;;  %v4246_v7 = vmul.f32 0.125, %v4238_v61  ;;  %v4248_v12 = vadd.f32 1e-05, %v4245_v54  ;;  %v3772_v37 = vld [vmem:[%s8486_s3] sm:$0x7] }
 0x4a0   :  { %v4212_v42 = vrot.slane %v4197_v41, 4  ;;  %v4249_v60 = vadd.f32 1e-05, %v4246_v7 }
 0x4a2   :  { %v4213_v18 = vadd.f32 %v4212_v42, %v4197_v41  ;;  %7177 = vrsqrt.f32 %v4249_v60  ;;  %v4740_v60 = vunpack.c.h.bf16 %v4628_v6 }
 0x4a3   :  { %7179 = vrsqrt.f32 %v4248_v12  ;;  %v4690_v12 = vld [vmem:[#allocation16 + $0xa4] ss:$396 sps:$4 sm:$0xff]  }
 0x4a4   :  { %v4214_v48 = vrot.slane %v4213_v18, 2 }
 0x4a6   :  { %v4215_v52 = vadd.f32 %v4214_v48, %v4213_v18 }
 0x4a8   :  { %v4216_v39 = vrot.slane %v4215_v52, 1 }
 0x4aa   :  { %v4217_v17 = vadd.f32 %v4216_v39, %v4215_v52  ;;  %v3773_v39 = vld [vmem:[#allocation13] sm:$0x7] }
 0x4ac   :  { %v4220_v58 = vmul.f32 0.125, %v4217_v17 }
 0x4ae   :  { %v4223_v5 = vsub.f32 %v4197_v41, %v4220_v58 }
 0x4af   :  { %v7178_v32 = vpop.eup %7177 }
 0x4b0   :  { %v4226_v50 = vmul.f32 %v4223_v5, %v4223_v5  ;;  %v7180_v20 = vpop.eup %7179 }
 0x4b1   :  { %v4257_v16 = vcombine.low %v7180_v20, %v7178_v32  ;;  %v4622_v32 = vld [vmem:[#allocation16 + $0x98] ss:$180 sps:$4 sm:$0xff]  }
 0x4b2   :  { %v4239_v14 = vrot.slane %v4226_v50, 4  ;;  %v4686_v20 = vld [vmem:[#allocation16 + $0x8c] ss:$396 sps:$4 sm:$0xff]  }
 0x4b3   :  { %v4264_v33 = vrot.slane %v4257_v16, %v7834_v46  ;;  %v4731_v16 = vunpack.c.l.bf16 %v4622_v32 }
 0x4b4   :  { %v4240_v11 = vadd.f32 %v4239_v14, %v4226_v50 }
 0x4b6   :  { %v4241_v19 = vrot.slane %v4240_v11, 2 }
 0x4b8   :  { %v4242_v22 = vadd.f32 %v4241_v19, %v4240_v11  ;;  %v4692_v19 = vld [vmem:[#allocation16 + $0x164] ss:$216 sps:$4 sm:$0xff]  }
 0x4ba   :  { %v4243_v59 = vrot.slane %v4242_v22, 1 }
 0x4bc   :  { %v4244_v23 = vadd.f32 %v4243_v59, %v4242_v22  ;;  %v4836_v59 = vunpack.c.h.bf16 %v4692_v19 }
 0x4be   :  { %v4247_v29 = vmul.f32 0.125, %v4244_v23  ;;  %v4737_v23 = vunpack.c.l.bf16 %v4628_v6 }
 0x4c0   :  { %v4250_v13 = vadd.f32 1e-05, %v4247_v29  ;;  %v4654_v29 = vld [vmem:[#allocation16 + $0x158] ss:$204 sps:$4 sm:$0xff]  }
 0x4c2   :  { %7181 = vrsqrt.f32 %v4250_v13  ;;  %v4782_v13 = vunpack.c.l.bf16 %v4692_v19  ;;  %v4670_v19 = vld [vmem:[#allocation16 + $0x2c] ss:$396 sps:$4 sm:$0xff]  }
 0x4cf   :  { %v7182_v31 = vpop.eup %7181 }
 0x4d0   :  { %v4271_v34 = vrot.slane %v7182_v31, %v7834_v46  ;;  %v4650_v31 = vld [vmem:[#allocation16 + $0x140] ss:$204 sps:$4 sm:$0xff]  }
 0x4d2   :  { %v4272_v36 = vcombine.low %v4264_v33, %v4271_v34  ;;  %v4776_v33 = vunpack.c.h.bf16 %v4622_v32  ;;  %v4618_v34 = vld [vmem:[#allocation16 + $0x80] ss:$180 sps:$4 sm:$0xff]  }
 0x4d4   :  { %v4279_v38 = vrot.slane %v4272_v36, %v7834_v46  ;;  %v4827_v36 = vunpack.c.h.bf16 %v4686_v20 }
 0x4d6   :  { %v4281_v40 = vmul.f32 %v4279_v38, %v3772_v37  ;;  %v4728_v37 = vunpack.c.l.bf16 %v4686_v20  ;;  %v4773_v38 = vunpack.c.l.bf16 %v4650_v31  ;;  %v4630_v20 = vld [vmem:[#allocation16 + $0xc8] ss:$204 sps:$4 sm:$0xff]  }
 0x4d8   :  { %v4294_v4 = vrot.slane %v4281_v40, %v7844_v1  ;;  %v4286_v25 = vrot.slane %v4281_v40, %v7840_v62  ;;  %v4290_v42 = vrot.slane %v4281_v40, %v7842_v63  ;;  %v4682_v40 = vld [vmem:[#allocation16 + $0x74] ss:$396 sps:$4 sm:$0xff]  }
 0x4da   :  { %v4300_v26 = vmul.f32 %v4294_v4, %v4220_v58  ;;  %v4298_v18 = vmul.f32 %v4286_v25, %v4218_v28  ;;  %v4299_v30 = vmul.f32 %v4290_v42, %v8202_v27  ;;  %v4331_v56 = vmul.f32 %v4294_v4, %v4197_v41 }
 0x4db   :  { %v4330_v3 = vmul.f32 %v4290_v42, %v8184_v57  ;;  %v4329_v28 = vmul.f32 %v4286_v25, %v8179_v15  ;;  %v4785_v15 = vunpack.c.l.bf16 %v8161_v44  ;;  %v4830_v44 = vunpack.c.h.bf16 %v4654_v29  ;;  %v4646_v42 = vld [vmem:[#allocation16 + $0x128] ss:$204 sps:$4 sm:$0xff]  }
 0x4dc   :  { %v4304_v48 = vcombine.low %v4298_v18, %v4299_v30  ;;  %v4318_v51 = vrot.slane %v4300_v26, %v7834_v46  ;;  %v4824_v4 = vunpack.c.h.bf16 %v4650_v31  ;;  %v4725_v25 = vunpack.c.l.bf16 %v4618_v34  ;;  %v4614_v18 = vld [vmem:[#allocation16 + $0x68] ss:$180 sps:$4 sm:$0xff]  }
 0x4dd   :  { %v4770_v26 = vunpack.c.h.bf16 %v4618_v34  ;;  %v4821_v30 = vunpack.c.h.bf16 %v4682_v40  ;;  %v4598_v31 = vld [vmem:[#allocation16 + $0x8] sm:$0xf] }
 0x4de   :  { %v4311_v52 = vrot.slane %v4304_v48, %v7834_v46  ;;  %v4722_v48 = vunpack.c.l.bf16 %v4682_v40  ;;  %v4695_v40 = vunpack.c.l.bf16 %v4598_v31 }
 0x4e0   :  { %v4319_v53 = vcombine.low %v4311_v52, %v4318_v51  ;;  %v4767_v51 = vunpack.c.l.bf16 %v4646_v42  ;;  %v4678_v52 = vld [vmem:[#allocation16 + $0x5c] ss:$396 sps:$4 sm:$0xff]  }
 0x4e2   :  { %v4326_v24 = vrot.slane %v4319_v53, %v7834_v46  ;;  %v4818_v53 = vunpack.c.h.bf16 %v4646_v42  ;;  %v4385_v42 = vld [vmem:[#allocation15 + $0xa8] sm:$0xff] }
 0x4e4   :  { %v4328_v17 = vsub.f32 %v3773_v39, %v4326_v24  ;;  %v4719_v39 = vunpack.c.l.bf16 %v4614_v18  ;;  %v4642_v24 = vld [vmem:[#allocation16 + $0x110] ss:$204 sps:$4 sm:$0xff]  }
 0x4e6   :  { %v4340_v5 = vrot.slane %v4328_v17, %v7842_v63  ;;  %v4344_v58 = vrot.slane %v4328_v17, %v7844_v1  ;;  %v4336_v27 = vrot.slane %v4328_v17, %v7840_v62  ;;  %v4764_v17 = vunpack.c.h.bf16 %v4614_v18 }
 0x4e8   :  { %v4349_v61 = vadd.f32 %v4340_v5, %v4330_v3  ;;  %v4350_v50 = vadd.f32 %v4344_v58, %v4331_v56  ;;  %v4348_v14 = vadd.f32 %v4336_v27, %v4329_v28  ;;  %v4610_v56 = vld [vmem:[#allocation16 + $0x50] ss:$180 sps:$4 sm:$0xff]   ;;  %v4815_v3 = vunpack.c.h.bf16 %v4678_v52 }
 0x4e9   :  { %v4716_v5 = vunpack.c.l.bf16 %v4678_v52  ;;  %v4761_v58 = vunpack.c.l.bf16 %v4642_v24  ;;  %v4674_v28 = vld [vmem:[#allocation16 + $0x44] ss:$396 sps:$4 sm:$0xff]   ;;  %v4812_v27 = vunpack.c.h.bf16 %v4642_v24  ;;  %v4758_v6 = vunpack.c.h.bf16 %v4610_v56 }
 0x4ea   :  { %v4352_v7 = vmax.f32 %v4349_v61, 0.0  ;;  %v4353_v11 = vmax.f32 %v4350_v50, 0.0  ;;  %v4351_v54 = vmax.f32 %v4348_v14, 0.0  ;;  %v4713_v61 = vunpack.c.l.bf16 %v4610_v56  ;;  %v4638_v50 = vld [vmem:[#allocation16 + $0xf8] ss:$204 sps:$4 sm:$0xff]   ;;  %v4381_v56 = vld [vmem:[#allocation15 + $0x90] sm:$0xff] }
 0x4eb   :  { %v4606_v14 = vld [vmem:[#allocation16 + $0x38] ss:$180 sps:$4 sm:$0xff]   ;;  %v4496_v52 = vunpack.c.h.bf16 %v4385_v42  ;;  %v4495_v24 = vunpack.c.l.bf16 %v4385_v42 }
 0x4ec   :  { %v4355_v41 = vadd.f32 %v4352_v7, %v8030_v43  ;;  %v8225_v57 = vadd.f32 %v4353_v11, %v8033_v45  ;;  %v8228_v22 = vadd.f32 %v4351_v54, %v8037_v49  ;;  %v4833_v43 = vunpack.c.h.bf16 %v4690_v12 }
 0x4ed   :  { %v4734_v45 = vunpack.c.l.bf16 %v4690_v12  ;;  %v4779_v49 = vunpack.c.l.bf16 %v4654_v29  ;;  %v4809_v7 = vunpack.c.h.bf16 %v4674_v28  ;;  %v4710_v11 = vunpack.c.l.bf16 %v4674_v28  ;;  %v4445_v28 = vld [vmem:[#allocation15 + $0x210] sm:$0xff] }
 0x4ee   :  { %4901 = vmatprep.mubr.f32.mxu0 %v4355_v41  ;;  %4973 = vmatmul.mubr.f32.vlgmr.msra.gmra.mxu1 %v8225_v57  ;;  %v4755_v54 = vunpack.c.l.bf16 %v4638_v50  ;;  %v4752_v12 = vunpack.c.h.bf16 %v4606_v14  ;;  %v4704_v29 = vunpack.c.l.bf16 %v4670_v19 }
 0x4ef   :  { %6677 = vmatpush3.msra.mxu1 %v4740_v60  ;;  %4902 = vmatmul.mubr.f32.vlgmr.msra.gmra.mxu0 %v8228_v22  ;;  %v4806_v60 = vunpack.c.h.bf16 %v4638_v50 }
 0x4f0   :  { %6678 = vmatprep.subr.mxu1 %v4785_v15  ;;  %5043 = vmatprep.mubr.f32.mxu1 %v4355_v41  ;;  %v4707_v41 = vunpack.c.l.bf16 %v4606_v14  ;;  %v4634_v15 = vld [vmem:[#allocation16 + $0xe0] ss:$204 sps:$4 sm:$0xff]   ;;  %v4443_v14 = vld [vmem:[#allocation15 + $0x204] sm:$0xff] }
 0x4f1   :  { %7004 = vmatpush3.msra.mxu0 %v4836_v59  ;;  %6679 = vmatpush3.msra.mxu1 %v4737_v23  ;;  %v4602_v59 = vld [vmem:[#allocation16 + $0x20] ss:$180 sps:$4 sm:$0xff]   ;;  %v4803_v23 = vunpack.c.h.bf16 %v4670_v19  ;;  %v4749_v32 = vunpack.c.l.bf16 %v4634_v15 }
 0x4f2   :  { %7005 = vmatprep.subr.mxu0 %v7461_v0  ;;  %6680 = vmatprep.subr.mxu1 %v4782_v13  ;;  %v3659_v13 = vrot.slane %v8191_v8, %v7842_v63 }
 0x4f3   :  { %7006 = vmatpush3.msra.mxu0 %v4833_v43  ;;  %6681 = vmatpush3.msra.mxu1 %v4734_v45  ;;  %v4666_v43 = vld [vmem:[#allocation16 + $0x14] ss:$396 sps:$4 sm:$0xff]   ;;  %v4800_v45 = vunpack.c.h.bf16 %v4634_v15  ;;  %v4583_v15 = vunpack.c.h.bf16 %v4443_v14 }
 0x4f4   :  { %7007 = vmatprep.subr.mxu0 %v7461_v0  ;;  %6682 = vmatprep.subr.mxu1 %v4779_v49  ;;  %v4701_v49 = vunpack.c.l.bf16 %v4602_v59  ;;  %v4797_v8 = vunpack.c.h.bf16 %v4666_v43 }
 0x4f5   :  { %7008 = vmatpush3.msra.mxu0 %v4830_v44  ;;  %6683 = vmatpush3.msra.mxu1 %v4731_v16  ;;  %v3649_v44 = vmul.f32 %v8172_v35, %v8140_v47  ;;  %v4746_v16 = vunpack.c.h.bf16 %v4602_v59  ;;  %v4387_v47 = vld [vmem:[#allocation15 + $0xb4] sm:$0xff]  ;;  %v4582_v59 = vunpack.c.l.bf16 %v4443_v14 }
 0x4f6   :  { %7009 = vmatprep.subr.mxu0 %v7461_v0  ;;  %6684 = vmatprep.subr.mxu1 %v4776_v33  ;;  %v4698_v33 = vunpack.c.l.bf16 %v4666_v43  ;;  %v4498_v18 = vunpack.c.l.bf16 %v4387_v47  ;;  %v4425_v14 = vld [vmem:[#allocation15 + $0x198] sm:$0xff] }
 0x4f7   :  { %7010 = vmatpush3.msra.mxu0 %v4827_v36  ;;  %6685 = vmatpush3.msra.mxu1 %v4728_v37  ;;  %v3668_v34 = vadd.f32 %v3659_v13, %v3649_v44  ;;  %v4743_v36 = vunpack.c.l.bf16 %v4630_v20  ;;  %v4662_v37 = vld [vmem:[#allocation16 + $0x188] sm:$0xf]  ;;  %v4373_v13 = vld [vmem:[#allocation15 + $0x60] sm:$0xff]  ;;  %v4371_v44 = vld [vmem:[#allocation15 + $0x54] sm:$0xff] }
 0x4f8   :  { %7011 = vmatprep.subr.mxu0 %v7461_v0  ;;  %6686 = vmatprep.subr.mxu1 %v4773_v38  ;;  %v4794_v38 = vunpack.c.h.bf16 %v4630_v20  ;;  %v4791_v35 = vunpack.c.l.bf16 %v4662_v37  ;;  %v4437_v20 = vld [vmem:[#allocation15 + $0x1e0] sm:$0xff]  ;;  %v4478_v31 = vunpack.c.h.bf16 %v4373_v13 }
 0x4f9   :  { %7012 = vmatpush3.msra.mxu0 %v4824_v4  ;;  %6687 = vmatpush3.msra.mxu1 %v4725_v25  ;;  %v3671_v4 = vmax.f32 %v3668_v34, 0.0  ;;  %v4451_v25 = vld [vmem:[#allocation15 + $0x234] sm:$0xff]  ;;  %v4574_v37 = vunpack.c.h.bf16 %v4437_v20 }
 0x4fa   :  { %7013 = vmatprep.subr.mxu0 %v7461_v0  ;;  %6688 = vmatprep.subr.mxu1 %v4770_v26  ;;  %v4499_v26 = vunpack.c.h.bf16 %v4387_v47  ;;  %v4435_v34 = vld [vmem:[#allocation15 + $0x1d4] sm:$0xff]  ;;  %v4474_v47 = vunpack.c.l.bf16 %v4371_v44 }
 0x4fb   :  { %7014 = vmatpush3.msra.mxu0 %v4821_v30  ;;  %6689 = vmatpush3.msra.mxu1 %v4722_v48  ;;  %v4449_v30 = vld [vmem:[#allocation15 + $0x228] sm:$0xff]  ;;  %v4383_v48 = vld [vmem:[#allocation15 + $0x9c] sm:$0xff] }
 0x4fc   :  { %7015 = vmatprep.subr.mxu0 %v7461_v0  ;;  %6690 = vmatprep.subr.mxu1 %v4767_v51  ;;  %v4595_v51 = vunpack.c.h.bf16 %v4451_v25 }
 0x4fd   :  { %7016 = vmatpush3.msra.mxu0 %v4818_v53  ;;  %6691 = vmatpush3.msra.mxu1 %v4719_v39  ;;  %v8256_v53 = vadd.f32 %v3671_v4, %v8103_v9  ;;  %v4594_v39 = vunpack.c.l.bf16 %v4451_v25  ;;  %v4367_v4 = vld [vmem:[#allocation15 + $0x3c] sm:$0xff]  ;;  %v4571_v25 = vunpack.c.h.bf16 %v4435_v34 }
 0x4fe   :  { %7017 = vmatprep.subr.mxu0 %v7461_v0  ;;  %6692 = vmatprep.subr.mxu1 %v4764_v17  ;;  %v4447_v17 = vld [vmem:[#allocation15 + $0x21c] sm:$0xff] }
 0x4ff   :  { %7018 = vmatpush3.msra.mxu0 %v4815_v3  ;;  %6693 = vmatpush3.msra.mxu1 %v4716_v5  ;;  %v4592_v3 = vunpack.c.h.bf16 %v4449_v30  ;;  %v4493_v5 = vunpack.c.h.bf16 %v4383_v48  ;;  %v4589_v9 = vunpack.c.h.bf16 %v4447_v17  ;;  %v4588_v50 = vunpack.c.l.bf16 %v4447_v17  ;;  %v4429_v17 = vld [vmem:[#allocation15 + $0x1b0] sm:$0xff] }
 0x500   :  { %7019 = vmatprep.subr.mxu0 %v7461_v0  ;;  %6694 = vmatprep.subr.mxu1 %v4761_v58  ;;  %v4492_v58 = vunpack.c.l.bf16 %v4383_v48  ;;  %v4365_v48 = vld [vmem:[#allocation15 + $0x30] sm:$0xff] }
 0x501   :  { %7020 = vmatpush3.msra.mxu0 %v4812_v27  ;;  %6695 = vmatpush3.msra.mxu1 %v4713_v61  ;;  %v4379_v27 = vld [vmem:[#allocation15 + $0x84] sm:$0xff]  ;;  %v4490_v61 = vunpack.c.h.bf16 %v4381_v56 }
 0x502   :  { %7021 = vmatprep.subr.mxu0 %v7461_v0  ;;  %6696 = vmatprep.subr.mxu1 %v4758_v6  ;;  %v4489_v6 = vunpack.c.l.bf16 %v4381_v56  ;;  %v4486_v19 = vunpack.c.l.bf16 %v4379_v27  ;;  %v4363_v56 = vld [vmem:[#allocation15 + $0x24] sm:$0xff] }
 0x503   :  { %7022 = vmatpush3.msra.mxu0 %v4809_v7  ;;  %6697 = vmatpush3.msra.mxu1 %v4710_v11  ;;  %v4377_v7 = vld [vmem:[#allocation15 + $0x78] sm:$0xff]  ;;  %v4487_v11 = vunpack.c.h.bf16 %v4379_v27 }
 0x504   :  { %7023 = vmatprep.subr.mxu0 %v7461_v0  ;;  %6698 = vmatprep.subr.mxu1 %v4755_v54  ;;  %v4585_v54 = vunpack.c.l.bf16 %v4445_v28  ;;  %v4361_v27 = vld [vmem:[#allocation15 + $0x18] sm:$0xff] }
 0x505   :  { %7024 = vmatpush3.msra.mxu0 %v4806_v60  ;;  %6699 = vmatpush3.msra.mxu1 %v4707_v41  ;;  %v4441_v60 = vld [vmem:[#allocation15 + $0x1f8] sm:$0xff]  ;;  %v4375_v41 = vld [vmem:[#allocation15 + $0x6c] sm:$0xff] }
 0x506   :  { %7025 = vmatprep.subr.mxu0 %v7461_v0  ;;  %6700 = vmatprep.subr.mxu1 %v4752_v12  ;;  %v4484_v12 = vunpack.c.h.bf16 %v4377_v7  ;;  %v4481_v43 = vunpack.c.h.bf16 %v4375_v41 }
 0x507   :  { %7026 = vmatpush3.msra.mxu0 %v4803_v23  ;;  %6701 = vmatpush3.msra.mxu1 %v4704_v29  ;;  %v4483_v23 = vunpack.c.l.bf16 %v4377_v7  ;;  %v4439_v29 = vld [vmem:[#allocation15 + $0x1ec] sm:$0xff] }
 0x508   :  { %7027 = vmatprep.subr.mxu0 %v7461_v0  ;;  %6702 = vmatprep.subr.mxu1 %v4749_v32  ;;  %v4580_v32 = vunpack.c.h.bf16 %v4441_v60  ;;  %v4359_v7 = vld [vmem:[#allocation15 + $0xc] sm:$0xff] }
 0x509   :  { %7028 = vmatpush3.msra.mxu0 %v4800_v45  ;;  %6703 = vmatpush3.msra.mxu1 %v4701_v49  ;;  %v4579_v45 = vunpack.c.l.bf16 %v4441_v60  ;;  %v4480_v49 = vunpack.c.l.bf16 %v4375_v41  ;;  %v4423_v60 = vld [vmem:[#allocation15 + $0x18c] sm:$0xff]  ;;  %v4357_v41 = vld [vmem:[#allocation15] sm:$0xff] }
 0x50a   :  { %7029 = vmatprep.subr.mxu0 %v7461_v0  ;;  %6704 = vmatprep.subr.mxu1 %v4746_v16  ;;  %v4577_v16 = vunpack.c.h.bf16 %v4439_v29 }
 0x50b   :  { %7030 = vmatpush3.msra.mxu0 %v4797_v8  ;;  %6705 = vmatpush3.msra.mxu1 %v4698_v33  ;;  %v4576_v8 = vunpack.c.l.bf16 %v4439_v29  ;;  %v4477_v33 = vunpack.c.l.bf16 %v4373_v13  ;;  %v4421_v29 = vld [vmem:[#allocation15 + $0x180] sm:$0xff]  ;;  %v4419_v13 = vld [vmem:[#allocation15 + $0x174] sm:$0xff] }
 0x50c   :  { %7031 = vmatprep.subr.mxu0 %v7461_v0  ;;  %6706 = vmatprep.subr.mxu1 %v4743_v36  ;;  %v4369_v36 = vld [vmem:[#allocation15 + $0x48] sm:$0xff] }
 0x50d   :  { %7032 = vmatpush3.msra.mxu0 %v4794_v38  ;;  %6707 = vmatpush3.msra.mxu1 %v4695_v40  ;;  %v4475_v38 = vunpack.c.h.bf16 %v4371_v44  ;;  %v4573_v40 = vunpack.c.l.bf16 %v4437_v20  ;;  %v4472_v42 = vunpack.c.h.bf16 %v4369_v36  ;;  %v4550_v20 = vunpack.c.h.bf16 %v4421_v29 }
 0x50e   :  { %7033 = vmatprep.subr.mxu0 %v7461_v0  ;;  %5044 = vmatmul.mubr.f32.vlgmr.msra.gmra.mxu1 %v8228_v22  ;;  %v4591_v22 = vunpack.c.l.bf16 %v4449_v30  ;;  %v4431_v30 = vld [vmem:[#allocation15 + $0x1bc] sm:$0xff]  ;;  %v4547_v44 = vunpack.c.h.bf16 %v4419_v13 }
 0x50f   :  { %7034 = vmatpush3.msra.mxu0 %v4791_v35  ;;  %7035 = vmatprep.mubr.msk.f32.mxu0 %vm7462_vm0, %v7461_v0  ;;  %v4433_v35 = vld [vmem:[#allocation15 + $0x1c8] sm:$0xff] }
 0x510   :  { %5119 = vmatprep.subr.mxu1 %v4499_v26  ;;  %7036 = vmatmul.mubr.f32.vlgmr.msra.gmra.mxu0 %v8225_v57  ;;  %v4586_v57 = vunpack.c.h.bf16 %v4445_v28  ;;  %v4570_v26 = vunpack.c.l.bf16 %v4435_v34  ;;  %v4427_v28 = vld [vmem:[#allocation15 + $0x1a4] sm:$0xff]  ;;  %v4388_v34 = vld [vmem:[#allocation15 + $0xb0] ss:$12 sps:$4 sm:$0xff]  }
 0x511   :  { %5120 = vmatpush1.msra.mxu1 %v4498_v18  ;;  %5183 = vmatprep.mubr.f32.mxu1 %v8256_v53  ;;  %v4471_v18 = vunpack.c.l.bf16 %v4369_v36  ;;  %v4546_v36 = vunpack.c.l.bf16 %v4419_v13  ;;  %v4401_v13 = vld [vmem:[#allocation15 + $0x108] sm:$0xff] }
 0x512   :  { %5190 = vmatprep.subr.mxu0 %v4595_v51  ;;  %5121 = vmatprep.subr.mxu1 %v4496_v52  ;;  %v4568_v51 = vunpack.c.h.bf16 %v4433_v35  ;;  %v4469_v52 = vunpack.c.h.bf16 %v4367_v4 }
 0x513   :  { %5191 = vmatpush1.msra.mxu0 %v4594_v39  ;;  %5122 = vmatpush1.msra.mxu1 %v4495_v24  ;;  %v4567_v39 = vunpack.c.l.bf16 %v4433_v35  ;;  %v4468_v24 = vunpack.c.l.bf16 %v4367_v4  ;;  %v4416_v35 = vld [vmem:[#allocation15 + $0x158] ss:$12 sps:$4 sm:$0xff]  }
 0x514   :  { %5192 = vmatprep.subr.mxu0 %v4592_v3  ;;  %5123 = vmatprep.subr.mxu1 %v4493_v5  ;;  %v4565_v3 = vunpack.c.h.bf16 %v4431_v30  ;;  %v4466_v5 = vunpack.c.h.bf16 %v4365_v48 }
 0x515   :  { %5193 = vmatpush1.msra.mxu0 %v4591_v22  ;;  %5124 = vmatpush1.msra.mxu1 %v4492_v58  ;;  %v4564_v22 = vunpack.c.l.bf16 %v4431_v30  ;;  %v4465_v58 = vunpack.c.l.bf16 %v4365_v48  ;;  %v4497_v30 = vunpack.c.l.bf16 %v4388_v34 }
 0x516   :  { %5194 = vmatprep.subr.mxu0 %v4589_v9  ;;  %5125 = vmatprep.subr.mxu1 %v4490_v61  ;;  %v4562_v9 = vunpack.c.h.bf16 %v4429_v17  ;;  %v4463_v61 = vunpack.c.h.bf16 %v4363_v56 }
 0x517   :  { %5195 = vmatpush1.msra.mxu0 %v4588_v50  ;;  %5126 = vmatpush1.msra.mxu1 %v4489_v6  ;;  %v4561_v50 = vunpack.c.l.bf16 %v4429_v17  ;;  %v4462_v6 = vunpack.c.l.bf16 %v4363_v56  ;;  %v4539_v56 = vunpack.c.l.bf16 %v4416_v35 }
 0x518   :  { %5196 = vmatprep.subr.mxu0 %v4586_v57  ;;  %5127 = vmatprep.subr.mxu1 %v4487_v11  ;;  %v4559_v57 = vunpack.c.h.bf16 %v4427_v28  ;;  %v4460_v11 = vunpack.c.h.bf16 %v4361_v27 }
 0x519   :  { %5197 = vmatpush1.msra.mxu0 %v4585_v54  ;;  %5128 = vmatpush1.msra.mxu1 %v4486_v19  ;;  %v4558_v54 = vunpack.c.l.bf16 %v4427_v28  ;;  %v4459_v19 = vunpack.c.l.bf16 %v4361_v27 }
 0x51a   :  { %5198 = vmatprep.subr.mxu0 %v4583_v15  ;;  %5129 = vmatprep.subr.mxu1 %v4484_v12  ;;  %v4556_v15 = vunpack.c.h.bf16 %v4425_v14  ;;  %v4457_v12 = vunpack.c.h.bf16 %v4359_v7 }
 0x51b   :  { %5199 = vmatpush1.msra.mxu0 %v4582_v59  ;;  %5130 = vmatpush1.msra.mxu1 %v4483_v23  ;;  %v4555_v59 = vunpack.c.l.bf16 %v4425_v14  ;;  %v4456_v23 = vunpack.c.l.bf16 %v4359_v7  ;;  %v4405_v7 = vld [vmem:[#allocation15 + $0x120] sm:$0xff] }
 0x51c   :  { %5200 = vmatprep.subr.mxu0 %v4580_v32  ;;  %5131 = vmatprep.subr.mxu1 %v4481_v43  ;;  %v4553_v32 = vunpack.c.h.bf16 %v4423_v60  ;;  %v4454_v43 = vunpack.c.h.bf16 %v4357_v41 }
 0x51d   :  { %5201 = vmatpush1.msra.mxu0 %v4579_v45  ;;  %5132 = vmatpush1.msra.mxu1 %v4480_v49  ;;  %v4552_v45 = vunpack.c.l.bf16 %v4423_v60  ;;  %v4453_v49 = vunpack.c.l.bf16 %v4357_v41  ;;  %v4403_v41 = vld [vmem:[#allocation15 + $0x114] sm:$0xff] }
 0x51e   :  { %5202 = vmatprep.subr.mxu0 %v4577_v16  ;;  %5133 = vmatprep.subr.mxu1 %v4478_v31  ;;  %v3672_v16 = vmax.f32 %v8198_v10, 0.0  ;;  %v4420_v31 = vld [vmem:[#allocation15 + $0x170] ss:$12 sps:$4 sm:$0xff]   ;;  %v4500_v10 = vunpack.c.h.bf16 %v4388_v34 }
 0x51f   :  { %5203 = vmatpush1.msra.mxu0 %v4576_v8  ;;  %5134 = vmatpush1.msra.mxu1 %v4477_v33  ;;  %v4417_v8 = vld [vmem:[#allocation15 + $0x168] sm:$0xff]  ;;  %v4549_v33 = vunpack.c.l.bf16 %v4421_v29 }
 0x520   :  { %5204 = vmatprep.subr.mxu0 %v4574_v37  ;;  %5135 = vmatprep.subr.mxu1 %v4475_v38  ;;  %v4548_v37 = vunpack.c.h.bf16 %v4420_v31  ;;  %v4544_v38 = vunpack.c.h.bf16 %v4417_v8  ;;  %v4543_v4 = vunpack.c.l.bf16 %v4417_v8  ;;  %v4400_v8 = vld [vmem:[#allocation15 + $0xf8] ss:$12 sps:$4 sm:$0xff]  }
 0x521   :  { %5205 = vmatpush1.msra.mxu0 %v4573_v40  ;;  %5136 = vmatpush1.msra.mxu1 %v4474_v47  ;;  %v4415_v40 = vld [vmem:[#allocation15 + $0x15c] sm:$0xff]  ;;  %v8262_v47 = vadd.f32 %v3672_v16, %v8106_v2  ;;  %v4411_v2 = vld [vmem:[#allocation15 + $0x144] sm:$0xff]  ;;  %v4520_v16 = vunpack.c.h.bf16 %v4401_v13 }
 0x522   :  { %5206 = vmatprep.subr.mxu0 %v4571_v25  ;;  %5137 = vmatprep.subr.mxu1 %v4472_v42  ;;  %v4545_v25 = vunpack.c.l.bf16 %v4420_v31  ;;  %v4413_v42 = vld [vmem:[#allocation15 + $0x150] sm:$0xff]  ;;  %v4540_v48 = vunpack.c.l.bf16 %v4415_v40  ;;  %v4534_v28 = vunpack.c.l.bf16 %v4411_v2 }
 0x523   :  { %5207 = vmatpush1.msra.mxu0 %v4570_v26  ;;  %5138 = vmatpush1.msra.mxu1 %v4471_v18  ;;  %v4384_v26 = vld [vmem:[#allocation15 + $0x98] ss:$12 sps:$4 sm:$0xff]   ;;  %v4541_v18 = vunpack.c.h.bf16 %v4415_v40  ;;  %v4537_v17 = vunpack.c.l.bf16 %v4413_v42 }
 0x524   :  { %5208 = vmatprep.subr.mxu0 %v4568_v51  ;;  %5139 = vmatprep.subr.mxu1 %v4469_v52  ;;  %v4542_v51 = vunpack.c.h.bf16 %v4416_v35  ;;  %v4538_v52 = vunpack.c.h.bf16 %v4413_v42  ;;  %v4518_v35 = vunpack.c.h.bf16 %v4400_v8 }
 0x525   :  { %5209 = vmatpush1.msra.mxu0 %v4567_v39  ;;  %5140 = vmatpush1.msra.mxu1 %v4468_v24  ;;  %v4494_v39 = vunpack.c.h.bf16 %v4384_v26  ;;  %v4412_v24 = vld [vmem:[#allocation15 + $0x140] ss:$12 sps:$4 sm:$0xff]  }
 0x526   :  { %5210 = vmatprep.subr.mxu0 %v4565_v3  ;;  %5141 = vmatprep.subr.mxu1 %v4466_v5  ;;  %v4409_v3 = vld [vmem:[#allocation15 + $0x138] sm:$0xff]  ;;  %v4380_v5 = vld [vmem:[#allocation15 + $0x80] ss:$12 sps:$4 sm:$0xff]   ;;  %v4536_v27 = vunpack.c.h.bf16 %v4412_v24  ;;  %v4533_v14 = vunpack.c.l.bf16 %v4412_v24 }
 0x527   :  { %5211 = vmatpush1.msra.mxu0 %v4564_v22  ;;  %5142 = vmatpush1.msra.mxu1 %v4465_v58  ;;  %v4535_v22 = vunpack.c.h.bf16 %v4411_v2  ;;  %v4491_v58 = vunpack.c.l.bf16 %v4384_v26  ;;  %v4396_v26 = vld [vmem:[#allocation15 + $0xe0] ss:$12 sps:$4 sm:$0xff]  }
 0x528   :  { %5212 = vmatprep.subr.mxu0 %v4562_v9  ;;  %5143 = vmatprep.subr.mxu1 %v4463_v61  ;;  %v4407_v9 = vld [vmem:[#allocation15 + $0x12c] sm:$0xff]  ;;  %v4488_v61 = vunpack.c.h.bf16 %v4380_v5  ;;  %v4512_v24 = vunpack.c.h.bf16 %v4396_v26 }
 0x529   :  { %5213 = vmatpush1.msra.mxu0 %v4561_v50  ;;  %5144 = vmatpush1.msra.mxu1 %v4462_v6  ;;  %v4408_v50 = vld [vmem:[#allocation15 + $0x128] ss:$12 sps:$4 sm:$0xff]   ;;  %v4531_v6 = vunpack.c.l.bf16 %v4409_v3 }
 0x52a   :  { %5214 = vmatprep.subr.mxu0 %v4559_v57  ;;  %5145 = vmatprep.subr.mxu1 %v4460_v11  ;;  %v4376_v57 = vld [vmem:[#allocation15 + $0x68] ss:$12 sps:$4 sm:$0xff]   ;;  %v4529_v11 = vunpack.c.h.bf16 %v4407_v9  ;;  %v4530_v60 = vunpack.c.h.bf16 %v4408_v50  ;;  %v4527_v29 = vunpack.c.l.bf16 %v4408_v50 }
 0x52b   :  { %5215 = vmatpush1.msra.mxu0 %v4558_v54  ;;  %5146 = vmatpush1.msra.mxu1 %v4459_v19  ;;  %v4485_v54 = vunpack.c.l.bf16 %v4380_v5  ;;  %v4528_v19 = vunpack.c.l.bf16 %v4407_v9  ;;  %v4392_v5 = vld [vmem:[#allocation15 + $0xc8] ss:$12 sps:$4 sm:$0xff]  }
 0x52c   :  { %5216 = vmatprep.subr.mxu0 %v4556_v15  ;;  %5147 = vmatprep.subr.mxu1 %v4457_v12  ;;  %v4526_v15 = vunpack.c.h.bf16 %v4405_v7  ;;  %v4482_v12 = vunpack.c.h.bf16 %v4376_v57  ;;  %v4506_v50 = vunpack.c.h.bf16 %v4392_v5 }
 0x52d   :  { %5217 = vmatpush1.msra.mxu0 %v4555_v59  ;;  %5148 = vmatpush1.msra.mxu1 %v4456_v23  ;;  %v4404_v59 = vld [vmem:[#allocation15 + $0x110] ss:$12 sps:$4 sm:$0xff]   ;;  %v4525_v23 = vunpack.c.l.bf16 %v4405_v7  ;;  %v3670_v7 = vmax.f32 %v8200_v21, 0.0 }
 0x52e   :  { %5218 = vmatprep.subr.mxu0 %v4553_v32  ;;  %5149 = vmatprep.subr.mxu1 %v4454_v43  ;;  %v4372_v32 = vld [vmem:[#allocation15 + $0x50] ss:$12 sps:$4 sm:$0xff]   ;;  %v4523_v43 = vunpack.c.h.bf16 %v4403_v41  ;;  %v4521_v34 = vunpack.c.l.bf16 %v4404_v59 }
 0x52f   :  { %5219 = vmatpush1.msra.mxu0 %v4552_v45  ;;  %5150 = vmatpush1.msra.mxu1 %v4453_v49  ;;  %v4479_v45 = vunpack.c.l.bf16 %v4376_v57  ;;  %v4522_v49 = vunpack.c.l.bf16 %v4403_v41  ;;  %v4476_v31 = vunpack.c.h.bf16 %v4372_v32  ;;  %v4473_v40 = vunpack.c.l.bf16 %v4372_v32 }
 0x530   :  { %5220 = vmatprep.subr.mxu0 %v4550_v20  ;;  %5151 = vmatprep.subr.mxu1 %v4547_v44  ;;  %v4524_v20 = vunpack.c.h.bf16 %v4404_v59  ;;  %v4399_v44 = vld [vmem:[#allocation15 + $0xfc] sm:$0xff] }
 0x531   :  { %5221 = vmatpush1.msra.mxu0 %v4549_v33  ;;  %5254 = vmatprep.mubr.f32.mxu0 %v7461_v0  ;;  %v4519_v33 = vunpack.c.l.bf16 %v4401_v13  ;;  %v4444_v59 = vld [vmem:[#allocation15 + $0x200] ss:$12 sps:$4 sm:$0xff]  }
 0x532   :  { %5152 = vmatpush2.msra.mxu1 %v4546_v36  ;;  %5255 = vmatmul.mubr.f32.vlgmr.msra.gmra.mxu0 %v8262_v47  ;;  %v4397_v36 = vld [vmem:[#allocation15 + $0xf0] sm:$0xff]  ;;  %v4581_v13 = vunpack.c.l.bf16 %v4444_v59 }
 0x533   :  { %6728 = vmatprep.subr.mxu0 %v4548_v37  ;;  %5153 = vmatprep.subr.mxu1 %v4544_v38  ;;  %v4368_v37 = vld [vmem:[#allocation15 + $0x38] ss:$12 sps:$4 sm:$0xff]   ;;  %v4517_v38 = vunpack.c.h.bf16 %v4399_v44 }
 0x534   :  { %6729 = vmatpush3.msra.mxu0 %v4500_v10  ;;  %5325 = vmatprep.mubr.f32.mxu0 %v8256_v53  ;;  %v4532_v53 = vunpack.c.h.bf16 %v4409_v3  ;;  %v4516_v10 = vunpack.c.l.bf16 %v4399_v44  ;;  %v4470_v42 = vunpack.c.h.bf16 %v4368_v37 }
 0x535   :  { %5154 = vmatpush2.msra.mxu1 %v4543_v4  ;;  %6730 = vmatprep.subr.mxu0 %v4545_v25  ;;  %v4395_v4 = vld [vmem:[#allocation15 + $0xe4] sm:$0xff]  ;;  %v4514_v25 = vunpack.c.h.bf16 %v4397_v36 }
 0x536   :  { %5155 = vmatprep.subr.mxu1 %v4541_v18  ;;  %6731 = vmatpush3.msra.mxu0 %v4497_v30  ;;  %v4513_v18 = vunpack.c.l.bf16 %v4397_v36  ;;  %v4515_v30 = vunpack.c.l.bf16 %v4400_v8  ;;  %v4511_v2 = vunpack.c.h.bf16 %v4395_v4 }
 0x537   :  { %5156 = vmatpush2.msra.mxu1 %v4540_v48  ;;  %6732 = vmatprep.subr.mxu0 %v4542_v51  ;;  %v4393_v48 = vld [vmem:[#allocation15 + $0xd8] sm:$0xff]  ;;  %v4364_v51 = vld [vmem:[#allocation15 + $0x20] ss:$12 sps:$4 sm:$0xff]  }
 0x538   :  { %5157 = vmatprep.subr.mxu1 %v4538_v52  ;;  %6733 = vmatpush3.msra.mxu0 %v4494_v39  ;;  %v4467_v52 = vunpack.c.l.bf16 %v4368_v37  ;;  %v4510_v39 = vunpack.c.l.bf16 %v4395_v4  ;;  %v4464_v3 = vunpack.c.h.bf16 %v4364_v51  ;;  %v5571_v4 = vld [vmem:[%s8487_s28 + $0x70] sm:$0xff] }
 0x539   :  { %5158 = vmatpush2.msra.mxu1 %v4537_v17  ;;  %6734 = vmatprep.subr.mxu0 %v4539_v56  ;;  %v4391_v17 = vld [vmem:[#allocation15 + $0xcc] sm:$0xff]  ;;  %v4508_v56 = vunpack.c.h.bf16 %v4393_v48 }
 0x53a   :  { %5159 = vmatprep.subr.mxu1 %v4535_v22  ;;  %6735 = vmatpush3.msra.mxu0 %v4491_v58  ;;  %v4507_v22 = vunpack.c.l.bf16 %v4393_v48  ;;  %v4509_v58 = vunpack.c.l.bf16 %v4396_v26  ;;  %v4505_v9 = vunpack.c.h.bf16 %v4391_v17  ;;  %v5570_v26 = vld [vmem:[%s8487_s28 + $0x68] sm:$0xff]  ;;  %v5569_v48 = vld [vmem:[%s8487_s28 + $0x60] sm:$0xff] }
 0x53b   :  { %5160 = vmatpush2.msra.mxu1 %v4534_v28  ;;  %6736 = vmatprep.subr.mxu0 %v4536_v27  ;;  %v4389_v28 = vld [vmem:[#allocation15 + $0xc0] sm:$0xff]  ;;  %v4360_v27 = vld [vmem:[#allocation15 + $0x8] ss:$12 sps:$4 sm:$0xff]  }
 0x53c   :  { %5161 = vmatprep.subr.mxu1 %v4532_v53  ;;  %6737 = vmatpush3.msra.mxu0 %v4488_v61  ;;  %v4461_v53 = vunpack.c.l.bf16 %v4364_v51  ;;  %v4504_v61 = vunpack.c.l.bf16 %v4391_v17  ;;  %v4501_v57 = vunpack.c.l.bf16 %v4389_v28  ;;  %v5631_v51 = vunpack.c.l.bf16 %v5569_v48  ;;  %v5567_v17 = vld [vmem:[%s8487_s28 + $0x50] sm:$0xff] }
 0x53d   :  { %5162 = vmatpush2.msra.mxu1 %v4531_v6  ;;  %6738 = vmatprep.subr.mxu0 %v4533_v14  ;;  %v4502_v6 = vunpack.c.h.bf16 %v4389_v28  ;;  %v4458_v14 = vunpack.c.h.bf16 %v4360_v27 }
 0x53e   :  { %5163 = vmatprep.subr.mxu1 %v4529_v11  ;;  %6739 = vmatpush3.msra.mxu0 %v4485_v54  ;;  %v4503_v11 = vunpack.c.l.bf16 %v4392_v5  ;;  %v4452_v54 = vld [vmem:[#allocation15 + $0x230] ss:$12 sps:$4 sm:$0xff]  }
 0x53f   :  { %5164 = vmatpush2.msra.mxu1 %v4528_v19  ;;  %6740 = vmatprep.subr.mxu0 %v4530_v60  ;;  %v4455_v19 = vunpack.c.l.bf16 %v4360_v27  ;;  %v3673_v60 = vadd.f32 %v3670_v7, %v8113_v55  ;;  %v4596_v41 = vunpack.c.h.bf16 %v4452_v54  ;;  %v4593_v21 = vunpack.c.l.bf16 %v4452_v54  ;;  %v5566_v5 = vld [vmem:[%s8487_s28 + $0x48] sm:$0xff]  ;;  %v5565_v27 = vld [vmem:[%s8487_s28 + $0x40] sm:$0xff] }
 0x540   :  { %5165 = vmatprep.subr.mxu1 %v4526_v15  ;;  %6741 = vmatpush3.msra.mxu0 %v4482_v12  ;;  %v4448_v15 = vld [vmem:[#allocation15 + $0x218] ss:$12 sps:$4 sm:$0xff]   ;;  %v5625_v28 = vunpack.c.l.bf16 %v5566_v5 }
 0x541   :  { %5166 = vmatpush2.msra.mxu1 %v4525_v23  ;;  %6742 = vmatprep.subr.mxu0 %v4527_v29  ;;  %v4590_v12 = vunpack.c.h.bf16 %v4448_v15  ;;  %v4587_v55 = vunpack.c.l.bf16 %v4448_v15  ;;  %v4584_v23 = vunpack.c.h.bf16 %v4444_v59  ;;  %v4440_v29 = vld [vmem:[#allocation15 + $0x1e8] ss:$12 sps:$4 sm:$0xff]   ;;  %v5560_v59 = vld [vmem:[%s8487_s28 + $0x18] sm:$0xff] }
 0x542   :  { %5167 = vmatprep.subr.mxu1 %v4523_v43  ;;  %6743 = vmatpush3.msra.mxu0 %v4479_v45  ;;  %v4578_v32 = vunpack.c.h.bf16 %v4440_v29  ;;  %v4436_v43 = vld [vmem:[#allocation15 + $0x1d0] ss:$12 sps:$4 sm:$0xff]   ;;  %v4575_v45 = vunpack.c.l.bf16 %v4440_v29  ;;  %v5561_v15 = vld [vmem:[%s8487_s28 + $0x20] sm:$0xff]  ;;  %v5559_v29 = vld [vmem:[%s8487_s28 + $0x10] sm:$0xff] }
 0x543   :  { %5168 = vmatpush2.msra.mxu1 %v4522_v49  ;;  %6744 = vmatprep.subr.mxu0 %v4524_v20  ;;  %v4572_v49 = vunpack.c.h.bf16 %v4436_v43  ;;  %v4432_v20 = vld [vmem:[#allocation15 + $0x1b8] ss:$12 sps:$4 sm:$0xff]   ;;  %v4569_v44 = vunpack.c.l.bf16 %v4436_v43  ;;  %v5558_v43 = vld [vmem:[%s8487_s28 + $0x8] sm:$0xff] }
 0x544   :  { %5169 = vmatprep.subr.mxu1 %v4520_v16  ;;  %6745 = vmatpush3.msra.mxu0 %v4476_v31  ;;  %v4566_v16 = vunpack.c.h.bf16 %v4432_v20  ;;  %v4428_v31 = vld [vmem:[#allocation15 + $0x1a0] ss:$12 sps:$4 sm:$0xff]   ;;  %v4563_v8 = vunpack.c.l.bf16 %v4432_v20  ;;  %v5557_v20 = vld [vmem:[%s8487_s28] sm:$0xff] }
 0x545   :  { %5170 = vmatpush2.msra.mxu1 %v4519_v33  ;;  %6746 = vmatprep.subr.mxu0 %v4521_v34  ;;  %v4560_v33 = vunpack.c.h.bf16 %v4428_v31  ;;  %v4424_v34 = vld [vmem:[#allocation15 + $0x188] ss:$12 sps:$4 sm:$0xff]   ;;  %v4557_v36 = vunpack.c.l.bf16 %v4428_v31  ;;  %v5607_v31 = vunpack.c.l.bf16 %v5557_v20 }
 0x546   :  { %5171 = vmatprep.subr.mxu1 %v4517_v38  ;;  %6747 = vmatpush3.msra.mxu0 %v4473_v40  ;;  %v4554_v37 = vunpack.c.h.bf16 %v4424_v34  ;;  %v4551_v38 = vunpack.c.l.bf16 %v4424_v34  ;;  %v5572_v40 = vld [vmem:[%s8487_s28 + $0x78] sm:$0xff] }
 0x547   :  { %5172 = vmatpush2.msra.mxu1 %v4516_v10  ;;  %6748 = vmatprep.subr.mxu0 %v4518_v35  ;;  %v5638_v10 = vunpack.c.h.bf16 %v5572_v40  ;;  %v5637_v35 = vunpack.c.l.bf16 %v5572_v40 }
 0x548   :  { %5173 = vmatprep.subr.mxu1 %v4514_v25  ;;  %6749 = vmatpush3.msra.mxu0 %v4470_v42  ;;  %v5636_v25 = vunpack.c.h.bf16 %v5571_v4  ;;  %v5635_v42 = vunpack.c.l.bf16 %v5571_v4 }
 0x549   :  { %5174 = vmatpush2.msra.mxu1 %v4513_v18  ;;  %6750 = vmatprep.subr.mxu0 %v4515_v30  ;;  %v5634_v18 = vunpack.c.h.bf16 %v5570_v26  ;;  %v5633_v30 = vunpack.c.l.bf16 %v5570_v26 }
 0x54a   :  { %5175 = vmatprep.subr.mxu1 %v4511_v2  ;;  %6751 = vmatpush3.msra.mxu0 %v4467_v52  ;;  %v5568_v2 = vld [vmem:[%s8487_s28 + $0x58] sm:$0xff] }
 0x54b   :  { %5176 = vmatpush2.msra.mxu1 %v4510_v39  ;;  %6752 = vmatprep.subr.mxu0 %v4512_v24  ;;  %v5630_v52 = vunpack.c.h.bf16 %v5568_v2  ;;  %v5629_v24 = vunpack.c.l.bf16 %v5568_v2 }
 0x54c   :  { %5177 = vmatprep.subr.mxu1 %v4508_v56  ;;  %6753 = vmatpush3.msra.mxu0 %v4464_v3  ;;  %v5628_v56 = vunpack.c.h.bf16 %v5567_v17  ;;  %v5627_v3 = vunpack.c.l.bf16 %v5567_v17 }
 0x54d   :  { %5178 = vmatpush2.msra.mxu1 %v4507_v22  ;;  %6754 = vmatprep.subr.mxu0 %v4509_v58  ;;  %v5626_v22 = vunpack.c.h.bf16 %v5566_v5 }
 0x54e   :  { %5179 = vmatprep.subr.mxu1 %v4505_v9  ;;  %6755 = vmatpush3.msra.mxu0 %v4461_v53  ;;  %v5624_v9 = vunpack.c.h.bf16 %v5565_v27 }
 0x54f   :  { %5180 = vmatpush2.msra.mxu1 %v4504_v61  ;;  %6756 = vmatprep.subr.mxu0 %v4506_v50  ;;  %v5623_v61 = vunpack.c.l.bf16 %v5565_v27  ;;  %v5564_v50 = vld [vmem:[%s8487_s28 + $0x38] sm:$0xff] }
 0x550   :  { %5181 = vmatprep.subr.mxu1 %v4502_v6  ;;  %6757 = vmatpush3.msra.mxu0 %v4458_v14  ;;  %v5622_v6 = vunpack.c.h.bf16 %v5564_v50  ;;  %v5621_v7 = vunpack.c.l.bf16 %v5564_v50 }
 0x551   :  { %5182 = vmatpush2.msra.mxu1 %v4501_v57  ;;  %6758 = vmatprep.subr.mxu0 %v4503_v11  ;;  %v5563_v57 = vld [vmem:[%s8487_s28 + $0x30] sm:$0xff] }
 0x552   :  { %5184 = vmatmul.mubr.f32.vlgmr.msra.gmra.mxu1 %v3673_v60  ;;  %6759 = vmatpush3.msra.mxu0 %v4455_v19  ;;  %v5620_v11 = vunpack.c.h.bf16 %v5563_v57  ;;  %v5619_v54 = vunpack.c.l.bf16 %v5563_v57  ;;  %v5562_v19 = vld [vmem:[%s8487_s28 + $0x28] sm:$0xff] }
 0x553   :  { %7038 = vmatprep.subr.mxu1 %v7461_v0  ;;  %5326 = vmatmul.mubr.f32.vlgmr.msra.gmra.mxu0 %v3673_v60  ;;  %v5618_v60 = vunpack.c.h.bf16 %v5562_v19  ;;  %v5598_v57 = vld [vmem:[%s8487_s28 + $0x148] sm:$0xff] }
 0x554   :  { %7039 = vmatpush3.msra.mxu1 %v4596_v41  ;;  %7070 = vmatprep.mubr.msk.f32.mxu1 %vm7462_vm0, %v7461_v0  ;;  %v5617_v41 = vunpack.c.l.bf16 %v5562_v19  ;;  %v5582_v19 = vld [vmem:[%s8487_s28 + $0xc8] sm:$0xff] }
 0x555   :  { %7040 = vmatprep.subr.mxu1 %v7461_v0  ;;  %5703 = vmatprep.subr.mxu0 %v5638_v10  ;;  %v5587_v10 = vld [vmem:[%s8487_s28 + $0xf0] sm:$0xff] }
 0x556   :  { %7041 = vmatpush3.msra.mxu1 %v4593_v21  ;;  %5704 = vmatpush1.msra.mxu0 %v5637_v35  ;;  %v5616_v21 = vunpack.c.h.bf16 %v5561_v15  ;;  %v5668_v4 = vunpack.c.h.bf16 %v5587_v10 }
 0x557   :  { %7042 = vmatprep.subr.mxu1 %v7461_v0  ;;  %5705 = vmatprep.subr.mxu0 %v5636_v25  ;;  %v5602_v25 = vld [vmem:[%s8487_s28 + $0x168] sm:$0xff] }
 0x558   :  { %7043 = vmatpush3.msra.mxu1 %v4590_v12  ;;  %5706 = vmatpush1.msra.mxu0 %v5635_v42  ;;  %v5615_v12 = vunpack.c.l.bf16 %v5561_v15  ;;  %v5667_v42 = vunpack.c.l.bf16 %v5587_v10  ;;  %v5698_v26 = vunpack.c.h.bf16 %v5602_v25  ;;  %v5597_v15 = vld [vmem:[%s8487_s28 + $0x140] sm:$0xff] }
 0x559   :  { %7044 = vmatprep.subr.mxu1 %v7461_v0  ;;  %5707 = vmatprep.subr.mxu0 %v5634_v18  ;;  %v5586_v18 = vld [vmem:[%s8487_s28 + $0xe8] sm:$0xff]  ;;  %v5593_v10 = vld [vmem:[%s8487_s28 + $0x120] sm:$0xff] }
 0x55a   :  { %7045 = vmatpush3.msra.mxu1 %v4587_v55  ;;  %5708 = vmatpush1.msra.mxu0 %v5633_v30  ;;  %v5614_v55 = vunpack.c.h.bf16 %v5560_v59  ;;  %v5697_v30 = vunpack.c.l.bf16 %v5602_v25 }
 0x55b   :  { %7046 = vmatprep.subr.mxu1 %v7461_v0 }
 0x55c   :  { %7047 = vmatpush3.msra.mxu1 %v4584_v23  ;;  %v5613_v23 = vunpack.c.l.bf16 %v5560_v59  ;;  %v5581_v59 = vld [vmem:[%s8487_s28 + $0xc0] sm:$0xff] }
 0x55d   :  { %7048 = vmatprep.subr.mxu1 %v7461_v0 }
 0x55e   :  { %7049 = vmatpush3.msra.mxu1 %v4581_v13  ;;  %v5612_v13 = vunpack.c.h.bf16 %v5559_v29 }
 0x55f   :  { %7050 = vmatprep.subr.mxu1 %v7461_v0 }
 0x560   :  { %7051 = vmatpush3.msra.mxu1 %v4578_v32  ;;  %v5611_v32 = vunpack.c.l.bf16 %v5559_v29  ;;  %v5596_v29 = vld [vmem:[%s8487_s28 + $0x138] sm:$0xff] }
 0x561   :  { %7052 = vmatprep.subr.mxu1 %v7461_v0 }
 0x562   :  { %7053 = vmatpush3.msra.mxu1 %v4575_v45  ;;  %v5610_v45 = vunpack.c.h.bf16 %v5558_v43 }
 0x563   :  { %7054 = vmatprep.subr.mxu1 %v7461_v0 }
 0x564   :  { %7055 = vmatpush3.msra.mxu1 %v4572_v49  ;;  %v5609_v49 = vunpack.c.l.bf16 %v5558_v43  ;;  %v5580_v43 = vld [vmem:[%s8487_s28 + $0xb8] sm:$0xff] }
 0x565   :  { %7056 = vmatprep.subr.mxu1 %v7461_v0 }
 0x566   :  { %7057 = vmatpush3.msra.mxu1 %v4569_v44  ;;  %v5608_v44 = vunpack.c.h.bf16 %v5557_v20  ;;  %v5595_v20 = vld [vmem:[%s8487_s28 + $0x130] sm:$0xff] }
 0x567   :  { %7058 = vmatprep.subr.mxu1 %v7461_v0 }
 0x568   :  { %7059 = vmatpush3.msra.mxu1 %v4566_v16  ;;  %v5604_v16 = vld [vmem:[%s8487_s28 + $0x178] sm:$0xff] }
 0x569   :  { %7060 = vmatprep.subr.mxu1 %v7461_v0  ;;  %v5701_v34 = vunpack.c.l.bf16 %v5604_v16 }
 0x56a   :  { %7061 = vmatpush3.msra.mxu1 %v4563_v8  ;;  %v5702_v8 = vunpack.c.h.bf16 %v5604_v16  ;;  %v5683_v16 = vunpack.c.l.bf16 %v5595_v20 }
 0x56b   :  { %7062 = vmatprep.subr.mxu1 %v7461_v0 }
 0x56c   :  { %7063 = vmatpush3.msra.mxu1 %v4560_v33  ;;  %v5588_v33 = vld [vmem:[%s8487_s28 + $0xf8] sm:$0xff] }
 0x56d   :  { %7064 = vmatprep.subr.mxu1 %v7461_v0 }
 0x56e   :  { %7065 = vmatpush3.msra.mxu1 %v4557_v36  ;;  %v5670_v36 = vunpack.c.h.bf16 %v5588_v33 }
 0x56f   :  { %7066 = vmatprep.subr.mxu1 %v7461_v0 }
 0x570   :  { %7067 = vmatpush3.msra.mxu1 %v4554_v37  ;;  %v5603_v37 = vld [vmem:[%s8487_s28 + $0x170] sm:$0xff] }
 0x571   :  { %7068 = vmatprep.subr.mxu1 %v7461_v0  ;;  %v5700_v40 = vunpack.c.h.bf16 %v5603_v37  ;;  %v5699_v35 = vunpack.c.l.bf16 %v5603_v37 }
 0x572   :  { %7069 = vmatpush3.msra.mxu1 %v4551_v38  ;;  %v5669_v38 = vunpack.c.l.bf16 %v5588_v33  ;;  %v5594_v33 = vld [vmem:[%s8487_s28 + $0x128] sm:$0xff] }
 0x573   :  { %7071 = vmatmul.mubr.f32.vlgmr.msra.gmra.mxu1 %v8262_v47  ;;  %v5632_v47 = vunpack.c.h.bf16 %v5569_v48  ;;  %5774 = vmatprep.subr.mxu1 %v5702_v8  ;;  %v5666_v48 = vunpack.c.h.bf16 %v5586_v18  ;;  %v5579_v8 = vld [vmem:[%s8487_s28 + $0xb0] sm:$0xff] }
 0x574   :  { %5838 = vmatprep.mubr.f32.mxu1 %v7461_v0  ;;  %5775 = vmatpush1.msra.mxu1 %v5701_v34  ;;  %v5578_v34 = vld [vmem:[%s8487_s28 + $0xa8] sm:$0xff]  ;;  %v5652_v37 = vunpack.c.h.bf16 %v5579_v8 }
 0x575   :  { %5709 = vmatprep.subr.mxu0 %v5632_v47  ;;  %5776 = vmatprep.subr.mxu1 %v5700_v40  ;;  %v5601_v47 = vld [vmem:[%s8487_s28 + $0x160] sm:$0xff]  ;;  %v5682_v40 = vunpack.c.h.bf16 %v5594_v33  ;;  %v5649_v25 = vunpack.c.l.bf16 %v5578_v34 }
 0x576   :  { %5710 = vmatpush1.msra.mxu0 %v5631_v51  ;;  %5777 = vmatpush1.msra.mxu1 %v5699_v35  ;;  %v5665_v51 = vunpack.c.l.bf16 %v5586_v18  ;;  %v5696_v2 = vunpack.c.h.bf16 %v5601_v47  ;;  %v5577_v35 = vld [vmem:[%s8487_s28 + $0xa0] sm:$0xff]  ;;  %v5576_v18 = vld [vmem:[%s8487_s28 + $0x98] sm:$0xff] }
 0x577   :  { %5711 = vmatprep.subr.mxu0 %v5630_v52  ;;  %5778 = vmatprep.subr.mxu1 %v5698_v26  ;;  %v5585_v52 = vld [vmem:[%s8487_s28 + $0xe0] sm:$0xff]  ;;  %v5680_v26 = vunpack.c.h.bf16 %v5593_v10 }
 0x578   :  { %5712 = vmatpush1.msra.mxu0 %v5629_v24  ;;  %5779 = vmatpush1.msra.mxu1 %v5697_v30  ;;  %v5695_v24 = vunpack.c.l.bf16 %v5601_v47  ;;  %v5664_v17 = vunpack.c.h.bf16 %v5585_v52  ;;  %v5679_v30 = vunpack.c.l.bf16 %v5593_v10  ;;  %v5591_v47 = vld [vmem:[%s8487_s28 + $0x110] sm:$0xff] }
 0x579   :  { %5713 = vmatprep.subr.mxu0 %v5628_v56  ;;  %v5600_v56 = vld [vmem:[%s8487_s28 + $0x158] sm:$0xff]  ;;  %5780 = vmatprep.subr.mxu1 %v5696_v2 }
 0x57a   :  { %5714 = vmatpush1.msra.mxu0 %v5627_v3  ;;  %v5663_v3 = vunpack.c.l.bf16 %v5585_v52  ;;  %v5694_v5 = vunpack.c.h.bf16 %v5600_v56  ;;  %5781 = vmatpush1.msra.mxu1 %v5695_v24  ;;  %v5575_v52 = vld [vmem:[%s8487_s28 + $0x90] sm:$0xff] }
 0x57b   :  { %5715 = vmatprep.subr.mxu0 %v5626_v22  ;;  %v5584_v22 = vld [vmem:[%s8487_s28 + $0xd8] sm:$0xff] }
 0x57c   :  { %5716 = vmatpush1.msra.mxu0 %v5625_v28  ;;  %v5693_v28 = vunpack.c.l.bf16 %v5600_v56  ;;  %v5662_v27 = vunpack.c.h.bf16 %v5584_v22  ;;  %5782 = vmatprep.subr.mxu1 %v5694_v5  ;;  %v5590_v56 = vld [vmem:[%s8487_s28 + $0x108] sm:$0xff]  ;;  %v5676_v5 = vunpack.c.h.bf16 %v5591_v47 }
 0x57d   :  { %5717 = vmatprep.subr.mxu0 %v5624_v9  ;;  %v5599_v9 = vld [vmem:[%s8487_s28 + $0x150] sm:$0xff] }
 0x57e   :  { %5718 = vmatpush1.msra.mxu0 %v5623_v61  ;;  %v5661_v61 = vunpack.c.l.bf16 %v5584_v22  ;;  %v5692_v50 = vunpack.c.h.bf16 %v5599_v9  ;;  %5783 = vmatpush1.msra.mxu1 %v5693_v28  ;;  %v5574_v22 = vld [vmem:[%s8487_s28 + $0x88] sm:$0xff]  ;;  %v5675_v28 = vunpack.c.l.bf16 %v5591_v47 }
 0x57f   :  { %5719 = vmatprep.subr.mxu0 %v5622_v6  ;;  %v5583_v6 = vld [vmem:[%s8487_s28 + $0xd0] sm:$0xff] }
 0x580   :  { %5720 = vmatpush1.msra.mxu0 %v5621_v7  ;;  %v5660_v7 = vunpack.c.h.bf16 %v5583_v6  ;;  %5784 = vmatprep.subr.mxu1 %v5692_v50  ;;  %v5674_v50 = vunpack.c.h.bf16 %v5590_v56 }
 0x581   :  { %5721 = vmatprep.subr.mxu0 %v5620_v11  ;;  %v5659_v11 = vunpack.c.l.bf16 %v5583_v6  ;;  %v5573_v6 = vld [vmem:[%s8487_s28 + $0x80] sm:$0xff] }
 0x582   :  { %5722 = vmatpush1.msra.mxu0 %v5619_v54  ;;  %v5690_v54 = vunpack.c.h.bf16 %v5598_v57 }
 0x583   :  { %5723 = vmatprep.subr.mxu0 %v5618_v60  ;;  %v5689_v60 = vunpack.c.l.bf16 %v5598_v57  ;;  %v5641_v57 = vunpack.c.l.bf16 %v5574_v22 }
 0x584   :  { %5724 = vmatpush1.msra.mxu0 %v5617_v41  ;;  %v5658_v41 = vunpack.c.h.bf16 %v5582_v19 }
 0x585   :  { %5725 = vmatprep.subr.mxu0 %v5616_v21  ;;  %v5657_v21 = vunpack.c.l.bf16 %v5582_v19  ;;  %v5640_v19 = vunpack.c.h.bf16 %v5573_v6 }
 0x586   :  { %5726 = vmatpush1.msra.mxu0 %v5615_v12  ;;  %v5688_v12 = vunpack.c.h.bf16 %v5597_v15 }
 0x587   :  { %5727 = vmatprep.subr.mxu0 %v5614_v55  ;;  %v5687_v55 = vunpack.c.l.bf16 %v5597_v15 }
 0x588   :  { %5728 = vmatpush1.msra.mxu0 %v5613_v23  ;;  %v5656_v23 = vunpack.c.h.bf16 %v5581_v59 }
 0x589   :  { %5729 = vmatprep.subr.mxu0 %v5612_v13  ;;  %v5655_v13 = vunpack.c.l.bf16 %v5581_v59 }
 0x58a   :  { %5730 = vmatpush1.msra.mxu0 %v5611_v32  ;;  %v5686_v32 = vunpack.c.h.bf16 %v5596_v29 }
 0x58b   :  { %5731 = vmatprep.subr.mxu0 %v5610_v45  ;;  %v5685_v45 = vunpack.c.l.bf16 %v5596_v29 }
 0x58c   :  { %5732 = vmatpush1.msra.mxu0 %v5609_v49  ;;  %v5654_v49 = vunpack.c.h.bf16 %v5580_v43 }
 0x58d   :  { %5733 = vmatprep.subr.mxu0 %v5608_v44  ;;  %v5653_v44 = vunpack.c.l.bf16 %v5580_v43 }
 0x58e   :  { %5734 = vmatpush1.msra.mxu0 %v5607_v31  ;;  %v5684_v31 = vunpack.c.h.bf16 %v5595_v20 }
 0x58f   :  { %5735 = vmatprep.subr.mxu0 %v5670_v36  ;;  %v5651_v36 = vunpack.c.l.bf16 %v5579_v8 }
 0x590   :  { %5736 = vmatpush2.msra.mxu0 %v5669_v38  ;;  %v5681_v38 = vunpack.c.l.bf16 %v5594_v33 }
 0x591   :  { %5737 = vmatprep.subr.mxu0 %v5668_v4  ;;  %v5592_v4 = vld [vmem:[%s8487_s28 + $0x118] sm:$0xff] }
 0x592   :  { %5738 = vmatpush2.msra.mxu0 %v5667_v42  ;;  %v5650_v42 = vunpack.c.h.bf16 %v5578_v34  ;;  %v5678_v2 = vunpack.c.h.bf16 %v5592_v4  ;;  %v5677_v24 = vunpack.c.l.bf16 %v5592_v4 }
 0x593   :  { %5739 = vmatprep.subr.mxu0 %v5666_v48  ;;  %v5648_v48 = vunpack.c.h.bf16 %v5577_v35 }
 0x594   :  { %5740 = vmatpush2.msra.mxu0 %v5665_v51  ;;  %v5647_v51 = vunpack.c.l.bf16 %v5577_v35 }
 0x595   :  { %5741 = vmatprep.subr.mxu0 %v5664_v17  ;;  %v5646_v17 = vunpack.c.h.bf16 %v5576_v18 }
 0x596   :  { %5742 = vmatpush2.msra.mxu0 %v5663_v3  ;;  %v5645_v3 = vunpack.c.l.bf16 %v5576_v18 }
 0x597   :  { %5743 = vmatprep.subr.mxu0 %v5662_v27  ;;  %v5644_v27 = vunpack.c.h.bf16 %v5575_v52 }
 0x598   :  { %5744 = vmatpush2.msra.mxu0 %v5661_v61  ;;  %v5643_v61 = vunpack.c.l.bf16 %v5575_v52 }
 0x599   :  { %5745 = vmatprep.subr.mxu0 %v5660_v7  ;;  %v5642_v7 = vunpack.c.h.bf16 %v5574_v22 }
 0x59a   :  { %5746 = vmatpush2.msra.mxu0 %v5659_v11 }
 0x59b   :  { %5747 = vmatprep.subr.mxu0 %v5658_v41 }
 0x59c   :  { %5748 = vmatpush2.msra.mxu0 %v5657_v21 }
 0x59d   :  { %5749 = vmatprep.subr.mxu0 %v5656_v23 }
 0x59e   :  { %5750 = vmatpush2.msra.mxu0 %v5655_v13 }
 0x59f   :  { %5751 = vmatprep.subr.mxu0 %v5654_v49 }
 0x5a0   :  { %5752 = vmatpush2.msra.mxu0 %v5653_v44 }
 0x5a1   :  { %5753 = vmatprep.subr.mxu0 %v5652_v37 }
 0x5a2   :  { %5754 = vmatpush2.msra.mxu0 %v5651_v36 }
 0x5a3   :  { %5755 = vmatprep.subr.mxu0 %v5650_v42 }
 0x5a4   :  { %5756 = vmatpush2.msra.mxu0 %v5649_v25 }
 0x5a5   :  { %5757 = vmatprep.subr.mxu0 %v5648_v48 }
 0x5a6   :  { %5758 = vmatpush2.msra.mxu0 %v5647_v51 }
 0x5a7   :  { %5759 = vmatprep.subr.mxu0 %v5646_v17 }
 0x5a8   :  { %5760 = vmatpush2.msra.mxu0 %v5645_v3 }
 0x5a9   :  { %5761 = vmatprep.subr.mxu0 %v5644_v27 }
 0x5aa   :  { %5762 = vmatpush2.msra.mxu0 %v5643_v61 }
 0x5ab   :  { %5763 = vmatprep.subr.mxu0 %v5642_v7 }
 0x5ac   :  { %5764 = vmatpush2.msra.mxu0 %v5641_v57 }
 0x5ad   :  { %5765 = vmatprep.subr.mxu0 %v5640_v19 }
 0x5ae   :  { %v4974_v41 = vpop.f32.mrf.mxu1 }
 0x5af   :  { %v8294_v39 = vpop.f32.mrf.mxu0 }
 0x5b0   :  { %v4976_v15 = vpop.f32.mrf.mxu1  ;;  %v4975_v59 = vadd.f32 %v4974_v41, %v8294_v39 }
 0x5b1   :  { %v8298_v58 = vpop.f32.mrf.mxu0 }
 0x5b2   :  { %v4977_v29 = vadd.f32 %v4976_v15, %v8298_v58 }
 0x5ce   :  { %v6708_v21 = vpop.f32.mrf.mxu1 }
 0x5d0   :  { %v8301_v53 = vpop.f32.mrf.mxu0 }
 0x5d2   :  { %v7037_v14 = vpop.f32.mrf.mxu0 }
 0x5d3   :  { %v5691_v14 = vunpack.c.l.bf16 %v5599_v9  ;;  %v5589_v9 = vld [vmem:[%s8487_s28 + $0x100] sm:$0xff] }
 0x5d4   :  { %v5672_v11 = vunpack.c.h.bf16 %v5589_v9 }
 0x5d5   :  { %5785 = vmatpush1.msra.mxu1 %v5691_v14  ;;  %v5673_v14 = vunpack.c.l.bf16 %v5590_v56 }
 0x5d6   :  { %5786 = vmatprep.subr.mxu1 %v5690_v54  ;;  %v5671_v54 = vunpack.c.l.bf16 %v5589_v9 }
 0x5d7   :  { %5787 = vmatpush1.msra.mxu1 %v5689_v60  ;;  %v5639_v60 = vunpack.c.l.bf16 %v5573_v6 }
 0x5d8   :  { %5788 = vmatprep.subr.mxu1 %v5688_v12  ;;  %v6709_v12 = vpop.f32.mrf.mxu1 }
 0x5d9   :  { %5789 = vmatpush1.msra.mxu1 %v5687_v55  ;;  %5766 = vmatpush2.msra.mxu0 %v5639_v60 }
 0x5da   :  { %5790 = vmatprep.subr.mxu1 %v5686_v32  ;;  %7073 = vmatprep.subr.mxu0 %v7461_v0 }
 0x5db   :  { %5791 = vmatpush1.msra.mxu1 %v5685_v45 }
 0x5dc   :  { %5792 = vmatprep.subr.mxu1 %v5684_v31 }
 0x5dd   :  { %5793 = vmatpush1.msra.mxu1 %v5683_v16 }
 0x5de   :  { %5794 = vmatprep.subr.mxu1 %v5682_v40 }
 0x5df   :  { %5795 = vmatpush1.msra.mxu1 %v5681_v38 }
 0x5e0   :  { %5796 = vmatprep.subr.mxu1 %v5680_v26  ;;  %v6710_v26 = vadd.f32 %v6709_v12, %v6708_v21 }
 0x5e1   :  { %5797 = vmatpush1.msra.mxu1 %v5679_v30 }
 0x5e2   :  { %5798 = vmatprep.subr.mxu1 %v5678_v2  ;;  %v5116_v47 = vadd.f32 %v6710_v26, %v8301_v53 }
 0x5e3   :  { %5799 = vmatpush1.msra.mxu1 %v5677_v24 }
 0x5e4   :  { %5800 = vmatprep.subr.mxu1 %v5676_v5 }
 0x5e5   :  { %5801 = vmatpush1.msra.mxu1 %v5675_v28 }
 0x5e6   :  { %5802 = vmatprep.subr.mxu1 %v5674_v50 }
 0x5e7   :  { %5803 = vmatpush1.msra.mxu1 %v5673_v14 }
 0x5e8   :  { %5804 = vmatprep.subr.mxu1 %v5672_v11 }
 0x5e9   :  { %5805 = vmatpush1.msra.mxu1 %v5671_v54 }
 0x5ea   :  { %6005 = vmatprep.subr.mxu1 %v7461_v0 }
 0x5f2   :  { %v5256_v55 = vpop.f32.mrf.mxu0 }
 0x5f4   :  { %v5258_v49 = vpop.f32.mrf.mxu0 }
 0x612   :  { %v5185_v23 = vpop.f32.mrf.mxu1 }
 0x613   :  { %v5186_v13 = vadd.f32 %v5185_v23, %v4975_v59  ;;  %v6760_v35 = vpop.f32.mrf.mxu0 }
 0x614   :  { %v5187_v32 = vpop.f32.mrf.mxu1 }
 0x615   :  { %v8347_v43 = vadd.f32 %v5256_v55, %v5186_v13  ;;  %v5188_v45 = vadd.f32 %v5187_v32, %v4977_v29  ;;  %v6761_v42 = vpop.f32.mrf.mxu0 }
 0x616   :  { %v6762_v48 = vadd.f32 %v6761_v42, %v6760_v35 }
 0x617   :  { %v5403_v20 = vrot.slane %v8347_v43, 4  ;;  %v8350_v44 = vadd.f32 %v5258_v49, %v5188_v45 }
 0x618   :  { %v5328_v52 = vadd.f32 %v6762_v48, %v5116_v47 }
 0x619   :  { %v5404_v16 = vadd.f32 %v5403_v20, %v8347_v43  ;;  %v5409_v31 = vrot.slane %v8350_v44, 4 }
 0x61b   :  { %v5405_v8 = vrot.slane %v5404_v16, 2  ;;  %v5410_v39 = vadd.f32 %v5409_v31, %v8350_v44 }
 0x61d   :  { %v5406_v33 = vadd.f32 %v5405_v8, %v5404_v16  ;;  %v5411_v34 = vrot.slane %v5410_v39, 2 }
 0x61f   :  { %v5412_v58 = vadd.f32 %v5411_v34, %v5410_v39  ;;  %v5407_v36 = vrot.slane %v5406_v33, 1 }
 0x621   :  { %v5413_v37 = vrot.slane %v5412_v58, 1  ;;  %v5408_v40 = vadd.f32 %v5407_v36, %v5406_v33 }
 0x623   :  { %v5414_v38 = vadd.f32 %v5413_v37, %v5412_v58  ;;  %v8357_v4 = vmul.f32 0.125, %v5408_v40 }
 0x625   :  { %v8355_v10 = vmul.f32 0.125, %v5414_v38  ;;  %v5424_v18 = vsub.f32 %v8347_v43, %v8357_v4  ;;  %v5401_v38 = vld [vmem:[%s8488_s2] sm:$0x7] }
 0x627   :  { %v5425_v25 = vsub.f32 %v8350_v44, %v8355_v10  ;;  %v5427_v51 = vmul.f32 %v5424_v18, %v5424_v18 }
 0x629   :  { %v5428_v30 = vmul.f32 %v5425_v25, %v5425_v25  ;;  %v5430_v17 = vrot.slane %v5427_v51, 4 }
 0x62b   :  { %v5436_v2 = vrot.slane %v5428_v30, 4  ;;  %v5431_v28 = vadd.f32 %v5430_v17, %v5427_v51  ;;  %v5402_v17 = vld [vmem:[%s8489_s7] sm:$0x7] }
 0x62d   :  { %v5437_v5 = vadd.f32 %v5436_v2, %v5428_v30  ;;  %v5432_v50 = vrot.slane %v5431_v28, 2 }
 0x62f   :  { %v5438_v9 = vrot.slane %v5437_v5, 2  ;;  %v5433_v57 = vadd.f32 %v5432_v50, %v5431_v28 }
 0x631   :  { %v5439_v14 = vadd.f32 %v5438_v9, %v5437_v5  ;;  %v5434_v19 = vrot.slane %v5433_v57, 1 }
 0x633   :  { %v5397_v24 = vpop.f32.mrf.mxu1  ;;  %v5440_v53 = vrot.slane %v5439_v14, 1  ;;  %v5435_v21 = vadd.f32 %v5434_v19, %v5433_v57  ;;  %v6352_v57 = vld [vmem:[%s8490_s10 + $0x28] sm:$0xff]   ;;  %v6351_v19 = vld [vmem:[%s8490_s10 + $0x20] sm:$0xff]  }
 0x634   :  { %v5398_v56 = vadd.f32 %v5397_v24, %v5328_v52 }
 0x635   :  { %v7072_v3 = vpop.f32.mrf.mxu1  ;;  %v5441_v41 = vadd.f32 %v5440_v53, %v5439_v14  ;;  %v5448_v23 = vmul.f32 0.125, %v5435_v21  ;;  %v6294_v21 = vunpack.c.l.bf16 %v6351_v19 }
 0x636   :  { %v5415_v22 = vrot.slane %v5398_v56, 4 }
 0x637   :  { %v5449_v59 = vmul.f32 0.125, %v5441_v41  ;;  %v5451_v45 = vadd.f32 1e-05, %v5448_v23  ;;  %v6295_v41 = vunpack.c.h.bf16 %v6351_v19 }
 0x638   :  { %v5416_v27 = vadd.f32 %v5415_v22, %v5398_v56 }
 0x639   :  { %v5452_v13 = vadd.f32 1e-05, %v5449_v59  ;;  %v6349_v59 = vld [vmem:[%s8490_s10 + $0x10] sm:$0xff]  }
 0x63a   :  { %v5417_v61 = vrot.slane %v5416_v27, 2  ;;  %v6287_v23 = vunpack.c.h.bf16 %v6349_v59 }
 0x63b   :  { %7183 = vrsqrt.f32 %v5452_v13  ;;  %v6286_v13 = vunpack.c.l.bf16 %v6349_v59 }
 0x63c   :  { %v5418_v6 = vadd.f32 %v5417_v61, %v5416_v27  ;;  %7185 = vrsqrt.f32 %v5451_v45  ;;  %v6277_v45 = vld [vmem:[%s8490_s10] sm:$0xff]  }
 0x63e   :  { %v5419_v7 = vrot.slane %v5418_v6, 1 }
 0x640   :  { %v5420_v11 = vadd.f32 %v5419_v7, %v5418_v6  ;;  %v6353_v7 = vld [vmem:[%s8490_s10 + $0x30] sm:$0xff]  }
 0x641   :  { %v6302_v53 = vunpack.c.l.bf16 %v6353_v7 }
 0x642   :  { %v5423_v54 = vmul.f32 0.125, %v5420_v11  ;;  %v6303_v11 = vunpack.c.h.bf16 %v6353_v7 }
 0x644   :  { %v5426_v60 = vsub.f32 %v5398_v56, %v5423_v54 }
 0x646   :  { %v5429_v15 = vmul.f32 %v5426_v60, %v5426_v60  ;;  %v6298_v60 = vunpack.c.l.bf16 %v6352_v57 }
 0x648   :  { %v5442_v12 = vrot.slane %v5429_v15, 4  ;;  %v7184_v8 = vpop.eup %7183 }
 0x649   :  { %v7186_v39 = vpop.eup %7185 }
 0x64a   :  { %v5443_v55 = vadd.f32 %v5442_v12, %v5429_v15  ;;  %v5460_v33 = vcombine.low %v7186_v39, %v7184_v8  ;;  %v6350_v15 = vld [vmem:[%s8490_s10 + $0x18] sm:$0xff]   ;;  %v6357_v39 = vld [vmem:[%s8490_s10 + $0x50] sm:$0xff]  }
 0x64b   :  { %v6291_v12 = vunpack.c.h.bf16 %v6350_v15 }
 0x64c   :  { %v5444_v29 = vrot.slane %v5443_v55, 2  ;;  %v5467_v58 = vrot.slane %v5460_v33, %v7834_v46 }
 0x64e   :  { %v5445_v32 = vadd.f32 %v5444_v29, %v5443_v55  ;;  %v6290_v55 = vunpack.c.l.bf16 %v6350_v15  ;;  %v6348_v29 = vld [vmem:[%s8490_s10 + $0x8] sm:$0xff]  }
 0x650   :  { %v5446_v49 = vrot.slane %v5445_v32, 1 }
 0x652   :  { %v5447_v20 = vadd.f32 %v5446_v49, %v5445_v32  ;;  %v6283_v32 = vunpack.c.h.bf16 %v6348_v29  ;;  %v6282_v49 = vunpack.c.l.bf16 %v6348_v29 }
 0x654   :  { %v5450_v16 = vmul.f32 0.125, %v5447_v20  ;;  %v6279_v20 = vunpack.c.h.bf16 %v6277_v45 }
 0x656   :  { %v5453_v31 = vadd.f32 1e-05, %v5450_v16  ;;  %v6358_v16 = vld [vmem:[%s8490_s10 + $0x58] sm:$0xff]  }
 0x657   :  { %v6323_v8 = vunpack.c.h.bf16 %v6358_v16  ;;  %v6322_v33 = vunpack.c.l.bf16 %v6358_v16 }
 0x658   :  { %7187 = vrsqrt.f32 %v5453_v31  ;;  %v6278_v31 = vunpack.c.l.bf16 %v6277_v45 }
 0x665   :  { %v7188_v34 = vpop.eup %7187 }
 0x666   :  { %v5474_v36 = vrot.slane %v7188_v34, %v7834_v46  ;;  %v6319_v34 = vunpack.c.h.bf16 %v6357_v39 }
 0x668   :  { %v5475_v37 = vcombine.low %v5467_v58, %v5474_v36  ;;  %v6356_v58 = vld [vmem:[%s8490_s10 + $0x48] sm:$0xff]   ;;  %v6318_v36 = vunpack.c.l.bf16 %v6357_v39 }
 0x66a   :  { %v5482_v40 = vrot.slane %v5475_v37, %v7834_v46  ;;  %v6315_v37 = vunpack.c.h.bf16 %v6356_v58 }
 0x66c   :  { %v5484_v35 = vmul.f32 %v5482_v40, %v5401_v38  ;;  %v6355_v38 = vld [vmem:[%s8490_s10 + $0x40] sm:$0xff]   ;;  %v6314_v40 = vunpack.c.l.bf16 %v6356_v58 }
 0x66e   :  { %v5497_v25 = vrot.slane %v5484_v35, %v7844_v1  ;;  %v5489_v42 = vrot.slane %v5484_v35, %v7840_v62  ;;  %v5493_v26 = vrot.slane %v5484_v35, %v7842_v63  ;;  %v6311_v35 = vunpack.c.h.bf16 %v6355_v38 }
 0x670   :  { %v5503_v18 = vmul.f32 %v5497_v25, %v5423_v54  ;;  %v5534_v30 = vmul.f32 %v5497_v25, %v5398_v56  ;;  %v5501_v48 = vmul.f32 %v5489_v42, %v8357_v4  ;;  %v5502_v47 = vmul.f32 %v5493_v26, %v8355_v10 }
 0x671   :  { %v5533_v22 = vmul.f32 %v5493_v26, %v8350_v44  ;;  %v5532_v4 = vmul.f32 %v5489_v42, %v8347_v43  ;;  %v6299_v54 = vunpack.c.h.bf16 %v6352_v57  ;;  %v6310_v25 = vunpack.c.l.bf16 %v6355_v38 }
 0x672   :  { %v5507_v51 = vcombine.low %v5501_v48, %v5502_v47  ;;  %v5521_v2 = vrot.slane %v5503_v18, %v7834_v46 }
 0x674   :  { %v5514_v52 = vrot.slane %v5507_v51, %v7834_v46 }
 0x676   :  { %v5522_v24 = vcombine.low %v5514_v52, %v5521_v2 }
 0x678   :  { %v5529_v3 = vrot.slane %v5522_v24, %v7834_v46 }
 0x67a   :  { %v5531_v5 = vsub.f32 %v5402_v17, %v5529_v3 }
 0x67c   :  { %v5543_v28 = vrot.slane %v5531_v5, %v7842_v63  ;;  %v5547_v56 = vrot.slane %v5531_v5, %v7844_v1  ;;  %v5539_v10 = vrot.slane %v5531_v5, %v7840_v62  ;;  %v6354_v1 = vld [vmem:[%s8490_s10 + $0x38] sm:$0xff]  }
 0x67d   :  { %v6307_v44 = vunpack.c.h.bf16 %v6354_v1  ;;  %v6306_v43 = vunpack.c.l.bf16 %v6354_v1 }
 0x67e   :  { %v5552_v27 = vadd.f32 %v5543_v28, %v5533_v22  ;;  %v5553_v9 = vadd.f32 %v5547_v56, %v5534_v30  ;;  %v5551_v61 = vadd.f32 %v5539_v10, %v5532_v4 }
 0x680   :  { %v5555_v50 = vmax.f32 %v5552_v27, 0.0  ;;  %v5556_v6 = vmax.f32 %v5553_v9, 0.0  ;;  %v5554_v14 = vmax.f32 %v5551_v61, 0.0 }
 0x682   :  { %5767 = vmatprep.mubr.f32.mxu0 %v5555_v50  ;;  %5839 = vmatmul.mubr.f32.vlgmr.msra.gmra.mxu1 %v5556_v6 }
 0x683   :  { %5768 = vmatmul.mubr.f32.vlgmr.msra.gmra.mxu0 %v5554_v14  ;;  %6006 = vmatpush1.msra.mxu1 %v6307_v44 }
 0x684   :  { %7097 = vmatprep.mubr.msk.f32.mxu0 %vm7462_vm0, %v7461_v0  ;;  %6007 = vmatprep.subr.mxu1 %v7461_v0 }
 0x685   :  { %6008 = vmatpush1.msra.mxu1 %v6306_v43 }
 0x686   :  { %6009 = vmatprep.subr.mxu1 %v7461_v0 }
 0x687   :  { %6010 = vmatpush1.msra.mxu1 %v6303_v11 }
 0x688   :  { %6011 = vmatprep.subr.mxu1 %v7461_v0 }
 0x689   :  { %6012 = vmatpush1.msra.mxu1 %v6302_v53 }
 0x68a   :  { %6013 = vmatprep.subr.mxu1 %v7461_v0 }
 0x68b   :  { %6014 = vmatpush1.msra.mxu1 %v6299_v54 }
 0x68c   :  { %6015 = vmatprep.subr.mxu1 %v7461_v0 }
 0x68d   :  { %6016 = vmatpush1.msra.mxu1 %v6298_v60 }
 0x68e   :  { %6017 = vmatprep.subr.mxu1 %v7461_v0 }
 0x68f   :  { %6018 = vmatpush1.msra.mxu1 %v6295_v41 }
 0x690   :  { %6019 = vmatprep.subr.mxu1 %v7461_v0 }
 0x691   :  { %6020 = vmatpush1.msra.mxu1 %v6294_v21 }
 0x692   :  { %6021 = vmatprep.subr.mxu1 %v7461_v0 }
 0x693   :  { %6022 = vmatpush1.msra.mxu1 %v6291_v12 }
 0x694   :  { %6023 = vmatprep.subr.mxu1 %v7461_v0 }
 0x695   :  { %6024 = vmatpush1.msra.mxu1 %v6290_v55 }
 0x696   :  { %6025 = vmatprep.subr.mxu1 %v7461_v0 }
 0x697   :  { %6026 = vmatpush1.msra.mxu1 %v6287_v23 }
 0x698   :  { %6027 = vmatprep.subr.mxu1 %v7461_v0 }
 0x699   :  { %6028 = vmatpush1.msra.mxu1 %v6286_v13 }
 0x69a   :  { %6029 = vmatprep.subr.mxu1 %v7461_v0 }
 0x69b   :  { %6030 = vmatpush1.msra.mxu1 %v6283_v32 }
 0x69c   :  { %6031 = vmatprep.subr.mxu1 %v7461_v0 }
 0x69d   :  { %6032 = vmatpush1.msra.mxu1 %v6282_v49 }
 0x69e   :  { %6033 = vmatprep.subr.mxu1 %v7461_v0 }
 0x69f   :  { %6034 = vmatpush1.msra.mxu1 %v6279_v20  ;;  %v5605_v20 = vld [vmem:[%s8491_s11] sm:$0x3] }
 0x6a0   :  { %6035 = vmatprep.subr.mxu1 %v7461_v0 }
 0x6a1   :  { %6036 = vmatpush1.msra.mxu1 %v6278_v31 }
 0x6a2   :  { %6053 = vmatprep.subr.mxu1 %v7461_v0 }
 0x6a3   :  { %6054 = vmatpush2.msra.mxu1 %v6323_v8 }
 0x6a4   :  { %6055 = vmatprep.subr.mxu1 %v7461_v0 }
 0x6a5   :  { %6056 = vmatpush2.msra.mxu1 %v6322_v33 }
 0x6a6   :  { %6057 = vmatprep.subr.mxu1 %v7461_v0 }
 0x6a7   :  { %6058 = vmatpush2.msra.mxu1 %v6319_v34 }
 0x6a8   :  { %6059 = vmatprep.subr.mxu1 %v7461_v0 }
 0x6a9   :  { %6060 = vmatpush2.msra.mxu1 %v6318_v36 }
 0x6aa   :  { %6061 = vmatprep.subr.mxu1 %v7461_v0 }
 0x6ab   :  { %6062 = vmatpush2.msra.mxu1 %v6315_v37  ;;  %v5606_v37 = vld [vmem:[%s8492_s0] sm:$0x3] }
 0x6ac   :  { %6063 = vmatprep.subr.mxu1 %v7461_v0 }
 0x6ad   :  { %6064 = vmatpush2.msra.mxu1 %v6314_v40 }
 0x6ae   :  { %6065 = vmatprep.subr.mxu1 %v7461_v0 }
 0x6af   :  { %6066 = vmatpush2.msra.mxu1 %v6311_v35 }
 0x6b0   :  { %6067 = vmatprep.subr.mxu1 %v7461_v0 }
 0x6b1   :  { %6068 = vmatpush2.msra.mxu1 %v6310_v25 }
 0x742   :  { %v5840_v42 = vpop.f32.mrf.mxu1 }
 0x743   :  { %v5769_v26 = vpop.f32.mrf.mxu0 }
 0x744   :  { %v5841_v18 = vadd.f32 %v5840_v42, %v5769_v26  ;;  %v5842_v30 = vpop.f32.mrf.mxu1 }
 0x745   :  { %v5771_v48 = vpop.f32.mrf.mxu0 }
 0x746   :  { %v5845_v47 = vrot.slane %v5841_v18, 4  ;;  %v5843_v51 = vadd.f32 %v5842_v30, %v5771_v48 }
 0x748   :  { %v5846_v2 = vadd.f32 %v5845_v47, %v5841_v18  ;;  %v5852_v52 = vsel %vm5851_vm1, %v5843_v51, 0.0 }
 0x749   :  { %v5853_v24 = vrot.slane %v5852_v52, 4 }
 0x74a   :  { %v5847_v17 = vrot.slane %v5846_v2, 2 }
 0x74b   :  { %v5854_v3 = vadd.f32 %v5853_v24, %v5852_v52  ;;  %v6363_v52 = vld [vmem:[%s7622_s6 + $0x28] sm:$0xff]  }
 0x74c   :  { %v5848_v5 = vadd.f32 %v5847_v17, %v5846_v2  ;;  %v6347_v24 = vunpack.c.h.bf16 %v6363_v52  ;;  %v6361_v17 = vld [vmem:[%s7622_s6 + $0x18] sm:$0xff]  }
 0x74d   :  { %v5855_v22 = vrot.slane %v5854_v3, 2 }
 0x74e   :  { %v5849_v28 = vrot.slane %v5848_v5, 1  ;;  %7074 = vmatpush3.msra.mxu0 %v6347_v24 }
 0x74f   :  { %v5856_v56 = vadd.f32 %v5855_v22, %v5854_v3  ;;  %7075 = vmatprep.subr.mxu0 %v7461_v0  ;;  %v6339_v3 = vunpack.c.h.bf16 %v6361_v17  ;;  %v6360_v22 = vld [vmem:[%s7622_s6 + $0x10] sm:$0xff]  }
 0x750   :  { %v5850_v4 = vadd.f32 %v5849_v28, %v5848_v5  ;;  %v6338_v5 = vunpack.c.l.bf16 %v6361_v17  ;;  %v6335_v28 = vunpack.c.h.bf16 %v6360_v22 }
 0x751   :  { %v5857_v10 = vrot.slane %v5856_v56, 1 }
 0x752   :  { %v5859_v27 = vmul.f32 0.125, %v5850_v4  ;;  %v6359_v4 = vld [vmem:[%s7622_s6 + $0x8] sm:$0xff]  }
 0x753   :  { %v5858_v9 = vadd.f32 %v5857_v10, %v5856_v56  ;;  %v6334_v56 = vunpack.c.l.bf16 %v6360_v22  ;;  %v6331_v10 = vunpack.c.h.bf16 %v6359_v4 }
 0x754   :  { %v5861_v61 = vsub.f32 %v5841_v18, %v5859_v27 }
 0x755   :  { %v5860_v50 = vmul.f32 0.125, %v5858_v9  ;;  %v6325_v9 = vld [vmem:[%s7622_s6] sm:$0xff]  }
 0x756   :  { %v5863_v6 = vmul.f32 %v5861_v61, %v5861_v61  ;;  %v6327_v61 = vunpack.c.h.bf16 %v6325_v9 }
 0x757   :  { %v5862_v14 = vsub.f32 %v5843_v51, %v5860_v50 }
 0x758   :  { %v5865_v1 = vrot.slane %v5863_v6, 4 }
 0x759   :  { %v5864_v44 = vmul.f32 %v5862_v14, %v5862_v14 }
 0x75a   :  { %v5866_v43 = vadd.f32 %v5865_v1, %v5863_v6 }
 0x75b   :  { %v5871_v7 = vsel %vm5851_vm1, %v5864_v44, 0.0 }
 0x75c   :  { %v5867_v57 = vrot.slane %v5866_v43, 2  ;;  %v5872_v11 = vrot.slane %v5871_v7, 4 }
 0x75e   :  { %v5868_v53 = vadd.f32 %v5867_v57, %v5866_v43  ;;  %v5873_v54 = vadd.f32 %v5872_v11, %v5871_v7 }
 0x760   :  { %v5869_v19 = vrot.slane %v5868_v53, 1  ;;  %v5874_v60 = vrot.slane %v5873_v54, 2 }
 0x762   :  { %v5870_v41 = vadd.f32 %v5869_v19, %v5868_v53  ;;  %v5875_v15 = vadd.f32 %v5874_v60, %v5873_v54 }
 0x764   :  { %v5878_v21 = vmul.f32 0.125, %v5870_v41  ;;  %v5876_v12 = vrot.slane %v5875_v15, 1 }
 0x766   :  { %v5877_v59 = vadd.f32 %v5876_v12, %v5875_v15  ;;  %v5880_v55 = vadd.f32 1e-05, %v5878_v21 }
 0x768   :  { %v5879_v23 = vmul.f32 0.125, %v5877_v59  ;;  %7189 = vrsqrt.f32 %v5880_v55 }
 0x76a   :  { %v5881_v29 = vadd.f32 1e-05, %v5879_v23 }
 0x76c   :  { %7191 = vrsqrt.f32 %v5881_v29 }
 0x775   :  { %v7190_v13 = vpop.eup %7189 }
 0x779   :  { %v7192_v32 = vpop.eup %7191 }
 0x77a   :  { %v5886_v45 = vcombine.low %v7190_v13, %v7192_v32  ;;  %v5976_v13 = vld [vmem:[%s8493_s12] sm:$0x1] }
 0x77c   :  { %v5893_v49 = vrot.slane %v5886_v45, %v7834_v46 }
 0x77e   :  { %v5900_v16 = vrot.slane %v5893_v49, %v7834_v46  ;;  %v5977_v49 = vld [vmem:[%s7617_s21] sm:$0x1] }
 0x780   :  { %v5902_v31 = vmul.f32 %v5900_v16, %v5605_v20 }
 0x782   :  { %v5907_v8 = vrot.slane %v5902_v31, %v7840_v62  ;;  %v5911_v39 = vrot.slane %v5902_v31, %v7842_v63 }
 0x784   :  { %v5914_v33 = vmul.f32 %v5907_v8, %v5859_v27  ;;  %v5915_v34 = vmul.f32 %v5911_v39, %v5860_v50  ;;  %v5936_v35 = vmul.f32 %v5911_v39, %v5843_v51  ;;  %v5935_v42 = vmul.f32 %v5907_v8, %v5841_v18  ;;  %v6362_v51 = vld [vmem:[%s7622_s6 + $0x20] sm:$0xff]  }
 0x785   :  { %v6342_v18 = vunpack.c.l.bf16 %v6362_v51  ;;  %v6330_v27 = vunpack.c.l.bf16 %v6359_v4  ;;  %v6326_v50 = vunpack.c.l.bf16 %v6325_v9 }
 0x786   :  { %v5918_v58 = vcombine.low %v5914_v33, %v5915_v34 }
 0x788   :  { %v5925_v36 = vrot.slane %v5918_v58, %v7834_v46  ;;  %v6274_v58 = vld [vmem:[%s7627_s19] ss:$0 sm:$0xff] }
 0x78a   :  { %v5932_v38 = vrot.slane %v5925_v36, %v7834_v46  ;;  %v6346_v46 = vunpack.c.l.bf16 %v6363_v52 }
 0x78c   :  { %v5934_v40 = vsub.f32 %v5606_v37, %v5932_v38  ;;  %7076 = vmatpush3.msra.mxu0 %v6346_v46 }
 0x78d   :  { %7077 = vmatprep.subr.mxu0 %v7461_v0 }
 0x78e   :  { %v5945_v25 = vrot.slane %v5934_v40, %v7842_v63  ;;  %v5941_v26 = vrot.slane %v5934_v40, %v7840_v62  ;;  %v6343_v63 = vunpack.c.h.bf16 %v6362_v51 }
 0x790   :  { %v5949_v30 = vadd.f32 %v5945_v25, %v5936_v35  ;;  %v5948_v48 = vadd.f32 %v5941_v26, %v5935_v42  ;;  %7078 = vmatpush3.msra.mxu0 %v6343_v63 }
 0x791   :  { %7079 = vmatprep.subr.mxu0 %v7461_v0 }
 0x792   :  { %v5951_v47 = vmax.f32 %v5949_v30, 0.0  ;;  %v5950_v2 = vmax.f32 %v5948_v48, 0.0  ;;  %7080 = vmatpush3.msra.mxu0 %v6342_v18 }
 0x793   :  { %7081 = vmatprep.subr.mxu0 %v7461_v0 }
 0x794   :  { %6273 = vmatprep.mubr.msk.f32.mxu1 %vm5851_vm1, %v5951_v47  ;;  %7082 = vmatpush3.msra.mxu0 %v6339_v3 }
 0x795   :  { %6070 = vmatmul.mubr.f32.vlgmr.msra.gmra.mxu1 %v5950_v2  ;;  %7083 = vmatprep.subr.mxu0 %v7461_v0 }
 0x796   :  { %7084 = vmatpush3.msra.mxu0 %v6338_v5 }
 0x797   :  { %7085 = vmatprep.subr.mxu0 %v7461_v0 }
 0x798   :  { %7086 = vmatpush3.msra.mxu0 %v6335_v28 }
 0x799   :  { %7087 = vmatprep.subr.mxu0 %v7461_v0 }
 0x79a   :  { %7088 = vmatpush3.msra.mxu0 %v6334_v56 }
 0x79b   :  { %7089 = vmatprep.subr.mxu0 %v7461_v0 }
 0x79c   :  { %7090 = vmatpush3.msra.mxu0 %v6331_v10 }
 0x79d   :  { %7091 = vmatprep.subr.mxu0 %v7461_v0 }
 0x79e   :  { %7092 = vmatpush3.msra.mxu0 %v6330_v27 }
 0x79f   :  { %7093 = vmatprep.subr.mxu0 %v7461_v0 }
 0x7a0   :  { %7094 = vmatpush3.msra.mxu0 %v6327_v61 }
 0x7a1   :  { %7095 = vmatprep.subr.mxu0 %v7461_v0 }
 0x7a2   :  { %7096 = vmatpush3.msra.mxu0 %v6326_v50 }
 0x855   :  { %v6071_v6 = vpop.f32.mrf.mxu1 }
 0x856   :  { %v6076_v14 = vsel %vm6075_vm2, %v6071_v6, 0.0 }
 0x857   :  { %v6077_v1 = vrot.slane %v6076_v14, 4  ;;  %v6073_v44 = vpop.f32.mrf.mxu1 }
 0x859   :  { %v6078_v43 = vadd.f32 %v6077_v1, %v6076_v14 }
 0x85b   :  { %v6079_v7 = vrot.slane %v6078_v43, 2 }
 0x85d   :  { %v6080_v57 = vadd.f32 %v6079_v7, %v6078_v43 }
 0x85f   :  { %v6081_v11 = vrot.slane %v6080_v57, 1 }
 0x861   :  { %v6082_v53 = vadd.f32 %v6081_v11, %v6080_v57 }
 0x863   :  { %v6083_v54 = vmul.f32 0.125, %v6082_v53 }
 0x865   :  { %v6084_v19 = vsub.f32 %v6071_v6, %v6083_v54 }
 0x867   :  { %v6085_v60 = vmul.f32 %v6084_v19, %v6084_v19 }
 0x869   :  { %v6086_v41 = vsel %vm6075_vm2, %v6085_v60, 0.0 }
 0x86a   :  { %v6087_v0 = vrot.slane %v6086_v41, 4 }
 0x86c   :  { %v6088_v15 = vadd.f32 %v6087_v0, %v6086_v41 }
 0x86e   :  { %v6089_v21 = vrot.slane %v6088_v15, 2 }
 0x870   :  { %v6090_v12 = vadd.f32 %v6089_v21, %v6088_v15 }
 0x872   :  { %v6091_v59 = vrot.slane %v6090_v12, 1 }
 0x874   :  { %v6092_v55 = vadd.f32 %v6091_v59, %v6090_v12 }
 0x876   :  { %v6093_v23 = vmul.f32 0.125, %v6092_v55 }
 0x878   :  { %v6094_v29 = vadd.f32 1e-05, %v6093_v23 }
 0x87a   :  { %7193 = vrsqrt.f32 %v6094_v29 }
 0x887   :  { %v7194_v32 = vpop.eup %7193 }
 0x888   :  { %v6096_v45 = vmul.f32 %v7194_v32, %v5976_v13 }
 0x88a   :  { %v6097_v20 = vmul.f32 %v6096_v45, %v6083_v54  ;;  %v6103_v16 = vrot.slane %v6096_v45, %v7840_v62 }
 0x88c   :  { %v6098_v31 = vsub.f32 %v5977_v49, %v6097_v20  ;;  %v6105_v8 = vmul.f32 %v6103_v16, %v6071_v6 }
 0x88e   :  { %v6110_v39 = vrot.slane %v6098_v31, %v7840_v62 }
 0x890   :  { %v6112_v33 = vadd.f32 %v6110_v39, %v6105_v8 }
 0x892   :  { %v6113_v34 = vmax.f32 %v6112_v33, 0.0 }
 0x894   :  { %7098 = vmatmul.mubr.msk.f32.vlgmr.msra.gmra.mxu0 %vm6075_vm2, %v6113_v34 }
 0x954   :  { %v6214_v36 = vpop.f32.mrf.mxu0 }
 0x955   :  { %v6215_v37 = vadd.f32 %v6274_v58, %v6214_v36 }
 0x956   :  { %v7099_v38 = vpop.f32.mrf.mxu0 }
 0x957   :  { %v6219_v40 = vsel %vm6218_vm3, %v6215_v37, -inf }
 0x958   :  { %6220 = vmax.xlane.f32.xlu0 %v6219_v40 }
 0x9e1   :  { %v6221_v35 = vpop.xlane.xlu0 %6220 }
 0x9e2   :  { %v6222_v25 = vsub.f32 %v6215_v37, %v6221_v35 }
 0x9e4   :  { %v6223_v42 = vmul.f32 1.442695, %v6222_v25 }
 0x9e6   :  { %7195 = vpow2.f32 %v6223_v42 }
 0x9f3   :  { %v7196_v26 = vpop.eup %7195 }
 0x9f4   :  { %v6225_v62 = vsel %vm6218_vm3, %v7196_v26, 0.0 }
 0x9f5   :  { %6226 = vadd.xlane.f32.xlu0 %v6225_v62 }
 0xa7e   :  { %v6227_v30 = vpop.xlane.xlu0 %6226 }
 0xa7f   :  { %7197 = vrcp.f32 %v6227_v30 }
 0xa8c   :  { %v7198_v48 = vpop.eup %7197 }
 0xa8d   :  { %v6229_v47 = vmul.f32 %v7198_v48, %v7196_v26 }
 0xa8f   :  { %6230 = vst.msk [vmem:[%s7632_s29] sm:$0xff] %vm6218_vm3, %v6229_v47 }
 0xa90   :  { %6235 = vsyncpa [#allocation3], 1 }
 0xa91   :  { %6236 = vsyncpa [#allocation5], 1 }
 0xa92   :  { %6237 = vsyncpa [#allocation8], 1 }
 0xa93   :  { %6238 = vsyncpa [#allocation11], 1 }
 0xa94   :  { %6239 = vsyncpa [#allocation14], 1 }
 0xa95   :  { %6240 = vsyncpa [#allocation17], 1 }

</bundles_post_ra>
